<compile_context>
chip_gen: v7x
topology: tpu7x:2x2x1
jax: 0.10.0
libtpu: 0.0.40
codegen_flags: <defaults>
</compile_context>

<pallas_src>
import jax
import jax.numpy as jnp
from jax.experimental import pallas as pl
from jax.experimental.pallas import tpu as pltpu

# ----------------------------- model config ---------------------------------
FEATURE_SIZE = 24          # vocabulary V
FIELD_SIZE = 8             # F
EMBEDDING_SIZE = 16        # E
DNN_HIDDEN = (32, 16)      # two SubLayers (H1, H2)
OUT_LANES = 128            # fused, lane-dense output slab width
BATCH = 256                # demo batch (grid of 2 tiles at tb=128)


def deepfm_kernel(idx_ref, val_ref, rexp_ref, lv_ref, tbl_ref, selw1_ref,
                  b1_ref, w2_ref, b2_ref, wf_ref, bf_ref, colmask_ref,
                  out_ref):
    """One batch tile.

    idx_ref/val_ref: (TB, F).  rexp_ref: (F, F*V) 0/1 field expansion.
    lv_ref: (1, F*V) per-block local index.  tbl_ref: (F*V, F*E + F)
    block-diagonal [embedding | bias] gather table.  selw1_ref: (F*E, E+H1)
    fused [field-sum selector | W1].  wf_ref: (OUT_LANES, 1) zero-padded final
    weight.  colmask_ref: (1, OUT_LANES) one-hot for the `output` lane.
    out_ref: (TB, OUT_LANES) slab = [fo | so | h2 | output | zeros].
    """
    F = val_ref.shape[1]
    H1 = b1_ref.shape[1]
    H2 = b2_ref.shape[1]
    FE = selw1_ref.shape[0]
    E = selw1_ref.shape[1] - H1
    TB = out_ref.shape[0]
    OUT = out_ref.shape[1]

    hp = jax.lax.Precision.HIGHEST   # keep full f32 fidelity through the MXU

    def dot(a, b):
        return jnp.dot(a, b, preferred_element_type=jnp.float32, precision=hp)

    # ---- in-kernel gather: scaled one-hot @ block-diag [emb | bias] (exact)
    rexp = rexp_ref[...]                              # (F, F*V) 0/1
    g = dot(idx_ref[...].astype(jnp.float32), rexp)   # idx broadcast over its field block
    valg = dot(val_ref[...], rexp)                    # feat_value broadcast likewise
    sone = jnp.where(g == lv_ref[...], valg, 0.0)     # (TB, F*V) scaled one-hot
    gath = dot(sone, tbl_ref[...])                    # (TB, F*E + F)
    emb_x = gath[:, :FE]                              # embeddings * feat_value (flat f*E+e)
    fo = gath[:, FE:FE + F]                           # FM first order (TB, F)

    # ---- FM second order + first deep layer: one MXU pass over emb_x
    selw1 = selw1_ref[...]
    sw = dot(emb_x, selw1)                            # (TB, E + H1)
    sum_e = sw[:, :E]
    h1 = jnp.maximum(sw[:, E:E + H1] + b1_ref[...], 0.0)
    sum_sq = dot(emb_x * emb_x, selw1[:, :E])
    so = 0.5 * (sum_e * sum_e - sum_sq)               # (TB, E)

    # ---- second deep layer (dropout = identity in eval mode)
    h2 = jnp.maximum(dot(h1, w2_ref[...]) + b2_ref[...], 0.0)   # (TB, H2)

    # ---- lane-dense slab [fo | so | h2 | zeros] built in registers
    zpad = jnp.zeros((TB, OUT - (F + E + H2)), jnp.float32)
    slab = jnp.concatenate([fo, so, h2, zpad], axis=1)          # (TB, OUT)

    # ---- final linear on the zero-padded concat, placed into its lane;
    #      single full-width unmasked store, no partial writes / readback.
    out = dot(slab, wf_ref[...]) + bf_ref[...]                  # (TB, 1)
    out_ref[...] = slab + out * colmask_ref[...]


def _round_up(x, m):
    return ((x + m - 1) // m) * m


def deepfm_forward(feat_index, feat_value, params, tile_b=512):
    """Returns (output, first_order, second_order, deep_y) like the torch module.

    tile_b: batch tile (sweep 512-1024 on v5e/v6e; on v7x size against the
    64 MiB-per-TC VMEM and keep >= 2 grid steps so both TensorCores get work).
    """
    B, F = feat_index.shape
    V, E = params["feature_embedding"].shape
    H1 = params["b1"].shape[1]
    H2 = params["b2"].shape[1]
    FE, FV = F * E, F * V
    CONCAT = F + E + H2
    assert CONCAT + 1 <= OUT_LANES

    feat_index = feat_index.astype(jnp.int32)
    feat_value = feat_value.astype(jnp.float32)

    # ---- tiny constant MXU operands (VMEM-resident across the whole grid)
    rexp = jnp.repeat(jnp.eye(F, dtype=jnp.float32), V, axis=1)           # (F, F*V)
    lv = jnp.tile(jnp.arange(V, dtype=jnp.float32), (F,))[None, :]        # (1, F*V)
    emb = params["feature_embedding"].astype(jnp.float32)
    bias = params["feature_bias"].astype(jnp.float32)
    bd_emb = jax.scipy.linalg.block_diag(*([emb] * F))                    # (F*V, F*E)
    bd_bias = jax.scipy.linalg.block_diag(*([bias] * F))                  # (F*V, F)
    tbl = jnp.concatenate([bd_emb, bd_bias], axis=1)                      # (F*V, F*E + F)
    sel = jnp.tile(jnp.eye(E, dtype=jnp.float32), (F, 1))                 # (F*E, E)
    selw1 = jnp.concatenate([sel, params["w1"]], axis=1)                  # (F*E, E + H1)
    wf_pad = jnp.zeros((OUT_LANES, 1), jnp.float32).at[:CONCAT].set(params["wf"])
    colmask = (jnp.arange(OUT_LANES) == CONCAT).astype(jnp.float32)[None, :]

    # ---- batch tiling: multiple of 8, >= 2 grid steps when possible (v7x has
    #      2 TCs); only the two tiny (B, F) operands ever get padded (~64 B/row).
    tb = min(_round_up(tile_b, 8), _round_up(B, 8))
    if B >= 16 and pl.cdiv(B, tb) < 2:
        tb = _round_up(pl.cdiv(B, 2), 8)
    nb = pl.cdiv(B, tb)
    Bp = nb * tb
    if Bp != B:
        pad = ((0, Bp - B), (0, 0))
        feat_index = jnp.pad(feat_index, pad)
        feat_value = jnp.pad(feat_value, pad)

    tile = lambda i: (i, 0)       # batch-tiled operands / output
    const = lambda i: (0, 0)      # weights: resident in VMEM across the grid

    slab = pl.pallas_call(
        deepfm_kernel,
        out_shape=jax.ShapeDtypeStruct((Bp, OUT_LANES), jnp.float32),
        grid=(nb,),
        in_specs=[
            pl.BlockSpec((tb, F), tile),            # feat_index (int32)
            pl.BlockSpec((tb, F), tile),            # feat_value
            pl.BlockSpec((F, FV), const),           # field expansion (0/1)
            pl.BlockSpec((1, FV), const),           # per-block local index
            pl.BlockSpec((FV, FE + F), const),      # block-diag [emb | bias]
            pl.BlockSpec((FE, E + H1), const),      # fused [sel | w1]
            pl.BlockSpec((1, H1), const),           # b1
            pl.BlockSpec((H1, H2), const),          # w2
            pl.BlockSpec((1, H2), const),           # b2
            pl.BlockSpec((OUT_LANES, 1), const),    # wf (zero-padded to 128)
            pl.BlockSpec((1, 1), const),            # bf
            pl.BlockSpec((1, OUT_LANES), const),    # output-lane one-hot
        ],
        out_specs=pl.BlockSpec((tb, OUT_LANES), tile),
        compiler_params=pltpu.CompilerParams(
            dimension_semantics=("parallel",),
            vmem_limit_bytes=32 * 1024 * 1024),
    )(feat_index, feat_value, rexp, lv, tbl, selw1,
      params["b1"], params["w2"], params["b2"], wf_pad, params["bf"], colmask)

    slab = slab[:B]
    # Module contract: return all four tensors.  (If only `output` is consumed
    # downstream, read the slab directly instead of materializing the slices.)
    first_order = slab[:, :F]
    second_order = slab[:, F:F + E]
    deep_y = slab[:, F + E:CONCAT]
    output = slab[:, CONCAT:CONCAT + 1]
    return output, first_order, second_order, deep_y


def init_params(key):
    """Deterministic init mirroring the PyTorch module's __init__ shapes."""
    F, E = FIELD_SIZE, EMBEDDING_SIZE
    H1, H2 = DNN_HIDDEN
    ks = jax.random.split(key, 6)

    p = 1.0 / jnp.sqrt(FEATURE_SIZE + E)
    feature_embedding = jax.random.uniform(ks[0], (FEATURE_SIZE, E), jnp.float32, -p, p)
    p = 1.0 / jnp.sqrt(FEATURE_SIZE + 1.0)
    feature_bias = jax.random.uniform(ks[1], (FEATURE_SIZE, 1), jnp.float32, -p, p)

    in1 = F * E
    p = 1.0 / jnp.sqrt(in1 + H1)
    w1 = jax.random.uniform(ks[2], (H1, in1), jnp.float32, -p, p)   # torch (out, in)
    b1 = jnp.zeros((1, H1), jnp.float32)

    p = 1.0 / jnp.sqrt(H1 + H2)
    w2 = jax.random.uniform(ks[3], (H2, H1), jnp.float32, -p, p)
    b2 = jnp.zeros((1, H2), jnp.float32)

    concat_in = F + E + H2
    p = 1.0 / jnp.sqrt(concat_in + 1.0)
    wf = jax.random.uniform(ks[4], (1, concat_in), jnp.float32, -p, p)
    bf = jnp.zeros((1, 1), jnp.float32)

    return {
        "feature_embedding": feature_embedding,
        "feature_bias": feature_bias,
        "w1": w1.T,          # pre-transposed -> (in, out) for x @ W
        "b1": b1,
        "w2": w2.T,
        "b2": b2,
        "wf": wf.T,          # (concat_in, 1)
        "bf": bf,
    }


def deepfm_reference(feat_index, feat_value, params):
    """Pure-JAX reference replicating the PyTorch forward (eval mode)."""
    B, F = feat_index.shape
    emb = params["feature_embedding"][feat_index] * feat_value[:, :, None]
    fo = jnp.sum(params["feature_bias"][feat_index] * feat_value[:, :, None], axis=-1)
    so = 0.5 * (jnp.sum(emb, axis=1) ** 2 - jnp.sum(emb ** 2, axis=1))
    deep = emb.reshape(B, -1)
    deep = jnp.maximum(deep @ params["w1"] + params["b1"], 0.0)
    deep = jnp.maximum(deep @ params["w2"] + params["b2"], 0.0)
    concat = jnp.concatenate([fo, so, deep], axis=1)
    out = concat @ params["wf"] + params["bf"]
    return out, fo, so, deep


if __name__ == "__main__":
    key = jax.random.PRNGKey(0)
    k_params, k_idx, k_val = jax.random.split(key, 3)

    params = init_params(k_params)
    feat_index = jax.random.randint(k_idx, (BATCH, FIELD_SIZE), 0, FEATURE_SIZE,
                                    dtype=jnp.int32)
    feat_value = jax.random.uniform(k_val, (BATCH, FIELD_SIZE), dtype=jnp.float32)

    fwd = jax.jit(deepfm_forward)
    outs = jax.block_until_ready(fwd(feat_index, feat_value, params))

    refs = deepfm_reference(feat_index, feat_value, params)
    names = ("output", "first_order", "second_order", "deep_y")
    for name, got, ref in zip(names, outs, refs):
        assert got.shape == ref.shape and got.dtype == ref.dtype, name
        assert jnp.allclose(got, ref, atol=1e-3, rtol=1e-3), name

    print("KERNEL_OK")
</pallas_src>

<mosaic_0001>
module attributes {stable_mosaic.version = 11 : i64} {
  func.func @deepfm_kernel(%arg0: i32, %arg1: memref<128x8xi32, #tpu.memory_space<vmem>>, %arg2: memref<128x8xf32, #tpu.memory_space<vmem>>, %arg3: memref<8x192xf32, #tpu.memory_space<vmem>>, %arg4: memref<1x192xf32, #tpu.memory_space<vmem>>, %arg5: memref<192x136xf32, #tpu.memory_space<vmem>>, %arg6: memref<128x48xf32, #tpu.memory_space<vmem>>, %arg7: memref<1x32xf32, #tpu.memory_space<vmem>>, %arg8: memref<32x16xf32, #tpu.memory_space<vmem>>, %arg9: memref<1x16xf32, #tpu.memory_space<vmem>>, %arg10: memref<128x1xf32, #tpu.memory_space<vmem>>, %arg11: memref<1x1xf32, #tpu.memory_space<vmem>>, %arg12: memref<1x128xf32, #tpu.memory_space<vmem>>, %arg13: memref<128x128xf32, #tpu.memory_space<vmem>>) attributes {dimension_semantics = [#tpu.dimension_semantics<parallel>], iteration_bounds = array<i64: 2>, scalar_prefetch = 0 : i64, scratch_operands = 0 : i64, tpu.core_type = #tpu.core_type<tc>, window_params = [{transform_indices = @transform_0, window_bounds = array<i64: 128, 8>}, {transform_indices = @transform_1, window_bounds = array<i64: 128, 8>}, {pipeline_mode = #tpu.pipeline_mode<synchronous>, transform_indices = @transform_2, window_bounds = array<i64: 8, 192>}, {pipeline_mode = #tpu.pipeline_mode<synchronous>, transform_indices = @transform_3, window_bounds = array<i64: 1, 192>}, {pipeline_mode = #tpu.pipeline_mode<synchronous>, transform_indices = @transform_4, window_bounds = array<i64: 192, 136>}, {pipeline_mode = #tpu.pipeline_mode<synchronous>, transform_indices = @transform_5, window_bounds = array<i64: 128, 48>}, {pipeline_mode = #tpu.pipeline_mode<synchronous>, transform_indices = @transform_6, window_bounds = array<i64: 1, 32>}, {pipeline_mode = #tpu.pipeline_mode<synchronous>, transform_indices = @transform_7, window_bounds = array<i64: 32, 16>}, {pipeline_mode = #tpu.pipeline_mode<synchronous>, transform_indices = @transform_8, window_bounds = array<i64: 1, 16>}, {pipeline_mode = #tpu.pipeline_mode<synchronous>, transform_indices = @transform_9, window_bounds = array<i64: 128, 1>}, {pipeline_mode = #tpu.pipeline_mode<synchronous>, transform_indices = @transform_10, window_bounds = array<i64: 1, 1>}, {pipeline_mode = #tpu.pipeline_mode<synchronous>, transform_indices = @transform_11, window_bounds = array<i64: 1, 128>}, {transform_indices = @transform_12, window_bounds = array<i64: 128, 128>}]} {
    %c0 = arith.constant 0 : index
    %c0_0 = arith.constant 0 : index
    %0 = vector.load %arg3[%c0, %c0_0] : memref<8x192xf32, #tpu.memory_space<vmem>>, vector<8x192xf32>
    %c0_1 = arith.constant 0 : index
    %c0_2 = arith.constant 0 : index
    %1 = vector.load %arg1[%c0_1, %c0_2] : memref<128x8xi32, #tpu.memory_space<vmem>>, vector<128x8xi32>
    %2 = arith.sitofp %1 : vector<128x8xi32> to vector<128x8xf32>
    %cst = arith.constant dense<0.000000e+00> : vector<128x192xf32>
    %3 = tpu.matmul %2, %0, %cst {dimension_numbers = #tpu.dot_dimension_numbers<[1], [0], [0], [1], [0, 0, 1, 1], [], []>, precision = #tpu.contract_precision<fp32>} : vector<128x8xf32>, vector<8x192xf32>, vector<128x192xf32> -> vector<128x192xf32>
    %c0_3 = arith.constant 0 : index
    %c0_4 = arith.constant 0 : index
    %4 = vector.load %arg2[%c0_3, %c0_4] : memref<128x8xf32, #tpu.memory_space<vmem>>, vector<128x8xf32>
    %cst_5 = arith.constant dense<0.000000e+00> : vector<128x192xf32>
    %5 = tpu.matmul %4, %0, %cst_5 {dimension_numbers = #tpu.dot_dimension_numbers<[1], [0], [0], [1], [0, 0, 1, 1], [], []>, precision = #tpu.contract_precision<fp32>} : vector<128x8xf32>, vector<8x192xf32>, vector<128x192xf32> -> vector<128x192xf32>
    %c0_6 = arith.constant 0 : index
    %c0_7 = arith.constant 0 : index
    %6 = vector.load %arg4[%c0_6, %c0_7] : memref<1x192xf32, #tpu.memory_space<vmem>>, vector<1x192xf32>
    %7 = vector.broadcast %6 : vector<1x192xf32> to vector<128x192xf32>
    %8 = arith.cmpf oeq, %3, %7 : vector<128x192xf32>
    %cst_8 = arith.constant 0.000000e+00 : f32
    %9 = vector.broadcast %cst_8 : f32 to vector<128x192xf32>
    %10 = arith.select %8, %5, %9 : vector<128x192xi1>, vector<128x192xf32>
    %c0_9 = arith.constant 0 : index
    %c0_10 = arith.constant 0 : index
    %11 = vector.load %arg5[%c0_9, %c0_10] : memref<192x136xf32, #tpu.memory_space<vmem>>, vector<192x136xf32>
    %cst_11 = arith.constant dense<0.000000e+00> : vector<128x136xf32>
    %12 = tpu.matmul %10, %11, %cst_11 {dimension_numbers = #tpu.dot_dimension_numbers<[1], [0], [0], [1], [0, 0, 1, 1], [], []>, precision = #tpu.contract_precision<fp32>} : vector<128x192xf32>, vector<192x136xf32>, vector<128x136xf32> -> vector<128x136xf32>
    %13 = vector.extract_strided_slice %12 {offsets = [0, 0], sizes = [128, 128], strides = [1, 1]} : vector<128x136xf32> to vector<128x128xf32>
    %14 = vector.extract_strided_slice %12 {offsets = [0, 128], sizes = [128, 8], strides = [1, 1]} : vector<128x136xf32> to vector<128x8xf32>
    %c0_12 = arith.constant 0 : index
    %c0_13 = arith.constant 0 : index
    %15 = vector.load %arg6[%c0_12, %c0_13] : memref<128x48xf32, #tpu.memory_space<vmem>>, vector<128x48xf32>
    %cst_14 = arith.constant dense<0.000000e+00> : vector<128x48xf32>
    %16 = tpu.matmul %13, %15, %cst_14 {dimension_numbers = #tpu.dot_dimension_numbers<[1], [0], [0], [1], [0, 0, 1, 1], [], []>, precision = #tpu.contract_precision<fp32>} : vector<128x128xf32>, vector<128x48xf32>, vector<128x48xf32> -> vector<128x48xf32>
    %17 = vector.extract_strided_slice %16 {offsets = [0, 0], sizes = [128, 16], strides = [1, 1]} : vector<128x48xf32> to vector<128x16xf32>
    %18 = vector.extract_strided_slice %16 {offsets = [0, 16], sizes = [128, 32], strides = [1, 1]} : vector<128x48xf32> to vector<128x32xf32>
    %c0_15 = arith.constant 0 : index
    %c0_16 = arith.constant 0 : index
    %19 = vector.load %arg7[%c0_15, %c0_16] : memref<1x32xf32, #tpu.memory_space<vmem>>, vector<1x32xf32>
    %20 = vector.broadcast %19 : vector<1x32xf32> to vector<128x32xf32>
    %21 = arith.addf %18, %20 : vector<128x32xf32>
    %cst_17 = arith.constant 0.000000e+00 : f32
    %22 = vector.broadcast %cst_17 : f32 to vector<128x32xf32>
    %23 = arith.maximumf %21, %22 : vector<128x32xf32>
    %24 = arith.mulf %13, %13 : vector<128x128xf32>
    %25 = vector.extract_strided_slice %15 {offsets = [0, 0], sizes = [128, 16], strides = [1, 1]} : vector<128x48xf32> to vector<128x16xf32>
    %cst_18 = arith.constant dense<0.000000e+00> : vector<128x16xf32>
    %26 = tpu.matmul %24, %25, %cst_18 {dimension_numbers = #tpu.dot_dimension_numbers<[1], [0], [0], [1], [0, 0, 1, 1], [], []>, precision = #tpu.contract_precision<fp32>} : vector<128x128xf32>, vector<128x16xf32>, vector<128x16xf32> -> vector<128x16xf32>
    %27 = arith.mulf %17, %17 : vector<128x16xf32>
    %28 = arith.subf %27, %26 : vector<128x16xf32>
    %cst_19 = arith.constant 5.000000e-01 : f32
    %29 = vector.broadcast %cst_19 : f32 to vector<128x16xf32>
    %30 = arith.mulf %29, %28 : vector<128x16xf32>
    %c0_20 = arith.constant 0 : index
    %c0_21 = arith.constant 0 : index
    %31 = vector.load %arg8[%c0_20, %c0_21] : memref<32x16xf32, #tpu.memory_space<vmem>>, vector<32x16xf32>
    %cst_22 = arith.constant dense<0.000000e+00> : vector<128x16xf32>
    %32 = tpu.matmul %23, %31, %cst_22 {dimension_numbers = #tpu.dot_dimension_numbers<[1], [0], [0], [1], [0, 0, 1, 1], [], []>, precision = #tpu.contract_precision<fp32>} : vector<128x32xf32>, vector<32x16xf32>, vector<128x16xf32> -> vector<128x16xf32>
    %c0_23 = arith.constant 0 : index
    %c0_24 = arith.constant 0 : index
    %33 = vector.load %arg9[%c0_23, %c0_24] : memref<1x16xf32, #tpu.memory_space<vmem>>, vector<1x16xf32>
    %34 = vector.broadcast %33 : vector<1x16xf32> to vector<128x16xf32>
    %35 = arith.addf %32, %34 : vector<128x16xf32>
    %cst_25 = arith.constant 0.000000e+00 : f32
    %36 = vector.broadcast %cst_25 : f32 to vector<128x16xf32>
    %37 = arith.maximumf %35, %36 : vector<128x16xf32>
    %cst_26 = arith.constant 0.000000e+00 : f32
    %38 = vector.broadcast %cst_26 : f32 to vector<128x88xf32>
    %39 = tpu.concatenate %14, %30, %37, %38 in 1 : vector<128x8xf32>, vector<128x16xf32>, vector<128x16xf32>, vector<128x88xf32> -> vector<128x128xf32>
    %c0_27 = arith.constant 0 : index
    %c0_28 = arith.constant 0 : index
    %40 = vector.load %arg10[%c0_27, %c0_28] : memref<128x1xf32, #tpu.memory_space<vmem>>, vector<128x1xf32>
    %cst_29 = arith.constant dense<0.000000e+00> : vector<128x1xf32>
    %41 = tpu.matmul %39, %40, %cst_29 {dimension_numbers = #tpu.dot_dimension_numbers<[1], [0], [0], [1], [0, 0, 1, 1], [], []>, precision = #tpu.contract_precision<fp32>} : vector<128x128xf32>, vector<128x1xf32>, vector<128x1xf32> -> vector<128x1xf32>
    %c0_30 = arith.constant 0 : index
    %c0_31 = arith.constant 0 : index
    %42 = vector.load %arg11[%c0_30, %c0_31] : memref<1x1xf32, #tpu.memory_space<vmem>>, vector<1x1xf32>
    %43 = vector.broadcast %42 : vector<1x1xf32> to vector<128x1xf32>
    %44 = arith.addf %41, %43 : vector<128x1xf32>
    %c0_32 = arith.constant 0 : index
    %c0_33 = arith.constant 0 : index
    %45 = vector.load %arg12[%c0_32, %c0_33] : memref<1x128xf32, #tpu.memory_space<vmem>>, vector<1x128xf32>
    %46 = vector.broadcast %44 : vector<128x1xf32> to vector<128x128xf32>
    %47 = vector.broadcast %45 : vector<1x128xf32> to vector<128x128xf32>
    %48 = arith.mulf %46, %47 : vector<128x128xf32>
    %49 = arith.addf %39, %48 : vector<128x128xf32>
    %c0_34 = arith.constant 0 : index
    %c0_35 = arith.constant 0 : index
    %50 = vector.load %arg13[%c0_34, %c0_35] : memref<128x128xf32, #tpu.memory_space<vmem>>, vector<128x128xf32>
    tpu.vector_store %arg13[%c0_34, %c0_35], %49 {strides = array<i32>} : memref<128x128xf32, #tpu.memory_space<vmem>>, vector<128x128xf32>,
    return
  }
  func.func @transform_0(%arg0: i32) -> (i32, i32) {
    %c0_i32 = arith.constant 0 : i32
    %c0_i32_0 = arith.constant 0 : i32
    return %arg0, %c0_i32 : i32, i32
  }
  func.func @transform_1(%arg0: i32) -> (i32, i32) {
    %c0_i32 = arith.constant 0 : i32
    %c0_i32_0 = arith.constant 0 : i32
    return %arg0, %c0_i32 : i32, i32
  }
  func.func @transform_2(%arg0: i32) -> (i32, i32) {
    %c0_i32 = arith.constant 0 : i32
    %c0_i32_0 = arith.constant 0 : i32
    %c0_i32_1 = arith.constant 0 : i32
    return %c0_i32, %c0_i32_0 : i32, i32
  }
  func.func @transform_3(%arg0: i32) -> (i32, i32) {
    %c0_i32 = arith.constant 0 : i32
    %c0_i32_0 = arith.constant 0 : i32
    %c0_i32_1 = arith.constant 0 : i32
    return %c0_i32, %c0_i32_0 : i32, i32
  }
  func.func @transform_4(%arg0: i32) -> (i32, i32) {
    %c0_i32 = arith.constant 0 : i32
    %c0_i32_0 = arith.constant 0 : i32
    %c0_i32_1 = arith.constant 0 : i32
    return %c0_i32, %c0_i32_0 : i32, i32
  }
  func.func @transform_5(%arg0: i32) -> (i32, i32) {
    %c0_i32 = arith.constant 0 : i32
    %c0_i32_0 = arith.constant 0 : i32
    %c0_i32_1 = arith.constant 0 : i32
    return %c0_i32, %c0_i32_0 : i32, i32
  }
  func.func @transform_6(%arg0: i32) -> (i32, i32) {
    %c0_i32 = arith.constant 0 : i32
    %c0_i32_0 = arith.constant 0 : i32
    %c0_i32_1 = arith.constant 0 : i32
    return %c0_i32, %c0_i32_0 : i32, i32
  }
  func.func @transform_7(%arg0: i32) -> (i32, i32) {
    %c0_i32 = arith.constant 0 : i32
    %c0_i32_0 = arith.constant 0 : i32
    %c0_i32_1 = arith.constant 0 : i32
    return %c0_i32, %c0_i32_0 : i32, i32
  }
  func.func @transform_8(%arg0: i32) -> (i32, i32) {
    %c0_i32 = arith.constant 0 : i32
    %c0_i32_0 = arith.constant 0 : i32
    %c0_i32_1 = arith.constant 0 : i32
    return %c0_i32, %c0_i32_0 : i32, i32
  }
  func.func @transform_9(%arg0: i32) -> (i32, i32) {
    %c0_i32 = arith.constant 0 : i32
    %c0_i32_0 = arith.constant 0 : i32
    %c0_i32_1 = arith.constant 0 : i32
    return %c0_i32, %c0_i32_0 : i32, i32
  }
  func.func @transform_10(%arg0: i32) -> (i32, i32) {
    %c0_i32 = arith.constant 0 : i32
    %c0_i32_0 = arith.constant 0 : i32
    %c0_i32_1 = arith.constant 0 : i32
    return %c0_i32, %c0_i32_0 : i32, i32
  }
  func.func @transform_11(%arg0: i32) -> (i32, i32) {
    %c0_i32 = arith.constant 0 : i32
    %c0_i32_0 = arith.constant 0 : i32
    %c0_i32_1 = arith.constant 0 : i32
    return %c0_i32, %c0_i32_0 : i32, i32
  }
  func.func @transform_12(%arg0: i32) -> (i32, i32) {
    %c0_i32 = arith.constant 0 : i32
    %c0_i32_0 = arith.constant 0 : i32
    return %arg0, %c0_i32 : i32, i32
  }
}

</mosaic_0001>

<bundles_post_ra>
// kernel: tile.14
= control target key start
LH: loop header
LB: loop body
LE: loop exit
PB: predicated region body
PF: predicated region fallthrough
CT: control target
= control target key end

     0   :  { %vm9_vm0 = vcmask 64512   ;;  %s83_s12 = smov 120   ;;  %s84_s13 = smov 72   ;;  %vm3_vm1 = vcmask 195584   ;;  %vm13_vm2 = vcmask 130048   ;;  %vm16_vm3 = vcmask 1048512   ;;  %s133_s0 = inlined_call_operand.vmem [shape: f32[8,24], index: 0, kind: input, shape index: {}]   ;;  %s134_s1 = inlined_call_operand.vmem [shape: f32[1,192], index: 1, kind: output, shape index: {}]  }
   0x1   :  { %v67_v0 = vld [vmem:[%s133_s0 + $0x5] sm:$0x1]   ;;  %v70_v3 = vld [vmem:[%s133_s0 + $0x3] sm:$0x1]   ;;  %v69_v4 = vld [vmem:[%s133_s0 + $0x4] sm:$0x1]  }
   0x2   :  { %v68_v1 = vld [vmem:[%s133_s0 + $0x5] sm:$0x1]   ;;  %26 = vrot.lane.b32.xlu1 %v70_v3, %s84_s13  ;;  %v71_v5 = vld [vmem:[%s133_s0 + $0x2] sm:$0x1]   ;;  %v2_v6 = vld [vmem:[%s133_s0] sm:$0x1]  }
   0x3   :  { %v10_v2 = vsel %vm9_vm0, %v68_v1, %v67_v0  ;;  %4 = vst.msk [vmem:[#allocation0] sm:$0x1] %vm3_vm1, %v2_v6   ;;  %s85_s20 = smov 96   ;;  %s86_s21 = smov 48   ;;  %v72_v7 = vld [vmem:[%s133_s0 + $0x7] sm:$0x1]  }
   0x4   :  { %11 = vrot.lane.b32.xlu0 %v10_v2, %s83_s12  ;;  %v73_v8 = vld [vmem:[%s133_s0 + $0x1] sm:$0x1]   ;;  %s87_s26 = smov 40   ;;  %s88_s27 = smov 24   ;;  %v74_v9 = vld [vmem:[%s133_s0 + $0x6] sm:$0x1]  }
   0x5   :  { %s89_s0 = smov 16   ;;  %vm22_vm4 = vcmask 982784   ;;  %vm28_vm5 = vcmask 785984   ;;  %vm34_vm6 = vcmask 589184   ;;  %vm40_vm7 = vcmask 523584  }
   0x6   :  { %32 = vrot.lane.b32.xlu1 %v71_v5, %s86_s21  ;;  %vm47_vm8 = vcmask 392384   ;;  %vm53_vm9 = vcmask 326784  }
   0x8   :  { %20 = vrot.lane.b32.xlu0 %v69_v4, %s85_s20 }
   0xa   :  { %45 = vrot.lane.b32.xlu1 %v73_v8, %s88_s27 }
   0xc   :  { %38 = vrot.lane.b32.xlu0 %v72_v7, %s87_s26 }
  0x10   :  { %51 = vrot.lane.b32.xlu0 %v74_v9, %s89_s0 }
  0x74   :  { %v27_v11 = vpop.permute.xlu1 %26  }
  0x76   :  { %v12_v10 = vpop.permute.xlu0 %11  }
  0x77   :  { %15 = vst.msk [vmem:[#allocation0 + $0x8] sm:$0x1] %vm13_vm2, %v12_v10  }
  0x78   :  { %17 = vst.msk [vmem:[#allocation0] sm:$0x1] %vm16_vm3, %v12_v10   ;;  %v33_v13 = vpop.permute.xlu1 %32  }
  0x7a   :  { %v21_v12 = vpop.permute.xlu0 %20  }
  0x7b   :  { %23 = vst.msk [vmem:[#allocation0] sm:$0x1] %vm22_vm4, %v21_v12  }
  0x7c   :  { %29 = vst.msk [vmem:[#allocation0] sm:$0x1] %vm28_vm5, %v27_v11   ;;  %v46_v15 = vpop.permute.xlu1 %45  }
  0x7d   :  { %35 = vst.msk [vmem:[#allocation0] sm:$0x1] %vm34_vm6, %v33_v13  }
  0x7e   :  { %v39_v14 = vpop.permute.xlu0 %38   ;;  %48 = vst.msk [vmem:[#allocation0] sm:$0x1] %vm47_vm8, %v46_v15  }
  0x7f   :  { %42 = vst.msk [vmem:[#allocation0 + $0x8] sm:$0x1] %vm40_vm7, %v39_v14  }
  0x82   :  { %v52_v16 = vpop.permute.xlu0 %51  }
  0x83   :  { %55 = vst.msk [vmem:[#allocation0 + $0x8] sm:$0x1] %vm53_vm9, %v52_v16  }
  0x85   :  { %v59_v17 = vld [vmem:[#allocation0] sm:$0x1] }
  0x86   :  { %61 = vst [vmem:[%s134_s1] sm:$0x1] %v59_v17 }
  0x8a   :  { %v63_v18 = vld [vmem:[#allocation0 + $0x8] sm:$0x1] }
  0x8b   :  { %75 = vst [vmem:[%s134_s1 + $0x1] sm:$0x1] %v63_v18 }

// kernel: tile.19
= control target key start
LH: loop header
LB: loop body
LE: loop exit
PB: predicated region body
PF: predicated region fallthrough
CT: control target
= control target key end

     0   :  { %vm4_vm0 = vcmask 1047556   ;;  %s209_s14 = smov 96   ;;  %s210_s19 = smov 112   ;;  %vm6_vm1 = vcmask 130048   ;;  %vm25_vm2 = vcmask 1048448   ;;  %vm46_vm3 = vcmask 917248   ;;  %s388_s0 = inlined_call_operand.vmem [shape: f32[8,16,16], index: 0, kind: input, shape index: {}]   ;;  %s389_s1 = inlined_call_operand.vmem [shape: f32[128,16], index: 1, kind: output, shape index: {}]  }
   0x1   :  { %v172_v0 = vld [vmem:[%s388_s0 + $0x6] ss:$8 sm:$0xf]   ;;  %v167_v3 = vld [vmem:[%s388_s0 + $0x7] ss:$8 sm:$0xf]  }
   0x2   :  { %v173_v1 = vld [vmem:[%s388_s0 + $0x6] ss:$8 sm:$0xf0]   ;;  %v168_v4 = vld [vmem:[%s388_s0 + $0x7] ss:$8 sm:$0xf0]  }
   0x3   :  { %v43_v2 = vsel %vm4_vm0, %v173_v1, %v172_v0  ;;  %v22_v5 = vsel %vm4_vm0, %v168_v4, %v167_v3  ;;  %v174_v6 = vld [vmem:[%s388_s0 + $0x46] ss:$8 sm:$0xf]   ;;  %v169_v9 = vld [vmem:[%s388_s0 + $0x47] ss:$8 sm:$0xf]  }
   0x4   :  { %44 = vrot.lane.b32.xlu1 %v43_v2, %s209_s14  ;;  %v175_v7 = vld [vmem:[%s388_s0 + $0x46] ss:$8 sm:$0xf0]   ;;  %23 = vrot.lane.b32.xlu0 %v22_v5, %s210_s19  ;;  %v170_v10 = vld [vmem:[%s388_s0 + $0x47] ss:$8 sm:$0xf0]  }
   0x5   :  { %v53_v8 = vsel %vm4_vm0, %v175_v7, %v174_v6  ;;  %v32_v11 = vsel %vm4_vm0, %v170_v10, %v169_v9  ;;  %v179_v12 = vld [vmem:[%s388_s0 + $0x45] ss:$8 sm:$0xf]   ;;  %v184_v18 = vld [vmem:[%s388_s0 + $0x44] ss:$8 sm:$0xf]  }
   0x6   :  { %v180_v13 = vld [vmem:[%s388_s0 + $0x45] ss:$8 sm:$0xf0]   ;;  %v185_v19 = vld [vmem:[%s388_s0 + $0x44] ss:$8 sm:$0xf0]  }
   0x7   :  { %v177_v14 = vld [vmem:[%s388_s0 + $0x5] ss:$8 sm:$0xf]   ;;  %v74_v16 = vsel %vm4_vm0, %v180_v13, %v179_v12  ;;  %v182_v20 = vld [vmem:[%s388_s0 + $0x4] ss:$8 sm:$0xf]   ;;  %v95_v22 = vsel %vm4_vm0, %v185_v19, %v184_v18 }
   0x8   :  { %54 = vrot.lane.b32.xlu1 %v53_v8, %s209_s14  ;;  %v178_v15 = vld [vmem:[%s388_s0 + $0x5] ss:$8 sm:$0xf0]   ;;  %33 = vrot.lane.b32.xlu0 %v32_v11, %s210_s19  ;;  %v183_v21 = vld [vmem:[%s388_s0 + $0x4] ss:$8 sm:$0xf0]  }
   0x9   :  { %v64_v17 = vsel %vm4_vm0, %v178_v15, %v177_v14  ;;  %s211_s11 = smov 80   ;;  %v85_v23 = vsel %vm4_vm0, %v183_v21, %v182_v20  ;;  %v189_v24 = vld [vmem:[%s388_s0 + $0x43] ss:$8 sm:$0xf]   ;;  %s212_s20 = smov 64   ;;  %vm67_vm4 = vcmask 786048  }
   0xa   :  { %v190_v25 = vld [vmem:[%s388_s0 + $0x43] ss:$8 sm:$0xf0]   ;;  %v194_v28 = vld [vmem:[%s388_s0 + $0x42] ss:$8 sm:$0xf]  }
   0xb   :  { %v187_v26 = vld [vmem:[%s388_s0 + $0x3] ss:$8 sm:$0xf]   ;;  %v195_v29 = vld [vmem:[%s388_s0 + $0x42] ss:$8 sm:$0xf0]   ;;  %v116_v30 = vsel %vm4_vm0, %v190_v25, %v189_v24 }
   0xc   :  { %75 = vrot.lane.b32.xlu1 %v74_v16, %s211_s11  ;;  %65 = vrot.lane.b32.xlu0 %v64_v17, %s211_s11  ;;  %v188_v27 = vld [vmem:[%s388_s0 + $0x3] ss:$8 sm:$0xf0]   ;;  %v192_v31 = vld [vmem:[%s388_s0 + $0x2] ss:$8 sm:$0xf]   ;;  %v137_v40 = vsel %vm4_vm0, %v195_v29, %v194_v28 }
   0xd   :  { %v2_v32 = vld [vmem:[%s388_s0] ss:$8 sm:$0xf]   ;;  %v106_v33 = vsel %vm4_vm0, %v188_v27, %v187_v26  ;;  %v193_v36 = vld [vmem:[%s388_s0 + $0x2] ss:$8 sm:$0xf0]  }
   0xe   :  { %v3_v34 = vld [vmem:[%s388_s0] ss:$8 sm:$0xf0]   ;;  %s213_s8 = smov 48   ;;  %v127_v41 = vsel %vm4_vm0, %v193_v36, %v192_v31  ;;  %s215_s21 = smov 16   ;;  %vm88_vm5 = vcmask 654848  }
   0xf   :  { %v164_v35 = vld [vmem:[%s388_s0 + $0x40] ss:$8 sm:$0xf]   ;;  %v5_v37 = vsel %vm4_vm0, %v3_v34, %v2_v32  ;;  %v199_v42 = vld [vmem:[%s388_s0 + $0x41] ss:$8 sm:$0xf]  }
  0x10   :  { %96 = vrot.lane.b32.xlu1 %v95_v22, %s212_s20  ;;  %86 = vrot.lane.b32.xlu0 %v85_v23, %s212_s20  ;;  %v165_v38 = vld [vmem:[%s388_s0 + $0x40] ss:$8 sm:$0xf0]   ;;  %7 = vst.msk [vmem:[%s389_s1] sm:$0xff] %vm6_vm1, %v5_v37   ;;  %vm109_vm6 = vcmask 523648   ;;  %vm130_vm7 = vcmask 392448  }
  0x11   :  { %v13_v39 = vsel %vm4_vm0, %v165_v38, %v164_v35  ;;  %v200_v43 = vld [vmem:[%s388_s0 + $0x41] ss:$8 sm:$0xf0]   ;;  %vm151_vm8 = vcmask 261248  }
  0x12   :  { %166 = vst.msk [vmem:[%s389_s1 + $0x8] sm:$0xff] %vm6_vm1, %v13_v39   ;;  %v197_v44 = vld [vmem:[%s388_s0 + $0x1] ss:$8 sm:$0xf]   ;;  %v158_v46 = vsel %vm4_vm0, %v200_v43, %v199_v42 }
  0x13   :  { %v198_v45 = vld [vmem:[%s388_s0 + $0x1] ss:$8 sm:$0xf0]   ;;  %s214_s0 = smov 32  }
  0x14   :  { %117 = vrot.lane.b32.xlu1 %v116_v30, %s213_s8  ;;  %107 = vrot.lane.b32.xlu0 %v106_v33, %s213_s8  ;;  %v148_v47 = vsel %vm4_vm0, %v198_v45, %v197_v44 }
  0x18   :  { %138 = vrot.lane.b32.xlu1 %v137_v40, %s214_s0  ;;  %128 = vrot.lane.b32.xlu0 %v127_v41, %s214_s0 }
  0x1c   :  { %159 = vrot.lane.b32.xlu1 %v158_v46, %s215_s21  ;;  %149 = vrot.lane.b32.xlu0 %v148_v47, %s215_s21 }
  0x76   :  { %v45_v48 = vpop.permute.xlu1 %44   ;;  %v24_v49 = vpop.permute.xlu0 %23  }
  0x77   :  { %26 = vst.msk [vmem:[%s389_s1] sm:$0xff] %vm25_vm2, %v24_v49  }
  0x78   :  { %47 = vst.msk [vmem:[%s389_s1] sm:$0xff] %vm46_vm3, %v45_v48  }
  0x7a   :  { %v55_v50 = vpop.permute.xlu1 %54   ;;  %v34_v51 = vpop.permute.xlu0 %33  }
  0x7b   :  { %171 = vst.msk [vmem:[%s389_s1 + $0x8] sm:$0xff] %vm25_vm2, %v34_v51  }
  0x7c   :  { %176 = vst.msk [vmem:[%s389_s1 + $0x8] sm:$0xff] %vm46_vm3, %v55_v50  }
  0x7e   :  { %v76_v52 = vpop.permute.xlu1 %75   ;;  %v66_v53 = vpop.permute.xlu0 %65  }
  0x7f   :  { %181 = vst.msk [vmem:[%s389_s1 + $0x8] sm:$0xff] %vm67_vm4, %v76_v52   ;;  %68 = vst.msk [vmem:[%s389_s1] sm:$0xff] %vm67_vm4, %v66_v53  }
  0x82   :  { %v97_v54 = vpop.permute.xlu1 %96   ;;  %v87_v55 = vpop.permute.xlu0 %86  }
  0x83   :  { %186 = vst.msk [vmem:[%s389_s1 + $0x8] sm:$0xff] %vm88_vm5, %v97_v54   ;;  %89 = vst.msk [vmem:[%s389_s1] sm:$0xff] %vm88_vm5, %v87_v55  }
  0x86   :  { %v118_v56 = vpop.permute.xlu1 %117   ;;  %v108_v57 = vpop.permute.xlu0 %107  }
  0x87   :  { %191 = vst.msk [vmem:[%s389_s1 + $0x8] sm:$0xff] %vm109_vm6, %v118_v56   ;;  %110 = vst.msk [vmem:[%s389_s1] sm:$0xff] %vm109_vm6, %v108_v57  }
  0x8a   :  { %v139_v58 = vpop.permute.xlu1 %138   ;;  %v129_v59 = vpop.permute.xlu0 %128  }
  0x8b   :  { %196 = vst.msk [vmem:[%s389_s1 + $0x8] sm:$0xff] %vm130_vm7, %v139_v58   ;;  %131 = vst.msk [vmem:[%s389_s1] sm:$0xff] %vm130_vm7, %v129_v59  }
  0x8e   :  { %v160_v60 = vpop.permute.xlu1 %159   ;;  %v150_v61 = vpop.permute.xlu0 %149  }
  0x8f   :  { %201 = vst.msk [vmem:[%s389_s1 + $0x8] sm:$0xff] %vm151_vm8, %v160_v60   ;;  %152 = vst.msk [vmem:[%s389_s1] sm:$0xff] %vm151_vm8, %v150_v61  }

// kernel: deepfm_forward.1
= control target key start
LH: loop header
LB: loop body
LE: loop exit
PB: predicated region body
PF: predicated region fallthrough
CT: control target
= control target key end

     0   :  { %s14543_s23 = smov 0   ;;  %s19544_s0 = inlined_call_operand.vmem [shape: s32[256,8], index: 0, kind: input, shape index: {}]   ;;  %s19545_s1 = inlined_call_operand.vmem [shape: f32[256,8], index: 1, kind: input, shape index: {}]   ;;  %s19546_s2 = inlined_call_operand.vmem [shape: f32[8,192], index: 2, kind: input, shape index: {}]   ;;  %s19547_s3 = inlined_call_operand.vmem [shape: f32[1,192], index: 3, kind: input, shape index: {}]   ;;  %s19548_s4 = inlined_call_operand.vmem [shape: f32[192,136], index: 4, kind: input, shape index: {}]   ;;  %s19549_s5 = inlined_call_operand.vmem [shape: f32[128,48], index: 5, kind: input, shape index: {}]   ;;  %s19550_s6 = inlined_call_operand.vmem [shape: f32[1,32], index: 6, kind: input, shape index: {}]   ;;  %s19551_s7 = inlined_call_operand.vmem [shape: f32[32,16], index: 7, kind: input, shape index: {}]   ;;  %s19552_s8 = inlined_call_operand.vmem [shape: f32[1,16], index: 8, kind: input, shape index: {}]   ;;  %s19553_s9 = inlined_call_operand.vmem [shape: f32[128,1], index: 9, kind: input, shape index: {}]   ;;  %s19554_s10 = inlined_call_operand.<no memory space> [shape: f32[1,1], index: 10, kind: input, shape index: {}]   ;;  %s19555_s11 = inlined_call_operand.vmem [shape: f32[1,128], index: 11, kind: input, shape index: {}]   ;;  %s19556_s12 = inlined_call_operand.vmem [shape: f32[256,128], index: 12, kind: output, shape index: {}]  }
   0x1   :  { %v17_v0 = vstv %s19554_s10 }
   0x2   :  { %18 = vst [vmem:[#allocation2] sm:$0x1] %v17_v0 }
   0x3 LB: > { %s10788_s24 = sadd.s32 4294967295, %s14467_s23   ;;  %p10792_p0 = scmp.ge.s32.totalorder %s14467_s23, 1  ;;  %s14467_s23 = sphi %s14543_s23, %s24_s23  }
   0x4   : > { %p376_p1 = scmp.lt.s32.totalorder %s14467_s23, 3 }
   0x6   : > { %p377_p2 = pnand %p10792_p0, %p376_p1 }
   0x8   : > { %380 = sbr.rel (%p377_p2) target bundleno = 2714 (0xa9a), region = 68 }
   0xf   : > { %v442_v1 = vld [vmem:[%s19546_s2 + $0x8] sm:$0xff]  ;;  %v441_v2 = vld [vmem:[%s19546_s2] sm:$0xff]  ;;  %s10793_s28 = sshll.u32 %s10788_s24, 4  ;;  %v19581_v5 = vmov 0.0   ;;  %vm475_vm0 = vcmask 64512   ;;  %vm3112_vm2 = vcmask 523264  }
  0x10   : > { %v14557_v3 = vand.u32 4294901760, %v442_v1  ;;  %v14559_v4 = vand.u32 4294901760, %v441_v2  ;;  %1854 = vmatprep.mubr.f32.mxu1 %v19581_v5  ;;  %p424_p3 = scmp.lt.s32.totalorder %s10793_s28, 31  ;;  %590 = vmatprep.mubr.f32.mxu0 %v19581_v5  ;;  %s14471_s24 = smov 112  }
  0x11   : > { %s14472_s25 = smov 8   ;;  %s14473_s26 = smov 24  }
  0x12   : > { %1789 = vmatprep.subr.mxu1 %v14557_v3  ;;  %525 = vmatprep.subr.mxu0 %v14557_v3  ;;  %s21009_s28 = smov (!%p424_p3, %s10793_s28), 31  ;;  %v14566_v6 = vsub.f32 %v442_v1, %v14557_v3  ;;  %v14569_v7 = vsub.f32 %v441_v2, %v14559_v4 }
  0x13   : > { %1791 = vmatpush1.msra.mxu1 %v14559_v4  ;;  %527 = vmatpush1.msra.mxu0 %v14559_v4  ;;  %s14573_s29 = sshll.u32 %s21009_s28, 3 }
  0x14   : > { %v14576_v8 = vand.u32 4294901760, %v14566_v6  ;;  %v14579_v9 = vand.u32 4294901760, %v14569_v7  ;;  %s14585_s14 = scalar_lea.vmem %s19545_s1, %s14573_s29  ;;  %s14591_s17 = scalar_lea.vmem %s19544_s0, %s14573_s29 }
  0x15   : > { %v1724_v10 = vld [vmem:[%s14585_s14] sm:$0xff]  ;;  %v1725_v14 = vld [vmem:[%s14585_s14 + $0x8] sm:$0xff]  ;;  %v1726_v19 = vld [vmem:[%s14585_s14 + $0x10] sm:$0xff]  ;;  %s19492_s13 = scalar_lea.vmem %s19556_s12, %s14573_s29 }
  0x16   : > { %20121 = vst [vmem:[#allocation3_spill] sm:$0xff] %v14579_v9  ;;  %v770_v11 = vsub.f32 %v14566_v6, %v14576_v8  ;;  %v443_v12 = vld [vmem:[%s14591_s17] sm:$0xff]  ;;  %v776_v13 = vsub.f32 %v14569_v7, %v14579_v9  ;;  %v1741_v15 = vsel %vm475_vm0, %v1724_v10, 0  ;;  %v1744_v17 = vsel %vm475_vm0, %v1725_v14, 0  ;;  %v444_v18 = vld [vmem:[%s14591_s17 + $0x8] sm:$0xff]  ;;  %v445_v20 = vld [vmem:[%s14591_s17 + $0x10] sm:$0xff] }
  0x17   : > { %v459_v16 = vcvt.s32.f32 %v443_v12  ;;  %v14605_v21 = vand.u32 4294901760, %v1741_v15  ;;  %v14609_v24 = vand.u32 4294901760, %v1744_v17  ;;  %v1727_v25 = vld [vmem:[%s14585_s14 + $0x18] sm:$0xff]  ;;  %v460_v28 = vcvt.s32.f32 %v444_v18  ;;  %v1728_v55 = vld [vmem:[%s14585_s14 + $0x20] sm:$0xff]  ;;  %v1729_v1 = vld [vmem:[%s14585_s14 + $0x28] sm:$0xff] }
  0x18   : > { %v771_v22 = vand.u32 4294901760, %v770_v11  ;;  %v14607_v23 = vand.u32 4294901760, %v776_v13  ;;  %v446_v26 = vld [vmem:[%s14591_s17 + $0x18] sm:$0xff]  ;;  %v1747_v29 = vsel %vm475_vm0, %v1726_v19, 0  ;;  %v461_v30 = vcvt.s32.f32 %v445_v20  ;;  %v447_v56 = vld [vmem:[%s14591_s17 + $0x20] sm:$0xff] }
  0x19   : > { %v477_v27 = vsel %vm475_vm0, %v459_v16, 0  ;;  %v14616_v31 = vsub.f32 %v1741_v15, %v14605_v21  ;;  %v14621_v33 = vsub.f32 %v1744_v17, %v14609_v24  ;;  %v14623_v34 = vand.u32 4294901760, %v1747_v29  ;;  %v448_v16 = vld [vmem:[%s14591_s17 + $0x28] sm:$0xff]  ;;  %v1730_v17 = vld [vmem:[%s14585_s14 + $0x30] sm:$0xff] }
  0x1a   : > { %772 = vmatprep.subr.mxu0 %v771_v22  ;;  %v14618_v32 = vand.u32 4294901760, %v477_v27  ;;  %2036 = vmatprep.subr.mxu1 %v771_v22  ;;  %v480_v35 = vsel %vm475_vm0, %v460_v28, 0  ;;  %v483_v36 = vsel %vm475_vm0, %v461_v30, 0  ;;  %v1750_v37 = vsel %vm475_vm0, %v1727_v25, 0  ;;  %v449_v25 = vld [vmem:[%s14591_s17 + $0x30] sm:$0xff]  ;;  %v1731_v30 = vld [vmem:[%s14585_s14 + $0x38] sm:$0xff] }
  0x1b   : > { %v462_v38 = vcvt.s32.f32 %v446_v26  ;;  %v19571_v39 = vand.u32 4294901760, %v14616_v31  ;;  %v19567_v41 = vand.u32 4294901760, %v14621_v33  ;;  %v14633_v42 = vand.u32 4294901760, %v480_v35 }
  0x1c   : > { %v14630_v40 = vsub.f32 %v477_v27, %v14618_v32  ;;  %v14636_v43 = vsub.f32 %v1747_v29, %v14623_v34  ;;  %v14638_v44 = vand.u32 4294901760, %v483_v36  ;;  %v14640_v45 = vand.u32 4294901760, %v1750_v37 }
  0x1d   : > { %v486_v46 = vsel %vm475_vm0, %v462_v38, 0  ;;  %v1858_v47 = vsub.f32 %v14616_v31, %v19571_v39  ;;  %v1869_v49 = vsub.f32 %v14621_v33, %v19567_v41  ;;  %v14651_v50 = vsub.f32 %v480_v35, %v14633_v42 }
  0x1e   : > { %v19568_v48 = vand.u32 4294901760, %v14630_v40  ;;  %v19564_v51 = vand.u32 4294901760, %v14636_v43  ;;  %v14655_v52 = vsub.f32 %v483_v36, %v14638_v44  ;;  %v14658_v53 = vsub.f32 %v1750_v37, %v14640_v45 }
  0x1f   : > { %v14660_v54 = vand.u32 4294901760, %v486_v46  ;;  %v1859_v57 = vand.u32 4294901760, %v1858_v47  ;;  %v1870_v59 = vand.u32 4294901760, %v1869_v49  ;;  %v19566_v60 = vand.u32 4294901760, %v14651_v50 }
  0x20   : > { %v594_v58 = vsub.f32 %v14630_v40, %v19568_v48  ;;  %v1880_v61 = vsub.f32 %v14636_v43, %v19564_v51  ;;  %v19563_v62 = vand.u32 4294901760, %v14655_v52  ;;  %v19562_v63 = vand.u32 4294901760, %v14658_v53 }
  0x21   : > { %v14674_v0 = vsub.f32 %v486_v46, %v14660_v54  ;;  %1860 = vmatmul.mubr.f32.vlgmr.msra.gmra.mrb[0].mxu1 %v1859_v57  ;;  %v605_v10 = vsub.f32 %v14651_v50, %v19566_v60  ;;  %v1753_v11 = vsel %vm475_vm0, %v1728_v55, 0  ;;  %v463_v12 = vcvt.s32.f32 %v447_v56 }
  0x22   : > { %v595_v2 = vand.u32 4294901760, %v594_v58  ;;  %1865 = vmatprep.mubr.f32.mxu1 %v19581_v5  ;;  %2042 = vmatpush1.msra.mxu1 %v14607_v23  ;;  %v616_v13 = vsub.f32 %v14655_v52, %v19563_v62  ;;  %v1891_v14 = vsub.f32 %v14658_v53, %v19562_v63  ;;  %v14692_v19 = vand.u32 4294901760, %v1753_v11  ;;  %v450_v58 = vld [vmem:[%s14591_s17 + $0x38] sm:$0xff]  ;;  %v453_v62 = vld [vmem:[%s14591_s17 + $0x50] sm:$0xff] }
  0x23   : > { %20122 = vst [vmem:[#allocation4_spill] sm:$0xff] %v14674_v0  ;;  %v19561_v15 = vand.u32 4294901760, %v14674_v0  ;;  %v606_v18 = vand.u32 4294901760, %v605_v10  ;;  %v489_v20 = vsel %vm475_vm0, %v463_v12, 0  ;;  %v1756_v22 = vsel %vm475_vm0, %v1729_v1, 0  ;;  %2220 = vmatprep.subr.mxu1 %v14566_v6 }
  0x24   : > { %596 = vmatmul.mubr.f32.vlgmr.msra.gmra.mrb[0].mxu0 %v595_v2  ;;  %v1881_v26 = vand.u32 4294901760, %v1880_v61  ;;  %v617_v27 = vand.u32 4294901760, %v616_v13  ;;  %v1892_v28 = vand.u32 4294901760, %v1891_v14  ;;  %v14700_v29 = vand.u32 4294901760, %v489_v20 }
  0x25   : > { %778 = vmatpush1.msra.mxu0 %v14607_v23  ;;  %601 = vmatprep.mubr.f32.mxu0 %v19581_v5  ;;  %v14704_v35 = vsub.f32 %v1753_v11, %v14692_v19  ;;  %v14706_v36 = vand.u32 4294901760, %v1756_v22  ;;  %v464_v37 = vcvt.s32.f32 %v448_v16  ;;  %v1759_v38 = vsel %vm475_vm0, %v1730_v17, 0 }
  0x26   : > { %1871 = vmatmul.mubr.f32.gmra.mrb[2].mxu1 %v1870_v59  ;;  %956 = vmatprep.subr.mxu0 %v14566_v6  ;;  %v627_v23 = vsub.f32 %v14674_v0, %v19561_v15  ;;  %v14715_v46 = vsub.f32 %v489_v20, %v14700_v29  ;;  %v14717_v47 = vand.u32 4294901760, %v1759_v38  ;;  %v465_v49 = vcvt.s32.f32 %v449_v25  ;;  %v451_v25 = vld [vmem:[%s14591_s17 + $0x40] sm:$0xff] }
  0x27   : > { %20123 = vst [vmem:[#allocation5_spill] sm:$0xff] %v14704_v35  ;;  %1876 = vmatprep.mubr.f32.mxu1 %v19581_v5  ;;  %v19559_v55 = vand.u32 4294901760, %v14704_v35  ;;  %v14721_v56 = vsub.f32 %v1756_v22, %v14706_v36  ;;  %v492_v6 = vsel %vm475_vm0, %v464_v37, 0  ;;  %v1762_v57 = vsel %vm475_vm0, %v1731_v30, 0  ;;  %v1732_v22 = vld [vmem:[%s14585_s14 + $0x40] sm:$0xff] }
  0x28   : > { %20124 = vst [vmem:[#allocation6_spill] sm:$0xff] %v14715_v46  ;;  %607 = vmatmul.mubr.f32.gmra.mrb[2].mxu0 %v606_v18  ;;  %v19557_v59 = vand.u32 4294901760, %v14715_v46  ;;  %v14728_v61 = vand.u32 4294901760, %v492_v6  ;;  %v14731_v1 = vsub.f32 %v1759_v38, %v14717_v47  ;;  %v495_v2 = vsel %vm475_vm0, %v465_v49, 0 }
  0x29   : > { %20125 = vst [vmem:[#allocation7_spill] sm:$0xff] %v14721_v56  ;;  %612 = vmatprep.mubr.f32.mxu0 %v19581_v5  ;;  %v1902_v10 = vsub.f32 %v14704_v35, %v19559_v55  ;;  %v19558_v11 = vand.u32 4294901760, %v14721_v56  ;;  %v14738_v12 = vand.u32 4294901760, %v495_v2  ;;  %v14740_v13 = vand.u32 4294901760, %v1762_v57  ;;  %v1734_v55 = vld [vmem:[%s14585_s14 + $0x50] sm:$0xff] }
  0x2a   : > { %20126 = vst [vmem:[#allocation8_spill] sm:$0xff] %v14731_v1  ;;  %1882 = vmatmul.mubr.f32.gmra.mrb[4].mxu1 %v1881_v26  ;;  %v638_v14 = vsub.f32 %v14715_v46, %v19557_v59  ;;  %v14747_v16 = vsub.f32 %v492_v6, %v14728_v61  ;;  %v466_v17 = vcvt.s32.f32 %v450_v58  ;;  %v628_v18 = vand.u32 4294901760, %v627_v23  ;;  %v1733_v6 = vld [vmem:[%s14585_s14 + $0x48] sm:$0xff] }
  0x2b   : > { %1887 = vmatprep.mubr.f32.mxu1 %v19581_v5  ;;  %v14750_v20 = vsub.f32 %v495_v2, %v14738_v12  ;;  %v19565_v30 = vand.u32 4294901760, %v14731_v1  ;;  %v1903_v38 = vand.u32 4294901760, %v1902_v10  ;;  %v14762_v23 = vsub.f32 %v1762_v57, %v14740_v13  ;;  %v452_v58 = vld [vmem:[%s14591_s17 + $0x48] sm:$0xff] }
  0x2c   : > { %20127 = vst [vmem:[#allocation9_spill] sm:$0xff] %v14747_v16  ;;  %618 = vmatmul.mubr.f32.gmra.mrb[4].mxu0 %v617_v27  ;;  %v19560_v26 = vand.u32 4294901760, %v14747_v16  ;;  %v498_v37 = vsel %vm475_vm0, %v466_v17, 0  ;;  %v1913_v27 = vsub.f32 %v14721_v56, %v19558_v11  ;;  %v639_v2 = vand.u32 4294901760, %v638_v14 }
  0x2d   : > { %20128 = vst [vmem:[#allocation10_spill] sm:$0xff] %v14750_v20  ;;  %623 = vmatprep.mubr.f32.mxu0 %v19581_v5  ;;  %20129 = vst [vmem:[#allocation11_spill] sm:$0xff] %v14762_v23  ;;  %v14764_v49 = vand.u32 4294901760, %v498_v37  ;;  %v1765_v59 = vsel %vm475_vm0, %v1732_v22, 0  ;;  %v467_v17 = vcvt.s32.f32 %v451_v25  ;;  %v19569_v10 = vand.u32 4294901760, %v14750_v20 }
  0x2e   : > { %1893 = vmatmul.mubr.f32.gmra.mrb[6].mxu1 %v1892_v28  ;;  %v649_v28 = vsub.f32 %v14747_v16, %v19560_v26  ;;  %v14777_v11 = vand.u32 4294901760, %v1765_v59  ;;  %v1924_v14 = vsub.f32 %v14731_v1, %v19565_v30  ;;  %v1768_v22 = vsel %vm475_vm0, %v1733_v6, 0  ;;  %v457_v1 = vld [vmem:[%s14591_s17 + $0x70] sm:$0xff] }
  0x2f   : > { %1898 = vmatprep.mubr.f32.mxu1 %v19581_v5  ;;  %v14775_v57 = vsub.f32 %v498_v37, %v14764_v49  ;;  %v468_v25 = vcvt.s32.f32 %v452_v58  ;;  %v1914_v26 = vand.u32 4294901760, %v1913_v27  ;;  %v19570_v37 = vand.u32 4294901760, %v14762_v23 }
  0x30   : > { %629 = vmatmul.mubr.f32.gmra.mrb[6].mxu0 %v628_v18  ;;  %v501_v18 = vsel %vm475_vm0, %v467_v17, 0  ;;  %v14789_v63 = vsub.f32 %v1765_v59, %v14777_v11  ;;  %v14795_v30 = vand.u32 4294901760, %v1768_v22  ;;  %v1771_v6 = vsel %vm475_vm0, %v1734_v55, 0 }
  0x31   : > { %20130 = vst [vmem:[#allocation12_spill] sm:$0xff] %v14775_v57  ;;  %634 = vmatprep.mubr.f32.mxu0 %v19581_v5  ;;  %v19572_v15 = vand.u32 4294901760, %v14775_v57  ;;  %v14793_v51 = vand.u32 4294901760, %v501_v18  ;;  %v504_v17 = vsel %vm475_vm0, %v468_v25, 0  ;;  %v650_v27 = vand.u32 4294901760, %v649_v28 }
  0x32   : > { %1904 = vmatmul.mubr.f32.gmra.mrb[8].mxu1 %v1903_v38  ;;  %20131 = vst [vmem:[#allocation13_spill] sm:$0xff] %v14789_v63  ;;  %v1735_v38 = vld [vmem:[%s14585_s14 + $0x58] sm:$0xff]  ;;  %v660_v59 = vsub.f32 %v14750_v20, %v19569_v10  ;;  %v14803_v58 = vand.u32 4294901760, %v504_v17  ;;  %v1925_v60 = vand.u32 4294901760, %v1924_v14  ;;  %v14809_v48 = vand.u32 4294901760, %v1771_v6  ;;  %v456_v20 = vld [vmem:[%s14591_s17 + $0x68] sm:$0xff] }
  0x33   : > { %1909 = vmatprep.mubr.f32.mxu1 %v19581_v5  ;;  %v14807_v41 = vsub.f32 %v501_v18, %v14793_v51  ;;  %v469_v55 = vcvt.s32.f32 %v453_v62  ;;  %v14816_v25 = vsub.f32 %v1768_v22, %v14795_v30  ;;  %v1774_v10 = vsel %vm475_vm0, %v1735_v38, 0  ;;  %v454_v14 = vld [vmem:[%s14591_s17 + $0x58] sm:$0xff]  ;;  %v1736_v38 = vld [vmem:[%s14585_s14 + $0x60] sm:$0xff] }
  0x34   : > { %640 = vmatmul.mubr.f32.gmra.mrb[8].mxu0 %v639_v2  ;;  %v1935_v2 = vsub.f32 %v14762_v23, %v19570_v37  ;;  %v671_v18 = vsub.f32 %v14775_v57, %v19572_v15  ;;  %v14827_v39 = vsub.f32 %v504_v17, %v14803_v58  ;;  %v14834_v28 = vsub.f32 %v1771_v6, %v14809_v48  ;;  %v455_v37 = vld [vmem:[%s14591_s17 + $0x60] sm:$0xff] }
  0x35   : > { %645 = vmatprep.mubr.f32.mxu0 %v19581_v5  ;;  %20132 = vst [vmem:[#allocation14_spill] sm:$0xff] %v14807_v41  ;;  %20133 = vst [vmem:[#allocation15_spill] sm:$0xff] %v14816_v25  ;;  %v507_v62 = vsel %vm475_vm0, %v469_v55, 0  ;;  %v14836_v15 = vand.u32 4294901760, %v1774_v10  ;;  %v470_v9 = vcvt.s32.f32 %v454_v14  ;;  %v1777_v6 = vsel %vm475_vm0, %v1736_v38, 0 }
  0x36   : > { %1915 = vmatmul.mubr.f32.gmra.mrb[10].mxu1 %v1914_v26  ;;  %v661_v26 = vand.u32 4294901760, %v660_v59  ;;  %20134 = vst [vmem:[#allocation16_spill] sm:$0xff] %v14827_v39  ;;  %v14829_v22 = vand.u32 4294901760, %v507_v62  ;;  %20135 = vst [vmem:[#allocation17_spill] sm:$0xff] %v14834_v28  ;;  %v20136_v59 = vand.u32 4294901760, %v14789_v63  ;;  %v672_v57 = vand.u32 4294901760, %v671_v18 }
  0x37   : > { %1920 = vmatprep.mubr.f32.mxu1 %v19581_v5  ;;  %v510_v23 = vsel %vm475_vm0, %v470_v9, 0  ;;  %v20139_v18 = vmov 0.0   ;;  %v14860_v38 = vsub.f32 %v1774_v10, %v14836_v15 }
  0x38   : > { %651 = vmatmul.mubr.f32.gmra.mrb[10].mxu0 %v650_v27  ;;  %v1936_v27 = vand.u32 4294901760, %v1935_v2  ;;  %v1946_v17 = vsub.f32 %v14789_v63, %v20136_v59  ;;  %v14852_v59 = vsub.f32 %v507_v62, %v14829_v22  ;;  %v14854_v55 = vand.u32 4294901760, %v510_v23 }
  0x39   : > { %656 = vmatprep.mubr.f32.mxu0 %v19581_v5  ;;  %20140 = vst [vmem:[#allocation19_spill] sm:$0xff] %v14860_v38  ;;  %v14865_v62 = vand.u32 4294901760, %v1777_v6  ;;  %v20149_v56 = vand.u32 4294901760, %v14860_v38 }
  0x3a   : > { %1926 = vmatmul.mubr.f32.gmra.mrb[12].mxu1 %v1925_v60  ;;  %v20137_v60 = vand.u32 4294901760, %v14807_v41  ;;  %20138 = vst [vmem:[#allocation18_spill] sm:$0xff] %v14852_v59  ;;  %v1947_v63 = vand.u32 4294901760, %v1946_v17  ;;  %v14870_v16 = vsub.f32 %v510_v23, %v14854_v55  ;;  %v20142_v17 = vand.u32 4294901760, %v14827_v39 }
  0x3b   : > { %1931 = vmatprep.mubr.f32.mxu1 %v19581_v5  ;;  %v1737_v5 = vld [vmem:[%s14585_s14 + $0x68] sm:$0xff]  ;;  %v20144_v23 = vand.u32 4294901760, %v14834_v28 }
  0x3c   : > { %662 = vmatmul.mubr.f32.gmra.mrb[12].mxu0 %v661_v26  ;;  %v682_v2 = vsub.f32 %v14807_v41, %v20137_v60  ;;  %v471_v26 = vcvt.s32.f32 %v455_v37  ;;  %v20141_v60 = vand.u32 4294901760, %v14816_v25  ;;  %v472_v41 = vcvt.s32.f32 %v456_v20 }
  0x3d   : > { %667 = vmatprep.mubr.f32.mxu0 %v20139_v18  ;;  %v1780_v37 = vsel %vm475_vm0, %v1737_v5, 0  ;;  %v693_v9 = vsub.f32 %v14827_v39, %v20142_v17  ;;  %v14888_v39 = vsub.f32 %v1777_v6, %v14865_v62  ;;  %v1739_v6 = vld [vmem:[%s14585_s14 + $0x78] sm:$0xff]  ;;  %v20151_v35 = vand.u32 4294901760, %v14870_v16 }
  0x3e   : > { %1937 = vmatmul.mubr.f32.gmra.mrb[14].mxu1 %v1936_v27  ;;  %v1957_v14 = vsub.f32 %v14816_v25, %v20141_v60  ;;  %v513_v10 = vsel %vm475_vm0, %v471_v26, 0  ;;  %v683_v27 = vand.u32 4294901760, %v682_v2  ;;  %v1738_v25 = vld [vmem:[%s14585_s14 + $0x70] sm:$0xff]  ;;  %v1968_v26 = vsub.f32 %v14834_v28, %v20144_v23  ;;  %v458_v23 = vld [vmem:[%s14591_s17 + $0x78] sm:$0xff]  ;;  %s14470_s14 = smov 16  }
  0x3f   : > { %1942 = vmatprep.mubr.f32.mxu1 %v20139_v18  ;;  %v14878_v20 = vand.u32 4294901760, %v513_v10  ;;  %v473_v2 = vcvt.s32.f32 %v457_v1  ;;  %20145 = vst [vmem:[#allocation21_spill] sm:$0xff] %v14888_v39  ;;  %v14890_v60 = vand.u32 4294901760, %v1780_v37  ;;  %v1783_v46 = vsel %vm475_vm0, %v1738_v25, 0 }
  0x40   : > { %673 = vmatmul.mubr.f32.gmra.mrb[14].mxu0 %v672_v57  ;;  %v516_v57 = vsel %vm475_vm0, %v472_v41, 0  ;;  %v1958_v17 = vand.u32 4294901760, %v1957_v14  ;;  %v694_v5 = vand.u32 4294901760, %v693_v9  ;;  %v20147_v28 = vand.u32 4294901760, %v14852_v59 }
  0x41   : > { %20143 = vst [vmem:[#allocation20_spill] sm:$0xff] %v14878_v20  ;;  %678 = vmatprep.mubr.f32.mxu0 %v20139_v18  ;;  %20146 = vst [vmem:[#allocation22_spill] sm:$0xff] %v14890_v60  ;;  %v14902_v1 = vand.u32 4294901760, %v516_v57  ;;  %v1969_v14 = vand.u32 4294901760, %v1968_v26  ;;  %v1979_v25 = vsub.f32 %v14860_v38, %v20149_v56  ;;  %v715_v26 = vsub.f32 %v14870_v16, %v20151_v35 }
  0x42   : > { %1948 = vmatmul.mubr.f32.gmra.mrb[16].mxu1 %v1947_v63  ;;  %v704_v41 = vsub.f32 %v14852_v59, %v20147_v28  ;;  %v14900_v63 = vsub.f32 %v513_v10, %v14878_v20  ;;  %v14912_v28 = vsub.f32 %v1780_v37, %v14890_v60  ;;  %v14914_v10 = vand.u32 4294901760, %v1783_v46 }
  0x43   : > { %1953 = vmatprep.mubr.f32.mxu1 %v20139_v18  ;;  %20148 = vst [vmem:[#allocation23_spill] sm:$0xff] %v14902_v1  ;;  %v474_v59 = vcvt.s32.f32 %v458_v23  ;;  %v1786_v0 = vsel %vm475_vm0, %v1739_v6, 0  ;;  %v1980_v23 = vand.u32 4294901760, %v1979_v25  ;;  %v20153_v38 = vand.u32 4294901760, %v14888_v39 }
  0x44   : > { %684 = vmatmul.mubr.f32.gmra.mrb[16].mxu0 %v683_v27  ;;  %v519_v27 = vsel %vm475_vm0, %v473_v2, 0  ;;  %20150 = vst [vmem:[#allocation24_spill] sm:$0xff] %v14914_v10  ;;  %v705_v56 = vand.u32 4294901760, %v704_v41  ;;  %v19611_v2 = vand.u32 4294901760, %v14900_v63  ;;  %v14934_v41 = vsub.f32 %v1783_v46, %v14914_v10 }
  0x45   : > { %689 = vmatprep.mubr.f32.mxu0 %v20139_v18  ;;  %v14925_v37 = vand.u32 4294901760, %v519_v27  ;;  %v522_v9 = vsel %vm475_vm0, %v474_v59, 0  ;;  %v1990_v35 = vsub.f32 %v14888_v39, %v20153_v38  ;;  %v14936_v6 = vand.u32 4294901760, %v1786_v0 }
  0x46   : > { %1959 = vmatmul.mubr.f32.gmra.mrb[18].mxu1 %v1958_v17  ;;  %v14923_v17 = vsub.f32 %v516_v57, %v14902_v1  ;;  %v716_v57 = vand.u32 4294901760, %v715_v26  ;;  %v726_v59 = vsub.f32 %v14900_v63, %v19611_v2  ;;  %v14946_v38 = vand.u32 4294901760, %v522_v9 }
  0x47   : > { %1964 = vmatprep.mubr.f32.mxu1 %v20139_v18  ;;  %20152 = vst [vmem:[#allocation25_spill] sm:$0xff] %v14925_v37  ;;  %20154 = vst [vmem:[#allocation26_spill] sm:$0xff] %v14936_v6  ;;  %v14944_v25 = vsub.f32 %v519_v27, %v14925_v37  ;;  %v1991_v46 = vand.u32 4294901760, %v1990_v35  ;;  %v14954_v39 = vsub.f32 %v1786_v0, %v14936_v6 }
  0x48   : > { %695 = vmatmul.mubr.f32.gmra.mrb[18].mxu0 %v694_v5  ;;  %v19612_v5 = vand.u32 4294901760, %v14912_v28  ;;  %20155 = vst [vmem:[#allocation27_spill] sm:$0xff] %v14946_v38  ;;  %v727_v27 = vand.u32 4294901760, %v726_v59  ;;  %v14962_v35 = vsub.f32 %v522_v9, %v14946_v38 }
  0x49   : > { %700 = vmatprep.mubr.f32.mxu0 %v20139_v18 }
  0x4a   : > { %1970 = vmatmul.mubr.f32.gmra.mrb[20].mxu1 %v1969_v14  ;;  %v19613_v14 = vand.u32 4294901760, %v14923_v17  ;;  %v2001_v26 = vsub.f32 %v14912_v28, %v19612_v5  ;;  %v19615_v9 = vand.u32 4294901760, %v14962_v35 }
  0x4b   : > { %1975 = vmatprep.mubr.f32.mxu1 %v20139_v18 }
  0x4c   : > { %706 = vmatmul.mubr.f32.gmra.mrb[20].mxu0 %v705_v56  ;;  %v19614_v56 = vand.u32 4294901760, %v14934_v41  ;;  %v737_v2 = vsub.f32 %v14923_v17, %v19613_v14  ;;  %v2002_v5 = vand.u32 4294901760, %v2001_v26 }
  0x4d   : > { %711 = vmatprep.mubr.f32.mxu0 %v20139_v18 }
  0x4e   : > { %1981 = vmatmul.mubr.f32.gmra.mrb[22].mxu1 %v1980_v23  ;;  %v19617_v23 = vand.u32 4294901760, %v14944_v25  ;;  %v2012_v0 = vsub.f32 %v14934_v41, %v19614_v56  ;;  %v738_v59 = vand.u32 4294901760, %v737_v2  ;;  %v759_v2 = vsub.f32 %v14962_v35, %v19615_v9  ;;  %v20167_v9 = vld [vmem:[#allocation15_spill] sm:$0xff] }
  0x4f   : > { %1986 = vmatprep.mubr.f32.mxu1 %v20139_v18 }
  0x50   : > { %717 = vmatmul.mubr.f32.gmra.mrb[22].mxu0 %v716_v57  ;;  %v19616_v57 = vand.u32 4294901760, %v14954_v39  ;;  %v748_v14 = vsub.f32 %v14944_v25, %v19617_v23  ;;  %v20169_v23 = vld [vmem:[#allocation17_spill] sm:$0xff] }
  0x51   : > { %722 = vmatprep.mubr.f32.mxu0 %v20139_v18 }
  0x52   : > { %1992 = vmatmul.mubr.f32.gmra.mrb[24].mxu1 %v1991_v46  ;;  %v2013_v46 = vand.u32 4294901760, %v2012_v0  ;;  %v2023_v26 = vsub.f32 %v14954_v39, %v19616_v57  ;;  %v749_v56 = vand.u32 4294901760, %v748_v14  ;;  %v20158_v14 = vld [vmem:[#allocation6_spill] sm:$0xff]  ;;  %v20160_v0 = vld [vmem:[#allocation9_spill] sm:$0xff]  ;;  %v20168_v57 = vld [vmem:[#allocation16_spill] sm:$0xff] }
  0x53   : > { %1997 = vmatprep.mubr.f32.mxu1 %v20139_v18 }
  0x54   : > { %728 = vmatmul.mubr.f32.gmra.mrb[24].mxu0 %v727_v27  ;;  %v2024_v27 = vand.u32 4294901760, %v2023_v26  ;;  %v20163_v26 = vld [vmem:[#allocation11_spill] sm:$0xff] }
  0x55   : > { %733 = vmatprep.mubr.f32.mxu0 %v20139_v18 }
  0x56   : > { %2003 = vmatmul.mubr.f32.gmra.mrb[26].mxu1 %v2002_v5  ;;  %v760_v5 = vand.u32 4294901760, %v759_v2  ;;  %v20164_v2 = vld [vmem:[#allocation12_spill] sm:$0xff] }
  0x57   : > { %2008 = vmatprep.mubr.f32.mxu1 %v20139_v18 }
  0x58   : > { %739 = vmatmul.mubr.f32.gmra.mrb[26].mxu0 %v738_v59  ;;  %v20161_v59 = vld [vmem:[#allocation8_spill] sm:$0xff] }
  0x59   : > { %744 = vmatprep.mubr.f32.mxu0 %v20139_v18 }
  0x5a   : > { %2014 = vmatmul.mubr.f32.gmra.mrb[28].mxu1 %v2013_v46  ;;  %v20162_v46 = vld [vmem:[#allocation10_spill] sm:$0xff] }
  0x5b   : > { %2019 = vmatprep.mubr.f32.mxu1 %v20139_v18 }
  0x5c   : > { %750 = vmatmul.mubr.f32.gmra.mrb[28].mxu0 %v749_v56  ;;  %v20159_v56 = vld [vmem:[#allocation7_spill] sm:$0xff] }
  0x5d   : > { %755 = vmatprep.mubr.f32.mxu0 %v20139_v18 }
  0x5e   : > { %2025 = vmatmul.mubr.f32.gmra.mrb[30].mxu1 %v2024_v27  ;;  %v20165_v27 = vld [vmem:[#allocation13_spill] sm:$0xff] }
  0x5f   : > { %2105 = vmatprep.mubr.f32.mxu1 %v20139_v18 }
  0x60   : > { %761 = vmatmul.mubr.f32.gmra.mrb[30].mxu0 %v760_v5  ;;  %v20166_v5 = vld [vmem:[#allocation14_spill] sm:$0xff] }
  0x61   : > { %841 = vmatprep.mubr.f32.mxu0 %v20139_v18 }
  0x62   : > { %2107 = vmatmul.mubr.f32.vlgmr.msra.gmra.mrb[0].mxu1 %v14605_v21 }
  0x63   : > { %2112 = vmatprep.mubr.f32.mxu1 %v20139_v18  ;;  %2223 = vmatpush1.msra.mxu1 %v14569_v7 }
  0x64   : > { %843 = vmatmul.mubr.f32.vlgmr.msra.gmra.mrb[0].mxu0 %v14618_v32  ;;  %2416 = vmatprep.subr.mxu1 %v14557_v3 }
  0x65   : > { %959 = vmatpush1.msra.mxu0 %v14569_v7  ;;  %848 = vmatprep.mubr.f32.mxu0 %v20139_v18  ;;  %v20156_v7 = vld [vmem:[#allocation4_spill] sm:$0xff] }
  0x66   : > { %2114 = vmatmul.mubr.f32.gmra.mrb[2].mxu1 %v14609_v24  ;;  %1152 = vmatprep.subr.mxu0 %v14557_v3 }
  0x67   : > { %2119 = vmatprep.mubr.f32.mxu1 %v20139_v18 }
  0x68   : > { %850 = vmatmul.mubr.f32.gmra.mrb[2].mxu0 %v14633_v42 }
  0x69   : > { %855 = vmatprep.mubr.f32.mxu0 %v20139_v18 }
  0x6a   : > { %2121 = vmatmul.mubr.f32.gmra.mrb[4].mxu1 %v14623_v34 }
  0x6b   : > { %2126 = vmatprep.mubr.f32.mxu1 %v20139_v18 }
  0x6c   : > { %857 = vmatmul.mubr.f32.gmra.mrb[4].mxu0 %v14638_v44 }
  0x6d   : > { %862 = vmatprep.mubr.f32.mxu0 %v20139_v18 }
  0x6e   : > { %2128 = vmatmul.mubr.f32.gmra.mrb[6].mxu1 %v14640_v45 }
  0x6f   : > { %2133 = vmatprep.mubr.f32.mxu1 %v20139_v18 }
  0x70   : > { %864 = vmatmul.mubr.f32.gmra.mrb[6].mxu0 %v14660_v54 }
  0x71   : > { %869 = vmatprep.mubr.f32.mxu0 %v20139_v18 }
  0x72   : > { %2135 = vmatmul.mubr.f32.gmra.mrb[8].mxu1 %v14692_v19 }
  0x73   : > { %2140 = vmatprep.mubr.f32.mxu1 %v20139_v18 }
  0x74   : > { %871 = vmatmul.mubr.f32.gmra.mrb[8].mxu0 %v14700_v29 }
  0x75   : > { %876 = vmatprep.mubr.f32.mxu0 %v20139_v18 }
  0x76   : > { %2142 = vmatmul.mubr.f32.gmra.mrb[10].mxu1 %v14706_v36 }
  0x77   : > { %2147 = vmatprep.mubr.f32.mxu1 %v20139_v18 }
  0x78   : > { %878 = vmatmul.mubr.f32.gmra.mrb[10].mxu0 %v14728_v61 }
  0x79   : > { %883 = vmatprep.mubr.f32.mxu0 %v20139_v18 }
  0x7a   : > { %2149 = vmatmul.mubr.f32.gmra.mrb[12].mxu1 %v14717_v47 }
  0x7b   : > { %2154 = vmatprep.mubr.f32.mxu1 %v20139_v18 }
  0x7c   : > { %885 = vmatmul.mubr.f32.gmra.mrb[12].mxu0 %v14738_v12 }
  0x7d   : > { %890 = vmatprep.mubr.f32.mxu0 %v20139_v18 }
  0x7e   : > { %2156 = vmatmul.mubr.f32.gmra.mrb[14].mxu1 %v14740_v13 }
  0x7f   : > { %2161 = vmatprep.mubr.f32.mxu1 %v20139_v18 }
  0x80   : > { %892 = vmatmul.mubr.f32.gmra.mrb[14].mxu0 %v14764_v49 }
  0x81   : > { %897 = vmatprep.mubr.f32.mxu0 %v20139_v18 }
  0x82   : > { %2163 = vmatmul.mubr.f32.gmra.mrb[16].mxu1 %v14777_v11 }
  0x83   : > { %2168 = vmatprep.mubr.f32.mxu1 %v20139_v18 }
  0x84   : > { %899 = vmatmul.mubr.f32.gmra.mrb[16].mxu0 %v14793_v51 }
  0x85   : > { %904 = vmatprep.mubr.f32.mxu0 %v20139_v18 }
  0x86   : > { %2170 = vmatmul.mubr.f32.gmra.mrb[18].mxu1 %v14795_v30 }
  0x87   : > { %2175 = vmatprep.mubr.f32.mxu1 %v20139_v18 }
  0x88   : > { %906 = vmatmul.mubr.f32.gmra.mrb[18].mxu0 %v14803_v58 }
  0x89   : > { %911 = vmatprep.mubr.f32.mxu0 %v20139_v18 }
  0x8a   : > { %2177 = vmatmul.mubr.f32.gmra.mrb[20].mxu1 %v14809_v48 }
  0x8b   : > { %2182 = vmatprep.mubr.f32.mxu1 %v20139_v18 }
  0x8c   : > { %913 = vmatmul.mubr.f32.gmra.mrb[20].mxu0 %v14829_v22 }
  0x8d   : > { %918 = vmatprep.mubr.f32.mxu0 %v20139_v18 }
  0x8e   : > { %2184 = vmatmul.mubr.f32.gmra.mrb[22].mxu1 %v14836_v15 }
  0x8f   : > { %2189 = vmatprep.mubr.f32.mxu1 %v20139_v18 }
  0x90   : > { %920 = vmatmul.mubr.f32.gmra.mrb[22].mxu0 %v14854_v55 }
  0x91   : > { %925 = vmatprep.mubr.f32.mxu0 %v20139_v18 }
  0x92   : > { %2191 = vmatmul.mubr.f32.gmra.mrb[24].mxu1 %v14865_v62 }
  0x93   : > { %2196 = vmatprep.mubr.f32.mxu1 %v20139_v18 }
  0x94   : > { %927 = vmatmul.mubr.f32.gmra.mrb[24].mxu0 %v14878_v20  ;;  %v20176_v20 = vand.u32 4294901760, %v14621_v33 }
  0x95   : > { %932 = vmatprep.mubr.f32.mxu0 %v20139_v18 }
  0x96   : > { %2198 = vmatmul.mubr.f32.gmra.mrb[26].mxu1 %v14890_v60  ;;  %v20175_v60 = vand.u32 4294901760, %v14630_v40 }
  0x97   : > { %2203 = vmatprep.mubr.f32.mxu1 %v20139_v18 }
  0x98   : > { %934 = vmatmul.mubr.f32.gmra.mrb[26].mxu0 %v14902_v1  ;;  %v20174_v1 = vld [vmem:[#allocation3_spill] sm:$0xff] }
  0x99   : > { %939 = vmatprep.mubr.f32.mxu0 %v20139_v18 }
  0x9a   : > { %2205 = vmatmul.mubr.f32.gmra.mrb[28].mxu1 %v14914_v10  ;;  %v20173_v10 = vand.u32 4294901760, %v14616_v31 }
  0x9b   : > { %2210 = vmatprep.mubr.f32.mxu1 %v20139_v18 }
  0x9c   : > { %941 = vmatmul.mubr.f32.gmra.mrb[28].mxu0 %v14925_v37  ;;  %v20172_v37 = vld [vmem:[#allocation21_spill] sm:$0xff] }
  0x9d   : > { %946 = vmatprep.mubr.f32.mxu0 %v20139_v18 }
  0x9e   : > { %2212 = vmatmul.mubr.f32.gmra.mrb[30].mxu1 %v14936_v6  ;;  %v20171_v6 = vld [vmem:[#allocation19_spill] sm:$0xff] }
  0x9f   : > { %2286 = vmatprep.mubr.f32.mxu1 %v20139_v18 }
  0xa0   : > { %948 = vmatmul.mubr.f32.gmra.mrb[30].mxu0 %v14946_v38  ;;  %v20170_v38 = vld [vmem:[#allocation18_spill] sm:$0xff] }
  0xa1   : > { %1022 = vmatprep.mubr.f32.mxu0 %v20139_v18 }
  0xa2   : > { %2289 = vmatmul.mubr.f32.vlgmr.msra.gmra.mrb[0].mxu1 %v14616_v31  ;;  %v20177_v31 = vand.u32 4294901760, %v14651_v50 }
  0xa3   : > { %2294 = vmatprep.mubr.f32.mxu1 %v20139_v18  ;;  %2418 = vmatpush1.msra.mxu1 %v14559_v4 }
  0xa4   : > { %1025 = vmatmul.mubr.f32.vlgmr.msra.gmra.mrb[0].mxu0 %v14630_v40  ;;  %2629 = vmatprep.subr.mxu1 %v14576_v8  ;;  %v20178_v40 = vand.u32 4294901760, %v14636_v43 }
  0xa5   : > { %1154 = vmatpush1.msra.mxu0 %v14559_v4  ;;  %1030 = vmatprep.mubr.f32.mxu0 %v20139_v18 }
  0xa6   : > { %2297 = vmatmul.mubr.f32.gmra.mrb[2].mxu1 %v14621_v33  ;;  %1365 = vmatprep.subr.mxu0 %v14576_v8  ;;  %v20157_v8 = vld [vmem:[#allocation5_spill] sm:$0xff]  ;;  %v20180_v33 = vand.u32 4294901760, %v14658_v53 }
  0xa7   : > { %2302 = vmatprep.mubr.f32.mxu1 %v20139_v18 }
  0xa8   : > { %1033 = vmatmul.mubr.f32.gmra.mrb[2].mxu0 %v14651_v50  ;;  %v20183_v50 = vand.u32 4294901760, %v20158_v14 }
  0xa9   : > { %1038 = vmatprep.mubr.f32.mxu0 %v20139_v18 }
  0xaa   : > { %2305 = vmatmul.mubr.f32.gmra.mrb[4].mxu1 %v14636_v43  ;;  %v20182_v43 = vand.u32 4294901760, %v20157_v8 }
  0xab   : > { %2310 = vmatprep.mubr.f32.mxu1 %v20139_v18 }
  0xac   : > { %1041 = vmatmul.mubr.f32.gmra.mrb[4].mxu0 %v14655_v52 }
  0xad   : > { %1046 = vmatprep.mubr.f32.mxu0 %v20139_v18 }
  0xae   : > { %2313 = vmatmul.mubr.f32.gmra.mrb[6].mxu1 %v14658_v53  ;;  %v20185_v53 = vand.u32 4294901760, %v20160_v0 }
  0xaf   : > { %2318 = vmatprep.mubr.f32.mxu1 %v20139_v18 }
  0xb0   : > { %1049 = vmatmul.mubr.f32.gmra.mrb[6].mxu0 %v20156_v7 }
  0xb1   : > { %1054 = vmatprep.mubr.f32.mxu0 %v20139_v18 }
  0xb2   : > { %2321 = vmatmul.mubr.f32.gmra.mrb[8].mxu1 %v20157_v8  ;;  %v20190_v8 = vand.u32 4294901760, %v20165_v27 }
  0xb3   : > { %2326 = vmatprep.mubr.f32.mxu1 %v20139_v18 }
  0xb4   : > { %1057 = vmatmul.mubr.f32.gmra.mrb[8].mxu0 %v20158_v14  ;;  %v20191_v14 = vand.u32 4294901760, %v20166_v5 }
  0xb5   : > { %1062 = vmatprep.mubr.f32.mxu0 %v20139_v18 }
  0xb6   : > { %2329 = vmatmul.mubr.f32.gmra.mrb[10].mxu1 %v20159_v56 }
  0xb7   : > { %2334 = vmatprep.mubr.f32.mxu1 %v20139_v18 }
  0xb8   : > { %1065 = vmatmul.mubr.f32.gmra.mrb[10].mxu0 %v20160_v0  ;;  %v20193_v0 = vand.u32 4294901760, %v20168_v57 }
  0xb9   : > { %1070 = vmatprep.mubr.f32.mxu0 %v20139_v18 }
  0xba   : > { %2337 = vmatmul.mubr.f32.gmra.mrb[12].mxu1 %v20161_v59 }
  0xbb   : > { %2342 = vmatprep.mubr.f32.mxu1 %v20139_v18 }
  0xbc   : > { %1073 = vmatmul.mubr.f32.gmra.mrb[12].mxu0 %v20162_v46 }
  0xbd   : > { %1078 = vmatprep.mubr.f32.mxu0 %v20139_v18 }
  0xbe   : > { %2345 = vmatmul.mubr.f32.gmra.mrb[14].mxu1 %v20163_v26 }
  0xbf   : > { %2350 = vmatprep.mubr.f32.mxu1 %v20139_v18 }
  0xc0   : > { %1081 = vmatmul.mubr.f32.gmra.mrb[14].mxu0 %v20164_v2 }
  0xc1   : > { %1086 = vmatprep.mubr.f32.mxu0 %v20139_v18 }
  0xc2   : > { %2353 = vmatmul.mubr.f32.gmra.mrb[16].mxu1 %v20165_v27  ;;  %v15242_v27 = vld [vmem:[%s19548_s4 + $0x28] sm:$0xff] }
  0xc3   : > { %2358 = vmatprep.mubr.f32.mxu1 %v20139_v18 }
  0xc4   : > { %1089 = vmatmul.mubr.f32.gmra.mrb[16].mxu0 %v20166_v5  ;;  %v15247_v5 = vld [vmem:[%s19548_s4 + $0x38] sm:$0xff] }
  0xc5   : > { %1094 = vmatprep.mubr.f32.mxu0 %v20139_v18 }
  0xc6   : > { %2361 = vmatmul.mubr.f32.gmra.mrb[18].mxu1 %v20167_v9 }
  0xc7   : > { %2366 = vmatprep.mubr.f32.mxu1 %v20139_v18 }
  0xc8   : > { %1097 = vmatmul.mubr.f32.gmra.mrb[18].mxu0 %v20168_v57  ;;  %v20197_v57 = vand.u32 4294901760, %v14870_v16 }
  0xc9   : > { %1102 = vmatprep.mubr.f32.mxu0 %v20139_v18 }
  0xca   : > { %2369 = vmatmul.mubr.f32.gmra.mrb[20].mxu1 %v20169_v23 }
  0xcb   : > { %2374 = vmatprep.mubr.f32.mxu1 %v20139_v18 }
  0xcc   : > { %1105 = vmatmul.mubr.f32.gmra.mrb[20].mxu0 %v20170_v38 }
  0xcd   : > { %1110 = vmatprep.mubr.f32.mxu0 %v20139_v18 }
  0xce   : > { %2377 = vmatmul.mubr.f32.gmra.mrb[22].mxu1 %v20171_v6 }
  0xcf   : > { %2382 = vmatprep.mubr.f32.mxu1 %v20139_v18 }
  0xd0   : > { %1113 = vmatmul.mubr.f32.gmra.mrb[22].mxu0 %v14870_v16  ;;  %v20201_v16 = vand.u32 4294901760, %v14923_v17 }
  0xd1   : > { %1118 = vmatprep.mubr.f32.mxu0 %v20139_v18 }
  0xd2   : > { %2385 = vmatmul.mubr.f32.gmra.mrb[24].mxu1 %v20172_v37 }
  0xd3   : > { %2390 = vmatprep.mubr.f32.mxu1 %v20139_v18 }
  0xd4   : > { %1121 = vmatmul.mubr.f32.gmra.mrb[24].mxu0 %v14900_v63 }
  0xd5   : > { %1126 = vmatprep.mubr.f32.mxu0 %v20139_v18 }
  0xd6   : > { %2393 = vmatmul.mubr.f32.gmra.mrb[26].mxu1 %v14912_v28 }
  0xd7   : > { %2398 = vmatprep.mubr.f32.mxu1 %v20139_v18 }
  0xd8   : > { %1129 = vmatmul.mubr.f32.gmra.mrb[26].mxu0 %v14923_v17  ;;  %v20205_v17 = vand.u32 4294901760, %v14962_v35 }
  0xd9   : > { %1134 = vmatprep.mubr.f32.mxu0 %v20139_v18 }
  0xda   : > { %2401 = vmatmul.mubr.f32.gmra.mrb[28].mxu1 %v14934_v41 }
  0xdb   : > { %2406 = vmatprep.mubr.f32.mxu1 %v20139_v18 }
  0xdc   : > { %1137 = vmatmul.mubr.f32.gmra.mrb[28].mxu0 %v14944_v25 }
  0xdd   : > { %1142 = vmatprep.mubr.f32.mxu0 %v20139_v18 }
  0xde   : > { %2409 = vmatmul.mubr.f32.gmra.mrb[30].mxu1 %v14954_v39 }
  0xdf   : > { %2481 = vmatprep.mubr.f32.mxu1 %v20139_v18 }
  0xe0   : > { %1145 = vmatmul.mubr.f32.gmra.mrb[30].mxu0 %v14962_v35  ;;  %v15237_v35 = vld [vmem:[%s19548_s4 + $0x10] sm:$0xff] }
  0xe1   : > { %1217 = vmatprep.mubr.f32.mxu0 %v20139_v18 }
  0xe2   : > { %2485 = vmatmul.mubr.f32.vlgmr.msra.gmra.mrb[0].mxu1 %v20173_v10  ;;  %v20188_v10 = vand.u32 4294901760, %v20163_v26  ;;  %v3067_v26 = vld [vmem:[%s19548_s4 + $0x18] sm:$0xff] }
  0xe3   : > { %2490 = vmatprep.mubr.f32.mxu1 %v20139_v18  ;;  %2633 = vmatpush1.msra.mxu1 %v20174_v1 }
  0xe4   : > { %1221 = vmatmul.mubr.f32.vlgmr.msra.gmra.mrb[0].mxu0 %v20175_v60  ;;  %2810 = vmatprep.subr.mxu1 %v14557_v3  ;;  %v20179_v60 = vand.u32 4294901760, %v14655_v52  ;;  %v20184_v52 = vand.u32 4294901760, %v20159_v56  ;;  %v20192_v56 = vand.u32 4294901760, %v20167_v9  ;;  %v20196_v9 = vand.u32 4294901760, %v20171_v6 }
  0xe5   : > { %1369 = vmatpush1.msra.mxu0 %v20174_v1  ;;  %1226 = vmatprep.mubr.f32.mxu0 %v20139_v18  ;;  %v20187_v1 = vand.u32 4294901760, %v20162_v46  ;;  %v20195_v46 = vand.u32 4294901760, %v20170_v38  ;;  %v20199_v38 = vand.u32 4294901760, %v14900_v63  ;;  %v20200_v6 = vand.u32 4294901760, %v14912_v28 }
  0xe6   : > { %2494 = vmatmul.mubr.f32.gmra.mrb[2].mxu1 %v20176_v20  ;;  %1546 = vmatprep.subr.mxu0 %v14557_v3  ;;  %v20181_v3 = vand.u32 4294901760, %v20156_v7  ;;  %v20186_v20 = vand.u32 4294901760, %v20161_v59  ;;  %v20189_v7 = vand.u32 4294901760, %v20164_v2  ;;  %v20194_v59 = vand.u32 4294901760, %v20169_v23 }
  0xe7   : > { %2499 = vmatprep.mubr.f32.mxu1 %v20139_v18  ;;  %v20198_v23 = vand.u32 4294901760, %v20172_v37  ;;  %v20202_v37 = vand.u32 4294901760, %v14934_v41  ;;  %v20203_v63 = vand.u32 4294901760, %v14944_v25  ;;  %v20204_v28 = vand.u32 4294901760, %v14954_v39  ;;  %v3065_v41 = vld [vmem:[%s19548_s4 + $0x8] sm:$0xff]  ;;  %v15231_v25 = vld [vmem:[%s19548_s4] sm:$0xff] }
  0xe8   : > { %1230 = vmatmul.mubr.f32.gmra.mrb[2].mxu0 %v20177_v31  ;;  %v3161_v39 = vand.u32 4294901760, %v3065_v41  ;;  %v3165_v2 = vand.u32 4294901760, %v3067_v26  ;;  %v19641_v31 = vand.u32 4294901760, %v15231_v25 }
  0xe9   : > { %1235 = vmatprep.mubr.f32.mxu0 %v20139_v18 }
  0xea   : > { %2503 = vmatmul.mubr.f32.gmra.mrb[4].mxu1 %v20178_v40  ;;  %v19638_v40 = vand.u32 4294901760, %v15237_v35 }
  0xeb   : > { %2508 = vmatprep.mubr.f32.mxu1 %v20139_v18 }
  0xec   : > { %1239 = vmatmul.mubr.f32.gmra.mrb[4].mxu0 %v20179_v60  ;;  %v19637_v60 = vand.u32 4294901760, %v15242_v27 }
  0xed   : > { %1244 = vmatprep.mubr.f32.mxu0 %v20139_v18 }
  0xee   : > { %2512 = vmatmul.mubr.f32.gmra.mrb[6].mxu1 %v20180_v33  ;;  %v19636_v33 = vand.u32 4294901760, %v15247_v5 }
  0xef   : > { %2517 = vmatprep.mubr.f32.mxu1 %v20139_v18 }
  0xf0   : > { %1248 = vmatmul.mubr.f32.gmra.mrb[6].mxu0 %v20181_v3  ;;  %v15257_v3 = vld [vmem:[%s19548_s4 + $0x20] sm:$0xff] }
  0xf1   : > { %1253 = vmatprep.mubr.f32.mxu0 %v20139_v18 }
  0xf2   : > { %2521 = vmatmul.mubr.f32.gmra.mrb[8].mxu1 %v20182_v43  ;;  %v15262_v43 = vld [vmem:[%s19548_s4 + $0x30] sm:$0xff] }
  0xf3   : > { %2526 = vmatprep.mubr.f32.mxu1 %v20139_v18 }
  0xf4   : > { %1257 = vmatmul.mubr.f32.gmra.mrb[8].mxu0 %v20183_v50  ;;  %v15266_v50 = vpack.c.bf16 %v3165_v2, %v3161_v39 }
  0xf5   : > { %1262 = vmatprep.mubr.f32.mxu0 %v20139_v18 }
  0xf6   : > { %2530 = vmatmul.mubr.f32.gmra.mrb[10].mxu1 %v20184_v52  ;;  %20206 = vst [vmem:[#allocation4_spill] sm:$0xff] %v15266_v50  ;;  %v15268_v52 = vsub.f32 %v3065_v41, %v3161_v39  ;;  %v15358_v41 = vld [vmem:[%s19548_s4 + $0x88] sm:$0xff] }
  0xf7   : > { %2535 = vmatprep.mubr.f32.mxu1 %v20139_v18 }
  0xf8   : > { %1266 = vmatmul.mubr.f32.gmra.mrb[10].mxu0 %v20185_v53  ;;  %20207 = vst [vmem:[#allocation5_spill] sm:$0xff] %v15268_v52  ;;  %v15270_v53 = vsub.f32 %v3067_v26, %v3165_v2 }
  0xf9   : > { %1271 = vmatprep.mubr.f32.mxu0 %v20139_v18 }
  0xfa   : > { %2539 = vmatmul.mubr.f32.gmra.mrb[12].mxu1 %v20186_v20  ;;  %20208 = vst [vmem:[#allocation6_spill] sm:$0xff] %v15270_v53  ;;  %v19633_v20 = vand.u32 4294901760, %v15257_v3 }
  0xfb   : > { %2544 = vmatprep.mubr.f32.mxu1 %v20139_v18 }
  0xfc   : > { %1275 = vmatmul.mubr.f32.gmra.mrb[12].mxu0 %v20187_v1  ;;  %v15276_v1 = vld [vmem:[%s19548_s4 + $0x48] sm:$0xff] }
  0xfd   : > { %1280 = vmatprep.mubr.f32.mxu0 %v20139_v18 }
  0xfe   : > { %2548 = vmatmul.mubr.f32.gmra.mrb[14].mxu1 %v20188_v10  ;;  %v15281_v10 = vld [vmem:[%s19548_s4 + $0x58] sm:$0xff] }
  0xff   : > { %2553 = vmatprep.mubr.f32.mxu1 %v20139_v18 }
 0x100   : > { %1284 = vmatmul.mubr.f32.gmra.mrb[14].mxu0 %v20189_v7  ;;  %v15287_v7 = vsub.f32 %v15231_v25, %v19641_v31 }
 0x101   : > { %1289 = vmatprep.mubr.f32.mxu0 %v20139_v18 }
 0x102   : > { %2557 = vmatmul.mubr.f32.gmra.mrb[16].mxu1 %v20190_v8  ;;  %20209 = vst [vmem:[#allocation7_spill] sm:$0xff] %v15287_v7  ;;  %v15292_v8 = vsub.f32 %v15237_v35, %v19638_v40  ;;  %v15406_v40 = vld [vmem:[%s19548_s4 + $0xa8] sm:$0xff] }
 0x103   : > { %2562 = vmatprep.mubr.f32.mxu1 %v20139_v18 }
 0x104   : > { %1293 = vmatmul.mubr.f32.gmra.mrb[16].mxu0 %v20191_v14  ;;  %20210 = vst [vmem:[#allocation9_spill] sm:$0xff] %v15292_v8  ;;  %v15297_v14 = vld [vmem:[%s19548_s4 + $0x40] sm:$0xff]  ;;  %v15517_v8 = vld [vmem:[%s19548_s4 + $0xe8] sm:$0xff] }
 0x105   : > { %1298 = vmatprep.mubr.f32.mxu0 %v20139_v18 }
 0x106   : > { %2566 = vmatmul.mubr.f32.gmra.mrb[18].mxu1 %v20192_v56  ;;  %v15302_v56 = vld [vmem:[%s19548_s4 + $0x50] sm:$0xff] }
 0x107   : > { %2571 = vmatprep.mubr.f32.mxu1 %v20139_v18 }
 0x108   : > { %1302 = vmatmul.mubr.f32.gmra.mrb[18].mxu0 %v20193_v0  ;;  %v15307_v0 = vld [vmem:[%s19548_s4 + $0x68] sm:$0xff] }
 0x109   : > { %1307 = vmatprep.mubr.f32.mxu0 %v20139_v18 }
 0x10a   : > { %2575 = vmatmul.mubr.f32.gmra.mrb[20].mxu1 %v20194_v59  ;;  %v15314_v59 = vsub.f32 %v15242_v27, %v19637_v60 }
 0x10b   : > { %2580 = vmatprep.mubr.f32.mxu1 %v20139_v18 }
 0x10c   : > { %1311 = vmatmul.mubr.f32.gmra.mrb[20].mxu0 %v20195_v46  ;;  %20211 = vst [vmem:[#allocation8_spill] sm:$0xff] %v15314_v59  ;;  %v15319_v46 = vsub.f32 %v15247_v5, %v19636_v33  ;;  %v15522_v59 = vld [vmem:[%s19548_s4 + $0xf8] sm:$0xff] }
 0x10d   : > { %1316 = vmatprep.mubr.f32.mxu0 %v20139_v18 }
 0x10e   : > { %2584 = vmatmul.mubr.f32.gmra.mrb[22].mxu1 %v20196_v9  ;;  %20212 = vst [vmem:[#allocation10_spill] sm:$0xff] %v15319_v46  ;;  %v19632_v9 = vand.u32 4294901760, %v15262_v43 }
 0x10f   : > { %2589 = vmatprep.mubr.f32.mxu1 %v20139_v18 }
 0x110   : > { %1320 = vmatmul.mubr.f32.gmra.mrb[22].mxu0 %v20197_v57  ;;  %v15325_v57 = vsub.f32 %v15257_v3, %v19633_v20  ;;  %v15380_v20 = vld [vmem:[%s19548_s4 + $0x80] sm:$0xff] }
 0x111   : > { %1325 = vmatprep.mubr.f32.mxu0 %v20139_v18 }
 0x112   : > { %2593 = vmatmul.mubr.f32.gmra.mrb[24].mxu1 %v20198_v23  ;;  %20213 = vst [vmem:[#allocation11_spill] sm:$0xff] %v15325_v57  ;;  %v19634_v23 = vand.u32 4294901760, %v15276_v1 }
 0x113   : > { %2598 = vmatprep.mubr.f32.mxu1 %v20139_v18 }
 0x114   : > { %1329 = vmatmul.mubr.f32.gmra.mrb[24].mxu0 %v20199_v38  ;;  %v19635_v38 = vand.u32 4294901760, %v15281_v10  ;;  %v15364_v26 = vsub.f32 %v15276_v1, %v19634_v23  ;;  %v15385_v23 = vld [vmem:[%s19548_s4 + $0x90] sm:$0xff] }
 0x115   : > { %1334 = vmatprep.mubr.f32.mxu0 %v20139_v18 }
 0x116   : > { %2602 = vmatmul.mubr.f32.gmra.mrb[26].mxu1 %v20200_v6  ;;  %v15340_v6 = vsub.f32 %v15262_v43, %v19632_v9  ;;  %20215 = vst [vmem:[#allocation13_spill] sm:$0xff] %v15364_v26  ;;  %v15369_v39 = vsub.f32 %v15281_v10, %v19635_v38  ;;  %v15375_v9 = vld [vmem:[%s19548_s4 + $0x98] sm:$0xff]  ;;  %v15482_v26 = vld [vmem:[%s19548_s4 + $0xd0] sm:$0xff] }
 0x117   : > { %2607 = vmatprep.mubr.f32.mxu1 %v20139_v18  ;;  %20232 = vst [vmem:[#allocation34_spill] sm:$0xff] %v15482_v26  ;;  %v20247_v53 = vand.u32 4294901760, %v15482_v26 }
 0x118   : > { %1338 = vmatmul.mubr.f32.gmra.mrb[26].mxu0 %v20201_v16  ;;  %20214 = vst [vmem:[#allocation12_spill] sm:$0xff] %v15340_v6  ;;  %v19639_v16 = vand.u32 4294901760, %v15297_v14  ;;  %20216 = vst [vmem:[#allocation14_spill] sm:$0xff] %v15369_v39  ;;  %v15451_v39 = vld [vmem:[%s19548_s4 + $0xb0] sm:$0xff] }
 0x119   : > { %1343 = vmatprep.mubr.f32.mxu0 %v20139_v18  ;;  %20224 = vst [vmem:[#allocation28_spill] sm:$0xff] %v15451_v39  ;;  %v15569_v52 = vsub.f32 %v15482_v26, %v20247_v53 }
 0x11a   : > { %2611 = vmatmul.mubr.f32.gmra.mrb[28].mxu1 %v20202_v37  ;;  %v19640_v37 = vand.u32 4294901760, %v15302_v56  ;;  %v15391_v38 = vsub.f32 %v15297_v14, %v19639_v16 }
 0x11b   : > { %2616 = vmatprep.mubr.f32.mxu1 %v20139_v18  ;;  %20248 = vst [vmem:[#allocation43_spill] sm:$0xff] %v15569_v52 }
 0x11c   : > { %1347 = vmatmul.mubr.f32.gmra.mrb[28].mxu0 %v20203_v63  ;;  %v19644_v63 = vand.u32 4294901760, %v15307_v0  ;;  %20217 = vst [vmem:[#allocation15_spill] sm:$0xff] %v15391_v38  ;;  %v15396_v33 = vsub.f32 %v15302_v56, %v19640_v37  ;;  %v15424_v38 = vld [vmem:[%s19548_s4 + $0xb8] sm:$0xff] }
 0x11d   : > { %1352 = vmatprep.mubr.f32.mxu0 %v20139_v18 }
 0x11e   : > { %2620 = vmatmul.mubr.f32.gmra.mrb[30].mxu1 %v20204_v28  ;;  %v15348_v28 = vld [vmem:[%s19548_s4 + $0x60] sm:$0xff]  ;;  %20218 = vst [vmem:[#allocation16_spill] sm:$0xff] %v15396_v33  ;;  %v15401_v60 = vsub.f32 %v15307_v0, %v19644_v63 }
 0x11f   : > { %2696 = vmatprep.mubr.f32.mxu1 %v20139_v18  ;;  %v19651_v37 = vand.u32 4294901760, %v15348_v28 }
 0x120   : > { %1356 = vmatmul.mubr.f32.gmra.mrb[30].mxu0 %v20205_v17  ;;  %v15353_v17 = vld [vmem:[%s19548_s4 + $0x70] sm:$0xff]  ;;  %20219 = vst [vmem:[#allocation17_spill] sm:$0xff] %v15401_v60 }
 0x121   : > { %1432 = vmatprep.mubr.f32.mxu0 %v20139_v18  ;;  %v19652_v31 = vand.u32 4294901760, %v15353_v17  ;;  %v15435_v63 = vsub.f32 %v15348_v28, %v19651_v37  ;;  %v15456_v37 = vld [vmem:[%s19548_s4 + $0xc8] sm:$0xff] }
 0x122   : > { %2698 = vmatmul.mubr.f32.vlgmr.msra.gmra.mrb[0].mxu1 %v14605_v21  ;;  %20225 = vst [vmem:[#allocation29_spill] sm:$0xff] %v15456_v37 }
 0x123   : > { %2703 = vmatprep.mubr.f32.mxu1 %v20139_v18  ;;  %2812 = vmatpush1.msra.mxu1 %v14559_v4  ;;  %20221 = vst [vmem:[#allocation19_spill] sm:$0xff] %v15435_v63  ;;  %v15440_v33 = vsub.f32 %v15353_v17, %v19652_v31  ;;  %v15461_v31 = vld [vmem:[%s19548_s4 + $0xd8] sm:$0xff]  ;;  %v15477_v63 = vld [vmem:[%s19548_s4 + $0xc0] sm:$0xff] }
 0x124   : > { %1434 = vmatmul.mubr.f32.vlgmr.msra.gmra.mrb[0].mxu0 %v14618_v32  ;;  %20226 = vst [vmem:[#allocation30_spill] sm:$0xff] %v15461_v31  ;;  %20231 = vst [vmem:[#allocation33_spill] sm:$0xff] %v15477_v63 }
 0x125   : > { %1548 = vmatpush1.msra.mxu0 %v14559_v4  ;;  %1439 = vmatprep.mubr.f32.mxu0 %v20139_v18  ;;  %v15330_v4 = vld [vmem:[%s19548_s4 + $0x78] sm:$0xff]  ;;  %20222 = vst [vmem:[#allocation21_spill] sm:$0xff] %v15440_v33 }
 0x126   : > { %2705 = vmatmul.mubr.f32.gmra.mrb[2].mxu1 %v14609_v24  ;;  %12702 = vmatprep.subr.bf16.mxu0 %v15266_v50  ;;  %v19648_v2 = vand.u32 4294901760, %v15330_v4  ;;  %v19653_v50 = vand.u32 4294901760, %v15358_v41 }
 0x127   : > { %2710 = vmatprep.mubr.f32.mxu1 %v20139_v18 }
 0x128   : > { %1441 = vmatmul.mubr.f32.gmra.mrb[2].mxu0 %v14633_v42  ;;  %v15412_v16 = vsub.f32 %v15330_v4, %v19648_v2  ;;  %v15429_v2 = vld [vmem:[%s19548_s4 + $0xa0] sm:$0xff]  ;;  %v15445_v60 = vsub.f32 %v15358_v41, %v19653_v50  ;;  %v20227_v50 = vand.u32 4294901760, %v15375_v9 }
 0x129   : > { %1446 = vmatprep.mubr.f32.mxu0 %v20139_v18  ;;  %v19667_v57 = vand.u32 4294901760, %v15429_v2 }
 0x12a   : > { %2712 = vmatmul.mubr.f32.gmra.mrb[4].mxu1 %v14623_v34  ;;  %20220 = vst [vmem:[#allocation18_spill] sm:$0xff] %v15412_v16  ;;  %20223 = vst [vmem:[#allocation3_spill] sm:$0xff] %v15445_v60  ;;  %v15467_v16 = vsub.f32 %v15375_v9, %v20227_v50  ;;  %v20229_v60 = vand.u32 4294901760, %v15380_v20  ;;  %v20233_v50 = vand.u32 4294901760, %v15385_v23 }
 0x12b   : > { %2717 = vmatprep.mubr.f32.mxu1 %v20139_v18 }
 0x12c   : > { %1448 = vmatmul.mubr.f32.gmra.mrb[4].mxu0 %v14638_v44  ;;  %20228 = vst [vmem:[#allocation31_spill] sm:$0xff] %v15467_v16  ;;  %v15472_v33 = vsub.f32 %v15380_v20, %v20229_v60  ;;  %v15488_v16 = vsub.f32 %v15385_v23, %v20233_v50  ;;  %v19666_v60 = vand.u32 4294901760, %v15424_v38 }
 0x12d   : > { %1453 = vmatprep.mubr.f32.mxu0 %v20139_v18 }
 0x12e   : > { %20230 = vst [vmem:[#allocation32_spill] sm:$0xff] %v15472_v33  ;;  %2719 = vmatmul.mubr.f32.gmra.mrb[6].mxu1 %v14640_v45  ;;  %20234 = vst [vmem:[#allocation35_spill] sm:$0xff] %v15488_v16  ;;  %v20235_v33 = vand.u32 4294901760, %v15406_v40  ;;  %v15505_v50 = vsub.f32 %v15424_v38, %v19666_v60  ;;  %v15527_v60 = vld [vmem:[%s19548_s4 + $0xe0] sm:$0xff]  ;;  %v15548_v16 = vld [vmem:[%s19548_s4 + $0x108] sm:$0xff] }
 0x12f   : > { %2724 = vmatprep.mubr.f32.mxu1 %v20139_v18  ;;  %v20251_v26 = vand.u32 4294901760, %v15527_v60 }
 0x130   : > { %v15494_v6 = vsub.f32 %v15406_v40, %v20235_v33  ;;  %1455 = vmatmul.mubr.f32.gmra.mrb[6].mxu0 %v14660_v54  ;;  %20237 = vst [vmem:[#allocation37_spill] sm:$0xff] %v15505_v50  ;;  %v15510_v33 = vsub.f32 %v15429_v2, %v19667_v57  ;;  %v20239_v57 = vand.u32 4294901760, %v15451_v39  ;;  %v15543_v50 = vld [vmem:[%s19548_s4 + $0xf0] sm:$0xff] }
 0x131   : > { %1460 = vmatprep.mubr.f32.mxu0 %v20139_v18 }
 0x132   : > { %20236 = vst [vmem:[#allocation36_spill] sm:$0xff] %v15494_v6  ;;  %20238 = vst [vmem:[#allocation38_spill] sm:$0xff] %v15510_v33  ;;  %v15533_v46 = vsub.f32 %v15451_v39, %v20239_v57  ;;  %v20241_v6 = vand.u32 4294901760, %v15456_v37  ;;  %v15553_v57 = vld [vmem:[%s19548_s4 + $0x118] sm:$0xff]  ;;  %2726 = vmatmul.mubr.f32.gmra.mrb[8].mxu1 %v14692_v19  ;;  %v20253_v39 = vand.u32 4294901760, %v15543_v50 }
 0x133   : > { %2731 = vmatprep.mubr.f32.mxu1 %v20139_v18  ;;  %v20257_v52 = vand.u32 4294901760, %v15553_v57 }
 0x134   : > { %20240 = vst [vmem:[#allocation39_spill] sm:$0xff] %v15533_v46  ;;  %v15538_v33 = vsub.f32 %v15456_v37, %v20241_v6  ;;  %v20243_v6 = vand.u32 4294901760, %v15461_v31  ;;  %v20245_v46 = vand.u32 4294901760, %v15477_v63  ;;  %v15574_v37 = vld [vmem:[%s19548_s4 + $0x100] sm:$0xff]  ;;  %1462 = vmatmul.mubr.f32.gmra.mrb[8].mxu0 %v14700_v29 }
 0x135   : > { %1467 = vmatprep.mubr.f32.mxu0 %v20139_v18  ;;  %v15622_v53 = vsub.f32 %v15553_v57, %v20257_v52  ;;  %v20263_v52 = vld [vmem:[#allocation20_spill] sm:$0xff] }
 0x136   : > { %20242 = vst [vmem:[#allocation40_spill] sm:$0xff] %v15538_v33  ;;  %v15559_v33 = vsub.f32 %v15461_v31, %v20243_v6  ;;  %v15564_v7 = vsub.f32 %v15477_v63, %v20245_v46  ;;  %v15579_v6 = vld [vmem:[%s19548_s4 + $0x110] sm:$0xff]  ;;  %v19684_v46 = vand.u32 4294901760, %v15517_v8  ;;  %2733 = vmatmul.mubr.f32.gmra.mrb[10].mxu1 %v14706_v36 }
 0x137   : > { %2738 = vmatprep.mubr.f32.mxu1 %v20139_v18  ;;  %20258 = vst [vmem:[#allocation49_spill] sm:$0xff] %v15622_v53  ;;  %v20267_v53 = vld [vmem:[#allocation25_spill] sm:$0xff] }
 0x138   : > { %20244 = vst [vmem:[#allocation41_spill] sm:$0xff] %v15559_v33  ;;  %20246 = vst [vmem:[#allocation42_spill] sm:$0xff] %v15564_v7  ;;  %v19686_v7 = vand.u32 4294901760, %v15522_v59  ;;  %v15593_v63 = vsub.f32 %v15517_v8, %v19684_v46  ;;  %v15606_v33 = vsub.f32 %v15527_v60, %v20251_v26  ;;  %v15611_v46 = vsub.f32 %v15543_v50, %v20253_v39 }
 0x139   : > { %v20259_v26 = vand.u32 4294901760, %v15574_v37  ;;  %v20261_v39 = vand.u32 4294901760, %v15579_v6  ;;  %1469 = vmatmul.mubr.f32.gmra.mrb[10].mxu0 %v14728_v61 }
 0x13a   : > { %20249 = vst [vmem:[#allocation44_spill] sm:$0xff] %v15593_v63  ;;  %v15598_v31 = vsub.f32 %v15522_v59, %v19686_v7  ;;  %20252 = vst [vmem:[#allocation46_spill] sm:$0xff] %v15606_v33  ;;  %v20255_v63 = vand.u32 4294901760, %v15548_v16  ;;  %1474 = vmatprep.mubr.f32.mxu0 %v20139_v18  ;;  %2740 = vmatmul.mubr.f32.gmra.mrb[12].mxu1 %v14717_v47  ;;  %v20271_v33 = vand.u32 4294901760, %v15237_v35  ;;  %v20277_v35 = vand.u32 4294901760, %v15262_v43 }
 0x13b   : > { %20254 = vst [vmem:[#allocation47_spill] sm:$0xff] %v15611_v46  ;;  %v15632_v46 = vsub.f32 %v15579_v6, %v20261_v39  ;;  %2745 = vmatprep.mubr.f32.mxu1 %v20139_v18  ;;  %v20266_v39 = vld [vmem:[#allocation24_spill] sm:$0xff]  ;;  %v20285_v43 = vand.u32 4294901760, %v15307_v0  ;;  %v20292_v0 = vand.u32 4294901760, %v15375_v9  ;;  %v20297_v9 = vand.u32 4294901760, %v15406_v40  ;;  %v20304_v40 = vld [vmem:[#allocation29_spill] sm:$0xff] }
 0x13c   : > { %20250 = vst [vmem:[#allocation45_spill] sm:$0xff] %v15598_v31  ;;  %v15616_v7 = vsub.f32 %v15548_v16, %v20255_v63  ;;  %v15627_v31 = vsub.f32 %v15574_v37, %v20259_v26  ;;  %v20264_v63 = vld [vmem:[#allocation22_spill] sm:$0xff]  ;;  %v20265_v26 = vld [vmem:[#allocation23_spill] sm:$0xff] }
 0x13d   : > { %20262 = vst [vmem:[#allocation51_spill] sm:$0xff] %v15632_v46  ;;  %1476 = vmatmul.mubr.f32.gmra.mrb[12].mxu0 %v14738_v12  ;;  %v20269_v46 = vld [vmem:[#allocation27_spill] sm:$0xff] }
 0x13e   : > { %20256 = vst [vmem:[#allocation48_spill] sm:$0xff] %v15616_v7  ;;  %20260 = vst [vmem:[#allocation50_spill] sm:$0xff] %v15627_v31  ;;  %1481 = vmatprep.mubr.f32.mxu0 %v20139_v18  ;;  %2747 = vmatmul.mubr.f32.gmra.mrb[14].mxu1 %v14740_v13  ;;  %v20268_v7 = vld [vmem:[#allocation26_spill] sm:$0xff]  ;;  %v20270_v31 = vand.u32 4294901760, %v15231_v25  ;;  %v20276_v25 = vand.u32 4294901760, %v15257_v3 }
 0x13f   : > { %2752 = vmatprep.mubr.f32.mxu1 %v20139_v18 }
 0x141   : > { %1483 = vmatmul.mubr.f32.gmra.mrb[14].mxu0 %v14764_v49 }
 0x142   : > { %1488 = vmatprep.mubr.f32.mxu0 %v20139_v18  ;;  %2754 = vmatmul.mubr.f32.gmra.mrb[16].mxu1 %v14777_v11 }
 0x143   : > { %2759 = vmatprep.mubr.f32.mxu1 %v20139_v18 }
 0x145   : > { %1490 = vmatmul.mubr.f32.gmra.mrb[16].mxu0 %v14793_v51 }
 0x146   : > { %1495 = vmatprep.mubr.f32.mxu0 %v20139_v18  ;;  %2761 = vmatmul.mubr.f32.gmra.mrb[18].mxu1 %v14795_v30 }
 0x147   : > { %2766 = vmatprep.mubr.f32.mxu1 %v20139_v18 }
 0x149   : > { %1497 = vmatmul.mubr.f32.gmra.mrb[18].mxu0 %v14803_v58 }
 0x14a   : > { %1502 = vmatprep.mubr.f32.mxu0 %v20139_v18  ;;  %2768 = vmatmul.mubr.f32.gmra.mrb[20].mxu1 %v14809_v48 }
 0x14b   : > { %2773 = vmatprep.mubr.f32.mxu1 %v20139_v18 }
 0x14d   : > { %1504 = vmatmul.mubr.f32.gmra.mrb[20].mxu0 %v14829_v22 }
 0x14e   : > { %1509 = vmatprep.mubr.f32.mxu0 %v20139_v18  ;;  %2775 = vmatmul.mubr.f32.gmra.mrb[22].mxu1 %v14836_v15 }
 0x14f   : > { %2780 = vmatprep.mubr.f32.mxu1 %v20139_v18 }
 0x151   : > { %1511 = vmatmul.mubr.f32.gmra.mrb[22].mxu0 %v14854_v55 }
 0x152   : > { %1516 = vmatprep.mubr.f32.mxu0 %v20139_v18  ;;  %2782 = vmatmul.mubr.f32.gmra.mrb[24].mxu1 %v14865_v62 }
 0x153   : > { %2787 = vmatprep.mubr.f32.mxu1 %v20139_v18 }
 0x155   : > { %1518 = vmatmul.mubr.f32.gmra.mrb[24].mxu0 %v20263_v52 }
 0x156   : > { %1523 = vmatprep.mubr.f32.mxu0 %v20139_v18  ;;  %2789 = vmatmul.mubr.f32.gmra.mrb[26].mxu1 %v20264_v63 }
 0x157   : > { %2794 = vmatprep.mubr.f32.mxu1 %v20139_v18 }
 0x159   : > { %1525 = vmatmul.mubr.f32.gmra.mrb[26].mxu0 %v20265_v26  ;;  %v15680_v26 = vpack.c.bf16 %v20271_v33, %v20270_v31  ;;  %v15697_v31 = vpack.c.bf16 %v20277_v35, %v20276_v25  ;;  %v20306_v33 = vld [vmem:[#allocation30_spill] sm:$0xff] }
 0x15a   : > { %1530 = vmatprep.mubr.f32.mxu0 %v20139_v18  ;;  %2796 = vmatmul.mubr.f32.gmra.mrb[28].mxu1 %v20266_v39  ;;  %v20274_v39 = vand.u32 4294901760, %v15247_v5  ;;  %v20311_v25 = vld [vmem:[#allocation34_spill] sm:$0xff] }
 0x15b   : > { %2801 = vmatprep.mubr.f32.mxu1 %v20139_v18  ;;  %20272 = vst [vmem:[#allocation20_spill] sm:$0xff] %v15680_v26  ;;  %20278 = vst [vmem:[#allocation27_spill] sm:$0xff] %v15697_v31 }
 0x15d   : > { %1532 = vmatmul.mubr.f32.gmra.mrb[28].mxu0 %v20267_v53  ;;  %v20273_v53 = vand.u32 4294901760, %v15242_v27  ;;  %v20280_v27 = vand.u32 4294901760, %v15281_v10 }
 0x15e   : > { %1537 = vmatprep.mubr.f32.mxu0 %v20139_v18  ;;  %2803 = vmatmul.mubr.f32.gmra.mrb[30].mxu1 %v20268_v7 }
 0x15f   : > { %2875 = vmatprep.mubr.f32.mxu1 %v20139_v18  ;;  %v15687_v63 = vpack.c.bf16 %v20274_v39, %v20273_v53  ;;  %v20307_v53 = vand.u32 4294901760, %v20306_v33 }
 0x161   : > { %1539 = vmatmul.mubr.f32.gmra.mrb[30].mxu0 %v20269_v46  ;;  %20275 = vst [vmem:[#allocation26_spill] sm:$0xff] %v15687_v63 }
 0x162   : > { %1611 = vmatprep.mubr.f32.mxu0 %v20139_v18  ;;  %2877 = vmatmul.mubr.f32.vlgmr.msra.gmra.mrb[0].mxu1 %v14605_v21  ;;  %v20279_v21 = vand.u32 4294901760, %v15276_v1  ;;  %v20286_v1 = vand.u32 4294901760, %v15330_v4 }
 0x163   : > { %2882 = vmatprep.mubr.f32.mxu1 %v20139_v18 }
 0x164   : > { %v15705_v5 = vpack.c.bf16 %v20280_v27, %v20279_v21  ;;  %v15723_v10 = vpack.c.bf16 %v20286_v1, %v20285_v43  ;;  %v20314_v21 = vand.u32 4294901760, %v15517_v8  ;;  %v20315_v27 = vand.u32 4294901760, %v15522_v59 }
 0x165   : > { %1613 = vmatmul.mubr.f32.vlgmr.msra.gmra.mrb[0].mxu0 %v14618_v32  ;;  %v20282_v32 = vand.u32 4294901760, %v15297_v14  ;;  %v20320_v8 = vand.u32 4294901760, %v15548_v16  ;;  %v20321_v59 = vand.u32 4294901760, %v15553_v57 }
 0x166   : > { %1618 = vmatprep.mubr.f32.mxu0 %v20139_v18  ;;  %12704 = vmatpush1.bf16.msra.mxu0 %v15680_v26  ;;  %20281 = vst [vmem:[#allocation52_spill] sm:$0xff] %v15705_v5  ;;  %20287 = vst [vmem:[#allocation54_spill] sm:$0xff] %v15723_v10 }
 0x167   : > { %2884 = vmatmul.mubr.f32.gmra.mrb[2].mxu1 %v14609_v24  ;;  %12706 = vmatprep.subr.bf16.mxu0 %v15687_v63  ;;  %v20283_v24 = vand.u32 4294901760, %v15302_v56  ;;  %v20291_v56 = vand.u32 4294901760, %v15358_v41  ;;  %v15813_v43 = vpack.c.bf16 %v20321_v59, %v20320_v8  ;;  %v20378_v63 = vld [vmem:[#allocation42_spill] sm:$0xff] }
 0x168   : > { %2889 = vmatprep.mubr.f32.mxu1 %v20139_v18 }
 0x169   : > { %1620 = vmatmul.mubr.f32.gmra.mrb[2].mxu0 %v14633_v42  ;;  %v15715_v3 = vpack.c.bf16 %v20283_v24, %v20282_v32  ;;  %v20288_v42 = vand.u32 4294901760, %v15348_v28  ;;  %v15741_v4 = vpack.c.bf16 %v20292_v0, %v20291_v56  ;;  %v15795_v32 = vpack.c.bf16 %v20315_v27, %v20314_v21  ;;  %20322 = vst [vmem:[#allocation59_spill] sm:$0xff] %v15813_v43 }
 0x16a   : > { %1625 = vmatprep.mubr.f32.mxu0 %v20139_v18  ;;  %12708 = vmatpush1.bf16.msra.mxu0 %v15697_v31 }
 0x16b   : > { %20284 = vst [vmem:[#allocation53_spill] sm:$0xff] %v15715_v3  ;;  %2891 = vmatmul.mubr.f32.gmra.mrb[4].mxu1 %v14623_v34  ;;  %12710 = vmatprep.subr.bf16.mxu0 %v15705_v5  ;;  %v20289_v34 = vand.u32 4294901760, %v15353_v17  ;;  %20293 = vst [vmem:[#allocation56_spill] sm:$0xff] %v15741_v4  ;;  %v20298_v17 = vand.u32 4294901760, %v15424_v38  ;;  %v20305_v38 = vand.u32 4294901760, %v20304_v40  ;;  %v3110_v40 = vld [vmem:[%s19548_s4 + $0x170] sm:$0xff] }
 0x16c   : > { %2896 = vmatprep.mubr.f32.mxu1 %v20139_v18  ;;  %v3255_v33 = vand.u32 4294901760, %v3110_v40 }
 0x16d   : > { %1627 = vmatmul.mubr.f32.gmra.mrb[4].mxu0 %v14638_v44  ;;  %v15733_v14 = vpack.c.bf16 %v20289_v34, %v20288_v42  ;;  %v20294_v44 = vand.u32 4294901760, %v15380_v20  ;;  %v15759_v41 = vpack.c.bf16 %v20298_v17, %v20297_v9  ;;  %v20301_v20 = vld [vmem:[#allocation28_spill] sm:$0xff]  ;;  %v15777_v39 = vpack.c.bf16 %v20307_v53, %v20305_v38  ;;  %v3104_v42 = vld [vmem:[%s19548_s4 + $0x140] sm:$0xff]  ;;  %v3111_v17 = vld [vmem:[%s19548_s4 + $0x178] sm:$0xff] }
 0x16e   : > { %1632 = vmatprep.mubr.f32.mxu0 %v20139_v18  ;;  %12712 = vmatpush1.bf16.msra.mxu0 %v15715_v3  ;;  %v3106_v34 = vld [vmem:[%s19548_s4 + $0x150] sm:$0xff]  ;;  %v3243_v56 = vand.u32 4294901760, %v3104_v42  ;;  %v3109_v9 = vld [vmem:[%s19548_s4 + $0x168] sm:$0xff] }
 0x16f   : > { %20290 = vst [vmem:[#allocation55_spill] sm:$0xff] %v15733_v14  ;;  %2898 = vmatmul.mubr.f32.gmra.mrb[6].mxu1 %v14640_v45  ;;  %12714 = vmatprep.subr.bf16.mxu0 %v15723_v10  ;;  %v20295_v45 = vand.u32 4294901760, %v15385_v23  ;;  %20299 = vst [vmem:[#allocation58_spill] sm:$0xff] %v15759_v41  ;;  %v3247_v0 = vand.u32 4294901760, %v3106_v34  ;;  %v20376_v10 = vld [vmem:[#allocation40_spill] sm:$0xff] }
 0x170   : > { %2903 = vmatprep.mubr.f32.mxu1 %v20139_v18  ;;  %20308 = vst [vmem:[#allocation29_spill] sm:$0xff] %v15777_v39  ;;  %v15919_v21 = vsub.f32 %v3104_v42, %v3243_v56  ;;  %v19764_v3 = vand.u32 4294901760, %v20376_v10 }
 0x171   : > { %1634 = vmatmul.mubr.f32.gmra.mrb[6].mxu0 %v14660_v54  ;;  %v15751_v28 = vpack.c.bf16 %v20295_v45, %v20294_v44  ;;  %v20300_v54 = vand.u32 4294901760, %v15429_v2  ;;  %v15893_v45 = vpack.c.bf16 %v3247_v0, %v3243_v56  ;;  %v15921_v27 = vsub.f32 %v3106_v34, %v3247_v0  ;;  %v20352_v34 = vld [vmem:[#allocation8_spill] sm:$0xff]  ;;  %v20353_v0 = vld [vmem:[#allocation10_spill] sm:$0xff] }
 0x172   : > { %1639 = vmatprep.mubr.f32.mxu0 %v20139_v18  ;;  %12716 = vmatpush1.bf16.msra.mxu0 %v15733_v14  ;;  %20341 = vst [vmem:[#allocation68_spill] sm:$0xff] %v15919_v21  ;;  %v19694_v56 = vand.u32 4294901760, %v20352_v34 }
 0x173   : > { %20296 = vst [vmem:[#allocation57_spill] sm:$0xff] %v15751_v28  ;;  %2905 = vmatmul.mubr.f32.gmra.mrb[8].mxu1 %v14692_v19  ;;  %12718 = vmatprep.subr.bf16.mxu0 %v15741_v4  ;;  %v20302_v19 = vand.u32 4294901760, %v20301_v20  ;;  %20335 = vst [vmem:[#allocation62_spill] sm:$0xff] %v15893_v45  ;;  %v3253_v20 = vand.u32 4294901760, %v3111_v17  ;;  %v20373_v4 = vld [vmem:[#allocation39_spill] sm:$0xff] }
 0x174   : > { %2910 = vmatprep.mubr.f32.mxu1 %v20139_v18  ;;  %20342 = vst [vmem:[#allocation69_spill] sm:$0xff] %v15921_v27 }
 0x175   : > { %1641 = vmatmul.mubr.f32.gmra.mrb[8].mxu0 %v14700_v29  ;;  %v15769_v23 = vpack.c.bf16 %v20302_v19, %v20300_v54  ;;  %v20309_v29 = vld [vmem:[#allocation33_spill] sm:$0xff]  ;;  %v3249_v54 = vand.u32 4294901760, %v3109_v9  ;;  %v3108_v19 = vld [vmem:[%s19548_s4 + $0x160] sm:$0xff]  ;;  %v15929_v8 = vsub.f32 %v3111_v17, %v3253_v20 }
 0x176   : > { %1646 = vmatprep.mubr.f32.mxu0 %v20139_v18  ;;  %12720 = vmatpush1.bf16.msra.mxu0 %v15751_v28  ;;  %v20310_v2 = vand.u32 4294901760, %v20309_v29  ;;  %20316 = vst [vmem:[#allocation33_spill] sm:$0xff] %v15795_v32  ;;  %v3251_v38 = vand.u32 4294901760, %v3108_v19  ;;  %v20354_v17 = vld [vmem:[#allocation11_spill] sm:$0xff] }
 0x177   : > { %20303 = vst [vmem:[#allocation28_spill] sm:$0xff] %v15769_v23  ;;  %2912 = vmatmul.mubr.f32.gmra.mrb[10].mxu1 %v14706_v36  ;;  %12722 = vmatprep.subr.bf16.mxu0 %v15759_v41  ;;  %v20312_v36 = vand.u32 4294901760, %v20311_v25  ;;  %v15909_v53 = vpack.c.bf16 %v3253_v20, %v3249_v54  ;;  %20345 = vst [vmem:[#allocation72_spill] sm:$0xff] %v15929_v8  ;;  %v20355_v20 = vld [vmem:[#allocation12_spill] sm:$0xff]  ;;  %v20372_v41 = vld [vmem:[#allocation38_spill] sm:$0xff] }
 0x178   : > { %2917 = vmatprep.mubr.f32.mxu1 %v20139_v18  ;;  %v15931_v59 = vsub.f32 %v3108_v19, %v3251_v38  ;;  %v19701_v19 = vand.u32 4294901760, %v20355_v20  ;;  %v19763_v28 = vand.u32 4294901760, %v20372_v41 }
 0x179   : > { %1648 = vmatmul.mubr.f32.gmra.mrb[10].mxu0 %v14728_v61  ;;  %v15787_v35 = vpack.c.bf16 %v20312_v36, %v20310_v2  ;;  %v20317_v61 = vand.u32 4294901760, %v15527_v60  ;;  %20336 = vst [vmem:[#allocation63_spill] sm:$0xff] %v15909_v53 }
 0x17a   : > { %1653 = vmatprep.mubr.f32.mxu0 %v20139_v18  ;;  %12724 = vmatpush1.bf16.msra.mxu0 %v15769_v23  ;;  %20346 = vst [vmem:[#allocation73_spill] sm:$0xff] %v15931_v59 }
 0x17b   : > { %20313 = vst [vmem:[#allocation30_spill] sm:$0xff] %v15787_v35  ;;  %2919 = vmatmul.mubr.f32.gmra.mrb[12].mxu1 %v14717_v47  ;;  %12726 = vmatprep.subr.bf16.mxu0 %v15777_v39  ;;  %v20318_v47 = vand.u32 4294901760, %v15543_v50 }
 0x17c   : > { %2924 = vmatprep.mubr.f32.mxu1 %v20139_v18 }
 0x17d   : > { %1655 = vmatmul.mubr.f32.gmra.mrb[12].mxu0 %v14738_v12  ;;  %v15805_v24 = vpack.c.bf16 %v20318_v47, %v20317_v61  ;;  %v20323_v12 = vand.u32 4294901760, %v15574_v37  ;;  %v15924_v61 = vpack.c.bf16 %v3255_v33, %v3251_v38  ;;  %v15927_v47 = vsub.f32 %v3109_v9, %v3249_v54 }
 0x17e   : > { %1660 = vmatprep.mubr.f32.mxu0 %v20139_v18  ;;  %12728 = vmatpush1.bf16.msra.mxu0 %v15787_v35  ;;  %v19697_v9 = vand.u32 4294901760, %v20353_v0  ;;  %v19699_v54 = vand.u32 4294901760, %v20354_v17 }
 0x17f   : > { %20319 = vst [vmem:[#allocation34_spill] sm:$0xff] %v15805_v24  ;;  %2926 = vmatmul.mubr.f32.gmra.mrb[14].mxu1 %v14740_v13  ;;  %12730 = vmatprep.subr.bf16.mxu0 %v15795_v32  ;;  %v20324_v13 = vand.u32 4294901760, %v15579_v6  ;;  %v3105_v6 = vld [vmem:[%s19548_s4 + $0x148] sm:$0xff]  ;;  %20343 = vst [vmem:[#allocation70_spill] sm:$0xff] %v15924_v61 }
 0x180   : > { %2931 = vmatprep.mubr.f32.mxu1 %v20139_v18  ;;  %20344 = vst [vmem:[#allocation71_spill] sm:$0xff] %v15927_v47  ;;  %v3569_v38 = vsub.f32 %v20353_v0, %v19697_v9 }
 0x181   : > { %1662 = vmatmul.mubr.f32.gmra.mrb[14].mxu0 %v14764_v49  ;;  %v15823_v60 = vpack.c.bf16 %v20324_v13, %v20323_v12  ;;  %v3103_v49 = vld [vmem:[%s19548_s4 + $0x138] sm:$0xff]  ;;  %v15933_v12 = vsub.f32 %v3110_v40, %v3255_v33  ;;  %v3557_v40 = vsub.f32 %v20352_v34, %v19694_v56  ;;  %v3563_v33 = vsub.f32 %v20354_v17, %v19699_v54  ;;  %v20358_v56 = vld [vmem:[#allocation15_spill] sm:$0xff] }
 0x182   : > { %1667 = vmatprep.mubr.f32.mxu0 %v20139_v18  ;;  %12732 = vmatpush1.bf16.msra.mxu0 %v15805_v24  ;;  %v20348_v13 = vld [vmem:[#allocation5_spill] sm:$0xff] }
 0x183   : > { %20325 = vst [vmem:[#allocation60_spill] sm:$0xff] %v15823_v60  ;;  %2933 = vmatmul.mubr.f32.gmra.mrb[16].mxu1 %v14777_v11  ;;  %12734 = vmatprep.subr.bf16.mxu0 %v15813_v43  ;;  %v20329_v11 = vld [vmem:[#allocation25_spill] sm:$0xff]  ;;  %20347 = vst [vmem:[#allocation74_spill] sm:$0xff] %v15933_v12  ;;  %v20365_v43 = vld [vmem:[#allocation3_spill] sm:$0xff] }
 0x184   : > { %2938 = vmatprep.mubr.f32.mxu1 %v20139_v18  ;;  %v19736_v24 = vand.u32 4294901760, %v20365_v43 }
 0x185   : > { %1669 = vmatmul.mubr.f32.gmra.mrb[16].mxu0 %v14793_v51  ;;  %v20327_v51 = vld [vmem:[#allocation23_spill] sm:$0xff] }
 0x186   : > { %1674 = vmatprep.mubr.f32.mxu0 %v20139_v18  ;;  %12736 = vmatpush1.bf16.msra.mxu0 %v15823_v60 }
 0x187   : > { %2940 = vmatmul.mubr.f32.gmra.mrb[18].mxu1 %v14795_v30  ;;  %v3101_v30 = vld [vmem:[%s19548_s4 + $0x128] sm:$0xff] }
 0x188   : > { %2945 = vmatprep.mubr.f32.mxu1 %v20139_v18 }
 0x189   : > { %1676 = vmatmul.mubr.f32.gmra.mrb[18].mxu0 %v14803_v58  ;;  %v3233_v58 = vand.u32 4294901760, %v3101_v30 }
 0x18a   : > { %1681 = vmatprep.mubr.f32.mxu0 %v20139_v18 }
 0x18b   : > { %2947 = vmatmul.mubr.f32.gmra.mrb[20].mxu1 %v14809_v48  ;;  %v20326_v48 = vld [vmem:[#allocation22_spill] sm:$0xff]  ;;  %v15871_v37 = vsub.f32 %v3101_v30, %v3233_v58 }
 0x18c   : > { %2952 = vmatprep.mubr.f32.mxu1 %v20139_v18 }
 0x18d   : > { %1683 = vmatmul.mubr.f32.gmra.mrb[20].mxu0 %v14829_v22  ;;  %v3237_v22 = vand.u32 4294901760, %v3103_v49  ;;  %20331 = vst [vmem:[#allocation23_spill] sm:$0xff] %v15871_v37 }
 0x18e   : > { %1688 = vmatprep.mubr.f32.mxu0 %v20139_v18 }
 0x18f   : > { %2954 = vmatmul.mubr.f32.gmra.mrb[22].mxu1 %v14836_v15  ;;  %v20328_v15 = vld [vmem:[#allocation24_spill] sm:$0xff]  ;;  %v15869_v16 = vpack.c.bf16 %v3237_v22, %v3233_v58  ;;  %v15873_v50 = vsub.f32 %v3103_v49, %v3237_v22  ;;  %v20350_v49 = vld [vmem:[#allocation7_spill] sm:$0xff]  ;;  %v20351_v22 = vld [vmem:[#allocation9_spill] sm:$0xff] }
 0x190   : > { %2959 = vmatprep.mubr.f32.mxu1 %v20139_v18  ;;  %v19696_v58 = vand.u32 4294901760, %v20350_v49 }
 0x191   : > { %1690 = vmatmul.mubr.f32.gmra.mrb[22].mxu0 %v14854_v55  ;;  %v3100_v55 = vld [vmem:[%s19548_s4 + $0x120] sm:$0xff]  ;;  %20330 = vst [vmem:[#allocation22_spill] sm:$0xff] %v15869_v16  ;;  %20332 = vst [vmem:[#allocation24_spill] sm:$0xff] %v15873_v50  ;;  %12738 = vmatprep.subr.bf16.mxu0 %v15869_v16 }
 0x192   : > { %1695 = vmatprep.mubr.f32.mxu0 %v20139_v18 }
 0x193   : > { %2961 = vmatmul.mubr.f32.gmra.mrb[24].mxu1 %v14865_v62  ;;  %v3235_v62 = vand.u32 4294901760, %v3100_v55 }
 0x194   : > { %2966 = vmatprep.mubr.f32.mxu1 %v20139_v18 }
 0x195   : > { %1697 = vmatmul.mubr.f32.gmra.mrb[24].mxu0 %v20263_v52  ;;  %v3241_v52 = vand.u32 4294901760, %v3105_v6  ;;  %v15911_v29 = vsub.f32 %v3100_v55, %v3235_v62  ;;  %v19695_v55 = vand.u32 4294901760, %v20351_v22 }
 0x196   : > { %1702 = vmatprep.mubr.f32.mxu0 %v20139_v18 }
 0x197   : > { %2968 = vmatmul.mubr.f32.gmra.mrb[26].mxu1 %v20326_v48  ;;  %20337 = vst [vmem:[#allocation64_spill] sm:$0xff] %v15911_v29  ;;  %v15915_v25 = vsub.f32 %v3105_v6, %v3241_v52  ;;  %v19700_v48 = vand.u32 4294901760, %v20348_v13  ;;  %v3551_v6 = vsub.f32 %v20351_v22, %v19695_v55  ;;  %v19706_v55 = vand.u32 4294901760, %v20358_v56 }
 0x198   : > { %2973 = vmatprep.mubr.f32.mxu1 %v20139_v18 }
 0x199   : > { %1704 = vmatmul.mubr.f32.gmra.mrb[26].mxu0 %v20327_v51  ;;  %20339 = vst [vmem:[#allocation66_spill] sm:$0xff] %v15915_v25  ;;  %v20349_v51 = vld [vmem:[#allocation6_spill] sm:$0xff] }
 0x19a   : > { %1709 = vmatprep.mubr.f32.mxu0 %v20139_v18 }
 0x19b   : > { %2975 = vmatmul.mubr.f32.gmra.mrb[28].mxu1 %v20328_v15  ;;  %v19698_v15 = vand.u32 4294901760, %v20349_v51 }
 0x19c   : > { %2980 = vmatprep.mubr.f32.mxu1 %v20139_v18 }
 0x19d   : > { %1711 = vmatmul.mubr.f32.gmra.mrb[28].mxu0 %v20329_v11  ;;  %v3533_v11 = vsub.f32 %v20348_v13, %v19700_v48  ;;  %v3545_v30 = vsub.f32 %v20349_v51, %v19698_v15 }
 0x19e   : > { %1716 = vmatprep.mubr.f32.mxu0 %v20139_v18  ;;  %v3102_v18 = vld [vmem:[%s19548_s4 + $0x130] sm:$0xff] }
 0x19f   : > { %2982 = vmatmul.mubr.f32.gmra.mrb[30].mxu1 %v20268_v7  ;;  %v3239_v7 = vand.u32 4294901760, %v3102_v18 }
 0x1a1   : > { %1718 = vmatmul.mubr.f32.gmra.mrb[30].mxu0 %v20269_v46  ;;  %v15875_v57 = vpack.c.bf16 %v3239_v7, %v3235_v62  ;;  %v3107_v46 = vld [vmem:[%s19548_s4 + $0x158] sm:$0xff]  ;;  %v15913_v2 = vsub.f32 %v3102_v18, %v3239_v7  ;;  %v3534_v18 = vand.u32 4294901760, %v3533_v11  ;;  %v3546_v62 = vand.u32 4294901760, %v3545_v30 }
 0x1a2   : > { %v3245_v1 = vand.u32 4294901760, %v3107_v46  ;;  %v3539_v7 = vsub.f32 %v20350_v49, %v19696_v58  ;;  %v3575_v11 = vsub.f32 %v20355_v20, %v19701_v19  ;;  %v3558_v30 = vand.u32 4294901760, %v3557_v40  ;;  %v20359_v58 = vld [vmem:[#allocation16_spill] sm:$0xff]  ;;  %v20361_v19 = vld [vmem:[#allocation18_spill] sm:$0xff] }
 0x1a3   : > { %20333 = vst [vmem:[#allocation25_spill] sm:$0xff] %v15875_v57  ;;  %12740 = vmatpush1.bf16.msra.mxu0 %v15875_v57  ;;  %20338 = vst [vmem:[#allocation65_spill] sm:$0xff] %v15913_v2  ;;  %v19713_v9 = vand.u32 4294901760, %v20359_v58 }
 0x1a4   : > { %v15891_v44 = vpack.c.bf16 %v3245_v1, %v3241_v52  ;;  %v15917_v36 = vsub.f32 %v3107_v46, %v3245_v1  ;;  %v12749_v46 = vpack.c.bf16 %v3546_v62, %v3534_v18  ;;  %v3540_v52 = vand.u32 4294901760, %v3539_v7  ;;  %v20356_v7 = vld [vmem:[#allocation13_spill] sm:$0xff] }
 0x1a5   : > { %v3552_v1 = vand.u32 4294901760, %v3551_v6  ;;  %v3570_v18 = vand.u32 4294901760, %v3569_v38  ;;  %v3564_v62 = vand.u32 4294901760, %v3563_v33  ;;  %v19704_v6 = vand.u32 4294901760, %v20356_v7 }
 0x1a6   : > { %20334 = vst [vmem:[#allocation61_spill] sm:$0xff] %v15891_v44  ;;  %12742 = vmatprep.subr.bf16.mxu0 %v15891_v44  ;;  %20340 = vst [vmem:[#allocation67_spill] sm:$0xff] %v15917_v36  ;;  %v3587_v38 = vsub.f32 %v20358_v56, %v19706_v55  ;;  %v3599_v33 = vsub.f32 %v20359_v58, %v19713_v9  ;;  %v20363_v44 = vld [vmem:[#allocation21_spill] sm:$0xff] }
 0x1a7   : > { %12744 = vmatpush1.bf16.msra.mxu0 %v15893_v45  ;;  %v15951_v42 = vpack.c.bf16 %v3552_v1, %v3540_v52  ;;  %v20357_v52 = vld [vmem:[#allocation14_spill] sm:$0xff]  ;;  %v15973_v15 = vpack.c.bf16 %v3570_v18, %v3558_v30  ;;  %v3581_v54 = vsub.f32 %v20356_v7, %v19704_v6  ;;  %v20360_v30 = vld [vmem:[#allocation17_spill] sm:$0xff]  ;;  %v19729_v9 = vand.u32 4294901760, %v20363_v44 }
 0x1a8   : > { %12746 = vmatprep.subr.bf16.mxu0 %v15909_v53  ;;  %v19705_v1 = vand.u32 4294901760, %v20357_v52  ;;  %v19718_v18 = vand.u32 4294901760, %v20360_v30  ;;  %v20362_v53 = vld [vmem:[#allocation19_spill] sm:$0xff] }
 0x1a9   : > { %v19728_v45 = vand.u32 4294901760, %v20362_v53 }
 0x1aa   : > { %v3593_v40 = vsub.f32 %v20357_v52, %v19705_v1  ;;  %v3605_v1 = vsub.f32 %v20360_v30, %v19718_v18 }
 0x1ab   : > { %12748 = vmatpush1.bf16.msra.mxu0 %v15924_v61  ;;  %v19719_v61 = vand.u32 4294901760, %v20361_v19 }
 0x1ac   : > { %12750 = vmatprep.subr.bf16.mxu0 %v12749_v46  ;;  %v3576_v46 = vand.u32 4294901760, %v3575_v11  ;;  %v3582_v11 = vand.u32 4294901760, %v3581_v54  ;;  %v3594_v6 = vand.u32 4294901760, %v3593_v40  ;;  %v3606_v16 = vand.u32 4294901760, %v3605_v1  ;;  %v20368_v1 = vld [vmem:[#allocation35_spill] sm:$0xff] }
 0x1ad   : > { %v3617_v55 = vsub.f32 %v20361_v19, %v19719_v61 }
 0x1ae   : > { %v15978_v48 = vpack.c.bf16 %v3576_v46, %v3564_v62  ;;  %v3588_v62 = vand.u32 4294901760, %v3587_v38  ;;  %v3600_v46 = vand.u32 4294901760, %v3599_v33  ;;  %v15999_v54 = vpack.c.bf16 %v3594_v6, %v3582_v11  ;;  %v20366_v6 = vld [vmem:[#allocation31_spill] sm:$0xff] }
 0x1af   : > { %v3618_v40 = vand.u32 4294901760, %v3617_v55  ;;  %v3611_v38 = vsub.f32 %v20362_v53, %v19728_v45  ;;  %v3623_v33 = vsub.f32 %v20363_v44, %v19729_v9  ;;  %v19741_v11 = vand.u32 4294901760, %v20366_v6  ;;  %v20370_v9 = vld [vmem:[#allocation36_spill] sm:$0xff] }
 0x1b0   : > { %v16001_v57 = vpack.c.bf16 %v3600_v46, %v3588_v62  ;;  %v20367_v62 = vld [vmem:[#allocation32_spill] sm:$0xff]  ;;  %v19745_v55 = vand.u32 4294901760, %v20368_v1  ;;  %v3629_v45 = vsub.f32 %v20365_v43, %v19736_v24 }
 0x1b1   : > { %v16009_v18 = vpack.c.bf16 %v3618_v40, %v3606_v16  ;;  %v3612_v61 = vand.u32 4294901760, %v3611_v38  ;;  %v3624_v60 = vand.u32 4294901760, %v3623_v33  ;;  %v19742_v46 = vand.u32 4294901760, %v20367_v62  ;;  %v20388_v43 = vld [vmem:[#allocation48_spill] sm:$0xff] }
 0x1b2   : > { %v3641_v16 = vsub.f32 %v20366_v6, %v19741_v11  ;;  %v3647_v38 = vsub.f32 %v20368_v1, %v19745_v55  ;;  %v3630_v33 = vand.u32 4294901760, %v3629_v45  ;;  %v19762_v55 = vand.u32 4294901760, %v20373_v4 }
 0x1b3   : > { %20364 = vst [vmem:[#allocation5_spill] sm:$0xff] %v16009_v18  ;;  %v16015_v32 = vpack.c.bf16 %v3624_v60, %v3612_v61  ;;  %v3635_v40 = vsub.f32 %v20367_v62, %v19742_v46  ;;  %v19748_v60 = vand.u32 4294901760, %v20370_v9  ;;  %v20371_v61 = vld [vmem:[#allocation37_spill] sm:$0xff] }
 0x1b4   : > { %v19755_v35 = vand.u32 4294901760, %v20371_v61  ;;  %v3642_v39 = vand.u32 4294901760, %v3641_v16  ;;  %v3648_v24 = vand.u32 4294901760, %v3647_v38  ;;  %v3659_v16 = vsub.f32 %v20372_v41, %v19763_v28  ;;  %v20389_v62 = vld [vmem:[#allocation49_spill] sm:$0xff] }
 0x1b5   : > { %20369 = vst [vmem:[#allocation6_spill] sm:$0xff] %v16015_v32  ;;  %v3636_v23 = vand.u32 4294901760, %v3635_v40  ;;  %v3653_v11 = vsub.f32 %v20370_v9, %v19748_v60  ;;  %v3671_v60 = vsub.f32 %v20373_v4, %v19762_v55 }
 0x1b6   : > { %v3665_v46 = vsub.f32 %v20371_v61, %v19755_v35  ;;  %v16039_v45 = vpack.c.bf16 %v3642_v39, %v3630_v33  ;;  %v3660_v5 = vand.u32 4294901760, %v3659_v16  ;;  %v20377_v35 = vld [vmem:[#allocation41_spill] sm:$0xff]  ;;  %v19766_v39 = vand.u32 4294901760, %v20378_v63  ;;  %v20379_v33 = vld [vmem:[#allocation43_spill] sm:$0xff] }
 0x1b7   : > { %v16041_v14 = vpack.c.bf16 %v3648_v24, %v3636_v23  ;;  %v3654_v40 = vand.u32 4294901760, %v3653_v11  ;;  %v19765_v31 = vand.u32 4294901760, %v20377_v35  ;;  %v19767_v23 = vand.u32 4294901760, %v20379_v33 }
 0x1b8   : > { %20374 = vst [vmem:[#allocation7_spill] sm:$0xff] %v16039_v45  ;;  %v3666_v38 = vand.u32 4294901760, %v3665_v46  ;;  %v3672_v26 = vand.u32 4294901760, %v3671_v60  ;;  %v3677_v11 = vsub.f32 %v20376_v10, %v19764_v3  ;;  %v3683_v16 = vsub.f32 %v20378_v63, %v19766_v39  ;;  %v20382_v45 = vld [vmem:[#allocation47_spill] sm:$0xff] }
 0x1b9   : > { %20375 = vst [vmem:[#allocation9_spill] sm:$0xff] %v16041_v14  ;;  %v3689_v46 = vsub.f32 %v20377_v35, %v19765_v31  ;;  %v3695_v55 = vsub.f32 %v20379_v33, %v19767_v23  ;;  %v20381_v14 = vld [vmem:[#allocation46_spill] sm:$0xff]  ;;  %v19769_v32 = vand.u32 4294901760, %v20382_v45  ;;  %v20394_v63 = vand.u32 4294901760, %v15873_v50 }
 0x1ba   : > { %v16053_v24 = vpack.c.bf16 %v3666_v38, %v3654_v40  ;;  %v16067_v28 = vpack.c.bf16 %v3672_v26, %v3660_v5  ;;  %v3678_v40 = vand.u32 4294901760, %v3677_v11  ;;  %v3684_v38 = vand.u32 4294901760, %v3683_v16  ;;  %v20384_v11 = vld [vmem:[#allocation50_spill] sm:$0xff] }
 0x1bb   : > { %v3690_v60 = vand.u32 4294901760, %v3689_v46  ;;  %v19768_v3 = vand.u32 4294901760, %v20381_v14  ;;  %v3719_v26 = vsub.f32 %v20382_v45, %v19769_v32  ;;  %v19770_v46 = vand.u32 4294901760, %v20384_v11  ;;  %v20386_v32 = vld [vmem:[#allocation44_spill] sm:$0xff] }
 0x1bc   : > { %20380 = vst [vmem:[#allocation8_spill] sm:$0xff] %v16053_v24  ;;  %v3696_v24 = vand.u32 4294901760, %v3695_v55  ;;  %v20385_v55 = vld [vmem:[#allocation51_spill] sm:$0xff]  ;;  %v20393_v45 = vand.u32 4294901760, %v15871_v37  ;;  %v3761_v33 = vsub.f32 %v15873_v50, %v20394_v63  ;;  %v19798_v63 = vand.u32 4294901760, %v15917_v36 }
 0x1bd   : > { %v16071_v18 = vpack.c.bf16 %v3690_v60, %v3678_v40  ;;  %v3707_v39 = vsub.f32 %v20381_v14, %v19768_v3  ;;  %v19771_v16 = vand.u32 4294901760, %v20385_v55  ;;  %v3720_v23 = vand.u32 4294901760, %v3719_v26 }
 0x1be   : > { %v16073_v31 = vpack.c.bf16 %v3696_v24, %v3684_v38  ;;  %v3731_v40 = vsub.f32 %v20384_v11, %v19770_v46  ;;  %v2990_v46 = vlaneseq  ;;  %v19777_v26 = vand.u32 4294901760, %v20386_v32 }
 0x1bf   : > { %v3708_v5 = vand.u32 4294901760, %v3707_v39  ;;  %v3743_v24 = vsub.f32 %v20385_v55, %v19771_v16  ;;  %v2988_v16 = vld [vmem:[%s19547_s3] sm:$0x3] }
 0x1c0   : > { %20383 = vst [vmem:[#allocation10_spill] sm:$0xff] %v16073_v31  ;;  %v3732_v38 = vand.u32 4294901760, %v3731_v40  ;;  %v2991_v40 = vshrl.u32 %v2990_v46, 7  ;;  %v3701_v39 = vsub.f32 %v20386_v32, %v19777_v26 }
 0x1c1   : > { %v16089_v60 = vpack.c.bf16 %v3720_v23, %v3708_v5  ;;  %v3744_v3 = vand.u32 4294901760, %v3743_v24  ;;  %v20387_v24 = vld [vmem:[#allocation45_spill] sm:$0xff]  ;;  %v20391_v5 = vand.u32 4294901760, %v20388_v43 }
 0x1c2   : > { %v2992_v46 = vsub.s32 0, %v2991_v40  ;;  %v2996_v23 = vsub.s32 1, %v2991_v40  ;;  %v20395_v40 = vand.u32 4294901760, %v15911_v29  ;;  %v3702_v26 = vand.u32 4294901760, %v3701_v39 }
 0x1c3   : > { %v16091_v31 = vpack.c.bf16 %v3744_v3, %v3732_v38  ;;  %v20390_v38 = vand.u32 4294901760, %v20387_v24  ;;  %v3725_v10 = vsub.f32 %v20388_v43, %v20391_v5  ;;  %v20392_v3 = vand.u32 4294901760, %v20389_v62 }
 0x1c4   : > { %v20396_v5 = vand.u32 4294901760, %v15913_v2 }
 0x1c5   : > { %v3713_v1 = vsub.f32 %v20387_v24, %v20390_v38  ;;  %v3737_v14 = vsub.f32 %v20389_v62, %v20392_v3  ;;  %v3749_v38 = vsub.f32 %v15871_v37, %v20393_v45  ;;  %v3755_v24 = vsub.f32 %v15911_v29, %v20395_v40 }
 0x1c6   : > { %v3767_v43 = vsub.f32 %v15913_v2, %v20396_v5  ;;  %v19800_v3 = vand.u32 4294901760, %v15915_v25  ;;  %v16161_v62 = vrot.slane %v2988_v16, %v2992_v46  ;;  %v16163_v45 = vrot.slane %v2988_v16, %v2996_v23 }
 0x1c7   : > { %v3714_v11 = vand.u32 4294901760, %v3713_v1  ;;  %v3726_v37 = vand.u32 4294901760, %v3725_v10  ;;  %v3738_v32 = vand.u32 4294901760, %v3737_v14  ;;  %v3750_v35 = vand.u32 4294901760, %v3749_v38 }
 0x1c8   : > { %v3762_v40 = vand.u32 4294901760, %v3761_v33  ;;  %v19797_v29 = vand.u32 4294901760, %v15919_v21  ;;  %v3756_v5 = vand.u32 4294901760, %v3755_v24  ;;  %v3768_v2 = vand.u32 4294901760, %v3767_v43 }
 0x1c9   : > { %v16170_v39 = vsub.f32 %v15915_v25, %v19800_v3  ;;  %v19799_v1 = vand.u32 4294901760, %v15921_v27  ;;  %v16174_v14 = vpack.c.bf16 %v3714_v11, %v3702_v26  ;;  %v16177_v23 = vpack.c.bf16 %v3738_v32, %v3726_v37 }
 0x1ca   : > { %v16182_v43 = vsub.f32 %v15917_v36, %v19798_v63  ;;  %v16191_v11 = vsub.f32 %v15919_v21, %v19797_v29  ;;  %v16194_v37 = vpack.c.bf16 %v3768_v2, %v3756_v5  ;;  %v20404_v5 = vand.u32 4294901760, %v15927_v47 }
 0x1cc   : > { %v16236_v36 = vsub.f32 %v15927_v47, %v20404_v5 }
 0x235   : > { %v2878_v55 = vpop.f32.mrb[0].mxu1 }
 0x236   : > { %v2880_v50 = vpop.f32.mrb[1].mxu1 }
 0x238   : > { %v1614_v41 = vpop.f32.mrb[0].mxu0 }
 0x239   : > { %vm3000_vm1 = vcmp.eq.f32.partialorder %v1614_v41, %v16161_v62  ;;  %v1616_v10 = vpop.f32.mrb[1].mxu0  ;;  %v16186_v41 = vpack.c.bf16 %v3762_v40, %v3750_v35 }
 0x23a   : > { %v3032_v16 = vsel %vm3000_vm1, %v2878_v55, 0.0  ;;  %vm3001_vm3 = vcmp.eq.f32.partialorder %v1616_v10, %v16163_v45  ;;  %v2885_v33 = vpop.f32.mrb[2].mxu1  ;;  %v16200_v10 = vsub.f32 %v15921_v27, %v19799_v1 }
 0x23b   : > { %v16184_v24 = vand.u32 4294901760, %v3032_v16  ;;  %v3033_v46 = vsel %vm3001_vm3, %v2880_v50, 0.0  ;;  %v2887_v38 = vpop.f32.mrb[3].mxu1 }
 0x23c   : > { %v3114_v55 = vsel %vm3112_vm2, %v3033_v46, 0  ;;  %v1621_v32 = vpop.f32.mrb[2].mxu0 }
 0x23d   : > { %20397 = vst [vmem:[#allocation11_spill] sm:$0xff] %v16184_v24  ;;  %v16203_v35 = vsub.f32 %v3032_v16, %v16184_v24  ;;  %v16205_v50 = vand.u32 4294901760, %v3114_v55  ;;  %vm3002_vm4 = vcmp.eq.f32.partialorder %v1621_v32, %v16161_v62  ;;  %v1623_v40 = vpop.f32.mrb[3].mxu0 }
 0x23e   : > { %v3034_v29 = vsel %vm3002_vm4, %v2885_v33, 0.0  ;;  %vm3003_vm5 = vcmp.eq.f32.partialorder %v1623_v40, %v16163_v45  ;;  %v2892_v2 = vpop.f32.mrb[4].mxu1 }
 0x23f   : > { %20398 = vst [vmem:[#allocation12_spill] sm:$0xff] %v16203_v35  ;;  %20399 = vst [vmem:[#allocation13_spill] sm:$0xff] %v16205_v50  ;;  %v19807_v1 = vand.u32 4294901760, %v16203_v35  ;;  %v16214_v16 = vsub.f32 %v3114_v55, %v16205_v50  ;;  %v16216_v3 = vand.u32 4294901760, %v3034_v29  ;;  %v3035_v26 = vsel %vm3003_vm5, %v2887_v38, 0.0  ;;  %v2894_v32 = vpop.f32.mrb[5].mxu1 }
 0x240   : > { %v3117_v27 = vsel %vm3112_vm2, %v3035_v26, 0  ;;  %v1628_v46 = vpop.f32.mrb[4].mxu0 }
 0x241   : > { %20400 = vst [vmem:[#allocation14_spill] sm:$0xff] %v16214_v16  ;;  %20401 = vst [vmem:[#allocation15_spill] sm:$0xff] %v16216_v3  ;;  %v3282_v63 = vsub.f32 %v16203_v35, %v19807_v1  ;;  %v16226_v55 = vsub.f32 %v3034_v29, %v16216_v3  ;;  %v16228_v21 = vand.u32 4294901760, %v3117_v27  ;;  %vm3004_vm6 = vcmp.eq.f32.partialorder %v1628_v46, %v16161_v62  ;;  %v1630_v38 = vpop.f32.mrb[5].mxu0 }
 0x242   : > { %v3036_v26 = vsel %vm3004_vm6, %v2892_v2, 0.0  ;;  %vm3005_vm7 = vcmp.eq.f32.partialorder %v1630_v38, %v16163_v45  ;;  %v2899_v33 = vpop.f32.mrb[6].mxu1  ;;  %v20407_v46 = vand.u32 4294901760, %v15929_v8  ;;  %v20408_v9 = vand.u32 4294901760, %v16214_v16 }
 0x243   : > { %20402 = vst [vmem:[#allocation16_spill] sm:$0xff] %v16226_v55  ;;  %20403 = vst [vmem:[#allocation18_spill] sm:$0xff] %v16228_v21  ;;  %v16239_v1 = vsub.f32 %v3117_v27, %v16228_v21  ;;  %v16241_v29 = vand.u32 4294901760, %v3036_v26  ;;  %v3037_v35 = vsel %vm3005_vm7, %v2894_v32, 0.0  ;;  %v2901_v25 = vpop.f32.mrb[7].mxu1  ;;  %v3283_v38 = vand.u32 4294901760, %v3282_v63 }
 0x244   : > { %v16246_v2 = vsub.f32 %v15929_v8, %v20407_v46  ;;  %v3120_v40 = vsel %vm3112_vm2, %v3037_v35, 0  ;;  %v1635_v4 = vpop.f32.mrb[6].mxu0  ;;  %v3276_v5 = vsub.f32 %v16214_v16, %v20408_v9  ;;  %v19824_v27 = vand.u32 4294901760, %v16226_v55 }
 0x245   : > { %20405 = vst [vmem:[#allocation75_spill] sm:$0xff] %v16239_v1  ;;  %20406 = vst [vmem:[#allocation76_spill] sm:$0xff] %v16241_v29  ;;  %v16254_v47 = vsub.f32 %v3036_v26, %v16241_v29  ;;  %v16256_v32 = vand.u32 4294901760, %v3120_v40  ;;  %vm3006_vm8 = vcmp.eq.f32.partialorder %v1635_v4, %v16161_v62  ;;  %v1637_v61 = vpop.f32.mrb[7].mxu0  ;;  %v19828_v46 = vand.u32 4294901760, %v16239_v1 }
 0x246   : > { %v3038_v63 = vsel %vm3006_vm8, %v2899_v33, 0.0  ;;  %vm3007_vm9 = vcmp.eq.f32.partialorder %v1637_v61, %v16163_v45  ;;  %v2906_v35 = vpop.f32.mrb[8].mxu1  ;;  %v3277_v8 = vand.u32 4294901760, %v3276_v5  ;;  %v3298_v9 = vsub.f32 %v16226_v55, %v19824_v27 }
 0x247   : > { %20409 = vst [vmem:[#allocation77_spill] sm:$0xff] %v16254_v47  ;;  %20410 = vst [vmem:[#allocation78_spill] sm:$0xff] %v16256_v32  ;;  %v16265_v16 = vsub.f32 %v3120_v40, %v16256_v32  ;;  %v16267_v26 = vand.u32 4294901760, %v3038_v63  ;;  %v3039_v6 = vsel %vm3007_vm9, %v2901_v25, 0.0  ;;  %v2908_v53 = vpop.f32.mrb[9].mxu1  ;;  %v3292_v4 = vsub.f32 %v16239_v1, %v19828_v46 }
 0x248   : > { %v3123_v33 = vsel %vm3112_vm2, %v3039_v6, 0  ;;  %3278 = vmatprep.mubr.f32.mxu0 %v3277_v8  ;;  %v1642_v61 = vpop.f32.mrb[8].mxu0  ;;  %v3299_v5 = vand.u32 4294901760, %v3298_v9  ;;  %v19829_v44 = vand.u32 4294901760, %v16254_v47 }
 0x249   : > { %20411 = vst [vmem:[#allocation79_spill] sm:$0xff] %v16265_v16  ;;  %20412 = vst [vmem:[#allocation80_spill] sm:$0xff] %v16267_v26  ;;  %v16276_v40 = vsub.f32 %v3038_v63, %v16267_v26  ;;  %v16278_v55 = vand.u32 4294901760, %v3123_v33  ;;  %vm3008_vm10 = vcmp.eq.f32.partialorder %v1642_v61, %v16161_v62  ;;  %3284 = vmatmul.mubr.f32.vlgmr.msra.gmra.mrb[32].mxu0 %v3283_v38  ;;  %v1644_v25 = vpop.f32.mrb[9].mxu0  ;;  %v3293_v30 = vand.u32 4294901760, %v3292_v4 }
 0x24a   : > { %v3040_v46 = vsel %vm3008_vm10, %v2906_v35, 0.0  ;;  %12752 = vmatpush1.bf16.msra.mxu0 %v15951_v42  ;;  %vm3009_vm11 = vcmp.eq.f32.partialorder %v1644_v25, %v16163_v45  ;;  %v2913_v8 = vpop.f32.mrb[10].mxu1  ;;  %v19834_v6 = vand.u32 4294901760, %v16265_v16  ;;  %v3314_v63 = vsub.f32 %v16254_v47, %v19829_v44 }
 0x24b   : > { %20413 = vst [vmem:[#allocation81_spill] sm:$0xff] %v16276_v40  ;;  %20414 = vst [vmem:[#allocation82_spill] sm:$0xff] %v16278_v55  ;;  %v16288_v9 = vsub.f32 %v3123_v33, %v16278_v55  ;;  %v16290_v27 = vand.u32 4294901760, %v3040_v46  ;;  %v3041_v38 = vsel %vm3009_vm11, %v2908_v53, 0.0  ;;  %v2915_v61 = vpop.f32.mrb[11].mxu1  ;;  %3294 = vmatprep.mubr.f32.mxu0 %v3293_v30  ;;  %12754 = vmatprep.subr.bf16.mxu0 %v15973_v15  ;;  %v20417_v33 = vand.u32 4294901760, %v16170_v39 }
 0x24c   : > { %v3126_v35 = vsel %vm3112_vm2, %v3041_v38, 0  ;;  %v1649_v4 = vpop.f32.mrb[10].mxu0  ;;  %v3308_v25 = vsub.f32 %v16265_v16, %v19834_v6  ;;  %v3315_v44 = vand.u32 4294901760, %v3314_v63  ;;  %v20418_v47 = vand.u32 4294901760, %v16182_v43 }
 0x24d   : > { %20415 = vst [vmem:[#allocation83_spill] sm:$0xff] %v16288_v9  ;;  %20416 = vst [vmem:[#allocation84_spill] sm:$0xff] %v16290_v27  ;;  %v16305_v53 = vsub.f32 %v3040_v46, %v16290_v27  ;;  %v16307_v15 = vand.u32 4294901760, %v3126_v35  ;;  %vm3010_vm12 = vcmp.eq.f32.partialorder %v1649_v4, %v16161_v62  ;;  %3300 = vmatmul.mubr.f32.gmra.mrb[34].mxu0 %v3299_v5  ;;  %v1651_v30 = vpop.f32.mrb[11].mxu0  ;;  %v19837_v38 = vand.u32 4294901760, %v16288_v9 }
 0x24e   : > { %v16302_v1 = vpack.c.bf16 %v20418_v47, %v20417_v33  ;;  %v3042_v42 = vsel %vm3010_vm12, %v2913_v8, 0.0  ;;  %vm3011_vm13 = vcmp.eq.f32.partialorder %v1651_v30, %v16163_v45  ;;  %v2920_v63 = vpop.f32.mrb[12].mxu1  ;;  %12756 = vmatpush1.bf16.msra.mxu0 %v15978_v48  ;;  %v3309_v39 = vand.u32 4294901760, %v3308_v25 }
 0x24f   : > { %20419 = vst [vmem:[#allocation85_spill] sm:$0xff] %v16305_v53  ;;  %20420 = vst [vmem:[#allocation86_spill] sm:$0xff] %v16307_v15  ;;  %v20421_v47 = vand.u32 4294901760, %v16276_v40  ;;  %v16317_v46 = vsub.f32 %v3126_v35, %v16307_v15  ;;  %v16319_v33 = vand.u32 4294901760, %v3042_v42  ;;  %v3043_v5 = vsel %vm3011_vm13, %v2915_v61, 0.0  ;;  %v2922_v4 = vpop.f32.mrb[13].mxu1  ;;  %12758 = vmatprep.subr.bf16.mxu0 %v15999_v54 }
 0x250   : > { %v3324_v8 = vsub.f32 %v16288_v9, %v19837_v38  ;;  %v3129_v48 = vsel %vm3112_vm2, %v3043_v5, 0  ;;  %3310 = vmatprep.mubr.f32.mxu0 %v3309_v39  ;;  %v1656_v25 = vpop.f32.mrb[12].mxu0  ;;  %v20424_v35 = vand.u32 4294901760, %v16191_v11  ;;  %v20425_v6 = vand.u32 4294901760, %v16200_v10 }
 0x251   : > { %v3330_v43 = vsub.f32 %v16276_v40, %v20421_v47  ;;  %20422 = vst [vmem:[#allocation87_spill] sm:$0xff] %v16317_v46  ;;  %20423 = vst [vmem:[#allocation88_spill] sm:$0xff] %v16319_v33  ;;  %v19838_v47 = vand.u32 4294901760, %v16305_v53  ;;  %v16334_v61 = vsub.f32 %v3042_v42, %v16319_v33  ;;  %v16336_v54 = vand.u32 4294901760, %v3129_v48  ;;  %3316 = vmatmul.mubr.f32.gmra.mrb[36].mxu0 %v3315_v44  ;;  %v1658_v5 = vpop.f32.mrb[13].mxu0 }
 0x252   : > { %v16331_v40 = vpack.c.bf16 %v20425_v6, %v20424_v35  ;;  %vm3012_vm14 = vcmp.eq.f32.partialorder %v1656_v25, %v16161_v62  ;;  %v3325_v39 = vand.u32 4294901760, %v3324_v8  ;;  %vm3013_vm15 = vcmp.eq.f32.partialorder %v1658_v5, %v16163_v45  ;;  %12760 = vmatpush1.bf16.msra.mxu0 %v16001_v57 }
 0x253   : > { %v3331_v30 = vand.u32 4294901760, %v3330_v43  ;;  %20426 = vst [vmem:[#allocation89_spill] sm:$0xff] %v16334_v61  ;;  %20427 = vst [vmem:[#allocation90_spill] sm:$0xff] %v16336_v54  ;;  %v3044_v38 = vsel %vm3012_vm14, %v2920_v63, 0.0  ;;  %v2927_v43 = vpop.f32.mrb[14].mxu1  ;;  %v19841_v11 = vand.u32 4294901760, %v16317_v46  ;;  %v3346_v10 = vsub.f32 %v16305_v53, %v19838_v47 }
 0x254   : > { %v16346_v6 = vsub.f32 %v3129_v48, %v16336_v54  ;;  %v16348_v42 = vand.u32 4294901760, %v3044_v38  ;;  %v3045_v44 = vsel %vm3013_vm15, %v2922_v4, 0.0  ;;  %v2929_v25 = vpop.f32.mrb[15].mxu1  ;;  %3326 = vmatprep.mubr.f32.mxu0 %v3325_v39  ;;  %v20430_v63 = vld [vmem:[#allocation5_spill] sm:$0xff]  ;;  %v1663_v35 = vpop.f32.mrb[14].mxu0  ;;  %v20431_v48 = vand.u32 4294901760, %v15931_v59 }
 0x255   : > { %12762 = vmatprep.subr.bf16.mxu0 %v20430_v63  ;;  %v3132_v57 = vsel %vm3112_vm2, %v3045_v44, 0  ;;  %v3340_v5 = vsub.f32 %v16317_v46, %v19841_v11  ;;  %v3347_v47 = vand.u32 4294901760, %v3346_v10  ;;  %vm3014_vm1 = vcmp.eq.f32.partialorder %v1663_v35, %v16161_v62  ;;  %3332 = vmatmul.mubr.f32.gmra.mrb[38].mxu0 %v3331_v30  ;;  %v1665_v44 = vpop.f32.mrb[15].mxu0  ;;  %v20434_v46 = vld [vmem:[#allocation6_spill] sm:$0xff] }
 0x256   : > { %20428 = vst [vmem:[#allocation91_spill] sm:$0xff] %v16346_v6  ;;  %20429 = vst [vmem:[#allocation92_spill] sm:$0xff] %v16348_v42  ;;  %v16359_v53 = vsub.f32 %v15931_v59, %v20431_v48  ;;  %v16362_v4 = vsub.f32 %v3044_v38, %v16348_v42  ;;  %v16364_v39 = vand.u32 4294901760, %v3132_v57  ;;  %v19852_v63 = vand.u32 4294901760, %v16346_v6  ;;  %v2934_v10 = vpop.f32.mrb[16].mxu1  ;;  %12764 = vmatpush1.bf16.msra.mxu0 %v20434_v46 }
 0x257   : > { %v3046_v8 = vsel %vm3014_vm1, %v2927_v43, 0.0  ;;  %vm3015_vm3 = vcmp.eq.f32.partialorder %v1665_v44, %v16163_v45  ;;  %v3341_v11 = vand.u32 4294901760, %v3340_v5  ;;  %v20435_v48 = vand.u32 4294901760, %v16334_v61  ;;  %v2936_v35 = vpop.f32.mrb[17].mxu1  ;;  %v20438_v44 = vld [vmem:[#allocation7_spill] sm:$0xff] }
 0x258   : > { %20432 = vst [vmem:[#allocation5_spill] sm:$0xff] %v16362_v4  ;;  %20433 = vst [vmem:[#allocation93_spill] sm:$0xff] %v16364_v39  ;;  %v16374_v9 = vsub.f32 %v3132_v57, %v16364_v39  ;;  %v16376_v16 = vand.u32 4294901760, %v3046_v8  ;;  %v3047_v30 = vsel %vm3015_vm3, %v2929_v25, 0.0  ;;  %v3356_v43 = vsub.f32 %v16346_v6, %v19852_v63  ;;  %12766 = vmatprep.subr.bf16.mxu0 %v20438_v44  ;;  %v1670_v46 = vpop.f32.mrb[16].mxu0 }
 0x259   : > { %v3362_v38 = vsub.f32 %v16334_v61, %v20435_v48  ;;  %v3135_v5 = vsel %vm3112_vm2, %v3047_v30, 0  ;;  %3342 = vmatprep.mubr.f32.mxu0 %v3341_v11  ;;  %v19859_v48 = vand.u32 4294901760, %v16362_v4  ;;  %vm3016_vm4 = vcmp.eq.f32.partialorder %v1670_v46, %v16161_v62  ;;  %v1672_v63 = vpop.f32.mrb[17].mxu0  ;;  %v20441_v30 = vld [vmem:[#allocation9_spill] sm:$0xff] }
 0x25a   : > { %20436 = vst [vmem:[#allocation6_spill] sm:$0xff] %v16374_v9  ;;  %20437 = vst [vmem:[#allocation94_spill] sm:$0xff] %v16376_v16  ;;  %v16386_v61 = vsub.f32 %v3046_v8, %v16376_v16  ;;  %v16388_v25 = vand.u32 4294901760, %v3135_v5  ;;  %3348 = vmatmul.mubr.f32.gmra.mrb[40].mxu0 %v3347_v47  ;;  %v3357_v6 = vand.u32 4294901760, %v3356_v43  ;;  %v3048_v44 = vsel %vm3016_vm4, %v2934_v10, 0.0  ;;  %v2941_v11 = vpop.f32.mrb[18].mxu1 }
 0x25b   : > { %v3363_v59 = vand.u32 4294901760, %v3362_v38  ;;  %vm3017_vm5 = vcmp.eq.f32.partialorder %v1672_v63, %v16163_v45  ;;  %12768 = vmatpush1.bf16.msra.mxu0 %v20441_v30  ;;  %v19864_v38 = vand.u32 4294901760, %v16374_v9  ;;  %v3378_v8 = vsub.f32 %v16362_v4, %v19859_v48  ;;  %v2943_v46 = vpop.f32.mrb[19].mxu1  ;;  %v20444_v10 = vld [vmem:[#allocation8_spill] sm:$0xff] }
 0x25c   : > { %20439 = vst [vmem:[#allocation7_spill] sm:$0xff] %v16386_v61  ;;  %20440 = vst [vmem:[#allocation95_spill] sm:$0xff] %v16388_v25  ;;  %v16398_v57 = vsub.f32 %v3135_v5, %v16388_v25  ;;  %v16400_v16 = vand.u32 4294901760, %v3048_v44  ;;  %v3049_v47 = vsel %vm3017_vm5, %v2936_v35, 0.0  ;;  %3358 = vmatprep.mubr.f32.mxu0 %v3357_v6  ;;  %12770 = vmatprep.subr.bf16.mxu0 %v20444_v10  ;;  %v1677_v30 = vpop.f32.mrb[18].mxu0 }
 0x25d   : > { %v3138_v43 = vsel %vm3112_vm2, %v3049_v47, 0  ;;  %v3372_v42 = vsub.f32 %v16374_v9, %v19864_v38  ;;  %v3379_v48 = vand.u32 4294901760, %v3378_v8  ;;  %vm3018_vm6 = vcmp.eq.f32.partialorder %v1677_v30, %v16161_v62  ;;  %v1679_v6 = vpop.f32.mrb[19].mxu0 }
 0x25e   : > { %20442 = vst [vmem:[#allocation9_spill] sm:$0xff] %v16398_v57  ;;  %20443 = vst [vmem:[#allocation96_spill] sm:$0xff] %v16400_v16  ;;  %v16410_v4 = vsub.f32 %v3048_v44, %v16400_v16  ;;  %v16412_v35 = vand.u32 4294901760, %v3138_v43  ;;  %3364 = vmatmul.mubr.f32.gmra.mrb[42].mxu0 %v3363_v59  ;;  %v19869_v10 = vand.u32 4294901760, %v16398_v57  ;;  %v3050_v47 = vsel %vm3018_vm6, %v2941_v11, 0.0  ;;  %v2948_v63 = vpop.f32.mrb[20].mxu1 }
 0x25f   : > { %vm3019_vm7 = vcmp.eq.f32.partialorder %v1679_v6, %v16163_v45  ;;  %v3373_v25 = vand.u32 4294901760, %v3372_v42  ;;  %12772 = vmatpush1.bf16.msra.mxu0 %v16067_v28  ;;  %v20447_v8 = vand.u32 4294901760, %v16386_v61  ;;  %v16424_v5 = vand.u32 4294901760, %v3050_v47  ;;  %v2950_v30 = vpop.f32.mrb[21].mxu1 }
 0x260   : > { %20445 = vst [vmem:[#allocation8_spill] sm:$0xff] %v16410_v4  ;;  %20446 = vst [vmem:[#allocation97_spill] sm:$0xff] %v16412_v35  ;;  %v16422_v38 = vsub.f32 %v3138_v43, %v16412_v35  ;;  %v3051_v59 = vsel %vm3019_vm7, %v2943_v46, 0.0  ;;  %v3388_v11 = vsub.f32 %v16398_v57, %v19869_v10  ;;  %12774 = vmatprep.subr.bf16.mxu0 %v16071_v18  ;;  %v1684_v28 = vpop.f32.mrb[20].mxu0  ;;  %v20450_v43 = vand.u32 4294901760, %v15933_v12  ;;  %v20453_v57 = vld [vmem:[#allocation10_spill] sm:$0xff] }
 0x261   : > { %v3394_v44 = vsub.f32 %v16386_v61, %v20447_v8  ;;  %20449 = vst [vmem:[#allocation99_spill] sm:$0xff] %v16424_v5  ;;  %v3141_v42 = vsel %vm3112_vm2, %v3051_v59, 0  ;;  %3374 = vmatprep.mubr.f32.mxu0 %v3373_v25  ;;  %v19874_v8 = vand.u32 4294901760, %v16410_v4  ;;  %v16438_v46 = vsub.f32 %v3050_v47, %v16424_v5  ;;  %v1686_v18 = vpop.f32.mrb[21].mxu0 }
 0x262   : > { %20448 = vst [vmem:[#allocation98_spill] sm:$0xff] %v16422_v38  ;;  %v16435_v61 = vsub.f32 %v15933_v12, %v20450_v43  ;;  %v16440_v9 = vand.u32 4294901760, %v3141_v42  ;;  %vm3020_vm8 = vcmp.eq.f32.partialorder %v1684_v28, %v16161_v62  ;;  %3380 = vmatmul.mubr.f32.gmra.mrb[44].mxu0 %v3379_v48  ;;  %v3389_v59 = vand.u32 4294901760, %v3388_v11 }
 0x263   : > { %v3395_v6 = vand.u32 4294901760, %v3394_v44  ;;  %20451 = vst [vmem:[#allocation100_spill] sm:$0xff] %v16438_v46  ;;  %v3052_v25 = vsel %vm3020_vm8, %v2948_v63, 0.0  ;;  %vm3021_vm9 = vcmp.eq.f32.partialorder %v1686_v18, %v16163_v45  ;;  %v2955_v44 = vpop.f32.mrb[22].mxu1  ;;  %v19879_v10 = vand.u32 4294901760, %v16422_v38  ;;  %12776 = vmatpush1.bf16.msra.mxu0 %v20453_v57 }
 0x264   : > { %20452 = vst [vmem:[#allocation101_spill] sm:$0xff] %v16440_v9  ;;  %v3410_v43 = vsub.f32 %v16410_v4, %v19874_v8  ;;  %v16450_v47 = vsub.f32 %v3141_v42, %v16440_v9  ;;  %v16452_v12 = vand.u32 4294901760, %v3052_v25  ;;  %v3053_v48 = vsel %vm3021_vm9, %v2950_v30, 0.0  ;;  %v2957_v28 = vpop.f32.mrb[23].mxu1  ;;  %3390 = vmatprep.mubr.f32.mxu0 %v3389_v59  ;;  %12778 = vmatprep.subr.bf16.mxu0 %v16174_v14  ;;  %v1691_v18 = vpop.f32.mrb[22].mxu0 }
 0x265   : > { %v3144_v11 = vsel %vm3112_vm2, %v3053_v48, 0  ;;  %v3404_v8 = vsub.f32 %v16422_v38, %v19879_v10  ;;  %vm3022_vm10 = vcmp.eq.f32.partialorder %v1691_v18, %v16161_v62  ;;  %v1693_v59 = vpop.f32.mrb[23].mxu0  ;;  %vm9242_vm6 = vcmask 195584  }
 0x266   : > { %20454 = vst [vmem:[#allocation10_spill] sm:$0xff] %v16450_v47  ;;  %20455 = vst [vmem:[#allocation102_spill] sm:$0xff] %v16452_v12  ;;  %v3411_v57 = vand.u32 4294901760, %v3410_v43  ;;  %v16462_v4 = vsub.f32 %v3052_v25, %v16452_v12  ;;  %v16464_v30 = vand.u32 4294901760, %v3144_v11  ;;  %3396 = vmatmul.mubr.f32.gmra.mrb[46].mxu0 %v3395_v6  ;;  %v19887_v14 = vand.u32 4294901760, %v16450_v47  ;;  %v2962_v63 = vpop.f32.mrb[24].mxu1 }
 0x267   : > { %v3054_v48 = vsel %vm3022_vm10, %v2955_v44, 0.0  ;;  %vm3023_vm11 = vcmp.eq.f32.partialorder %v1693_v59, %v16163_v45  ;;  %v3405_v5 = vand.u32 4294901760, %v3404_v8  ;;  %v20458_v43 = vand.u32 4294901760, %v16438_v46  ;;  %12780 = vmatpush1.bf16.msra.mxu0 %v16089_v60  ;;  %v2964_v18 = vpop.f32.mrb[25].mxu1 }
 0x268   : > { %20456 = vst [vmem:[#allocation103_spill] sm:$0xff] %v16462_v4  ;;  %20457 = vst [vmem:[#allocation104_spill] sm:$0xff] %v16464_v30  ;;  %v16474_v25 = vsub.f32 %v3144_v11, %v16464_v30  ;;  %v16476_v42 = vand.u32 4294901760, %v3054_v48  ;;  %v3055_v6 = vsel %vm3023_vm11, %v2957_v28, 0.0  ;;  %v3420_v44 = vsub.f32 %v16450_v47, %v19887_v14  ;;  %12782 = vmatprep.subr.bf16.mxu0 %v16177_v23  ;;  %v1698_v59 = vpop.f32.mrb[24].mxu0 }
 0x269   : > { %v3426_v10 = vsub.f32 %v16438_v46, %v20458_v43  ;;  %v3147_v8 = vsel %vm3112_vm2, %v3055_v6, 0  ;;  %3406 = vmatprep.mubr.f32.mxu0 %v3405_v5  ;;  %v19886_v60 = vand.u32 4294901760, %v16462_v4  ;;  %v20460_v11 = vand.u32 4294901760, %v16236_v36  ;;  %v1700_v23 = vpop.f32.mrb[25].mxu0 }
 0x26a   : > { %20459 = vst [vmem:[#allocation105_spill] sm:$0xff] %v16476_v42  ;;  %v20461_v46 = vand.u32 4294901760, %v16246_v2  ;;  %v16491_v28 = vsub.f32 %v3054_v48, %v16476_v42  ;;  %v16493_v12 = vand.u32 4294901760, %v3147_v8  ;;  %vm3024_vm12 = vcmp.eq.f32.partialorder %v1698_v59, %v16161_v62  ;;  %3412 = vmatmul.mubr.f32.gmra.mrb[48].mxu0 %v3411_v57 }
 0x26b   : > { %v3427_v43 = vand.u32 4294901760, %v3426_v10  ;;  %v3421_v5 = vand.u32 4294901760, %v3420_v44  ;;  %v3056_v6 = vsel %vm3024_vm12, %v2962_v63, 0.0  ;;  %vm3025_vm13 = vcmp.eq.f32.partialorder %v1700_v23, %v16163_v45  ;;  %v2969_v10 = vpop.f32.mrb[26].mxu1  ;;  %12784 = vmatpush1.bf16.msra.mxu0 %v16091_v31 }
 0x26c   : > { %v16488_v38 = vpack.c.bf16 %v20461_v46, %v20460_v11  ;;  %20462 = vst [vmem:[#allocation106_spill] sm:$0xff] %v16491_v28  ;;  %20463 = vst [vmem:[#allocation107_spill] sm:$0xff] %v16493_v12  ;;  %v19888_v36 = vand.u32 4294901760, %v16474_v25  ;;  %v3442_v2 = vsub.f32 %v16462_v4, %v19886_v60  ;;  %v16503_v46 = vsub.f32 %v3147_v8, %v16493_v12  ;;  %v2971_v59 = vpop.f32.mrb[27].mxu1  ;;  %v1705_v11 = vpop.f32.mrb[26].mxu0 }
 0x26d   : > { %v16505_v48 = vand.u32 4294901760, %v3056_v6  ;;  %v3057_v57 = vsel %vm3025_vm13, %v2964_v18, 0.0  ;;  %3422 = vmatprep.mubr.f32.mxu0 %v3421_v5  ;;  %12786 = vmatprep.subr.bf16.mxu0 %v16186_v41  ;;  %v3816_v8 = vand.u32 4294901760, %v16435_v61  ;;  %vm3026_vm14 = vcmp.eq.f32.partialorder %v1705_v11, %v16161_v62  ;;  %v1707_v5 = vpop.f32.mrb[27].mxu0 }
 0x26e   : > { %20464 = vst [vmem:[#allocation108_spill] sm:$0xff] %v16503_v46  ;;  %v3150_v44 = vsel %vm3112_vm2, %v3057_v57, 0  ;;  %v3436_v23 = vsub.f32 %v16474_v25, %v19888_v36  ;;  %v3443_v31 = vand.u32 4294901760, %v3442_v2  ;;  %3428 = vmatmul.mubr.f32.gmra.mrb[50].mxu0 %v3427_v43  ;;  %v19893_v41 = vand.u32 4294901760, %v16503_v46  ;;  %v2976_v14 = vpop.f32.mrb[28].mxu1 }
 0x26f   : > { %20465 = vst [vmem:[#allocation109_spill] sm:$0xff] %v16505_v48  ;;  %v16515_v60 = vsub.f32 %v3056_v6, %v16505_v48  ;;  %v16517_v18 = vand.u32 4294901760, %v3150_v44  ;;  %v3058_v57 = vsel %vm3026_vm14, %v2969_v10, 0.0  ;;  %vm3027_vm15 = vcmp.eq.f32.partialorder %v1707_v5, %v16163_v45  ;;  %12788 = vmatpush1.bf16.msra.mxu0 %v16194_v37  ;;  %v2978_v11 = vpop.f32.mrb[29].mxu1 }
 0x270   : > { %v3437_v63 = vand.u32 4294901760, %v3436_v23  ;;  %v20467_v2 = vand.u32 4294901760, %v16491_v28  ;;  %v16529_v36 = vand.u32 4294901760, %v3058_v57  ;;  %v3059_v43 = vsel %vm3027_vm15, %v2971_v59, 0.0  ;;  %12790 = vmatprep.subr.bf16.mxu0 %v16302_v1  ;;  %v1712_v5 = vpop.f32.mrb[28].mxu0 }
 0x271   : > { %20466 = vst [vmem:[#allocation110_spill] sm:$0xff] %v16517_v18  ;;  %v16527_v6 = vsub.f32 %v3150_v44, %v16517_v18  ;;  %v3452_v10 = vsub.f32 %v16503_v46, %v19893_v41  ;;  %v3153_v23 = vsel %vm3112_vm2, %v3059_v43, 0  ;;  %v19896_v37 = vand.u32 4294901760, %v16515_v60  ;;  %v1714_v41 = vpop.f32.mrb[29].mxu0 }
 0x272   : > { %v3458_v61 = vsub.f32 %v16491_v28, %v20467_v2  ;;  %20468 = vst [vmem:[#allocation111_spill] sm:$0xff] %v16529_v36  ;;  %3438 = vmatprep.mubr.f32.mxu0 %v3437_v63  ;;  %v20469_v44 = vand.u32 4294901760, %v16359_v53  ;;  %v16540_v4 = vsub.f32 %v3058_v57, %v16529_v36  ;;  %v16542_v59 = vand.u32 4294901760, %v3153_v23  ;;  %v2983_v63 = vpop.f32.mrb[30].mxu1 }
 0x273   : > { %vm3028_vm1 = vcmp.eq.f32.partialorder %v1712_v5, %v16161_v62  ;;  %3444 = vmatmul.mubr.f32.gmra.mrb[52].mxu0 %v3443_v31  ;;  %v3453_v1 = vand.u32 4294901760, %v3452_v10  ;;  %vm3029_vm3 = vcmp.eq.f32.partialorder %v1714_v41, %v16163_v45  ;;  %v3474_v53 = vsub.f32 %v16515_v60, %v19896_v37  ;;  %v2985_v43 = vpop.f32.mrb[31].mxu1 }
 0x274   : > { %v3459_v2 = vand.u32 4294901760, %v3458_v61  ;;  %v12795_v28 = vpack.c.bf16 %v3816_v8, %v20469_v44  ;;  %20470 = vst [vmem:[#allocation112_spill] sm:$0xff] %v16542_v59  ;;  %v3060_v46 = vsel %vm3028_vm1, %v2976_v14, 0.0  ;;  %v19897_v61 = vand.u32 4294901760, %v16527_v6  ;;  %12792 = vmatpush1.bf16.msra.mxu0 %v16331_v40  ;;  %v1719_v10 = vpop.f32.mrb[30].mxu0 }
 0x275   : > { %v16552_v8 = vsub.f32 %v3153_v23, %v16542_v59  ;;  %v16554_v57 = vand.u32 4294901760, %v3060_v46  ;;  %v3061_v31 = vsel %vm3029_vm3, %v2978_v11, 0.0  ;;  %3454 = vmatprep.mubr.f32.mxu0 %v3453_v1  ;;  %v19902_v14 = vand.u32 4294901760, %v16540_v4  ;;  %12794 = vmatprep.subr.bf16.mxu0 %v16488_v38  ;;  %v1721_v11 = vpop.f32.mrb[31].mxu0 }
 0x276   : > { %v3156_v41 = vsel %vm3112_vm2, %v3061_v31, 0  ;;  %v3468_v5 = vsub.f32 %v16527_v6, %v19897_v61  ;;  %v3475_v40 = vand.u32 4294901760, %v3474_v53  ;;  %vm3030_vm4 = vcmp.eq.f32.partialorder %v1719_v10, %v16161_v62 }
 0x277   : > { %20471 = vst [vmem:[#allocation113_spill] sm:$0xff] %v16554_v57  ;;  %v16563_v23 = vsub.f32 %v3060_v46, %v16554_v57  ;;  %v16565_v44 = vand.u32 4294901760, %v3156_v41  ;;  %3460 = vmatmul.mubr.f32.gmra.mrb[54].mxu0 %v3459_v2  ;;  %v19903_v1 = vand.u32 4294901760, %v16552_v8  ;;  %v3062_v38 = vsel %vm3030_vm4, %v2983_v63, 0.0 }
 0x278   : > { %vm3031_vm5 = vcmp.eq.f32.partialorder %v1721_v11, %v16163_v45  ;;  %v3469_v31 = vand.u32 4294901760, %v3468_v5  ;;  %v3490_v37 = vsub.f32 %v16540_v4, %v19902_v14  ;;  %12796 = vmatpush1.bf16.msra.mxu0 %v12795_v28  ;;  %v16576_v53 = vand.u32 4294901760, %v3062_v38 }
 0x279   : > { %20472 = vst [vmem:[#allocation114_spill] sm:$0xff] %v16565_v44  ;;  %v16574_v46 = vsub.f32 %v3156_v41, %v16565_v44  ;;  %v3063_v61 = vsel %vm3031_vm5, %v2985_v43, 0.0  ;;  %v3484_v62 = vsub.f32 %v16552_v8, %v19903_v1  ;;  %v20474_v2 = vpack.c.bf16 %v20349_v51, %v20348_v13  ;;  %v20496_v1 = vld [vmem:[#allocation38_spill] sm:$0xff] }
 0x27a   : > { %20473 = vst [vmem:[#allocation115_spill] sm:$0xff] %v16576_v53  ;;  %v3159_v45 = vsel %vm3112_vm2, %v3063_v61, 0  ;;  %3470 = vmatprep.mubr.f32.mxu0 %v3469_v31  ;;  %v19898_v63 = vand.u32 4294901760, %v16563_v23  ;;  %v16587_v28 = vsub.f32 %v3062_v38, %v16576_v53  ;;  %v3491_v5 = vand.u32 4294901760, %v3490_v37 }
 0x27b   : > { %12798 = vmatprep.subr.bf16.mxu0 %v20474_v2  ;;  %v16589_v41 = vand.u32 4294901760, %v3159_v45  ;;  %3476 = vmatmul.mubr.f32.gmra.mrb[56].mxu0 %v3475_v40  ;;  %v3485_v43 = vand.u32 4294901760, %v3484_v62  ;;  %v19901_v10 = vand.u32 4294901760, %v16574_v46  ;;  %vm7919_vm2 = vcmask 261120  }
 0x27c   : > { %v3506_v38 = vsub.f32 %v16563_v23, %v19898_v63  ;;  %v19899_v31 = vand.u32 4294901760, %v16587_v28  ;;  %vm9259_vm7 = vcmask 326656  }
 0x27d   : > { %20475 = vst [vmem:[#allocation116_spill] sm:$0xff] %v16589_v41  ;;  %v16593_v11 = vsub.f32 %v3159_v45, %v16589_v41  ;;  %3486 = vmatprep.mubr.f32.mxu0 %v3485_v43  ;;  %v3500_v61 = vsub.f32 %v16574_v46, %v19901_v10  ;;  %v20493_v10 = vld [vmem:[#allocation36_spill] sm:$0xff] }
 0x27e   : > { %v3507_v37 = vand.u32 4294901760, %v3506_v38  ;;  %v3522_v45 = vsub.f32 %v16587_v28, %v19899_v31  ;;  %v20479_v38 = vpack.c.bf16 %v20357_v52, %v20356_v7  ;;  %v20490_v31 = vld [vmem:[#allocation32_spill] sm:$0xff] }
 0x27f   : > { %3492 = vmatmul.mubr.f32.gmra.mrb[58].mxu0 %v3491_v5  ;;  %v3501_v40 = vand.u32 4294901760, %v3500_v61  ;;  %v19900_v62 = vand.u32 4294901760, %v16593_v11  ;;  %v20476_v5 = vpack.c.bf16 %v20351_v22, %v20350_v49  ;;  %v20477_v61 = vpack.c.bf16 %v20353_v0, %v20352_v34 }
 0x280   : > { %v3523_v63 = vand.u32 4294901760, %v3522_v45  ;;  %v20483_v45 = vld [vmem:[#allocation21_spill] sm:$0xff] }
 0x281   : > { %3502 = vmatprep.mubr.f32.mxu0 %v3501_v40  ;;  %v3516_v2 = vsub.f32 %v16593_v11, %v19900_v62  ;;  %v20480_v40 = vpack.c.bf16 %v20359_v58, %v20358_v56 }
 0x283   : > { %3508 = vmatmul.mubr.f32.gmra.mrb[60].mxu0 %v3507_v37  ;;  %v3517_v43 = vand.u32 4294901760, %v3516_v2  ;;  %v20481_v37 = vld [vmem:[#allocation17_spill] sm:$0xff] }
 0x284   : > { %v20482_v2 = vpack.c.bf16 %v20361_v19, %v20481_v37 }
 0x285   : > { %3518 = vmatprep.mubr.f32.mxu0 %v3517_v43  ;;  %v20484_v43 = vld [vmem:[#allocation19_spill] sm:$0xff] }
 0x287   : > { %3524 = vmatmul.mubr.f32.gmra.mrb[62].mxu0 %v3523_v63  ;;  %v20478_v63 = vpack.c.bf16 %v20355_v20, %v20354_v17 }
 0x288   : > { %3835 = vmatprep.mubr.f32.mxu0 %v16205_v50  ;;  %v20512_v50 = vld [vmem:[#allocation46_spill] sm:$0xff] }
 0x28b   : > { %3837 = vmatmul.mubr.f32.vlgmr.msra.gmra.mrb[32].mxu0 %v16184_v24 }
 0x28c   : > { %12800 = vmatpush1.bf16.msra.mxu0 %v20476_v5  ;;  %3843 = vmatprep.mubr.f32.mxu0 %v16228_v21  ;;  %v20485_v5 = vpack.c.bf16 %v20483_v45, %v20484_v43  ;;  %v20509_v21 = vld [vmem:[#allocation49_spill] sm:$0xff] }
 0x28d   : > { %12802 = vmatprep.subr.bf16.mxu0 %v20477_v61  ;;  %v20486_v61 = vld [vmem:[#allocation31_spill] sm:$0xff] }
 0x28f   : > { %3845 = vmatmul.mubr.f32.gmra.mrb[34].mxu0 %v16216_v3  ;;  %v20506_v3 = vld [vmem:[#allocation42_spill] sm:$0xff] }
 0x290   : > { %3851 = vmatprep.mubr.f32.mxu0 %v16256_v32  ;;  %12804 = vmatpush1.bf16.msra.mxu0 %v20478_v63  ;;  %v20487_v63 = vld [vmem:[#allocation3_spill] sm:$0xff] }
 0x291   : > { %12806 = vmatprep.subr.bf16.mxu0 %v20479_v38  ;;  %v20488_v38 = vpack.c.bf16 %v20486_v61, %v20487_v63  ;;  %v20504_v32 = vld [vmem:[#allocation95_spill] sm:$0xff] }
 0x293   : > { %3853 = vmatmul.mubr.f32.gmra.mrb[36].mxu0 %v16241_v29 }
 0x294   : > { %3859 = vmatprep.mubr.f32.mxu0 %v16278_v55  ;;  %12808 = vmatpush1.bf16.msra.mxu0 %v20480_v40  ;;  %v20489_v40 = vld [vmem:[#allocation35_spill] sm:$0xff]  ;;  %v20502_v55 = vld [vmem:[#allocation45_spill] sm:$0xff] }
 0x295   : > { %12810 = vmatprep.subr.bf16.mxu0 %v20482_v2  ;;  %v20491_v62 = vpack.c.bf16 %v20489_v40, %v20490_v31  ;;  %v20492_v2 = vld [vmem:[#allocation37_spill] sm:$0xff] }
 0x296   : > { %v20494_v14 = vpack.c.bf16 %v20492_v2, %v20493_v10 }
 0x297   : > { %3861 = vmatmul.mubr.f32.gmra.mrb[38].mxu0 %v16267_v26 }
 0x298   : > { %3867 = vmatprep.mubr.f32.mxu0 %v16307_v15  ;;  %12812 = vmatpush1.bf16.msra.mxu0 %v20485_v5  ;;  %v20495_v5 = vld [vmem:[#allocation39_spill] sm:$0xff] }
 0x299   : > { %12814 = vmatprep.subr.bf16.mxu0 %v20488_v38  ;;  %v20497_v15 = vpack.c.bf16 %v20495_v5, %v20496_v1  ;;  %v20498_v38 = vld [vmem:[#allocation41_spill] sm:$0xff] }
 0x29b   : > { %3869 = vmatmul.mubr.f32.gmra.mrb[40].mxu0 %v16290_v27  ;;  %v20499_v27 = vld [vmem:[#allocation40_spill] sm:$0xff] }
 0x29c   : > { %3875 = vmatprep.mubr.f32.mxu0 %v16336_v54  ;;  %12816 = vmatpush1.bf16.msra.mxu0 %v20491_v62  ;;  %v20500_v26 = vpack.c.bf16 %v20498_v38, %v20499_v27  ;;  %v20501_v54 = vld [vmem:[#allocation44_spill] sm:$0xff] }
 0x29d   : > { %12818 = vmatprep.subr.bf16.mxu0 %v20494_v14  ;;  %v12825_v29 = vpack.c.bf16 %v20502_v55, %v20501_v54  ;;  %v20503_v62 = vld [vmem:[#allocation92_spill] sm:$0xff]  ;;  %v20505_v14 = vld [vmem:[#allocation43_spill] sm:$0xff] }
 0x29e   : > { %v20515_v55 = vld [vmem:[#allocation24_spill] sm:$0xff] }
 0x29f   : > { %3877 = vmatmul.mubr.f32.gmra.mrb[42].mxu0 %v16319_v33  ;;  %v20507_v33 = vpack.c.bf16 %v20505_v14, %v20506_v3  ;;  %v20522_v14 = vld [vmem:[#allocation67_spill] sm:$0xff] }
 0x2a0   : > { %3883 = vmatprep.mubr.f32.mxu0 %v16364_v39  ;;  %12820 = vmatpush1.bf16.msra.mxu0 %v20497_v15  ;;  %v20508_v39 = vld [vmem:[#allocation48_spill] sm:$0xff]  ;;  %v20510_v15 = vld [vmem:[#allocation94_spill] sm:$0xff] }
 0x2a1   : > { %12822 = vmatprep.subr.bf16.mxu0 %v20500_v26  ;;  %v12829_v24 = vpack.c.bf16 %v20509_v21, %v20508_v39  ;;  %v20511_v26 = vld [vmem:[#allocation47_spill] sm:$0xff]  ;;  %v20519_v21 = vld [vmem:[#allocation64_spill] sm:$0xff] }
 0x2a2   : > { %v20513_v38 = vpack.c.bf16 %v20511_v26, %v20512_v50 }
 0x2a3   : > { %3885 = vmatmul.mubr.f32.gmra.mrb[44].mxu0 %v20503_v62  ;;  %v20514_v62 = vld [vmem:[#allocation23_spill] sm:$0xff] }
 0x2a4   : > { %3891 = vmatprep.mubr.f32.mxu0 %v20504_v32  ;;  %12824 = vmatpush1.bf16.msra.mxu0 %v20507_v33  ;;  %v12833_v32 = vpack.c.bf16 %v20515_v55, %v20514_v62  ;;  %v20517_v33 = vld [vmem:[#allocation50_spill] sm:$0xff]  ;;  %v20527_v62 = vld [vmem:[#allocation72_spill] sm:$0xff] }
 0x2a5   : > { %12826 = vmatprep.subr.bf16.mxu0 %v12825_v29  ;;  %v20516_v29 = vld [vmem:[#allocation51_spill] sm:$0xff] }
 0x2a6   : > { %v20518_v54 = vpack.c.bf16 %v20516_v29, %v20517_v33 }
 0x2a7   : > { %3893 = vmatmul.mubr.f32.gmra.mrb[46].mxu0 %v20510_v15  ;;  %v20520_v15 = vld [vmem:[#allocation65_spill] sm:$0xff] }
 0x2a8   : > { %3899 = vmatprep.mubr.f32.mxu0 %v16412_v35  ;;  %12828 = vmatpush1.bf16.msra.mxu0 %v20513_v38  ;;  %v12835_v39 = vpack.c.bf16 %v20520_v15, %v20519_v21  ;;  %v20521_v35 = vld [vmem:[#allocation66_spill] sm:$0xff]  ;;  %v20523_v38 = vld [vmem:[#allocation99_spill] sm:$0xff] }
 0x2a9   : > { %12830 = vmatprep.subr.bf16.mxu0 %v12829_v24  ;;  %v12837_v26 = vpack.c.bf16 %v20522_v14, %v20521_v35  ;;  %v20524_v24 = vld [vmem:[#allocation68_spill] sm:$0xff]  ;;  %v20530_v15 = vld [vmem:[#allocation74_spill] sm:$0xff]  ;;  %v20571_v21 = vld [vmem:[#allocation103_spill] sm:$0xff] }
 0x2aa   : > { %v20568_v35 = vld [vmem:[#allocation100_spill] sm:$0xff] }
 0x2ab   : > { %3901 = vmatmul.mubr.f32.gmra.mrb[48].mxu0 %v16400_v16  ;;  %v20525_v16 = vld [vmem:[#allocation69_spill] sm:$0xff] }
 0x2ac   : > { %3907 = vmatprep.mubr.f32.mxu0 %v16440_v9  ;;  %12832 = vmatpush1.bf16.msra.mxu0 %v20518_v54  ;;  %v12839_v55 = vpack.c.bf16 %v20525_v16, %v20524_v24  ;;  %v20526_v9 = vld [vmem:[#allocation71_spill] sm:$0xff]  ;;  %v20528_v54 = vld [vmem:[#allocation102_spill] sm:$0xff]  ;;  %v20565_v24 = vld [vmem:[#allocation8_spill] sm:$0xff] }
 0x2ad   : > { %12834 = vmatprep.subr.bf16.mxu0 %v12833_v32  ;;  %v12841_v29 = vpack.c.bf16 %v20527_v62, %v20526_v9  ;;  %v20529_v32 = vld [vmem:[#allocation73_spill] sm:$0xff]  ;;  %v20561_v9 = vld [vmem:[#allocation7_spill] sm:$0xff] }
 0x2ae   : > { %v12843_v14 = vpack.c.bf16 %v20530_v15, %v20529_v32  ;;  %v20556_v15 = vld [vmem:[#allocation29_spill] sm:$0xff]  ;;  %v20564_v16 = vld [vmem:[#allocation59_spill] sm:$0xff] }
 0x2af   : > { %3909 = vmatmul.mubr.f32.gmra.mrb[50].mxu0 %v20523_v38  ;;  %v20548_v38 = vld [vmem:[#allocation56_spill] sm:$0xff]  ;;  %v20557_v32 = vld [vmem:[#allocation5_spill] sm:$0xff] }
 0x2b0   : > { %3915 = vmatprep.mubr.f32.mxu0 %v16464_v30  ;;  %12836 = vmatpush1.bf16.msra.mxu0 %v12835_v39  ;;  %v20531_v39 = vld [vmem:[#allocation4_spill] sm:$0xff]  ;;  %v20547_v30 = vld [vmem:[#allocation55_spill] sm:$0xff]  ;;  %v20560_v62 = vld [vmem:[#allocation33_spill] sm:$0xff] }
 0x2b1   : > { %12838 = vmatprep.subr.bf16.mxu0 %v12837_v26  ;;  %v20533_v26 = vld [vmem:[#allocation12_spill] sm:$0xff] }
 0x2b3   : > { %3917 = vmatmul.mubr.f32.gmra.mrb[52].mxu0 %v20528_v54  ;;  %v20546_v54 = vld [vmem:[#allocation87_spill] sm:$0xff] }
 0x2b4   : > { %3923 = vmatprep.mubr.f32.mxu0 %v16493_v12  ;;  %12840 = vmatpush1.bf16.msra.mxu0 %v12839_v55  ;;  %v20532_v55 = vld [vmem:[#allocation14_spill] sm:$0xff]  ;;  %v20545_v12 = vld [vmem:[#allocation81_spill] sm:$0xff] }
 0x2b5   : > { %12842 = vmatprep.subr.bf16.mxu0 %v12841_v29  ;;  %v20535_v29 = vld [vmem:[#allocation75_spill] sm:$0xff] }
 0x2b7   : > { %3925 = vmatmul.mubr.f32.gmra.mrb[54].mxu0 %v16476_v42  ;;  %v20544_v42 = vld [vmem:[#allocation54_spill] sm:$0xff] }
 0x2b8   : > { %3931 = vmatprep.mubr.f32.mxu0 %v16517_v18  ;;  %12844 = vmatpush1.bf16.msra.mxu0 %v12843_v14  ;;  %v20534_v14 = vld [vmem:[#allocation20_spill] sm:$0xff]  ;;  %v20543_v18 = vld [vmem:[#allocation53_spill] sm:$0xff] }
 0x2b9   : > { %12846 = vmatprep.subr.bf16.mxu0 %v20531_v39  ;;  %v20553_v39 = vld [vmem:[#allocation89_spill] sm:$0xff] }
 0x2bb   : > { %3933 = vmatmul.mubr.f32.gmra.mrb[56].mxu0 %v16505_v48  ;;  %v20536_v48 = vld [vmem:[#allocation26_spill] sm:$0xff] }
 0x2bc   : > { %3939 = vmatprep.mubr.f32.mxu0 %v16542_v59  ;;  %v20537_v59 = vld [vmem:[#allocation16_spill] sm:$0xff] }
 0x2bf   : > { %3941 = vmatmul.mubr.f32.gmra.mrb[58].mxu0 %v16529_v36  ;;  %v20538_v36 = vld [vmem:[#allocation79_spill] sm:$0xff] }
 0x2c0   : > { %3947 = vmatprep.mubr.f32.mxu0 %v16565_v44  ;;  %v20539_v44 = vld [vmem:[#allocation27_spill] sm:$0xff] }
 0x2c3   : > { %3949 = vmatmul.mubr.f32.gmra.mrb[60].mxu0 %v16554_v57  ;;  %v20540_v57 = vld [vmem:[#allocation52_spill] sm:$0xff] }
 0x2c4   : > { %3955 = vmatprep.mubr.f32.mxu0 %v16589_v41  ;;  %v20541_v41 = vld [vmem:[#allocation77_spill] sm:$0xff] }
 0x2c7   : > { %3957 = vmatmul.mubr.f32.gmra.mrb[62].mxu0 %v16576_v53  ;;  %v20542_v53 = vld [vmem:[#allocation83_spill] sm:$0xff] }
 0x2c8   : > { %4125 = vmatprep.mubr.f32.mxu0 %v20532_v55 }
 0x2cb   : > { %4128 = vmatmul.mubr.f32.vlgmr.msra.gmra.mrb[32].mxu0 %v20533_v26 }
 0x2cc   : > { %12848 = vmatpush1.bf16.msra.mxu0 %v20534_v14  ;;  %4135 = vmatprep.mubr.f32.mxu0 %v20535_v29  ;;  %v20552_v14 = vld [vmem:[#allocation58_spill] sm:$0xff] }
 0x2cd   : > { %12850 = vmatprep.subr.bf16.mxu0 %v20536_v48  ;;  %v20549_v48 = vld [vmem:[#allocation85_spill] sm:$0xff] }
 0x2cf   : > { %4138 = vmatmul.mubr.f32.gmra.mrb[34].mxu0 %v20537_v59 }
 0x2d0   : > { %4145 = vmatprep.mubr.f32.mxu0 %v20538_v36  ;;  %12852 = vmatpush1.bf16.msra.mxu0 %v20539_v44  ;;  %v20550_v44 = vld [vmem:[#allocation91_spill] sm:$0xff] }
 0x2d1   : > { %12854 = vmatprep.subr.bf16.mxu0 %v20540_v57  ;;  %v20551_v57 = vld [vmem:[#allocation57_spill] sm:$0xff] }
 0x2d3   : > { %4148 = vmatmul.mubr.f32.gmra.mrb[36].mxu0 %v20541_v41 }
 0x2d4   : > { %4155 = vmatprep.mubr.f32.mxu0 %v20542_v53  ;;  %12856 = vmatpush1.bf16.msra.mxu0 %v20543_v18  ;;  %v20554_v18 = vld [vmem:[#allocation6_spill] sm:$0xff] }
 0x2d5   : > { %12858 = vmatprep.subr.bf16.mxu0 %v20544_v42  ;;  %v20555_v42 = vld [vmem:[#allocation28_spill] sm:$0xff] }
 0x2d7   : > { %4158 = vmatmul.mubr.f32.gmra.mrb[38].mxu0 %v20545_v12 }
 0x2d8   : > { %4165 = vmatprep.mubr.f32.mxu0 %v20546_v54  ;;  %12860 = vmatpush1.bf16.msra.mxu0 %v20547_v30  ;;  %v20558_v30 = vld [vmem:[#allocation9_spill] sm:$0xff] }
 0x2d9   : > { %12862 = vmatprep.subr.bf16.mxu0 %v20548_v38  ;;  %v20559_v38 = vld [vmem:[#allocation30_spill] sm:$0xff] }
 0x2db   : > { %4168 = vmatmul.mubr.f32.gmra.mrb[40].mxu0 %v20549_v48 }
 0x2dc   : > { %4175 = vmatprep.mubr.f32.mxu0 %v20550_v44  ;;  %12864 = vmatpush1.bf16.msra.mxu0 %v20551_v57  ;;  %v20562_v57 = vld [vmem:[#allocation98_spill] sm:$0xff] }
 0x2dd   : > { %12866 = vmatprep.subr.bf16.mxu0 %v20552_v14  ;;  %v20563_v14 = vld [vmem:[#allocation34_spill] sm:$0xff] }
 0x2df   : > { %4178 = vmatmul.mubr.f32.gmra.mrb[42].mxu0 %v20553_v39 }
 0x2e0   : > { %4185 = vmatprep.mubr.f32.mxu0 %v20554_v18  ;;  %12868 = vmatpush1.bf16.msra.mxu0 %v20555_v42  ;;  %v20567_v42 = vld [vmem:[#allocation22_spill] sm:$0xff] }
 0x2e1   : > { %12870 = vmatprep.subr.bf16.mxu0 %v20556_v15  ;;  %v20566_v15 = vld [vmem:[#allocation60_spill] sm:$0xff] }
 0x2e3   : > { %4188 = vmatmul.mubr.f32.gmra.mrb[44].mxu0 %v20557_v32 }
 0x2e4   : > { %4195 = vmatprep.mubr.f32.mxu0 %v20558_v30  ;;  %12872 = vmatpush1.bf16.msra.mxu0 %v20559_v38  ;;  %v20570_v38 = vld [vmem:[#allocation61_spill] sm:$0xff] }
 0x2e5   : > { %12874 = vmatprep.subr.bf16.mxu0 %v20560_v62  ;;  %v20569_v62 = vld [vmem:[#allocation25_spill] sm:$0xff] }
 0x2e7   : > { %4198 = vmatmul.mubr.f32.gmra.mrb[46].mxu0 %v20561_v9 }
 0x2e8   : > { %4205 = vmatprep.mubr.f32.mxu0 %v20562_v57  ;;  %12876 = vmatpush1.bf16.msra.mxu0 %v20563_v14  ;;  %v20572_v14 = vld [vmem:[#allocation108_spill] sm:$0xff] }
 0x2e9   : > { %12878 = vmatprep.subr.bf16.mxu0 %v20564_v16  ;;  %v20573_v16 = vld [vmem:[#allocation62_spill] sm:$0xff] }
 0x2eb   : > { %4208 = vmatmul.mubr.f32.gmra.mrb[48].mxu0 %v20565_v24  ;;  %v20574_v24 = vld [vmem:[#allocation63_spill] sm:$0xff] }
 0x2ec   : > { %4215 = vmatprep.mubr.f32.mxu0 %v16450_v47  ;;  %12880 = vmatpush1.bf16.msra.mxu0 %v20566_v15  ;;  %v20575_v15 = vand.u32 4294901760, %v20348_v13  ;;  %v20579_v13 = vand.u32 4294901760, %v20532_v55  ;;  %v20586_v55 = vand.u32 4294901760, %v20354_v17  ;;  %v20593_v17 = vand.u32 4294901760, %v20359_v58 }
 0x2ed   : > { %12882 = vmatprep.subr.bf16.mxu0 %v20567_v42  ;;  %v20576_v42 = vand.u32 4294901760, %v20349_v51  ;;  %v20580_v51 = vand.u32 4294901760, %v20350_v49  ;;  %v20600_v58 = vand.u32 4294901760, %v20487_v63  ;;  %v20607_v63 = vand.u32 4294901760, %v20492_v2 }
 0x2ee   : > { %v20615_v2 = vand.u32 4294901760, %v20553_v39  ;;  %v20625_v39 = vand.u32 4294901760, %v20558_v30  ;;  %v20635_v30 = vand.u32 4294901760, %v20517_v33 }
 0x2ef   : > { %4218 = vmatmul.mubr.f32.gmra.mrb[50].mxu0 %v20568_v35  ;;  %v12893_v47 = vpack.c.bf16 %v20576_v42, %v20575_v15  ;;  %v20577_v35 = vld [vmem:[#allocation106_spill] sm:$0xff]  ;;  %v20582_v15 = vand.u32 4294901760, %v20352_v34  ;;  %v20589_v34 = vand.u32 4294901760, %v20357_v52  ;;  %v20596_v52 = vand.u32 4294901760, %v20541_v41 }
 0x2f0   : > { %4225 = vmatprep.mubr.f32.mxu0 %v16474_v25  ;;  %12884 = vmatpush1.bf16.msra.mxu0 %v20569_v62  ;;  %v20578_v62 = vld [vmem:[#allocation70_spill] sm:$0xff]  ;;  %v20603_v41 = vand.u32 4294901760, %v20546_v54  ;;  %v20610_v54 = vand.u32 4294901760, %v20496_v1 }
 0x2f1   : > { %12886 = vmatprep.subr.bf16.mxu0 %v20570_v38  ;;  %v20585_v38 = vand.u32 4294901760, %v20535_v29 }
 0x2f3   : > { %4228 = vmatmul.mubr.f32.gmra.mrb[52].mxu0 %v20571_v21 }
 0x2f4   : > { %4235 = vmatprep.mubr.f32.mxu0 %v20572_v14  ;;  %12888 = vmatpush1.bf16.msra.mxu0 %v20573_v16  ;;  %v20584_v16 = vand.u32 4294901760, %v20533_v26 }
 0x2f5   : > { %12890 = vmatprep.subr.bf16.mxu0 %v20574_v24 }
 0x2f7   : > { %4238 = vmatmul.mubr.f32.gmra.mrb[54].mxu0 %v20577_v35 }
 0x2f8   : > { %4245 = vmatprep.mubr.f32.mxu0 %v16527_v6  ;;  %12892 = vmatpush1.bf16.msra.mxu0 %v20578_v62  ;;  %v20583_v62 = vand.u32 4294901760, %v20353_v0  ;;  %v20590_v0 = vand.u32 4294901760, %v20537_v59  ;;  %v20597_v59 = vand.u32 4294901760, %v20542_v53  ;;  %v20604_v53 = vand.u32 4294901760, %v20490_v31 }
 0x2f9   : > { %12894 = vmatprep.subr.bf16.mxu0 %v12893_v47  ;;  %v20581_v47 = vand.u32 4294901760, %v20351_v22  ;;  %v20588_v22 = vand.u32 4294901760, %v20356_v7  ;;  %v20595_v7 = vand.u32 4294901760, %v20361_v19  ;;  %v20602_v19 = vand.u32 4294901760, %v20545_v12 }
 0x2fa   : > { %v12897_v24 = vpack.c.bf16 %v20583_v62, %v20582_v15  ;;  %v20592_v62 = vand.u32 4294901760, %v20358_v56  ;;  %v20599_v56 = vand.u32 4294901760, %v20483_v45  ;;  %v20606_v45 = vand.u32 4294901760, %v20493_v10 }
 0x2fb   : > { %4248 = vmatmul.mubr.f32.gmra.mrb[56].mxu0 %v16515_v60  ;;  %v12895_v42 = vpack.c.bf16 %v20581_v47, %v20580_v51  ;;  %v12901_v51 = vpack.c.bf16 %v20589_v34, %v20588_v22  ;;  %v20609_v12 = vand.u32 4294901760, %v20550_v44  ;;  %v20611_v31 = vand.u32 4294901760, %v20495_v5  ;;  %v20620_v5 = vld [vmem:[#allocation44_spill] sm:$0xff] }
 0x2fc   : > { %4255 = vmatprep.mubr.f32.mxu0 %v16552_v8  ;;  %v20617_v44 = vand.u32 4294901760, %v20506_v3  ;;  %v20621_v34 = vand.u32 4294901760, %v20620_v5 }
 0x2fd   : > { %v12915_v15 = vpack.c.bf16 %v20611_v31, %v20610_v54 }
 0x2ff   : > { %4258 = vmatmul.mubr.f32.gmra.mrb[58].mxu0 %v16540_v4 }
 0x300   : > { %4265 = vmatprep.mubr.f32.mxu0 %v16574_v46 }
 0x303   : > { %4268 = vmatmul.mubr.f32.gmra.mrb[60].mxu0 %v16563_v23 }
 0x304   : > { %4275 = vmatprep.mubr.f32.mxu0 %v16593_v11 }
 0x307   : > { %4278 = vmatmul.mubr.f32.gmra.mrb[62].mxu0 %v16587_v28 }
 0x308   : > { %4399 = vmatprep.mubr.f32.mxu0 %v20579_v13  ;;  %v20587_v13 = vand.u32 4294901760, %v20355_v20  ;;  %v20594_v20 = vand.u32 4294901760, %v20481_v37  ;;  %v20601_v37 = vand.u32 4294901760, %v20486_v61  ;;  %v20608_v61 = vand.u32 4294901760, %v20549_v48 }
 0x309   : > { %v20616_v48 = vand.u32 4294901760, %v20554_v18  ;;  %v20626_v18 = vand.u32 4294901760, %v20512_v50 }
 0x30a   : > { %v12899_v49 = vpack.c.bf16 %v20587_v13, %v20586_v55  ;;  %v12909_v29 = vpack.c.bf16 %v20601_v37, %v20600_v58  ;;  %v20613_v55 = vld [vmem:[#allocation41_spill] sm:$0xff]  ;;  %v20640_v37 = vld [vmem:[#allocation24_spill] sm:$0xff] }
 0x30b   : > { %4403 = vmatmul.mubr.f32.vlgmr.msra.gmra.mrb[32].mxu0 %v20584_v16  ;;  %v20591_v16 = vand.u32 4294901760, %v20538_v36  ;;  %v20598_v36 = vand.u32 4294901760, %v20484_v43  ;;  %v20605_v43 = vand.u32 4294901760, %v20489_v40  ;;  %v20612_v40 = vand.u32 4294901760, %v20499_v27 }
 0x30c   : > { %12896 = vmatpush1.bf16.msra.mxu0 %v12895_v42  ;;  %4411 = vmatprep.mubr.f32.mxu0 %v20585_v38  ;;  %v12903_v38 = vpack.c.bf16 %v20593_v17, %v20592_v62  ;;  %v12913_v42 = vpack.c.bf16 %v20607_v63, %v20606_v45  ;;  %v20614_v10 = vand.u32 4294901760, %v20613_v55  ;;  %v20627_v62 = vld [vmem:[#allocation47_spill] sm:$0xff]  ;;  %v20648_v45 = vld [vmem:[#allocation65_spill] sm:$0xff]  ;;  %v20656_v55 = vand.u32 4294901760, %v16474_v25 }
 0x30d   : > { %12898 = vmatprep.subr.bf16.mxu0 %v12897_v24  ;;  %v12905_v24 = vpack.c.bf16 %v20595_v7, %v20594_v20  ;;  %v12907_v26 = vpack.c.bf16 %v20599_v56, %v20598_v36  ;;  %v12911_v47 = vpack.c.bf16 %v20605_v43, %v20604_v53  ;;  %v20628_v3 = vand.u32 4294901760, %v20627_v62  ;;  %v20631_v7 = vld [vmem:[#allocation49_spill] sm:$0xff]  ;;  %v20636_v36 = vld [vmem:[#allocation51_spill] sm:$0xff] }
 0x30e   : > { %v12917_v13 = vpack.c.bf16 %v20614_v10, %v20612_v40  ;;  %v20637_v50 = vand.u32 4294901760, %v20636_v36  ;;  %v20649_v33 = vand.u32 4294901760, %v20648_v45  ;;  %v20657_v10 = vld [vmem:[#allocation68_spill] sm:$0xff]  ;;  %v20667_v25 = vld [vmem:[#allocation73_spill] sm:$0xff]  ;;  %v20671_v62 = vand.u32 4294901760, %v20577_v35  ;;  %v20682_v36 = vld [vmem:[#allocation11_spill] sm:$0xff] }
 0x30f   : > { %4415 = vmatmul.mubr.f32.gmra.mrb[34].mxu0 %v20590_v0  ;;  %v12923_v17 = vpack.c.bf16 %v20628_v3, %v20626_v18  ;;  %v20672_v3 = vand.u32 4294901760, %v16527_v6  ;;  %v20678_v35 = vand.u32 4294901760, %v16563_v23  ;;  %v20679_v6 = vand.u32 4294901760, %v16593_v11  ;;  %v20681_v23 = vld [vmem:[#allocation13_spill] sm:$0xff]  ;;  %v20688_v45 = vld [vmem:[#allocation27_spill] sm:$0xff] }
 0x310   : > { %4423 = vmatprep.mubr.f32.mxu0 %v20591_v16  ;;  %12900 = vmatpush1.bf16.msra.mxu0 %v12899_v49  ;;  %v20618_v49 = vld [vmem:[#allocation43_spill] sm:$0xff]  ;;  %v20624_v16 = vand.u32 4294901760, %v20557_v32  ;;  %v20634_v32 = vand.u32 4294901760, %v20562_v57  ;;  %v12927_v56 = vpack.c.bf16 %v20637_v50, %v20635_v30  ;;  %v20646_v57 = vld [vmem:[#allocation64_spill] sm:$0xff]  ;;  %v16940_v11 = vld [vmem:[%s19549_s5 + $0x18] sm:$0xff] }
 0x311   : > { %12902 = vmatprep.subr.bf16.mxu0 %v12901_v51  ;;  %v20619_v1 = vand.u32 4294901760, %v20618_v49  ;;  %v20622_v51 = vld [vmem:[#allocation45_spill] sm:$0xff]  ;;  %v20661_v49 = vld [vmem:[#allocation71_spill] sm:$0xff] }
 0x312   : > { %v20623_v27 = vand.u32 4294901760, %v20622_v51  ;;  %v20665_v51 = vand.u32 4294901760, %v20571_v21  ;;  %v20674_v21 = vand.u32 4294901760, %v16515_v60  ;;  %v16922_v60 = vld [vmem:[%s19549_s5] sm:$0xff] }
 0x313   : > { %4427 = vmatmul.mubr.f32.gmra.mrb[36].mxu0 %v20596_v52  ;;  %v12919_v22 = vpack.c.bf16 %v20619_v1, %v20617_v44  ;;  %v20662_v1 = vand.u32 4294901760, %v20661_v49  ;;  %v20698_v49 = vld [vmem:[#allocation84_spill] sm:$0xff] }
 0x314   : > { %4435 = vmatprep.mubr.f32.mxu0 %v20597_v59  ;;  %12904 = vmatpush1.bf16.msra.mxu0 %v12903_v38  ;;  %v12921_v0 = vpack.c.bf16 %v20623_v27, %v20621_v34  ;;  %v20629_v38 = vld [vmem:[#allocation48_spill] sm:$0xff]  ;;  %v20633_v59 = vand.u32 4294901760, %v20561_v9  ;;  %v20644_v9 = vld [vmem:[#allocation10_spill] sm:$0xff]  ;;  %v20666_v27 = vand.u32 4294901760, %v20572_v14  ;;  %v20675_v14 = vand.u32 4294901760, %v16552_v8 }
 0x315   : > { %12906 = vmatprep.subr.bf16.mxu0 %v12905_v24  ;;  %v20630_v20 = vand.u32 4294901760, %v20629_v38  ;;  %v20632_v24 = vand.u32 4294901760, %v20631_v7  ;;  %v20645_v43 = vand.u32 4294901760, %v20644_v9  ;;  %v20676_v38 = vand.u32 4294901760, %v16540_v4  ;;  %v16927_v4 = vld [vmem:[%s19549_s5 + $0x8] sm:$0xff]  ;;  %v16932_v8 = vld [vmem:[%s19549_s5 + $0x10] sm:$0xff] }
 0x316   : > { %v20680_v7 = vand.u32 4294901760, %v16587_v28  ;;  %v5187_v28 = vand.u32 4294901760, %v16927_v4 }
 0x317   : > { %4439 = vmatmul.mubr.f32.gmra.mrb[38].mxu0 %v20602_v19  ;;  %v12925_v52 = vpack.c.bf16 %v20632_v24, %v20630_v20  ;;  %v20677_v20 = vand.u32 4294901760, %v16574_v46  ;;  %v5184_v46 = vand.u32 4294901760, %v16922_v60  ;;  %v5190_v24 = vand.u32 4294901760, %v16932_v8 }
 0x318   : > { %4447 = vmatprep.mubr.f32.mxu0 %v20603_v41  ;;  %12908 = vmatpush1.bf16.msra.mxu0 %v12907_v26  ;;  %v20638_v26 = vld [vmem:[#allocation23_spill] sm:$0xff]  ;;  %v20642_v41 = vld [vmem:[#allocation8_spill] sm:$0xff] }
 0x319   : > { %12910 = vmatprep.subr.bf16.mxu0 %v12909_v29  ;;  %v20639_v58 = vand.u32 4294901760, %v20638_v26  ;;  %v20641_v29 = vand.u32 4294901760, %v20640_v37  ;;  %v20643_v53 = vand.u32 4294901760, %v20642_v41  ;;  %v16958_v30 = vpack.c.bf16 %v5187_v28, %v5184_v46  ;;  %v20684_v37 = vld [vmem:[#allocation18_spill] sm:$0xff] }
 0x31a   : > { %v20685_v41 = vld [vmem:[#allocation26_spill] sm:$0xff] }
 0x31b   : > { %4451 = vmatmul.mubr.f32.gmra.mrb[40].mxu0 %v20608_v61  ;;  %v12929_v19 = vpack.c.bf16 %v20641_v29, %v20639_v58  ;;  %v20683_v58 = vld [vmem:[#allocation20_spill] sm:$0xff]  ;;  %12990 = vmatprep.subr.bf16.mxu1 %v16958_v30 }
 0x31c   : > { %4459 = vmatprep.mubr.f32.mxu0 %v20609_v12  ;;  %12912 = vmatpush1.bf16.msra.mxu0 %v12911_v47  ;;  %v20647_v47 = vand.u32 4294901760, %v20646_v57  ;;  %v20652_v12 = vld [vmem:[#allocation67_spill] sm:$0xff]  ;;  %v16974_v29 = vld [vmem:[%s19549_s5 + $0x30] sm:$0xff] }
 0x31d   : > { %12914 = vmatprep.subr.bf16.mxu0 %v12913_v42  ;;  %v20650_v42 = vld [vmem:[#allocation66_spill] sm:$0xff]  ;;  %v20653_v54 = vand.u32 4294901760, %v20652_v12  ;;  %12992 = vmatpush3.bf16.msra.mxu1 %v16958_v30 }
 0x31e   : > { %v12931_v63 = vpack.c.bf16 %v20649_v33, %v20647_v47  ;;  %v20651_v61 = vand.u32 4294901760, %v20650_v42  ;;  %v20687_v47 = vld [vmem:[#allocation78_spill] sm:$0xff]  ;;  %v20689_v42 = vld [vmem:[#allocation52_spill] sm:$0xff] }
 0x31f   : > { %4463 = vmatmul.mubr.f32.gmra.mrb[42].mxu0 %v20615_v2  ;;  %v20659_v2 = vld [vmem:[#allocation69_spill] sm:$0xff]  ;;  %v16999_v33 = vld [vmem:[%s19549_s5 + $0x40] sm:$0xff] }
 0x320   : > { %4471 = vmatprep.mubr.f32.mxu0 %v20616_v48  ;;  %12916 = vmatpush1.bf16.msra.mxu0 %v12915_v15  ;;  %v12933_v31 = vpack.c.bf16 %v20653_v54, %v20651_v61  ;;  %v20654_v15 = vld [vmem:[#allocation100_spill] sm:$0xff]  ;;  %v20660_v48 = vand.u32 4294901760, %v20659_v2  ;;  %v5208_v54 = vand.u32 4294901760, %v16999_v33  ;;  %v20695_v2 = vld [vmem:[#allocation86_spill] sm:$0xff] }
 0x321   : > { %12918 = vmatprep.subr.bf16.mxu0 %v12917_v13  ;;  %v20655_v40 = vand.u32 4294901760, %v20654_v15  ;;  %v20658_v13 = vand.u32 4294901760, %v20657_v10  ;;  %v20690_v61 = vld [vmem:[#allocation76_spill] sm:$0xff]  ;;  %v20691_v15 = vld [vmem:[#allocation82_spill] sm:$0xff] }
 0x322   : > { %v20694_v10 = vld [vmem:[#allocation80_spill] sm:$0xff] }
 0x323   : > { %4475 = vmatmul.mubr.f32.gmra.mrb[44].mxu0 %v20624_v16  ;;  %v12935_v44 = vpack.c.bf16 %v20660_v48, %v20658_v13  ;;  %v20669_v16 = vld [vmem:[#allocation74_spill] sm:$0xff]  ;;  %v20696_v48 = vld [vmem:[#allocation55_spill] sm:$0xff] }
 0x324   : > { %4483 = vmatprep.mubr.f32.mxu0 %v20625_v39  ;;  %12920 = vmatpush1.bf16.msra.mxu0 %v12919_v22  ;;  %v20663_v22 = vld [vmem:[#allocation72_spill] sm:$0xff]  ;;  %v20670_v39 = vand.u32 4294901760, %v20669_v16  ;;  %v20707_v16 = vld [vmem:[#allocation95_spill] sm:$0xff] }
 0x325   : > { %12922 = vmatprep.subr.bf16.mxu0 %v12921_v0  ;;  %v20664_v5 = vand.u32 4294901760, %v20663_v22  ;;  %v20668_v0 = vand.u32 4294901760, %v20667_v25  ;;  %v20700_v22 = vld [vmem:[#allocation57_spill] sm:$0xff] }
 0x326   : > { %v20705_v25 = vld [vmem:[#allocation29_spill] sm:$0xff] }
 0x327   : > { %4487 = vmatmul.mubr.f32.gmra.mrb[46].mxu0 %v20633_v59  ;;  %v12937_v34 = vpack.c.bf16 %v20664_v5, %v20662_v1  ;;  %v12939_v18 = vpack.c.bf16 %v20670_v39, %v20668_v0  ;;  %v16951_v59 = vld [vmem:[%s19549_s5 + $0x28] sm:$0xff]  ;;  %v20699_v1 = vld [vmem:[#allocation90_spill] sm:$0xff] }
 0x328   : > { %4495 = vmatprep.mubr.f32.mxu0 %v20634_v32  ;;  %12924 = vmatpush1.bf16.msra.mxu0 %v12923_v17  ;;  %v20673_v17 = vld [vmem:[#allocation4_spill] sm:$0xff]  ;;  %v5193_v32 = vand.u32 4294901760, %v16940_v11  ;;  %v5199_v26 = vand.u32 4294901760, %v16951_v59  ;;  %v20701_v5 = vld [vmem:[#allocation58_spill] sm:$0xff] }
 0x329   : > { %12926 = vmatprep.subr.bf16.mxu0 %v12925_v52  ;;  %v16946_v52 = vld [vmem:[%s19549_s5 + $0x20] sm:$0xff]  ;;  %v20706_v0 = vld [vmem:[#allocation92_spill] sm:$0xff] }
 0x32a   : > { %v16965_v50 = vpack.c.bf16 %v5193_v32, %v5190_v24  ;;  %v20708_v39 = vld [vmem:[#allocation30_spill] sm:$0xff] }
 0x32b   : > { %4499 = vmatmul.mubr.f32.gmra.mrb[48].mxu0 %v20643_v53  ;;  %v20686_v53 = vld [vmem:[#allocation15_spill] sm:$0xff] }
 0x32c   : > { %4507 = vmatprep.mubr.f32.mxu0 %v20645_v43  ;;  %12928 = vmatpush1.bf16.msra.mxu0 %v12927_v56  ;;  %v5196_v56 = vand.u32 4294901760, %v16946_v52  ;;  %v5202_v43 = vand.u32 4294901760, %v16974_v29 }
 0x32d   : > { %12930 = vmatprep.subr.bf16.mxu0 %v12929_v19  ;;  %v16979_v19 = vld [vmem:[%s19549_s5 + $0x38] sm:$0xff]  ;;  %12994 = vmatprep.subr.bf16.mxu1 %v16965_v50 }
 0x32e   : > { %v16990_v9 = vpack.c.bf16 %v5199_v26, %v5196_v56  ;;  %v5205_v57 = vand.u32 4294901760, %v16979_v19  ;;  %12996 = vmatpush3.bf16.msra.mxu1 %v16965_v50 }
 0x32f   : > { %4511 = vmatmul.mubr.f32.gmra.mrb[50].mxu0 %v20655_v40  ;;  %v20692_v40 = vld [vmem:[#allocation53_spill] sm:$0xff] }
 0x330   : > { %4519 = vmatprep.mubr.f32.mxu0 %v20656_v55  ;;  %12932 = vmatpush1.bf16.msra.mxu0 %v12931_v63  ;;  %v17004_v63 = vld [vmem:[%s19549_s5 + $0x48] sm:$0xff]  ;;  %v17014_v12 = vpack.c.bf16 %v5205_v57, %v5202_v43  ;;  %v20693_v55 = vld [vmem:[#allocation54_spill] sm:$0xff] }
 0x331   : > { %12934 = vmatprep.subr.bf16.mxu0 %v12933_v31  ;;  %12998 = vmatprep.subr.bf16.mxu1 %v16990_v9  ;;  %v5211_v31 = vand.u32 4294901760, %v17004_v63 }
 0x332   : > { %13000 = vmatpush3.bf16.msra.mxu1 %v16990_v9 }
 0x333   : > { %4523 = vmatmul.mubr.f32.gmra.mrb[52].mxu0 %v20665_v51  ;;  %13002 = vmatprep.subr.bf16.mxu1 %v17014_v12  ;;  %v17028_v13 = vpack.c.bf16 %v5211_v31, %v5208_v54  ;;  %v20703_v51 = vld [vmem:[#allocation93_spill] sm:$0xff] }
 0x334   : > { %4531 = vmatprep.mubr.f32.mxu0 %v20666_v27  ;;  %12936 = vmatpush1.bf16.msra.mxu0 %v12935_v44  ;;  %v20697_v44 = vld [vmem:[#allocation56_spill] sm:$0xff] }
 0x335   : > { %12938 = vmatprep.subr.bf16.mxu0 %v12937_v34  ;;  %v20702_v34 = vld [vmem:[#allocation88_spill] sm:$0xff] }
 0x336   : > { %13004 = vmatpush3.bf16.msra.mxu1 %v17014_v12  ;;  %v20704_v27 = vld [vmem:[#allocation28_spill] sm:$0xff] }
 0x337   : > { %4535 = vmatmul.mubr.f32.gmra.mrb[54].mxu0 %v20671_v62  ;;  %13006 = vmatprep.subr.bf16.mxu1 %v17028_v13  ;;  %v20710_v62 = vld [vmem:[#allocation94_spill] sm:$0xff] }
 0x338   : > { %4543 = vmatprep.mubr.f32.mxu0 %v20672_v3  ;;  %12940 = vmatpush1.bf16.msra.mxu0 %v12939_v18  ;;  %v20709_v18 = vld [vmem:[#allocation33_spill] sm:$0xff] }
 0x339   : > { %12942 = vmatprep.subr.bf16.mxu0 %v20673_v17  ;;  %v20711_v3 = vld [vmem:[#allocation97_spill] sm:$0xff]  ;;  %v20712_v17 = vld [vmem:[#allocation34_spill] sm:$0xff] }
 0x33a   : > { %13008 = vmatpush3.bf16.msra.mxu1 %v17028_v13 }
 0x33b   : > { %4547 = vmatmul.mubr.f32.gmra.mrb[56].mxu0 %v20674_v21  ;;  %v20713_v21 = vld [vmem:[#allocation59_spill] sm:$0xff] }
 0x33c   : > { %4555 = vmatprep.mubr.f32.mxu0 %v20675_v14  ;;  %v20714_v14 = vld [vmem:[#allocation96_spill] sm:$0xff] }
 0x33f   : > { %4559 = vmatmul.mubr.f32.gmra.mrb[58].mxu0 %v20676_v38  ;;  %v20715_v38 = vld [vmem:[#allocation101_spill] sm:$0xff] }
 0x340   : > { %4567 = vmatprep.mubr.f32.mxu0 %v20677_v20  ;;  %v20716_v20 = vld [vmem:[#allocation60_spill] sm:$0xff] }
 0x343   : > { %4571 = vmatmul.mubr.f32.gmra.mrb[60].mxu0 %v20678_v35  ;;  %v20717_v35 = vld [vmem:[#allocation22_spill] sm:$0xff] }
 0x344   : > { %4579 = vmatprep.mubr.f32.mxu0 %v20679_v6  ;;  %v20718_v6 = vld [vmem:[#allocation99_spill] sm:$0xff] }
 0x347   : > { %4583 = vmatmul.mubr.f32.gmra.mrb[62].mxu0 %v20680_v7  ;;  %v20719_v7 = vld [vmem:[#allocation104_spill] sm:$0xff] }
 0x348   : > { %4798 = vmatprep.mubr.f32.mxu0 %v20681_v23 }
 0x34b   : > { %4800 = vmatmul.mubr.f32.vlgmr.msra.gmra.mrb[32].mxu0 %v20682_v36 }
 0x34c   : > { %12944 = vmatpush1.bf16.msra.mxu0 %v20683_v58  ;;  %4806 = vmatprep.mubr.f32.mxu0 %v20684_v37  ;;  %v20720_v58 = vld [vmem:[#allocation25_spill] sm:$0xff] }
 0x34d   : > { %12946 = vmatprep.subr.bf16.mxu0 %v20685_v41  ;;  %v20721_v41 = vld [vmem:[#allocation61_spill] sm:$0xff] }
 0x34f   : > { %4808 = vmatmul.mubr.f32.gmra.mrb[34].mxu0 %v20686_v53 }
 0x350   : > { %4814 = vmatprep.mubr.f32.mxu0 %v20687_v47  ;;  %12948 = vmatpush1.bf16.msra.mxu0 %v20688_v45  ;;  %v20722_v45 = vld [vmem:[#allocation102_spill] sm:$0xff] }
 0x351   : > { %12950 = vmatprep.subr.bf16.mxu0 %v20689_v42  ;;  %v20723_v42 = vld [vmem:[#allocation107_spill] sm:$0xff] }
 0x353   : > { %4816 = vmatmul.mubr.f32.gmra.mrb[36].mxu0 %v20690_v61 }
 0x354   : > { %4822 = vmatprep.mubr.f32.mxu0 %v20691_v15  ;;  %12952 = vmatpush1.bf16.msra.mxu0 %v20692_v40  ;;  %v20724_v40 = vld [vmem:[#allocation62_spill] sm:$0xff] }
 0x355   : > { %12954 = vmatprep.subr.bf16.mxu0 %v20693_v55  ;;  %v20725_v55 = vld [vmem:[#allocation63_spill] sm:$0xff] }
 0x357   : > { %4824 = vmatmul.mubr.f32.gmra.mrb[38].mxu0 %v20694_v10 }
 0x358   : > { %4830 = vmatprep.mubr.f32.mxu0 %v20695_v2  ;;  %12956 = vmatpush1.bf16.msra.mxu0 %v20696_v48  ;;  %v20726_v48 = vld [vmem:[#allocation105_spill] sm:$0xff] }
 0x359   : > { %12958 = vmatprep.subr.bf16.mxu0 %v20697_v44  ;;  %v20727_v44 = vld [vmem:[#allocation110_spill] sm:$0xff] }
 0x35b   : > { %4832 = vmatmul.mubr.f32.gmra.mrb[40].mxu0 %v20698_v49 }
 0x35c   : > { %4838 = vmatprep.mubr.f32.mxu0 %v20699_v1  ;;  %12960 = vmatpush1.bf16.msra.mxu0 %v20700_v22  ;;  %v20728_v22 = vld [vmem:[#allocation70_spill] sm:$0xff] }
 0x35d   : > { %12962 = vmatprep.subr.bf16.mxu0 %v20701_v5  ;;  %v20729_v5 = vld [vmem:[#allocation109_spill] sm:$0xff] }
 0x35f   : > { %4840 = vmatmul.mubr.f32.gmra.mrb[42].mxu0 %v20702_v34 }
 0x360   : > { %4846 = vmatprep.mubr.f32.mxu0 %v20703_v51  ;;  %12964 = vmatpush1.bf16.msra.mxu0 %v20704_v27  ;;  %v20730_v27 = vld [vmem:[#allocation112_spill] sm:$0xff] }
 0x361   : > { %12966 = vmatprep.subr.bf16.mxu0 %v20705_v25  ;;  %v20731_v25 = vld [vmem:[#allocation111_spill] sm:$0xff] }
 0x363   : > { %4848 = vmatmul.mubr.f32.gmra.mrb[44].mxu0 %v20706_v0 }
 0x364   : > { %4854 = vmatprep.mubr.f32.mxu0 %v20707_v16  ;;  %12968 = vmatpush1.bf16.msra.mxu0 %v20708_v39  ;;  %v20732_v39 = vld [vmem:[#allocation114_spill] sm:$0xff] }
 0x365   : > { %12970 = vmatprep.subr.bf16.mxu0 %v20709_v18  ;;  %v20733_v18 = vld [vmem:[#allocation113_spill] sm:$0xff] }
 0x367   : > { %4856 = vmatmul.mubr.f32.gmra.mrb[46].mxu0 %v20710_v62 }
 0x368   : > { %4862 = vmatprep.mubr.f32.mxu0 %v20711_v3  ;;  %12972 = vmatpush1.bf16.msra.mxu0 %v20712_v17  ;;  %v20734_v17 = vld [vmem:[#allocation116_spill] sm:$0xff] }
 0x369   : > { %12974 = vmatprep.subr.bf16.mxu0 %v20713_v21  ;;  %v20735_v21 = vld [vmem:[#allocation115_spill] sm:$0xff] }
 0x36b   : > { %4864 = vmatmul.mubr.f32.gmra.mrb[48].mxu0 %v20714_v14 }
 0x36c   : > { %4870 = vmatprep.mubr.f32.mxu0 %v20715_v38  ;;  %12976 = vmatpush1.bf16.msra.mxu0 %v20716_v20 }
 0x36d   : > { %12978 = vmatprep.subr.bf16.mxu0 %v20717_v35 }
 0x36f   : > { %4872 = vmatmul.mubr.f32.gmra.mrb[50].mxu0 %v20718_v6 }
 0x370   : > { %4878 = vmatprep.mubr.f32.mxu0 %v20719_v7  ;;  %12980 = vmatpush1.bf16.msra.mxu0 %v20720_v58 }
 0x371   : > { %12982 = vmatprep.subr.bf16.mxu0 %v20721_v41 }
 0x373   : > { %4880 = vmatmul.mubr.f32.gmra.mrb[52].mxu0 %v20722_v45 }
 0x374   : > { %4886 = vmatprep.mubr.f32.mxu0 %v20723_v42  ;;  %12984 = vmatpush1.bf16.msra.mxu0 %v20724_v40 }
 0x375   : > { %12986 = vmatprep.subr.bf16.mxu0 %v20725_v55 }
 0x377   : > { %4888 = vmatmul.mubr.f32.gmra.mrb[54].mxu0 %v20726_v48 }
 0x378   : > { %4894 = vmatprep.mubr.f32.mxu0 %v20727_v44  ;;  %12988 = vmatpush1.bf16.msra.mxu0 %v20728_v22 }
 0x37b   : > { %4896 = vmatmul.mubr.f32.gmra.mrb[56].mxu0 %v20729_v5 }
 0x37c   : > { %4902 = vmatprep.mubr.f32.mxu0 %v20730_v27 }
 0x37f   : > { %4904 = vmatmul.mubr.f32.gmra.mrb[58].mxu0 %v20731_v25 }
 0x380   : > { %4910 = vmatprep.mubr.f32.mxu0 %v20732_v39 }
 0x383   : > { %4912 = vmatmul.mubr.f32.gmra.mrb[60].mxu0 %v20733_v18 }
 0x384   : > { %4918 = vmatprep.mubr.f32.mxu0 %v20734_v17 }
 0x387   : > { %4920 = vmatmul.mubr.f32.gmra.mrb[62].mxu0 %v20735_v21 }
 0x388   : > { %5039 = vmatprep.mubr.f32.mxu0 %v20681_v23  ;;  %v5177_v23 = vld [vmem:[%s19549_s5 + $0x50] sm:$0xff] }
 0x38b   : > { %5041 = vmatmul.mubr.f32.vlgmr.msra.gmra.mrb[32].mxu0 %v20682_v36  ;;  %v5178_v36 = vld [vmem:[%s19549_s5 + $0x58] sm:$0xff] }
 0x38c   : > { %5047 = vmatprep.mubr.f32.mxu0 %v20684_v37  ;;  %v5214_v37 = vand.u32 4294901760, %v5177_v23 }
 0x38f   : > { %5049 = vmatmul.mubr.f32.gmra.mrb[34].mxu0 %v20686_v53  ;;  %v5217_v53 = vand.u32 4294901760, %v5178_v36 }
 0x390   : > { %5055 = vmatprep.mubr.f32.mxu0 %v20687_v47 }
 0x391   : > { %v17112_v47 = vpack.c.bf16 %v5217_v53, %v5214_v37 }
 0x393   : > { %5057 = vmatmul.mubr.f32.gmra.mrb[36].mxu0 %v20690_v61  ;;  %v5179_v61 = vld [vmem:[%s19549_s5 + $0x60] sm:$0xff]  ;;  %13010 = vmatprep.subr.bf16.mxu1 %v17112_v47 }
 0x394   : > { %5063 = vmatprep.mubr.f32.mxu0 %v20691_v15  ;;  %v5180_v15 = vld [vmem:[%s19549_s5 + $0x68] sm:$0xff]  ;;  %13012 = vmatpush3.bf16.msra.mxu1 %v17112_v47 }
 0x397   : > { %5065 = vmatmul.mubr.f32.gmra.mrb[38].mxu0 %v20694_v10  ;;  %v5220_v10 = vand.u32 4294901760, %v5179_v61 }
 0x398   : > { %5071 = vmatprep.mubr.f32.mxu0 %v20695_v2  ;;  %v5223_v2 = vand.u32 4294901760, %v5180_v15 }
 0x39b   : > { %5073 = vmatmul.mubr.f32.gmra.mrb[40].mxu0 %v20698_v49  ;;  %v17122_v49 = vpack.c.bf16 %v5223_v2, %v5220_v10 }
 0x39c   : > { %5079 = vmatprep.mubr.f32.mxu0 %v20699_v1  ;;  %v5181_v1 = vld [vmem:[%s19549_s5 + $0x70] sm:$0xff] }
 0x39d   : > { %13014 = vmatprep.subr.bf16.mxu1 %v17122_v49 }
 0x39e   : > { %13016 = vmatpush3.bf16.msra.mxu1 %v17122_v49 }
 0x39f   : > { %5081 = vmatmul.mubr.f32.gmra.mrb[42].mxu0 %v20702_v34  ;;  %v5182_v34 = vld [vmem:[%s19549_s5 + $0x78] sm:$0xff] }
 0x3a0   : > { %5087 = vmatprep.mubr.f32.mxu0 %v20703_v51  ;;  %v5226_v51 = vand.u32 4294901760, %v5181_v1 }
 0x3a3   : > { %5089 = vmatmul.mubr.f32.gmra.mrb[44].mxu0 %v20706_v0  ;;  %v5229_v0 = vand.u32 4294901760, %v5182_v34 }
 0x3a4   : > { %5095 = vmatprep.mubr.f32.mxu0 %v20707_v16 }
 0x3a5   : > { %v17132_v16 = vpack.c.bf16 %v5229_v0, %v5226_v51 }
 0x3a7   : > { %5097 = vmatmul.mubr.f32.gmra.mrb[46].mxu0 %v20710_v62  ;;  %13018 = vmatprep.subr.bf16.mxu1 %v17132_v16  ;;  %v17139_v62 = vsub.f32 %v16922_v60, %v5184_v46 }
 0x3a8   : > { %5103 = vmatprep.mubr.f32.mxu0 %v20711_v3  ;;  %13020 = vmatpush3.bf16.msra.mxu1 %v17132_v16  ;;  %v17144_v3 = vsub.f32 %v16927_v4, %v5187_v28  ;;  %v17157_v4 = vsub.f32 %v5177_v23, %v5214_v37  ;;  %v17159_v28 = vsub.f32 %v5178_v36, %v5217_v53 }
 0x3aa   : > { %20737 = vst [vmem:[#allocation21_spill] sm:$0xff] %v17157_v4  ;;  %20738 = vst [vmem:[#allocation19_spill] sm:$0xff] %v17159_v28  ;;  %v19963_v58 = vand.u32 4294901760, %v17159_v28 }
 0x3ab   : > { %5105 = vmatmul.mubr.f32.gmra.mrb[48].mxu0 %v20714_v14  ;;  %v19972_v14 = vand.u32 4294901760, %v17139_v62 }
 0x3ac   : > { %5111 = vmatprep.mubr.f32.mxu0 %v20715_v38  ;;  %v19970_v38 = vand.u32 4294901760, %v17144_v3  ;;  %v5505_v40 = vsub.f32 %v17159_v28, %v19963_v58 }
 0x3ad   : > { %v5428_v20 = vsub.f32 %v17139_v62, %v19972_v14 }
 0x3ae   : > { %v5435_v35 = vsub.f32 %v17144_v3, %v19970_v38  ;;  %v5506_v22 = vand.u32 4294901760, %v5505_v40 }
 0x3af   : > { %5113 = vmatmul.mubr.f32.gmra.mrb[50].mxu0 %v20718_v6  ;;  %v5429_v6 = vand.u32 4294901760, %v5428_v20  ;;  %v17220_v20 = vsub.f32 %v16946_v52, %v5196_v56 }
 0x3b0   : > { %5119 = vmatprep.mubr.f32.mxu0 %v20719_v7  ;;  %v5436_v60 = vand.u32 4294901760, %v5435_v35  ;;  %v19964_v7 = vand.u32 4294901760, %v17157_v4  ;;  %v17225_v35 = vsub.f32 %v16951_v59, %v5199_v26  ;;  %v17248_v59 = vsub.f32 %v16999_v33, %v5208_v54 }
 0x3b1   : > { %v17261_v26 = vpack.c.bf16 %v17159_v28, %v17157_v4  ;;  %v19965_v40 = vand.u32 4294901760, %v17220_v20 }
 0x3b2   : > { %v17154_v46 = vpack.c.bf16 %v5436_v60, %v5429_v6  ;;  %v5498_v41 = vsub.f32 %v17157_v4, %v19964_v7  ;;  %20747 = vst [vmem:[#allocation40_spill] sm:$0xff] %v17248_v59 }
 0x3b3   : > { %5121 = vmatmul.mubr.f32.gmra.mrb[52].mxu0 %v20722_v45  ;;  %v17166_v45 = vsub.f32 %v5179_v61, %v5220_v10 }
 0x3b4   : > { %5127 = vmatprep.mubr.f32.mxu0 %v20723_v42  ;;  %20736 = vst [vmem:[#allocation17_spill] sm:$0xff] %v17154_v46  ;;  %13022 = vmatprep.subr.bf16.mxu1 %v17154_v46  ;;  %v17168_v42 = vsub.f32 %v5180_v15, %v5223_v2  ;;  %v5499_v55 = vand.u32 4294901760, %v5498_v41 }
 0x3b5   : > { %20739 = vst [vmem:[#allocation31_spill] sm:$0xff] %v17166_v45 }
 0x3b6   : > { %20740 = vst [vmem:[#allocation3_spill] sm:$0xff] %v17168_v42 }
 0x3b7   : > { %5129 = vmatmul.mubr.f32.gmra.mrb[54].mxu0 %v20726_v48  ;;  %v19962_v48 = vand.u32 4294901760, %v17166_v45 }
 0x3b8   : > { %5135 = vmatprep.mubr.f32.mxu0 %v20727_v44  ;;  %v19961_v44 = vand.u32 4294901760, %v17168_v42 }
 0x3bb   : > { %5137 = vmatmul.mubr.f32.gmra.mrb[56].mxu0 %v20729_v5  ;;  %v5512_v5 = vsub.f32 %v17166_v45, %v19962_v48 }
 0x3bc   : > { %5143 = vmatprep.mubr.f32.mxu0 %v20730_v27  ;;  %v5519_v27 = vsub.f32 %v17168_v42, %v19961_v44 }
 0x3bf   : > { %5145 = vmatmul.mubr.f32.gmra.mrb[58].mxu0 %v20731_v25  ;;  %v17181_v25 = vsub.f32 %v5181_v1, %v5226_v51  ;;  %v17201_v1 = vpack.c.bf16 %v17144_v3, %v17139_v62  ;;  %v17211_v51 = vsub.f32 %v16940_v11, %v5193_v32  ;;  %v17234_v11 = vsub.f32 %v16974_v29, %v5202_v43 }
 0x3c0   : > { %5151 = vmatprep.mubr.f32.mxu0 %v20732_v39  ;;  %v17183_v39 = vsub.f32 %v5182_v34, %v5229_v0  ;;  %v17206_v34 = vsub.f32 %v16932_v8, %v5190_v24  ;;  %v17229_v8 = vpack.c.bf16 %v17225_v35, %v17220_v20  ;;  %v17239_v24 = vsub.f32 %v16979_v19, %v5205_v57 }
 0x3c1   : > { %20741 = vst [vmem:[#allocation35_spill] sm:$0xff] %v17181_v25  ;;  %v19960_v23 = vand.u32 4294901760, %v17181_v25  ;;  %v17253_v32 = vsub.f32 %v17004_v63, %v5211_v31  ;;  %v17265_v29 = vpack.c.bf16 %v17168_v42, %v17166_v45  ;;  %v19967_v57 = vand.u32 4294901760, %v17211_v51 }
 0x3c2   : > { %20742 = vst [vmem:[#allocation32_spill] sm:$0xff] %v17183_v39  ;;  %v19959_v36 = vand.u32 4294901760, %v17183_v39  ;;  %v17215_v0 = vpack.c.bf16 %v17211_v51, %v17206_v34  ;;  %20746 = vst [vmem:[#allocation38_spill] sm:$0xff] %v17239_v24  ;;  %v17243_v52 = vpack.c.bf16 %v17239_v24, %v17234_v11  ;;  %v17269_v19 = vpack.c.bf16 %v17183_v39, %v17181_v25 }
 0x3c3   : > { %5153 = vmatmul.mubr.f32.gmra.mrb[60].mxu0 %v20733_v18  ;;  %v17185_v18 = vpack.c.bf16 %v5506_v22, %v5499_v55  ;;  %v5526_v53 = vsub.f32 %v17181_v25, %v19960_v23  ;;  %20748 = vst [vmem:[#allocation42_spill] sm:$0xff] %v17253_v32  ;;  %v17257_v56 = vpack.c.bf16 %v17253_v32, %v17248_v59  ;;  %v19968_v43 = vand.u32 4294901760, %v17206_v34 }
 0x3c4   : > { %5159 = vmatprep.mubr.f32.mxu0 %v20734_v17  ;;  %v5513_v17 = vand.u32 4294901760, %v5512_v5  ;;  %v5533_v61 = vsub.f32 %v17183_v39, %v19959_v36  ;;  %v5449_v60 = vsub.f32 %v17211_v51, %v19967_v57  ;;  %v19966_v55 = vand.u32 4294901760, %v17225_v35 }
 0x3c5   : > { %20743 = vst [vmem:[#allocation37_spill] sm:$0xff] %v17185_v18  ;;  %v5527_v15 = vand.u32 4294901760, %v5526_v53  ;;  %v5442_v6 = vsub.f32 %v17206_v34, %v19968_v43  ;;  %v19974_v23 = vand.u32 4294901760, %v17234_v11  ;;  %v19973_v44 = vand.u32 4294901760, %v17239_v24 }
 0x3c6   : > { %v5534_v10 = vand.u32 4294901760, %v5533_v61  ;;  %v5450_v61 = vand.u32 4294901760, %v5449_v60  ;;  %v5463_v36 = vsub.f32 %v17225_v35, %v19966_v55 }
 0x3c7   : > { %5161 = vmatmul.mubr.f32.gmra.mrb[62].mxu0 %v20735_v21  ;;  %v5520_v21 = vand.u32 4294901760, %v5519_v27  ;;  %v5443_v53 = vand.u32 4294901760, %v5442_v6  ;;  %v5470_v38 = vsub.f32 %v17234_v11, %v19974_v23 }
 0x3c8   : > { %v17197_v2 = vpack.c.bf16 %v5534_v10, %v5527_v15  ;;  %v5456_v10 = vsub.f32 %v17220_v20, %v19965_v40 }
 0x3c9   : > { %v17189_v37 = vpack.c.bf16 %v5520_v21, %v5513_v17  ;;  %v17330_v55 = vpack.c.bf16 %v5450_v61, %v5443_v53  ;;  %v5471_v23 = vand.u32 4294901760, %v5470_v38 }
 0x3ca   : > { %20745 = vst [vmem:[#allocation39_spill] sm:$0xff] %v17197_v2  ;;  %v5457_v43 = vand.u32 4294901760, %v5456_v10 }
 0x3cb   : > { %20744 = vst [vmem:[#allocation36_spill] sm:$0xff] %v17189_v37  ;;  %20755 = vst [vmem:[#allocation79_spill] sm:$0xff] %v17330_v55 }
 0x45e   : > { %v17273_v33 = vpop.f32.mrb[32].mxu0 }
 0x45f   : > { %20749 = vst [vmem:[#allocation46_spill] sm:$0xff] %v17273_v33  ;;  %v17276_v63 = vand.u32 4294901760, %v17273_v33  ;;  %v17278_v54 = vpop.f32.mrb[33].mxu0 }
 0x460   : > { %20750 = vst [vmem:[#allocation50_spill] sm:$0xff] %v17278_v54 }
 0x461   : > { %v17282_v31 = vsub.f32 %v17273_v33, %v17276_v63 }
 0x462   : > { %v17290_v41 = vpop.f32.mrb[34].mxu0 }
 0x463   : > { %20751 = vst [vmem:[#allocation14_spill] sm:$0xff] %v17290_v41  ;;  %v17295_v22 = vand.u32 4294901760, %v17290_v41  ;;  %v17297_v5 = vpop.f32.mrb[35].mxu0  ;;  %v19969_v27 = vand.u32 4294901760, %v17282_v31 }
 0x464   : > { %20752 = vst [vmem:[#allocation12_spill] sm:$0xff] %v17297_v5 }
 0x465   : > { %v17302_v17 = vsub.f32 %v17290_v41, %v17295_v22  ;;  %v5267_v21 = vsub.f32 %v17282_v31, %v19969_v27  ;;  %v5464_v27 = vand.u32 4294901760, %v5463_v36 }
 0x466   : > { %v17307_v15 = vpop.f32.mrb[36].mxu0 }
 0x467   : > { %20753 = vst [vmem:[#allocation75_spill] sm:$0xff] %v17307_v15  ;;  %v19971_v48 = vand.u32 4294901760, %v17302_v17  ;;  %v17319_v58 = vand.u32 4294901760, %v17307_v15  ;;  %v17321_v6 = vpop.f32.mrb[37].mxu0  ;;  %v5268_v60 = vand.u32 4294901760, %v5267_v21  ;;  %v5477_v21 = vsub.f32 %v17239_v24, %v19973_v44 }
 0x468   : > { %20754 = vst [vmem:[#allocation16_spill] sm:$0xff] %v17321_v6  ;;  %v17358_v44 = vpack.c.bf16 %v5464_v27, %v5457_v43 }
 0x469   : > { %v5277_v7 = vsub.f32 %v17302_v17, %v19971_v48  ;;  %v17328_v40 = vsub.f32 %v17307_v15, %v17319_v58  ;;  %11533 = vmatprep.mubr.f32.mxu1 %v5268_v60  ;;  %v5478_v53 = vand.u32 4294901760, %v5477_v21 }
 0x46a   : > { %v17332_v57 = vpop.f32.mrb[38].mxu0  ;;  %20759 = vst [vmem:[#allocation87_spill] sm:$0xff] %v17358_v44 }
 0x46b   : > { %20756 = vst [vmem:[#allocation77_spill] sm:$0xff] %v17332_v57  ;;  %v5278_v48 = vand.u32 4294901760, %v5277_v7  ;;  %v17341_v14 = vand.u32 4294901760, %v17332_v57  ;;  %v17343_v6 = vpop.f32.mrb[39].mxu0  ;;  %v19975_v36 = vand.u32 4294901760, %v17328_v40 }
 0x46c   : > { %20757 = vst [vmem:[#allocation83_spill] sm:$0xff] %v17343_v6 }
 0x46d   : > { %v17350_v10 = vsub.f32 %v17332_v57, %v17341_v14  ;;  %11534 = vmatmul.mubr.f32.vlgmr.msra.gmra.mrb[32].mxu1 %v5278_v48  ;;  %v5287_v7 = vsub.f32 %v17328_v40, %v19975_v36  ;;  %v20761_v48 = vand.u32 4294901760, %v17248_v59  ;;  %v20762_v36 = vand.u32 4294901760, %v17253_v32 }
 0x46e   : > { %v17352_v60 = vpop.f32.mrb[40].mxu0  ;;  %13024 = vmatpush3.bf16.msra.mxu1 %v17154_v46  ;;  %v17383_v46 = vpack.c.bf16 %v5478_v53, %v5471_v23 }
 0x46f   : > { %20758 = vst [vmem:[#allocation81_spill] sm:$0xff] %v17352_v60  ;;  %v17361_v61 = vand.u32 4294901760, %v17352_v60  ;;  %v17363_v6 = vpop.f32.mrb[41].mxu0  ;;  %v19981_v54 = vand.u32 4294901760, %v17350_v10  ;;  %13026 = vmatprep.subr.bf16.mxu1 %v17330_v55  ;;  %v5484_v5 = vsub.f32 %v17248_v59, %v20761_v48  ;;  %v5491_v43 = vsub.f32 %v17253_v32, %v20762_v36 }
 0x470   : > { %20760 = vst [vmem:[#allocation85_spill] sm:$0xff] %v17363_v6  ;;  %v5288_v27 = vand.u32 4294901760, %v5287_v7  ;;  %20764 = vst [vmem:[#allocation89_spill] sm:$0xff] %v17383_v46 }
 0x471   : > { %v17375_v38 = vsub.f32 %v17352_v60, %v17361_v61  ;;  %v5297_v21 = vsub.f32 %v17350_v10, %v19981_v54  ;;  %v5485_v60 = vand.u32 4294901760, %v5484_v5  ;;  %v5492_v57 = vand.u32 4294901760, %v5491_v43 }
 0x472   : > { %11536 = vmatprep.mubr.f32.mxu1 %v5288_v27  ;;  %v17380_v6 = vpop.f32.mrb[42].mxu0  ;;  %13028 = vmatpush3.bf16.msra.mxu1 %v17330_v55 }
 0x473   : > { %20763 = vst [vmem:[#allocation91_spill] sm:$0xff] %v17380_v6  ;;  %v17386_v48 = vand.u32 4294901760, %v17380_v6  ;;  %v17388_v36 = vpop.f32.mrb[43].mxu0  ;;  %v5298_v7 = vand.u32 4294901760, %v5297_v21  ;;  %13030 = vmatprep.subr.bf16.mxu1 %v17358_v44  ;;  %v19982_v15 = vand.u32 4294901760, %v17375_v38  ;;  %v17409_v21 = vpack.c.bf16 %v5492_v57, %v5485_v60 }
 0x474   : > { %20765 = vst [vmem:[#allocation6_spill] sm:$0xff] %v17388_v36 }
 0x475   : > { %v17394_v27 = vsub.f32 %v17380_v6, %v17386_v48  ;;  %11537 = vmatmul.mubr.f32.gmra.mrb[34].mxu1 %v5298_v7  ;;  %v5307_v23 = vsub.f32 %v17375_v38, %v19982_v15  ;;  %20768 = vst [vmem:[#allocation7_spill] sm:$0xff] %v17409_v21 }
 0x476   : > { %v17396_v54 = vpop.f32.mrb[44].mxu0  ;;  %13032 = vmatpush3.bf16.msra.mxu1 %v17358_v44 }
 0x477   : > { %20766 = vst [vmem:[#allocation5_spill] sm:$0xff] %v17396_v54  ;;  %v17403_v53 = vand.u32 4294901760, %v17396_v54  ;;  %v17405_v5 = vpop.f32.mrb[45].mxu0  ;;  %v19987_v43 = vand.u32 4294901760, %v17394_v27  ;;  %13034 = vmatprep.subr.bf16.mxu1 %v17383_v46  ;;  %v5308_v7 = vand.u32 4294901760, %v5307_v23 }
 0x478   : > { %20767 = vst [vmem:[#allocation9_spill] sm:$0xff] %v17405_v5 }
 0x479   : > { %v17413_v36 = vsub.f32 %v17396_v54, %v17403_v53  ;;  %v5317_v15 = vsub.f32 %v17394_v27, %v19987_v43  ;;  %11539 = vmatprep.mubr.f32.mxu1 %v5308_v7 }
 0x47a   : > { %v17418_v44 = vpop.f32.mrb[46].mxu0  ;;  %13036 = vmatpush3.bf16.msra.mxu1 %v17383_v46 }
 0x47b   : > { %20769 = vst [vmem:[#allocation98_spill] sm:$0xff] %v17418_v44  ;;  %v17422_v5 = vand.u32 4294901760, %v17418_v44  ;;  %v17424_v55 = vpop.f32.mrb[47].mxu0  ;;  %v5318_v57 = vand.u32 4294901760, %v5317_v15  ;;  %13038 = vmatprep.subr.bf16.mxu1 %v17409_v21  ;;  %v19991_v60 = vand.u32 4294901760, %v17413_v36 }
 0x47c   : > { %20770 = vst [vmem:[#allocation103_spill] sm:$0xff] %v17424_v55 }
 0x47d   : > { %v17430_v23 = vsub.f32 %v17418_v44, %v17422_v5  ;;  %11540 = vmatmul.mubr.f32.gmra.mrb[36].mxu1 %v5318_v57  ;;  %v5327_v43 = vsub.f32 %v17413_v36, %v19991_v60 }
 0x47e   : > { %v17432_v7 = vpop.f32.mrb[48].mxu0  ;;  %13040 = vmatpush3.bf16.msra.mxu1 %v17409_v21 }
 0x47f   : > { %20771 = vst [vmem:[#allocation108_spill] sm:$0xff] %v17432_v7  ;;  %v17439_v55 = vand.u32 4294901760, %v17432_v7  ;;  %v17441_v15 = vpop.f32.mrb[49].mxu0  ;;  %v19997_v46 = vand.u32 4294901760, %v17430_v23  ;;  %13042 = vmatprep.subr.bf16.mxu1 %v17185_v18  ;;  %v5328_v44 = vand.u32 4294901760, %v5327_v43 }
 0x480   : > { %20772 = vst [vmem:[#allocation106_spill] sm:$0xff] %v17441_v15 }
 0x481   : > { %v17447_v57 = vsub.f32 %v17432_v7, %v17439_v55  ;;  %v5337_v60 = vsub.f32 %v17430_v23, %v19997_v46  ;;  %11542 = vmatprep.mubr.f32.mxu1 %v5328_v44 }
 0x482   : > { %v17452_v21 = vpop.f32.mrb[50].mxu0  ;;  %13044 = vmatpush3.bf16.msra.mxu1 %v17185_v18 }
 0x483   : > { %20773 = vst [vmem:[#allocation41_spill] sm:$0xff] %v17452_v21  ;;  %v17456_v15 = vand.u32 4294901760, %v17452_v21  ;;  %v17458_v54 = vpop.f32.mrb[51].mxu0  ;;  %v5338_v6 = vand.u32 4294901760, %v5337_v60  ;;  %13046 = vmatprep.subr.bf16.mxu1 %v17189_v37  ;;  %v20001_v43 = vand.u32 4294901760, %v17447_v57 }
 0x484   : > { %20774 = vst [vmem:[#allocation43_spill] sm:$0xff] %v17458_v54 }
 0x485   : > { %v17464_v7 = vsub.f32 %v17452_v21, %v17456_v15  ;;  %11543 = vmatmul.mubr.f32.gmra.mrb[38].mxu1 %v5338_v6  ;;  %v5347_v46 = vsub.f32 %v17447_v57, %v20001_v43 }
 0x486   : > { %v17466_v44 = vpop.f32.mrb[52].mxu0  ;;  %13048 = vmatpush3.bf16.msra.mxu1 %v17189_v37 }
 0x487   : > { %20775 = vst [vmem:[#allocation44_spill] sm:$0xff] %v17466_v44  ;;  %v17473_v54 = vand.u32 4294901760, %v17466_v44  ;;  %v17475_v60 = vpop.f32.mrb[53].mxu0  ;;  %v20007_v18 = vand.u32 4294901760, %v17464_v7  ;;  %13050 = vmatprep.subr.bf16.mxu1 %v17197_v2  ;;  %v5348_v21 = vand.u32 4294901760, %v5347_v46 }
 0x488   : > { %20776 = vst [vmem:[#allocation45_spill] sm:$0xff] %v17475_v60 }
 0x489   : > { %v17481_v6 = vsub.f32 %v17466_v44, %v17473_v54  ;;  %v5357_v43 = vsub.f32 %v17464_v7, %v20007_v18  ;;  %11545 = vmatprep.mubr.f32.mxu1 %v5348_v21 }
 0x48a   : > { %v17486_v37 = vpop.f32.mrb[54].mxu0  ;;  %13052 = vmatpush3.bf16.msra.mxu1 %v17197_v2 }
 0x48b   : > { %20777 = vst [vmem:[#allocation47_spill] sm:$0xff] %v17486_v37  ;;  %v17490_v60 = vand.u32 4294901760, %v17486_v37  ;;  %v17492_v41 = vpop.f32.mrb[55].mxu0  ;;  %v5358_v33 = vand.u32 4294901760, %v5357_v43  ;;  %13054 = vmatprep.subr.bf16.mxu1 %v17201_v1  ;;  %v20013_v46 = vand.u32 4294901760, %v17481_v6 }
 0x48c   : > { %20778 = vst [vmem:[#allocation48_spill] sm:$0xff] %v17492_v41 }
 0x48d   : > { %v17498_v44 = vsub.f32 %v17486_v37, %v17490_v60  ;;  %11546 = vmatmul.mubr.f32.gmra.mrb[40].mxu1 %v5358_v33  ;;  %v5367_v18 = vsub.f32 %v17481_v6, %v20013_v46 }
 0x48e   : > { %v17500_v21 = vpop.f32.mrb[56].mxu0 }
 0x48f   : > { %20779 = vst [vmem:[#allocation49_spill] sm:$0xff] %v17500_v21  ;;  %v17506_v2 = vand.u32 4294901760, %v17500_v21  ;;  %v17508_v41 = vpop.f32.mrb[57].mxu0  ;;  %v20017_v43 = vand.u32 4294901760, %v17498_v44  ;;  %v5368_v39 = vand.u32 4294901760, %v5367_v18 }
 0x490   : > { %20780 = vst [vmem:[#allocation51_spill] sm:$0xff] %v17508_v41 }
 0x491   : > { %v17513_v25 = vsub.f32 %v17500_v21, %v17506_v2  ;;  %v5377_v33 = vsub.f32 %v17498_v44, %v20017_v43  ;;  %11548 = vmatprep.mubr.f32.mxu1 %v5368_v39 }
 0x492   : > { %v17518_v37 = vpop.f32.mrb[58].mxu0 }
 0x493   : > { %20781 = vst [vmem:[#allocation23_spill] sm:$0xff] %v17518_v37  ;;  %v17521_v46 = vand.u32 4294901760, %v17518_v37  ;;  %v17523_v42 = vpop.f32.mrb[59].mxu0  ;;  %v5378_v41 = vand.u32 4294901760, %v5377_v33  ;;  %v20021_v45 = vand.u32 4294901760, %v17513_v25 }
 0x494   : > { %20782 = vst [vmem:[#allocation24_spill] sm:$0xff] %v17523_v42 }
 0x495   : > { %v17528_v18 = vsub.f32 %v17518_v37, %v17521_v46  ;;  %11549 = vmatmul.mubr.f32.gmra.mrb[42].mxu1 %v5378_v41  ;;  %v5387_v39 = vsub.f32 %v17513_v25, %v20021_v45 }
 0x496   : > { %v17530_v21 = vpop.f32.mrb[60].mxu0 }
 0x497   : > { %20783 = vst [vmem:[#allocation8_spill] sm:$0xff] %v17530_v21  ;;  %v17536_v43 = vand.u32 4294901760, %v17530_v21  ;;  %v17538_v28 = vpop.f32.mrb[61].mxu0  ;;  %v20024_v33 = vand.u32 4294901760, %v17528_v18  ;;  %v5388_v42 = vand.u32 4294901760, %v5387_v39 }
 0x498   : > { %20784 = vst [vmem:[#allocation10_spill] sm:$0xff] %v17538_v28 }
 0x499   : > { %v17543_v4 = vsub.f32 %v17530_v21, %v17536_v43  ;;  %v5397_v41 = vsub.f32 %v17528_v18, %v20024_v33  ;;  %11551 = vmatprep.mubr.f32.mxu1 %v5388_v42 }
 0x49a   : > { %v17548_v37 = vpop.f32.mrb[62].mxu0 }
 0x49b   : > { %v17551_v45 = vand.u32 4294901760, %v17548_v37  ;;  %v17553_v32 = vpop.f32.mrb[63].mxu0  ;;  %v5398_v28 = vand.u32 4294901760, %v5397_v41  ;;  %v20028_v59 = vand.u32 4294901760, %v17543_v4 }
 0x49c   : > { %20785 = vst [vmem:[#allocation64_spill] sm:$0xff] %v17553_v32 }
 0x49d   : > { %v17558_v39 = vsub.f32 %v17548_v37, %v17551_v45  ;;  %11552 = vmatmul.mubr.f32.gmra.mrb[44].mxu1 %v5398_v28  ;;  %v5407_v33 = vsub.f32 %v17543_v4, %v20028_v59  ;;  %v20786_v28 = vand.u32 4294901760, %v17139_v62  ;;  %v20791_v62 = vand.u32 4294901760, %v17302_v17 }
 0x49e   : > { %v20849_v32 = vld [vmem:[#allocation8_spill] sm:$0xff] }
 0x49f   : > { %v20027_v42 = vand.u32 4294901760, %v17558_v39  ;;  %v5408_v21 = vand.u32 4294901760, %v5407_v33  ;;  %v20788_v33 = vand.u32 4294901760, %v17282_v31 }
 0x4a1   : > { %v5417_v24 = vsub.f32 %v17558_v39, %v20027_v42  ;;  %11554 = vmatprep.mubr.f32.mxu1 %v5408_v21  ;;  %v20790_v42 = vand.u32 4294901760, %v17211_v51  ;;  %v20797_v51 = vand.u32 4294901760, %v17375_v38 }
 0x4a3   : > { %v5418_v41 = vand.u32 4294901760, %v5417_v24  ;;  %v20787_v24 = vand.u32 4294901760, %v17144_v3  ;;  %v20792_v3 = vand.u32 4294901760, %v17328_v40 }
 0x4a5   : > { %11555 = vmatmul.mubr.f32.gmra.mrb[46].mxu1 %v5418_v41  ;;  %v17632_v21 = vpack.c.bf16 %v20787_v24, %v20786_v28  ;;  %v20789_v41 = vand.u32 4294901760, %v17206_v34  ;;  %v20794_v28 = vand.u32 4294901760, %v17225_v35  ;;  %v20796_v34 = vand.u32 4294901760, %v17350_v10 }
 0x4a6   : > { %11589 = vmatprep.mubr.f32.mxu1 %v17276_v63  ;;  %v20803_v35 = vand.u32 4294901760, %v17413_v36 }
 0x4a7   : > { %v17643_v59 = vpack.c.bf16 %v20790_v42, %v20789_v41  ;;  %v20806_v41 = vld [vmem:[#allocation42_spill] sm:$0xff] }
 0x4a9   : > { %11590 = vmatmul.mubr.f32.vlgmr.msra.gmra.mrb[32].mxu1 %v17295_v22 }
 0x4aa   : > { %13056 = vmatpush3.bf16.msra.mxu1 %v17201_v1  ;;  %11592 = vmatprep.mubr.f32.mxu1 %v17319_v58 }
 0x4ab   : > { %13058 = vmatprep.subr.bf16.mxu1 %v17215_v0 }
 0x4ad   : > { %11593 = vmatmul.mubr.f32.gmra.mrb[34].mxu1 %v17341_v14 }
 0x4ae   : > { %13060 = vmatpush3.bf16.msra.mxu1 %v17215_v0  ;;  %11595 = vmatprep.mubr.f32.mxu1 %v17361_v61 }
 0x4af   : > { %13062 = vmatprep.subr.bf16.mxu1 %v17229_v8 }
 0x4b1   : > { %11596 = vmatmul.mubr.f32.gmra.mrb[36].mxu1 %v17386_v48 }
 0x4b2   : > { %13064 = vmatpush3.bf16.msra.mxu1 %v17229_v8  ;;  %11598 = vmatprep.mubr.f32.mxu1 %v17403_v53 }
 0x4b3   : > { %13066 = vmatprep.subr.bf16.mxu1 %v17243_v52 }
 0x4b5   : > { %11599 = vmatmul.mubr.f32.gmra.mrb[38].mxu1 %v17422_v5 }
 0x4b6   : > { %13068 = vmatpush3.bf16.msra.mxu1 %v17243_v52  ;;  %11601 = vmatprep.mubr.f32.mxu1 %v17439_v55 }
 0x4b7   : > { %13070 = vmatprep.subr.bf16.mxu1 %v17257_v56 }
 0x4b9   : > { %11602 = vmatmul.mubr.f32.gmra.mrb[40].mxu1 %v17456_v15 }
 0x4ba   : > { %13072 = vmatpush3.bf16.msra.mxu1 %v17257_v56  ;;  %11604 = vmatprep.mubr.f32.mxu1 %v17473_v54 }
 0x4bb   : > { %13074 = vmatprep.subr.bf16.mxu1 %v17261_v26 }
 0x4bd   : > { %11605 = vmatmul.mubr.f32.gmra.mrb[42].mxu1 %v17490_v60 }
 0x4be   : > { %13076 = vmatpush3.bf16.msra.mxu1 %v17261_v26  ;;  %11607 = vmatprep.mubr.f32.mxu1 %v17506_v2 }
 0x4bf   : > { %13078 = vmatprep.subr.bf16.mxu1 %v17265_v29 }
 0x4c1   : > { %11608 = vmatmul.mubr.f32.gmra.mrb[44].mxu1 %v17521_v46 }
 0x4c2   : > { %13080 = vmatpush3.bf16.msra.mxu1 %v17265_v29  ;;  %11610 = vmatprep.mubr.f32.mxu1 %v17536_v43 }
 0x4c3   : > { %13082 = vmatprep.subr.bf16.mxu1 %v17269_v19 }
 0x4c5   : > { %11611 = vmatmul.mubr.f32.gmra.mrb[46].mxu1 %v17551_v45 }
 0x4c6   : > { %13084 = vmatpush3.bf16.msra.mxu1 %v17269_v19  ;;  %11645 = vmatprep.mubr.f32.mxu1 %v17282_v31  ;;  %v20793_v31 = vand.u32 4294901760, %v17220_v20  ;;  %v20802_v20 = vand.u32 4294901760, %v17394_v27 }
 0x4c7   : > { %13086 = vmatprep.subr.bf16.mxu1 %v16958_v30 }
 0x4c8   : > { %v17655_v24 = vpack.c.bf16 %v20794_v28, %v20793_v31  ;;  %v20813_v28 = vld [vmem:[#allocation19_spill] sm:$0xff] }
 0x4c9   : > { %11646 = vmatmul.mubr.f32.vlgmr.msra.gmra.mrb[32].mxu1 %v17302_v17  ;;  %v20799_v17 = vld [vmem:[#allocation38_spill] sm:$0xff] }
 0x4ca   : > { %13088 = vmatpush3.bf16.msra.mxu1 %v16958_v30  ;;  %11648 = vmatprep.mubr.f32.mxu1 %v17328_v40  ;;  %20795 = vst [vmem:[#allocation65_spill] sm:$0xff] %v17655_v24  ;;  %v20798_v40 = vand.u32 4294901760, %v17234_v11  ;;  %v20800_v42 = vand.u32 4294901760, %v20799_v17  ;;  %v20809_v11 = vand.u32 4294901760, %v17430_v23 }
 0x4cb   : > { %13090 = vmatprep.subr.bf16.mxu1 %v16965_v50 }
 0x4cd   : > { %11649 = vmatmul.mubr.f32.gmra.mrb[34].mxu1 %v17350_v10  ;;  %v20804_v10 = vld [vmem:[#allocation40_spill] sm:$0xff] }
 0x4ce   : > { %13092 = vmatpush3.bf16.msra.mxu1 %v16965_v50  ;;  %11651 = vmatprep.mubr.f32.mxu1 %v17375_v38  ;;  %v20805_v38 = vand.u32 4294901760, %v20804_v10  ;;  %v20823_v10 = vand.u32 4294901760, %v17498_v44 }
 0x4cf   : > { %13094 = vmatprep.subr.bf16.mxu1 %v16990_v9 }
 0x4d1   : > { %11652 = vmatmul.mubr.f32.gmra.mrb[36].mxu1 %v17394_v27  ;;  %v20810_v27 = vand.u32 4294901760, %v17447_v57 }
 0x4d2   : > { %13096 = vmatpush3.bf16.msra.mxu1 %v16990_v9  ;;  %11654 = vmatprep.mubr.f32.mxu1 %v17413_v36  ;;  %v20811_v36 = vld [vmem:[#allocation21_spill] sm:$0xff] }
 0x4d3   : > { %13098 = vmatprep.subr.bf16.mxu1 %v17014_v12  ;;  %v20812_v31 = vand.u32 4294901760, %v20811_v36  ;;  %v20836_v36 = vld [vmem:[#allocation77_spill] sm:$0xff] }
 0x4d5   : > { %11655 = vmatmul.mubr.f32.gmra.mrb[38].mxu1 %v17430_v23  ;;  %v20817_v23 = vand.u32 4294901760, %v17481_v6 }
 0x4d6   : > { %13100 = vmatpush3.bf16.msra.mxu1 %v17014_v12  ;;  %11657 = vmatprep.mubr.f32.mxu1 %v17447_v57  ;;  %v20818_v57 = vld [vmem:[#allocation31_spill] sm:$0xff] }
 0x4d7   : > { %13102 = vmatprep.subr.bf16.mxu1 %v17028_v13  ;;  %v20819_v17 = vand.u32 4294901760, %v20818_v57  ;;  %v20839_v57 = vld [vmem:[#allocation5_spill] sm:$0xff] }
 0x4d9   : > { %11658 = vmatmul.mubr.f32.gmra.mrb[40].mxu1 %v17464_v7 }
 0x4da   : > { %13104 = vmatpush3.bf16.msra.mxu1 %v17028_v13  ;;  %11660 = vmatprep.mubr.f32.mxu1 %v17481_v6  ;;  %v20825_v6 = vld [vmem:[#allocation35_spill] sm:$0xff] }
 0x4db   : > { %13106 = vmatprep.subr.bf16.mxu1 %v17112_v47 }
 0x4dd   : > { %11661 = vmatmul.mubr.f32.gmra.mrb[42].mxu1 %v17498_v44  ;;  %v20831_v44 = vand.u32 4294901760, %v17543_v4 }
 0x4de   : > { %13108 = vmatpush3.bf16.msra.mxu1 %v17112_v47  ;;  %11663 = vmatprep.mubr.f32.mxu1 %v17513_v25 }
 0x4df   : > { %13110 = vmatprep.subr.bf16.mxu1 %v17122_v49 }
 0x4e1   : > { %11664 = vmatmul.mubr.f32.gmra.mrb[44].mxu1 %v17528_v18 }
 0x4e2   : > { %13112 = vmatpush3.bf16.msra.mxu1 %v17122_v49  ;;  %11666 = vmatprep.mubr.f32.mxu1 %v17543_v4  ;;  %v20833_v4 = vld [vmem:[#allocation46_spill] sm:$0xff] }
 0x4e3   : > { %13114 = vmatprep.subr.bf16.mxu1 %v17132_v16 }
 0x4e5   : > { %11667 = vmatmul.mubr.f32.gmra.mrb[46].mxu1 %v17558_v39 }
 0x4e6   : > { %13116 = vmatpush3.bf16.msra.mxu1 %v17132_v16  ;;  %11701 = vmatprep.mubr.f32.mxu1 %v20788_v33  ;;  %v17667_v33 = vpack.c.bf16 %v20800_v42, %v20798_v40  ;;  %v20816_v40 = vand.u32 4294901760, %v17464_v7  ;;  %v20820_v42 = vld [vmem:[#allocation3_spill] sm:$0xff]  ;;  %v20824_v7 = vand.u32 4294901760, %v17513_v25  ;;  %v20832_v25 = vand.u32 4294901760, %v17558_v39 }
 0x4e7   : > { %13118 = vmatprep.subr.bf16.mxu1 %v17632_v21 }
 0x4e8   : > { %20801 = vst [vmem:[#allocation66_spill] sm:$0xff] %v17667_v33 }
 0x4e9   : > { %11702 = vmatmul.mubr.f32.vlgmr.msra.gmra.mrb[32].mxu1 %v20791_v62  ;;  %v20807_v62 = vand.u32 4294901760, %v20806_v41  ;;  %v20827_v41 = vld [vmem:[#allocation32_spill] sm:$0xff] }
 0x4ea   : > { %13120 = vmatpush3.bf16.msra.mxu1 %v17632_v21  ;;  %11704 = vmatprep.mubr.f32.mxu1 %v20792_v3 }
 0x4eb   : > { %13122 = vmatprep.subr.bf16.mxu1 %v17643_v59  ;;  %v17679_v3 = vpack.c.bf16 %v20807_v62, %v20805_v38  ;;  %v20826_v38 = vand.u32 4294901760, %v20825_v6  ;;  %v20828_v62 = vand.u32 4294901760, %v20827_v41 }
 0x4ed   : > { %11705 = vmatmul.mubr.f32.gmra.mrb[34].mxu1 %v20796_v34  ;;  %20808 = vst [vmem:[#allocation67_spill] sm:$0xff] %v17679_v3  ;;  %v20814_v34 = vand.u32 4294901760, %v20813_v28 }
 0x4ee   : > { %13124 = vmatpush3.bf16.msra.mxu1 %v17643_v59  ;;  %11707 = vmatprep.mubr.f32.mxu1 %v20797_v51 }
 0x4ef   : > { %13126 = vmatprep.subr.bf16.mxu1 %v17655_v24  ;;  %v17691_v51 = vpack.c.bf16 %v20814_v34, %v20812_v31  ;;  %v6513_v31 = vmul.f32 %v20836_v36, %v20836_v36 }
 0x4f1   : > { %11708 = vmatmul.mubr.f32.gmra.mrb[36].mxu1 %v20802_v20  ;;  %20815 = vst [vmem:[#allocation100_spill] sm:$0xff] %v17691_v51  ;;  %v20821_v20 = vand.u32 4294901760, %v20820_v42 }
 0x4f2   : > { %13128 = vmatpush3.bf16.msra.mxu1 %v17655_v24  ;;  %11710 = vmatprep.mubr.f32.mxu1 %v20803_v35 }
 0x4f3   : > { %13130 = vmatprep.subr.bf16.mxu1 %v17667_v33  ;;  %v17703_v35 = vpack.c.bf16 %v20821_v20, %v20819_v17  ;;  %v6516_v17 = vmul.f32 %v20839_v57, %v20839_v57 }
 0x4f5   : > { %11711 = vmatmul.mubr.f32.gmra.mrb[38].mxu1 %v20809_v11  ;;  %20822 = vst [vmem:[#allocation68_spill] sm:$0xff] %v17703_v35  ;;  %v17715_v11 = vpack.c.bf16 %v20828_v62, %v20826_v38  ;;  %v17823_v6 = vand.u32 4294901760, %v6516_v17  ;;  %v20840_v38 = vld [vmem:[#allocation98_spill] sm:$0xff] }
 0x4f6   : > { %13132 = vmatpush3.bf16.msra.mxu1 %v17667_v33  ;;  %11713 = vmatprep.mubr.f32.mxu1 %v20810_v27  ;;  %v20830_v27 = vand.u32 4294901760, %v17528_v18  ;;  %v10799_v18 = vld [vmem:[%s19550_s6] ss:$0 sm:$0xff]  ;;  %v6517_v41 = vmul.f32 %v20840_v38, %v20840_v38  ;;  %v20854_v33 = vld [vmem:[#allocation7_spill] sm:$0xff] }
 0x4f7   : > { %13134 = vmatprep.subr.bf16.mxu1 %v17679_v3  ;;  %20829 = vst [vmem:[#allocation69_spill] sm:$0xff] %v17715_v11  ;;  %6475 = vrot.lane.b32.xlu0 %v10799_v18, %s14470_s14 }
 0x4f9   : > { %11714 = vmatmul.mubr.f32.gmra.mrb[40].mxu1 %v20816_v40 }
 0x4fa   : > { %13136 = vmatpush3.bf16.msra.mxu1 %v17679_v3  ;;  %11716 = vmatprep.mubr.f32.mxu1 %v20817_v23  ;;  %v20838_v23 = vld [vmem:[#allocation91_spill] sm:$0xff] }
 0x4fb   : > { %13138 = vmatprep.subr.bf16.mxu1 %v17691_v51 }
 0x4fd   : > { %11717 = vmatmul.mubr.f32.gmra.mrb[42].mxu1 %v20823_v10 }
 0x4fe   : > { %13140 = vmatpush3.bf16.msra.mxu1 %v17691_v51  ;;  %11719 = vmatprep.mubr.f32.mxu1 %v20824_v7  ;;  %v20851_v51 = vld [vmem:[#allocation87_spill] sm:$0xff] }
 0x4ff   : > { %13142 = vmatprep.subr.bf16.mxu1 %v17703_v35 }
 0x501   : > { %11720 = vmatmul.mubr.f32.gmra.mrb[44].mxu1 %v20830_v27 }
 0x502   : > { %13144 = vmatpush3.bf16.msra.mxu1 %v17703_v35  ;;  %11722 = vmatprep.mubr.f32.mxu1 %v20831_v44 }
 0x503   : > { %13146 = vmatprep.subr.bf16.mxu1 %v17715_v11 }
 0x505   : > { %11723 = vmatmul.mubr.f32.gmra.mrb[46].mxu1 %v20832_v25 }
 0x506   : > { %13148 = vmatpush3.bf16.msra.mxu1 %v17715_v11  ;;  %11757 = vmatprep.mubr.f32.mxu1 %v17276_v63 }
 0x507   : > { %13150 = vmatprep.subr.bf16.mxu1 %v16958_v30 }
 0x509   : > { %11758 = vmatmul.mubr.f32.vlgmr.msra.gmra.mrb[32].mxu1 %v17295_v22 }
 0x50a   : > { %13152 = vmatpush3.bf16.msra.mxu1 %v16958_v30  ;;  %11760 = vmatprep.mubr.f32.mxu1 %v17319_v58 }
 0x50b   : > { %13154 = vmatprep.subr.bf16.mxu1 %v16965_v50 }
 0x50d   : > { %11761 = vmatmul.mubr.f32.gmra.mrb[34].mxu1 %v17341_v14 }
 0x50e   : > { %13156 = vmatpush3.bf16.msra.mxu1 %v16965_v50  ;;  %11763 = vmatprep.mubr.f32.mxu1 %v17361_v61 }
 0x50f   : > { %13158 = vmatprep.subr.bf16.mxu1 %v16990_v9 }
 0x511   : > { %11764 = vmatmul.mubr.f32.gmra.mrb[36].mxu1 %v17386_v48 }
 0x512   : > { %13160 = vmatpush3.bf16.msra.mxu1 %v16990_v9  ;;  %11766 = vmatprep.mubr.f32.mxu1 %v17403_v53 }
 0x513   : > { %13162 = vmatprep.subr.bf16.mxu1 %v17014_v12 }
 0x515   : > { %11767 = vmatmul.mubr.f32.gmra.mrb[38].mxu1 %v17422_v5 }
 0x516   : > { %13164 = vmatpush3.bf16.msra.mxu1 %v17014_v12  ;;  %11769 = vmatprep.mubr.f32.mxu1 %v17439_v55 }
 0x517   : > { %13166 = vmatprep.subr.bf16.mxu1 %v17028_v13 }
 0x519   : > { %11770 = vmatmul.mubr.f32.gmra.mrb[40].mxu1 %v17456_v15 }
 0x51a   : > { %13168 = vmatpush3.bf16.msra.mxu1 %v17028_v13  ;;  %11772 = vmatprep.mubr.f32.mxu1 %v17473_v54 }
 0x51b   : > { %13170 = vmatprep.subr.bf16.mxu1 %v17112_v47 }
 0x51d   : > { %11773 = vmatmul.mubr.f32.gmra.mrb[42].mxu1 %v17490_v60 }
 0x51e   : > { %13172 = vmatpush3.bf16.msra.mxu1 %v17112_v47  ;;  %11775 = vmatprep.mubr.f32.mxu1 %v17506_v2 }
 0x51f   : > { %13174 = vmatprep.subr.bf16.mxu1 %v17122_v49 }
 0x521   : > { %11776 = vmatmul.mubr.f32.gmra.mrb[44].mxu1 %v17521_v46 }
 0x522   : > { %13176 = vmatpush3.bf16.msra.mxu1 %v17122_v49  ;;  %11778 = vmatprep.mubr.f32.mxu1 %v17536_v43 }
 0x523   : > { %13178 = vmatprep.subr.bf16.mxu1 %v17132_v16 }
 0x525   : > { %11779 = vmatmul.mubr.f32.gmra.mrb[46].mxu1 %v17551_v45 }
 0x526   : > { %13180 = vmatpush3.bf16.msra.mxu1 %v17132_v16  ;;  %11813 = vmatprep.mubr.f32.mxu1 %v17276_v63  ;;  %v6510_v63 = vmul.f32 %v20833_v4, %v20833_v4  ;;  %v17845_v4 = vsub.f32 %v6516_v17, %v17823_v6 }
 0x527   : > { %13182 = vmatprep.subr.bf16.mxu1 %v16958_v30 }
 0x528   : > { %v20035_v17 = vand.u32 4294901760, %v17845_v4 }
 0x529   : > { %11814 = vmatmul.mubr.f32.vlgmr.msra.gmra.mrb[32].mxu1 %v17295_v22 }
 0x52a   : > { %11816 = vmatprep.mubr.f32.mxu1 %v17319_v58  ;;  %13184 = vmatpush3.bf16.msra.mxu1 %v16958_v30  ;;  %v20834_v58 = vld [vmem:[#allocation14_spill] sm:$0xff] }
 0x52b   : > { %13186 = vmatprep.subr.bf16.mxu1 %v16965_v50  ;;  %v6511_v22 = vmul.f32 %v20834_v58, %v20834_v58 }
 0x52d   : > { %11817 = vmatmul.mubr.f32.gmra.mrb[34].mxu1 %v17341_v14  ;;  %v17779_v14 = vand.u32 4294901760, %v6510_v63 }
 0x52e   : > { %11819 = vmatprep.mubr.f32.mxu1 %v17361_v61  ;;  %13188 = vmatpush3.bf16.msra.mxu1 %v16965_v50  ;;  %v20835_v61 = vld [vmem:[#allocation75_spill] sm:$0xff] }
 0x52f   : > { %13190 = vmatprep.subr.bf16.mxu1 %v16990_v9  ;;  %v6512_v39 = vmul.f32 %v20835_v61, %v20835_v61  ;;  %v17794_v34 = vsub.f32 %v6510_v63, %v17779_v14  ;;  %v17847_v63 = vand.u32 4294901760, %v6517_v41  ;;  %v20842_v61 = vld [vmem:[#allocation41_spill] sm:$0xff] }
 0x531   : > { %11820 = vmatmul.mubr.f32.gmra.mrb[36].mxu1 %v17386_v48  ;;  %v17788_v48 = vand.u32 4294901760, %v6511_v22  ;;  %v17796_v40 = vand.u32 4294901760, %v6512_v39  ;;  %v20033_v10 = vand.u32 4294901760, %v17794_v34 }
 0x532   : > { %11822 = vmatprep.mubr.f32.mxu1 %v17403_v53  ;;  %13192 = vmatpush3.bf16.msra.mxu1 %v16990_v9  ;;  %v20837_v53 = vld [vmem:[#allocation81_spill] sm:$0xff] }
 0x533   : > { %13194 = vmatprep.subr.bf16.mxu1 %v17014_v12  ;;  %v6514_v28 = vmul.f32 %v20837_v53, %v20837_v53  ;;  %v17808_v42 = vsub.f32 %v6511_v22, %v17788_v48  ;;  %v6610_v25 = vsub.f32 %v17794_v34, %v20033_v10 }
 0x535   : > { %11823 = vmatmul.mubr.f32.gmra.mrb[38].mxu1 %v17422_v5  ;;  %v17799_v5 = vand.u32 4294901760, %v6513_v31  ;;  %v17810_v20 = vand.u32 4294901760, %v6514_v28  ;;  %v20031_v62 = vand.u32 4294901760, %v17808_v42  ;;  %v6611_v53 = vand.u32 4294901760, %v6610_v25  ;;  %v20844_v25 = vld [vmem:[#allocation47_spill] sm:$0xff] }
 0x536   : > { %11825 = vmatprep.mubr.f32.mxu1 %v17439_v55  ;;  %13196 = vmatpush3.bf16.msra.mxu1 %v17014_v12  ;;  %v6515_v55 = vmul.f32 %v20838_v23, %v20838_v23  ;;  %v17868_v23 = vsub.f32 %v6517_v41, %v17847_v63 }
 0x537   : > { %13198 = vmatprep.subr.bf16.mxu1 %v17028_v13  ;;  %v17819_v7 = vsub.f32 %v6513_v31, %v17799_v5  ;;  %v17831_v27 = vsub.f32 %v6514_v28, %v17810_v20  ;;  %v6620_v22 = vsub.f32 %v17808_v42, %v20031_v62  ;;  %v20843_v31 = vld [vmem:[#allocation44_spill] sm:$0xff] }
 0x539   : > { %11826 = vmatmul.mubr.f32.gmra.mrb[40].mxu1 %v17456_v15  ;;  %v17814_v15 = vsub.f32 %v6512_v39, %v17796_v40  ;;  %v20029_v58 = vand.u32 4294901760, %v17819_v7  ;;  %v20032_v39 = vand.u32 4294901760, %v17831_v27  ;;  %v6621_v38 = vand.u32 4294901760, %v6620_v22 }
 0x53a   : > { %11828 = vmatprep.mubr.f32.mxu1 %v17473_v54  ;;  %13200 = vmatpush3.bf16.msra.mxu1 %v17028_v13  ;;  %v17821_v54 = vand.u32 4294901760, %v6515_v55 }
 0x53b   : > { %13202 = vmatprep.subr.bf16.mxu1 %v17112_v47  ;;  %v20030_v18 = vand.u32 4294901760, %v17814_v15  ;;  %v6650_v41 = vsub.f32 %v17831_v27, %v20032_v39 }
 0x53d   : > { %11829 = vmatmul.mubr.f32.gmra.mrb[42].mxu1 %v17490_v60  ;;  %v20841_v60 = vld [vmem:[#allocation108_spill] sm:$0xff]  ;;  %v6630_v28 = vsub.f32 %v17814_v15, %v20030_v18 }
 0x53e   : > { %11831 = vmatprep.mubr.f32.mxu1 %v17506_v2  ;;  %13204 = vmatpush3.bf16.msra.mxu1 %v17112_v47  ;;  %v6518_v44 = vmul.f32 %v20841_v60, %v20841_v60  ;;  %v17842_v2 = vsub.f32 %v6515_v55, %v17821_v54  ;;  %v6640_v55 = vsub.f32 %v17819_v7, %v20029_v58  ;;  %v20846_v58 = vld [vmem:[#allocation49_spill] sm:$0xff] }
 0x53f   : > { %13206 = vmatprep.subr.bf16.mxu1 %v17122_v49  ;;  %v6522_v18 = vmul.f32 %v20846_v58, %v20846_v58  ;;  %v6631_v22 = vand.u32 4294901760, %v6630_v28  ;;  %v20847_v28 = vld [vmem:[#allocation23_spill] sm:$0xff] }
 0x540   : > { %v17859_v36 = vand.u32 4294901760, %v6518_v44  ;;  %v20034_v57 = vand.u32 4294901760, %v17842_v2 }
 0x541   : > { %11832 = vmatmul.mubr.f32.gmra.mrb[44].mxu1 %v17521_v46  ;;  %v6519_v46 = vmul.f32 %v20842_v61, %v20842_v61  ;;  %v20845_v61 = vld [vmem:[#allocation17_spill] sm:$0xff] }
 0x542   : > { %11834 = vmatprep.mubr.f32.mxu1 %v17536_v43  ;;  %13208 = vmatpush3.bf16.msra.mxu1 %v17122_v49  ;;  %v6520_v43 = vmul.f32 %v20843_v31, %v20843_v31  ;;  %v17885_v31 = vsub.f32 %v6518_v44, %v17859_v36  ;;  %v6660_v62 = vsub.f32 %v17842_v2, %v20034_v57  ;;  %v17910_v57 = vand.u32 4294901760, %v6522_v18 }
 0x543   : > { %13210 = vmatprep.subr.bf16.mxu1 %v17132_v16  ;;  %v17876_v60 = vand.u32 4294901760, %v6519_v46  ;;  %v6670_v44 = vsub.f32 %v17845_v4, %v20035_v17  ;;  %v6524_v17 = vmul.f32 %v20849_v32, %v20849_v32  ;;  %v6525_v32 = vmul.f32 %v17548_v37, %v17548_v37 }
 0x544   : > { %v20044_v39 = vand.u32 4294901760, %v17885_v31 }
 0x545   : > { %11835 = vmatmul.mubr.f32.gmra.mrb[46].mxu1 %v17551_v45  ;;  %v6521_v45 = vmul.f32 %v20844_v25, %v20844_v25  ;;  %v6641_v25 = vand.u32 4294901760, %v6640_v55  ;;  %v17900_v10 = vsub.f32 %v6519_v46, %v17876_v60  ;;  %v6651_v55 = vand.u32 4294901760, %v6650_v41 }
 0x546   : > { %13212 = vmatpush3.bf16.msra.mxu1 %v17132_v16  ;;  %11869 = vmatprep.mubr.f32.mxu1 %v6611_v53  ;;  %v17887_v53 = vand.u32 4294901760, %v6520_v43  ;;  %v6661_v46 = vand.u32 4294901760, %v6660_v62  ;;  %v6671_v11 = vand.u32 4294901760, %v6670_v44  ;;  %v17931_v62 = vand.u32 4294901760, %v6524_v17 }
 0x547   : > { %13214 = vmatprep.subr.bf16.mxu1 %v20845_v61  ;;  %v17902_v58 = vand.u32 4294901760, %v6521_v45  ;;  %v6690_v44 = vsub.f32 %v17885_v31, %v20044_v39 }
 0x549   : > { %11870 = vmatmul.mubr.f32.vlgmr.msra.gmra.mrb[48].mxu1 %v6621_v38  ;;  %v6523_v38 = vmul.f32 %v20847_v28, %v20847_v28  ;;  %v20850_v28 = vand.u32 4294901760, %v17868_v23 }
 0x54a   : > { %11872 = vmatprep.mubr.f32.mxu1 %v6631_v22  ;;  %13216 = vmatpush3.bf16.msra.mxu1 %v20845_v61  ;;  %v20848_v61 = vld [vmem:[#allocation79_spill] sm:$0xff]  ;;  %v17908_v22 = vsub.f32 %v6520_v43, %v17887_v53  ;;  %v17920_v43 = vsub.f32 %v6521_v45, %v17902_v58  ;;  %v17949_v45 = vsub.f32 %v6524_v17, %v17931_v62 }
 0x54b   : > { %13218 = vmatprep.subr.bf16.mxu1 %v20848_v61  ;;  %v6680_v41 = vsub.f32 %v17868_v23, %v20850_v28  ;;  %v17922_v35 = vand.u32 4294901760, %v6523_v38  ;;  %v17941_v28 = vand.u32 4294901760, %v6525_v32 }
 0x54c   : > { %v6719_v39 = vand.u32 4294901760, %v17920_v43 }
 0x54d   : > { %11873 = vmatmul.mubr.f32.gmra.mrb[50].mxu1 %v6641_v25  ;;  %v20045_v25 = vand.u32 4294901760, %v17900_v10  ;;  %v6681_v37 = vand.u32 4294901760, %v6680_v41  ;;  %v17957_v41 = vsub.f32 %v6525_v32, %v17941_v28  ;;  %v20855_v32 = vld [vmem:[#allocation37_spill] sm:$0xff] }
 0x54e   : > { %11875 = vmatprep.mubr.f32.mxu1 %v6651_v55  ;;  %13220 = vmatpush3.bf16.msra.mxu1 %v20848_v61  ;;  %v17929_v61 = vsub.f32 %v6522_v18, %v17910_v57  ;;  %v17939_v55 = vsub.f32 %v6523_v38, %v17922_v35  ;;  %v20852_v18 = vld [vmem:[#allocation89_spill] sm:$0xff]  ;;  %v6720_v17 = vsub.f32 %v17920_v43, %v6719_v39 }
 0x54f   : > { %13222 = vmatprep.subr.bf16.mxu1 %v20851_v51  ;;  %v6700_v3 = vsub.f32 %v17900_v10, %v20045_v25 }
 0x550   : > { %v20050_v38 = vand.u32 4294901760, %v17929_v61 }
 0x551   : > { %11876 = vmatmul.mubr.f32.gmra.mrb[52].mxu1 %v6661_v46  ;;  %v6701_v25 = vand.u32 4294901760, %v6700_v3  ;;  %v6721_v3 = vand.u32 4294901760, %v6720_v17 }
 0x552   : > { %11878 = vmatprep.mubr.f32.mxu1 %v6671_v11  ;;  %13224 = vmatpush3.bf16.msra.mxu1 %v20851_v51  ;;  %v6691_v11 = vand.u32 4294901760, %v6690_v44  ;;  %v20853_v51 = vand.u32 4294901760, %v17908_v22  ;;  %v20051_v44 = vand.u32 4294901760, %v17939_v55 }
 0x553   : > { %13226 = vmatprep.subr.bf16.mxu1 %v20852_v18 }
 0x554   : > { %v6710_v46 = vsub.f32 %v17908_v22, %v20853_v51  ;;  %v6759_v51 = vand.u32 4294901760, %v17957_v41 }
 0x555   : > { %11879 = vmatmul.mubr.f32.gmra.mrb[54].mxu1 %v6681_v37  ;;  %v6730_v37 = vsub.f32 %v17929_v61, %v20050_v38 }
 0x556   : > { %11881 = vmatprep.mubr.f32.mxu1 %v6691_v11  ;;  %13228 = vmatpush3.bf16.msra.mxu1 %v20852_v18  ;;  %v6711_v24 = vand.u32 4294901760, %v6710_v46  ;;  %v6749_v11 = vand.u32 4294901760, %v17949_v45  ;;  %v6740_v18 = vsub.f32 %v17939_v55, %v20051_v44  ;;  %v20857_v44 = vld [vmem:[#allocation39_spill] sm:$0xff] }
 0x557   : > { %13230 = vmatprep.subr.bf16.mxu1 %v20854_v33  ;;  %v6731_v46 = vand.u32 4294901760, %v6730_v37 }
 0x558   : > { %v6750_v38 = vsub.f32 %v17949_v45, %v6749_v11 }
 0x559   : > { %11882 = vmatmul.mubr.f32.gmra.mrb[56].mxu1 %v6701_v25  ;;  %v6760_v25 = vsub.f32 %v17957_v41, %v6759_v51 }
 0x55a   : > { %11884 = vmatprep.mubr.f32.mxu1 %v6711_v24  ;;  %13232 = vmatpush3.bf16.msra.mxu1 %v20854_v33  ;;  %v6741_v24 = vand.u32 4294901760, %v6740_v18  ;;  %v20856_v33 = vld [vmem:[#allocation36_spill] sm:$0xff]  ;;  %v6751_v17 = vand.u32 4294901760, %v6750_v38  ;;  %v20860_v18 = vand.u32 4294901760, %v17814_v15 }
 0x55b   : > { %13234 = vmatprep.subr.bf16.mxu1 %v20855_v32  ;;  %v6761_v37 = vand.u32 4294901760, %v6760_v25 }
 0x55d   : > { %11885 = vmatmul.mubr.f32.gmra.mrb[58].mxu1 %v6721_v3  ;;  %v20858_v3 = vand.u32 4294901760, %v17794_v34 }
 0x55e   : > { %11887 = vmatprep.mubr.f32.mxu1 %v6731_v46  ;;  %13236 = vmatpush3.bf16.msra.mxu1 %v20855_v32  ;;  %v20859_v32 = vand.u32 4294901760, %v17808_v42  ;;  %v20861_v46 = vand.u32 4294901760, %v17819_v7 }
 0x55f   : > { %13238 = vmatprep.subr.bf16.mxu1 %v20856_v33 }
 0x561   : > { %11888 = vmatmul.mubr.f32.gmra.mrb[60].mxu1 %v6741_v24  ;;  %v20863_v24 = vld [vmem:[#allocation65_spill] sm:$0xff] }
 0x562   : > { %11890 = vmatprep.mubr.f32.mxu1 %v6751_v17  ;;  %13240 = vmatpush3.bf16.msra.mxu1 %v20856_v33  ;;  %v20872_v33 = vld [vmem:[#allocation100_spill] sm:$0xff] }
 0x563   : > { %13242 = vmatprep.subr.bf16.mxu1 %v20857_v44 }
 0x565   : > { %11891 = vmatmul.mubr.f32.gmra.mrb[62].mxu1 %v6761_v37 }
 0x566   : > { %13244 = vmatpush3.bf16.msra.mxu1 %v20857_v44  ;;  %11925 = vmatprep.mubr.f32.mxu1 %v17779_v14 }
 0x567   : > { %13246 = vmatprep.subr.bf16.mxu1 %v17201_v1 }
 0x569   : > { %11926 = vmatmul.mubr.f32.vlgmr.msra.gmra.mrb[48].mxu1 %v17788_v48 }
 0x56a   : > { %11928 = vmatprep.mubr.f32.mxu1 %v17796_v40  ;;  %13248 = vmatpush3.bf16.msra.mxu1 %v17201_v1  ;;  %v18045_v1 = vld [vmem:[%s19551_s7] sm:$0xff] }
 0x56b   : > { %13250 = vmatprep.subr.bf16.mxu1 %v17215_v0 }
 0x56d   : > { %11929 = vmatmul.mubr.f32.gmra.mrb[50].mxu1 %v17799_v5 }
 0x56e   : > { %11931 = vmatprep.mubr.f32.mxu1 %v17810_v20  ;;  %13252 = vmatpush3.bf16.msra.mxu1 %v17215_v0  ;;  %v18050_v0 = vld [vmem:[%s19551_s7 + $0x8] sm:$0xff] }
 0x56f   : > { %13254 = vmatprep.subr.bf16.mxu1 %v17229_v8 }
 0x571   : > { %11932 = vmatmul.mubr.f32.gmra.mrb[52].mxu1 %v17821_v54 }
 0x572   : > { %11934 = vmatprep.mubr.f32.mxu1 %v17823_v6  ;;  %13256 = vmatpush3.bf16.msra.mxu1 %v17229_v8  ;;  %v18055_v8 = vld [vmem:[%s19551_s7 + $0x10] sm:$0xff] }
 0x573   : > { %13258 = vmatprep.subr.bf16.mxu1 %v17243_v52 }
 0x575   : > { %11935 = vmatmul.mubr.f32.gmra.mrb[54].mxu1 %v17847_v63 }
 0x576   : > { %11937 = vmatprep.mubr.f32.mxu1 %v17859_v36  ;;  %13260 = vmatpush3.bf16.msra.mxu1 %v17243_v52  ;;  %v7953_v52 = vand.u32 4294901760, %v18045_v1 }
 0x577   : > { %13262 = vmatprep.subr.bf16.mxu1 %v17257_v56 }
 0x579   : > { %11938 = vmatmul.mubr.f32.gmra.mrb[56].mxu1 %v17876_v60 }
 0x57a   : > { %11940 = vmatprep.mubr.f32.mxu1 %v17887_v53  ;;  %13264 = vmatpush3.bf16.msra.mxu1 %v17257_v56  ;;  %v7956_v56 = vand.u32 4294901760, %v18050_v0 }
 0x57b   : > { %13266 = vmatprep.subr.bf16.mxu1 %v17261_v26 }
 0x57c   : > { %v18072_v38 = vpack.c.bf16 %v7956_v56, %v7953_v52 }
 0x57d   : > { %11941 = vmatmul.mubr.f32.gmra.mrb[58].mxu1 %v17902_v58 }
 0x57e   : > { %11943 = vmatprep.mubr.f32.mxu1 %v17910_v57  ;;  %13268 = vmatpush3.bf16.msra.mxu1 %v17261_v26  ;;  %v18063_v26 = vld [vmem:[%s19551_s7 + $0x18] sm:$0xff] }
 0x57f   : > { %13270 = vmatprep.subr.bf16.mxu1 %v17265_v29  ;;  %13374 = vmatprep.subr.bf16.mxu0 %v18072_v38 }
 0x580   : > { %13376 = vmatpush3.bf16.msra.mxu0 %v18072_v38 }
 0x581   : > { %11944 = vmatmul.mubr.f32.gmra.mrb[60].mxu1 %v17922_v35 }
 0x582   : > { %11946 = vmatprep.mubr.f32.mxu1 %v17931_v62  ;;  %13272 = vmatpush3.bf16.msra.mxu1 %v17265_v29  ;;  %v7959_v29 = vand.u32 4294901760, %v18055_v8 }
 0x583   : > { %13274 = vmatprep.subr.bf16.mxu1 %v17269_v19 }
 0x585   : > { %11947 = vmatmul.mubr.f32.gmra.mrb[62].mxu1 %v17941_v28 }
 0x586   : > { %13276 = vmatpush3.bf16.msra.mxu1 %v17269_v19  ;;  %11981 = vmatprep.mubr.f32.mxu1 %v17794_v34  ;;  %v7962_v19 = vand.u32 4294901760, %v18063_v26  ;;  %v20862_v34 = vand.u32 4294901760, %v17831_v27 }
 0x587   : > { %13278 = vmatprep.subr.bf16.mxu1 %v16958_v30 }
 0x588   : > { %v18080_v44 = vpack.c.bf16 %v7962_v19, %v7959_v29 }
 0x589   : > { %11982 = vmatmul.mubr.f32.vlgmr.msra.gmra.mrb[48].mxu1 %v17808_v42  ;;  %v20864_v42 = vand.u32 4294901760, %v17842_v2 }
 0x58a   : > { %11984 = vmatprep.mubr.f32.mxu1 %v17814_v15  ;;  %13280 = vmatpush3.bf16.msra.mxu1 %v16958_v30  ;;  %v20865_v15 = vand.u32 4294901760, %v17845_v4 }
 0x58b   : > { %13282 = vmatprep.subr.bf16.mxu1 %v16965_v50  ;;  %13378 = vmatprep.subr.bf16.mxu0 %v18080_v44 }
 0x58c   : > { %13380 = vmatpush3.bf16.msra.mxu0 %v18080_v44 }
 0x58d   : > { %11985 = vmatmul.mubr.f32.gmra.mrb[50].mxu1 %v17819_v7  ;;  %v20867_v7 = vand.u32 4294901760, %v17868_v23 }
 0x58e   : > { %11987 = vmatprep.mubr.f32.mxu1 %v17831_v27  ;;  %13284 = vmatpush3.bf16.msra.mxu1 %v16965_v50  ;;  %v20868_v27 = vand.u32 4294901760, %v17885_v31 }
 0x58f   : > { %13286 = vmatprep.subr.bf16.mxu1 %v16990_v9 }
 0x591   : > { %11988 = vmatmul.mubr.f32.gmra.mrb[52].mxu1 %v17842_v2  ;;  %v20870_v2 = vand.u32 4294901760, %v17900_v10 }
 0x592   : > { %11990 = vmatprep.mubr.f32.mxu1 %v17845_v4  ;;  %13288 = vmatpush3.bf16.msra.mxu1 %v16990_v9  ;;  %v20871_v4 = vand.u32 4294901760, %v17908_v22 }
 0x593   : > { %13290 = vmatprep.subr.bf16.mxu1 %v17014_v12 }
 0x595   : > { %11991 = vmatmul.mubr.f32.gmra.mrb[54].mxu1 %v17868_v23  ;;  %v20873_v23 = vand.u32 4294901760, %v17929_v61 }
 0x596   : > { %11993 = vmatprep.mubr.f32.mxu1 %v17885_v31  ;;  %13292 = vmatpush3.bf16.msra.mxu1 %v17014_v12  ;;  %v20874_v31 = vld [vmem:[#allocation68_spill] sm:$0xff] }
 0x597   : > { %13294 = vmatprep.subr.bf16.mxu1 %v17028_v13 }
 0x599   : > { %11994 = vmatmul.mubr.f32.gmra.mrb[56].mxu1 %v17900_v10  ;;  %v20875_v10 = vand.u32 4294901760, %v17939_v55 }
 0x59a   : > { %11996 = vmatprep.mubr.f32.mxu1 %v17908_v22  ;;  %13296 = vmatpush3.bf16.msra.mxu1 %v17028_v13  ;;  %v20876_v22 = vld [vmem:[#allocation69_spill] sm:$0xff] }
 0x59b   : > { %13298 = vmatprep.subr.bf16.mxu1 %v17112_v47 }
 0x59d   : > { %11997 = vmatmul.mubr.f32.gmra.mrb[58].mxu1 %v17920_v43 }
 0x59e   : > { %11999 = vmatprep.mubr.f32.mxu1 %v17929_v61  ;;  %13300 = vmatpush3.bf16.msra.mxu1 %v17112_v47 }
 0x59f   : > { %13302 = vmatprep.subr.bf16.mxu1 %v17122_v49 }
 0x5a1   : > { %12000 = vmatmul.mubr.f32.gmra.mrb[60].mxu1 %v17939_v55 }
 0x5a2   : > { %12002 = vmatprep.mubr.f32.mxu1 %v17949_v45  ;;  %13304 = vmatpush3.bf16.msra.mxu1 %v17122_v49 }
 0x5a3   : > { %13306 = vmatprep.subr.bf16.mxu1 %v17132_v16 }
 0x5a5   : > { %12003 = vmatmul.mubr.f32.gmra.mrb[62].mxu1 %v17957_v41 }
 0x5a6   : > { %13308 = vmatpush3.bf16.msra.mxu1 %v17132_v16  ;;  %12037 = vmatprep.mubr.f32.mxu1 %v20858_v3 }
 0x5a7   : > { %13310 = vmatprep.subr.bf16.mxu1 %v17632_v21 }
 0x5a9   : > { %12038 = vmatmul.mubr.f32.vlgmr.msra.gmra.mrb[48].mxu1 %v20859_v32 }
 0x5aa   : > { %12040 = vmatprep.mubr.f32.mxu1 %v20860_v18  ;;  %13312 = vmatpush3.bf16.msra.mxu1 %v17632_v21  ;;  %v20866_v21 = vld [vmem:[#allocation66_spill] sm:$0xff] }
 0x5ab   : > { %13314 = vmatprep.subr.bf16.mxu1 %v17643_v59 }
 0x5ad   : > { %12041 = vmatmul.mubr.f32.gmra.mrb[50].mxu1 %v20861_v46 }
 0x5ae   : > { %12043 = vmatprep.mubr.f32.mxu1 %v20862_v34  ;;  %13316 = vmatpush3.bf16.msra.mxu1 %v17643_v59  ;;  %v20869_v59 = vld [vmem:[#allocation67_spill] sm:$0xff] }
 0x5af   : > { %13318 = vmatprep.subr.bf16.mxu1 %v20863_v24 }
 0x5b1   : > { %12044 = vmatmul.mubr.f32.gmra.mrb[52].mxu1 %v20864_v42 }
 0x5b2   : > { %12046 = vmatprep.mubr.f32.mxu1 %v20865_v15  ;;  %13320 = vmatpush3.bf16.msra.mxu1 %v20863_v24 }
 0x5b3   : > { %13322 = vmatprep.subr.bf16.mxu1 %v20866_v21 }
 0x5b5   : > { %12047 = vmatmul.mubr.f32.gmra.mrb[54].mxu1 %v20867_v7 }
 0x5b6   : > { %12049 = vmatprep.mubr.f32.mxu1 %v20868_v27  ;;  %13324 = vmatpush3.bf16.msra.mxu1 %v20866_v21 }
 0x5b7   : > { %13326 = vmatprep.subr.bf16.mxu1 %v20869_v59 }
 0x5b9   : > { %12050 = vmatmul.mubr.f32.gmra.mrb[56].mxu1 %v20870_v2 }
 0x5ba   : > { %12052 = vmatprep.mubr.f32.mxu1 %v20871_v4  ;;  %13328 = vmatpush3.bf16.msra.mxu1 %v20869_v59 }
 0x5bb   : > { %13330 = vmatprep.subr.bf16.mxu1 %v20872_v33 }
 0x5bd   : > { %12053 = vmatmul.mubr.f32.gmra.mrb[58].mxu1 %v6719_v39 }
 0x5be   : > { %12055 = vmatprep.mubr.f32.mxu1 %v20873_v23  ;;  %13332 = vmatpush3.bf16.msra.mxu1 %v20872_v33 }
 0x5bf   : > { %13334 = vmatprep.subr.bf16.mxu1 %v20874_v31 }
 0x5c1   : > { %12056 = vmatmul.mubr.f32.gmra.mrb[60].mxu1 %v20875_v10 }
 0x5c2   : > { %12058 = vmatprep.mubr.f32.mxu1 %v6749_v11  ;;  %13336 = vmatpush3.bf16.msra.mxu1 %v20874_v31 }
 0x5c3   : > { %13338 = vmatprep.subr.bf16.mxu1 %v20876_v22 }
 0x5c5   : > { %12059 = vmatmul.mubr.f32.gmra.mrb[62].mxu1 %v6759_v51 }
 0x5c6   : > { %13340 = vmatpush3.bf16.msra.mxu1 %v20876_v22  ;;  %12093 = vmatprep.mubr.f32.mxu1 %v17779_v14 }
 0x5c7   : > { %13342 = vmatprep.subr.bf16.mxu1 %v16958_v30 }
 0x5c9   : > { %12094 = vmatmul.mubr.f32.vlgmr.msra.gmra.mrb[48].mxu1 %v17788_v48 }
 0x5ca   : > { %12096 = vmatprep.mubr.f32.mxu1 %v17796_v40  ;;  %13344 = vmatpush3.bf16.msra.mxu1 %v16958_v30  ;;  %v18180_v30 = vpop.permute.xlu0 %6475 }
 0x5cb   : > { %13346 = vmatprep.subr.bf16.mxu1 %v16965_v50 }
 0x5cd   : > { %12097 = vmatmul.mubr.f32.gmra.mrb[50].mxu1 %v17799_v5 }
 0x5ce   : > { %12099 = vmatprep.mubr.f32.mxu1 %v17810_v20  ;;  %13348 = vmatpush3.bf16.msra.mxu1 %v16965_v50 }
 0x5cf   : > { %13350 = vmatprep.subr.bf16.mxu1 %v16990_v9 }
 0x5d1   : > { %12100 = vmatmul.mubr.f32.gmra.mrb[52].mxu1 %v17821_v54 }
 0x5d2   : > { %12102 = vmatprep.mubr.f32.mxu1 %v17823_v6  ;;  %13352 = vmatpush3.bf16.msra.mxu1 %v16990_v9 }
 0x5d3   : > { %13354 = vmatprep.subr.bf16.mxu1 %v17014_v12 }
 0x5d5   : > { %12103 = vmatmul.mubr.f32.gmra.mrb[54].mxu1 %v17847_v63 }
 0x5d6   : > { %12105 = vmatprep.mubr.f32.mxu1 %v17859_v36  ;;  %13356 = vmatpush3.bf16.msra.mxu1 %v17014_v12 }
 0x5d7   : > { %13358 = vmatprep.subr.bf16.mxu1 %v17028_v13 }
 0x5d9   : > { %12106 = vmatmul.mubr.f32.gmra.mrb[56].mxu1 %v17876_v60 }
 0x5da   : > { %12108 = vmatprep.mubr.f32.mxu1 %v17887_v53  ;;  %13360 = vmatpush3.bf16.msra.mxu1 %v17028_v13 }
 0x5db   : > { %13362 = vmatprep.subr.bf16.mxu1 %v17112_v47 }
 0x5dd   : > { %12109 = vmatmul.mubr.f32.gmra.mrb[58].mxu1 %v17902_v58 }
 0x5de   : > { %12111 = vmatprep.mubr.f32.mxu1 %v17910_v57  ;;  %13364 = vmatpush3.bf16.msra.mxu1 %v17112_v47 }
 0x5df   : > { %13366 = vmatprep.subr.bf16.mxu1 %v17122_v49 }
 0x5e1   : > { %12112 = vmatmul.mubr.f32.gmra.mrb[60].mxu1 %v17922_v35 }
 0x5e2   : > { %12114 = vmatprep.mubr.f32.mxu1 %v17931_v62  ;;  %13368 = vmatpush3.bf16.msra.mxu1 %v17122_v49 }
 0x5e3   : > { %13370 = vmatprep.subr.bf16.mxu1 %v17132_v16 }
 0x5e5   : > { %12115 = vmatmul.mubr.f32.gmra.mrb[62].mxu1 %v17941_v28 }
 0x5e6   : > { %13372 = vmatpush3.bf16.msra.mxu1 %v17132_v16  ;;  %12149 = vmatprep.mubr.f32.mxu1 %v17779_v14 }
 0x5e9   : > { %12150 = vmatmul.mubr.f32.vlgmr.msra.gmra.mrb[48].mxu1 %v17788_v48 }
 0x5ea   : > { %12152 = vmatprep.mubr.f32.mxu1 %v17796_v40 }
 0x5ed   : > { %12153 = vmatmul.mubr.f32.gmra.mrb[50].mxu1 %v17799_v5  ;;  %v18207_v5 = vsub.f32 %v18045_v1, %v7953_v52 }
 0x5ee   : > { %12155 = vmatprep.mubr.f32.mxu1 %v17810_v20 }
 0x5f1   : > { %12156 = vmatmul.mubr.f32.gmra.mrb[52].mxu1 %v17821_v54 }
 0x5f2   : > { %12158 = vmatprep.mubr.f32.mxu1 %v17823_v6 }
 0x5f5   : > { %12159 = vmatmul.mubr.f32.gmra.mrb[54].mxu1 %v17847_v63  ;;  %v20065_v63 = vand.u32 4294901760, %v18207_v5 }
 0x5f6   : > { %12161 = vmatprep.mubr.f32.mxu1 %v17859_v36 }
 0x5f9   : > { %12162 = vmatmul.mubr.f32.gmra.mrb[56].mxu1 %v17876_v60 }
 0x5fa   : > { %12164 = vmatprep.mubr.f32.mxu1 %v17887_v53  ;;  %v8185_v53 = vsub.f32 %v18207_v5, %v20065_v63 }
 0x5fc   : > { %v18182_v50 = vpop.f32.mrb[32].mxu1  ;;  %v8186_v45 = vand.u32 4294901760, %v8185_v53 }
 0x5fd   : > { %v6479_v9 = vadd.f32 %v18182_v50, %v18180_v30  ;;  %v18186_v12 = vpop.f32.mrb[33].mxu1  ;;  %12165 = vmatmul.mubr.f32.gmra.mrb[58].mxu1 %v17902_v58 }
 0x5fe   : > { %v6478_v13 = vadd.f32 %v18180_v30, %v18186_v12  ;;  %12167 = vmatprep.mubr.f32.mxu1 %v17910_v57 }
 0x5ff   : > { %v6495_v47 = vmax.f32 %v6479_v9, 0.0 }
 0x600   : > { %v6494_v49 = vmax.f32 %v6478_v13, 0.0  ;;  %v18192_v16 = vpop.f32.mrb[34].mxu1  ;;  %v18295_v13 = vsub.f32 %v18055_v8, %v7959_v29 }
 0x601   : > { %v6481_v14 = vadd.f32 %v18192_v16, %v18180_v30  ;;  %12168 = vmatmul.mubr.f32.gmra.mrb[60].mxu1 %v17922_v35  ;;  %7889 = vrot.lane.b32.xlu1 %v6495_v47, %s14471_s24  ;;  %v18198_v48 = vpop.f32.mrb[35].mxu1  ;;  %v18212_v35 = vsub.f32 %v18050_v0, %v7956_v56 }
 0x602   : > { %v6480_v40 = vadd.f32 %v18180_v30, %v18198_v48  ;;  %12170 = vmatprep.mubr.f32.mxu1 %v17931_v62  ;;  %7887 = vrot.lane.b32.xlu0 %v6494_v49, %s14471_s24  ;;  %v20060_v49 = vand.u32 4294901760, %v18295_v13 }
 0x603   : > { %v6497_v20 = vmax.f32 %v6481_v14, 0.0  ;;  %v20063_v57 = vand.u32 4294901760, %v18212_v35  ;;  %v18290_v9 = vpack.c.bf16 %v18212_v35, %v18207_v5 }
 0x604   : > { %v6496_v54 = vmax.f32 %v6480_v40, 0.0  ;;  %v18214_v6 = vpop.f32.mrb[36].mxu1 }
 0x605   : > { %v6483_v39 = vadd.f32 %v18214_v6, %v18180_v30  ;;  %v18219_v36 = vpop.f32.mrb[37].mxu1  ;;  %12171 = vmatmul.mubr.f32.gmra.mrb[62].mxu1 %v17941_v28  ;;  %v8192_v43 = vsub.f32 %v18212_v35, %v20063_v57 }
 0x606   : > { %v6482_v60 = vadd.f32 %v18180_v30, %v18219_v36  ;;  %7893 = vrot.lane.b32.xlu0 %v6497_v20, %s14471_s24  ;;  %7891 = vrot.lane.b32.xlu1 %v6496_v54, %s14471_s24 }
 0x607   : > { %v6499_v58 = vmax.f32 %v6483_v39, 0.0  ;;  %v8193_v41 = vand.u32 4294901760, %v8192_v43 }
 0x608   : > { %v6498_v61 = vmax.f32 %v6482_v60, 0.0  ;;  %v18233_v62 = vpop.f32.mrb[38].mxu1 }
 0x609   : > { %v6485_v55 = vadd.f32 %v18233_v62, %v18180_v30  ;;  %v18237_v28 = vpop.f32.mrb[39].mxu1  ;;  %v18243_v25 = vpack.c.bf16 %v8193_v41, %v8186_v45 }
 0x60a   : > { %v6484_v11 = vadd.f32 %v18180_v30, %v18237_v28  ;;  %7897 = vrot.lane.b32.xlu0 %v6499_v58, %s14471_s24  ;;  %7895 = vrot.lane.b32.xlu1 %v6498_v61, %s14471_s24 }
 0x60b   : > { %v6501_v51 = vmax.f32 %v6485_v55, 0.0  ;;  %13382 = vmatprep.subr.bf16.mxu0 %v18243_v25 }
 0x60c   : > { %v6500_v17 = vmax.f32 %v6484_v11, 0.0  ;;  %v18245_v37 = vpop.f32.mrb[40].mxu1 }
 0x60d   : > { %v6487_v1 = vadd.f32 %v18245_v37, %v18180_v30  ;;  %v18249_v0 = vpop.f32.mrb[41].mxu1 }
 0x60e   : > { %v6486_v52 = vadd.f32 %v18180_v30, %v18249_v0  ;;  %7901 = vrot.lane.b32.xlu0 %v6501_v51, %s14471_s24  ;;  %7899 = vrot.lane.b32.xlu1 %v6500_v17, %s14471_s24 }
 0x60f   : > { %v6503_v56 = vmax.f32 %v6487_v1, 0.0 }
 0x610   : > { %v6502_v3 = vmax.f32 %v6486_v52, 0.0  ;;  %v18256_v32 = vpop.f32.mrb[42].mxu1 }
 0x611   : > { %v6489_v18 = vadd.f32 %v18256_v32, %v18180_v30  ;;  %v18260_v46 = vpop.f32.mrb[43].mxu1 }
 0x612   : > { %v6488_v34 = vadd.f32 %v18180_v30, %v18260_v46  ;;  %7905 = vrot.lane.b32.xlu0 %v6503_v56, %s14471_s24  ;;  %7903 = vrot.lane.b32.xlu1 %v6502_v3, %s14471_s24 }
 0x613   : > { %v6505_v24 = vmax.f32 %v6489_v18, 0.0 }
 0x614   : > { %v6504_v42 = vmax.f32 %v6488_v34, 0.0  ;;  %v18266_v15 = vpop.f32.mrb[44].mxu1 }
 0x615   : > { %v6491_v21 = vadd.f32 %v18266_v15, %v18180_v30  ;;  %v18270_v7 = vpop.f32.mrb[45].mxu1 }
 0x616   : > { %20877 = vst [vmem:[#allocation71_spill] sm:$0xff] %v18270_v7  ;;  %v6490_v27 = vadd.f32 %v18180_v30, %v18270_v7  ;;  %7909 = vrot.lane.b32.xlu0 %v6505_v24, %s14471_s24  ;;  %7907 = vrot.lane.b32.xlu1 %v6504_v42, %s14471_s24 }
 0x617   : > { %v6507_v59 = vmax.f32 %v6491_v21, 0.0 }
 0x618   : > { %v6506_v2 = vmax.f32 %v6490_v27, 0.0  ;;  %v18276_v4 = vpop.f32.mrb[46].mxu1 }
 0x619   : > { %20878 = vst [vmem:[#allocation72_spill] sm:$0xff] %v18276_v4  ;;  %v6493_v33 = vadd.f32 %v18276_v4, %v18180_v30  ;;  %v18280_v23 = vpop.f32.mrb[47].mxu1 }
 0x61a   : > { %20879 = vst [vmem:[#allocation73_spill] sm:$0xff] %v18280_v23  ;;  %v6492_v31 = vadd.f32 %v18180_v30, %v18280_v23  ;;  %7913 = vrot.lane.b32.xlu0 %v6507_v59, %s14471_s24  ;;  %7911 = vrot.lane.b32.xlu1 %v6506_v2, %s14471_s24  ;;  %v18300_v30 = vsub.f32 %v18063_v26, %v7962_v19 }
 0x61b   : > { %v6509_v10 = vmax.f32 %v6493_v33, 0.0  ;;  %v8199_v26 = vsub.f32 %v18295_v13, %v20060_v49 }
 0x61c   : > { %v6508_v22 = vmax.f32 %v6492_v31, 0.0  ;;  %v20059_v14 = vand.u32 4294901760, %v18300_v30 }
 0x61d   : > { %v8200_v17 = vand.u32 4294901760, %v8199_v26 }
 0x61e   : > { %7917 = vrot.lane.b32.xlu0 %v6509_v10, %s14471_s24  ;;  %7915 = vrot.lane.b32.xlu1 %v6508_v22, %s14471_s24  ;;  %v8206_v19 = vsub.f32 %v18300_v30, %v20059_v14 }
 0x620   : > { %v8207_v1 = vand.u32 4294901760, %v8206_v19 }
 0x622   : > { %v13385_v10 = vpack.c.bf16 %v8207_v1, %v8200_v17 }
 0x673   : > { %v7890_v47 = vpop.permute.xlu1 %7889 }
 0x674   : > { %v7922_v40 = vsel %vm7919_vm2, %v7890_v47, 0  ;;  %v7888_v20 = vpop.permute.xlu0 %7887 }
 0x675   : > { %v18305_v54 = vand.u32 4294901760, %v7922_v40  ;;  %v7920_v39 = vsel %vm7919_vm2, %v7888_v20, 0 }
 0x676   : > { %v18308_v8 = vand.u32 4294901760, %v7920_v39 }
 0x677   : > { %v18311_v29 = vsub.f32 %v7922_v40, %v18305_v54 }
 0x678   : > { %v18320_v60 = vsub.f32 %v7920_v39, %v18308_v8  ;;  %v7894_v53 = vpop.permute.xlu0 %7893  ;;  %v7892_v58 = vpop.permute.xlu1 %7891 }
 0x679   : > { %v20058_v43 = vand.u32 4294901760, %v18311_v29  ;;  %v7926_v61 = vsel %vm7919_vm2, %v7894_v53, 0  ;;  %v7924_v45 = vsel %vm7919_vm2, %v7892_v58, 0 }
 0x67a   : > { %v20061_v55 = vand.u32 4294901760, %v18320_v60  ;;  %v18326_v41 = vand.u32 4294901760, %v7926_v61  ;;  %v18328_v11 = vand.u32 4294901760, %v7924_v45 }
 0x67b   : > { %v8034_v51 = vsub.f32 %v18311_v29, %v20058_v43 }
 0x67c   : > { %v18334_v52 = vsub.f32 %v7926_v61, %v18326_v41  ;;  %v18337_v56 = vsub.f32 %v7924_v45, %v18328_v11  ;;  %v7898_v3 = vpop.permute.xlu0 %7897  ;;  %v7896_v18 = vpop.permute.xlu1 %7895  ;;  %v8024_v34 = vsub.f32 %v18320_v60, %v20061_v55 }
 0x67d   : > { %v7930_v24 = vsel %vm7919_vm2, %v7898_v3, 0  ;;  %v7928_v42 = vsel %vm7919_vm2, %v7896_v18, 0  ;;  %v8035_v33 = vand.u32 4294901760, %v8034_v51 }
 0x67e   : > { %v20054_v21 = vand.u32 4294901760, %v18334_v52  ;;  %v20056_v27 = vand.u32 4294901760, %v18337_v56  ;;  %v18346_v59 = vand.u32 4294901760, %v7930_v24  ;;  %v18348_v2 = vand.u32 4294901760, %v7928_v42 }
 0x67f   : > { %v8025_v31 = vand.u32 4294901760, %v8024_v34 }
 0x680   : > { %v18351_v22 = vsub.f32 %v7930_v24, %v18346_v59  ;;  %v18354_v47 = vsub.f32 %v7928_v42, %v18348_v2  ;;  %v7902_v40 = vpop.permute.xlu0 %7901  ;;  %v7900_v20 = vpop.permute.xlu1 %7899  ;;  %v8044_v39 = vsub.f32 %v18337_v56, %v20056_v27  ;;  %v8054_v26 = vsub.f32 %v18334_v52, %v20054_v21 }
 0x681   : > { %12181 = vmatprep.mubr.f32.mxu0 %v8025_v31  ;;  %v7934_v19 = vsel %vm7919_vm2, %v7902_v40, 0  ;;  %v7932_v53 = vsel %vm7919_vm2, %v7900_v20, 0 }
 0x682   : > { %v20052_v58 = vand.u32 4294901760, %v18351_v22  ;;  %v20053_v61 = vand.u32 4294901760, %v18354_v47  ;;  %v18366_v45 = vand.u32 4294901760, %v7934_v19  ;;  %v18368_v51 = vand.u32 4294901760, %v7932_v53  ;;  %12182 = vmatmul.mubr.f32.vlgmr.msra.gmra.mrb[64].mxu0 %v8035_v33 }
 0x683   : > { %13384 = vmatpush3.bf16.msra.mxu0 %v18243_v25  ;;  %v8045_v17 = vand.u32 4294901760, %v8044_v39  ;;  %v8055_v1 = vand.u32 4294901760, %v8054_v26 }
 0x684   : > { %v18372_v3 = vsub.f32 %v7934_v19, %v18366_v45  ;;  %v18375_v18 = vsub.f32 %v7932_v53, %v18368_v51  ;;  %v7906_v34 = vpop.permute.xlu0 %7905  ;;  %v7904_v24 = vpop.permute.xlu1 %7903  ;;  %v8064_v42 = vsub.f32 %v18354_v47, %v20053_v61  ;;  %v8074_v33 = vsub.f32 %v18351_v22, %v20052_v58  ;;  %13386 = vmatprep.subr.bf16.mxu0 %v13385_v10 }
 0x685   : > { %12184 = vmatprep.mubr.f32.mxu0 %v8045_v17  ;;  %v7938_v25 = vsel %vm7919_vm2, %v7906_v34, 0  ;;  %v7936_v31 = vsel %vm7919_vm2, %v7904_v24, 0 }
 0x686   : > { %v20057_v40 = vand.u32 4294901760, %v18372_v3  ;;  %v20055_v20 = vand.u32 4294901760, %v18375_v18  ;;  %v18387_v39 = vand.u32 4294901760, %v7938_v25  ;;  %v18389_v26 = vand.u32 4294901760, %v7936_v31  ;;  %12185 = vmatmul.mubr.f32.gmra.mrb[66].mxu0 %v8055_v1 }
 0x687   : > { %v8065_v19 = vand.u32 4294901760, %v8064_v42  ;;  %v8075_v53 = vand.u32 4294901760, %v8074_v33  ;;  %13388 = vmatpush3.bf16.msra.mxu0 %v13385_v10 }
 0x688   : > { %v18392_v58 = vsub.f32 %v7938_v25, %v18387_v39  ;;  %v18395_v17 = vsub.f32 %v7936_v31, %v18389_v26  ;;  %v7910_v34 = vpop.permute.xlu0 %7909  ;;  %v7908_v24 = vpop.permute.xlu1 %7907  ;;  %v8084_v61 = vsub.f32 %v18375_v18, %v20055_v20  ;;  %v8094_v21 = vsub.f32 %v18372_v3, %v20057_v40  ;;  %13390 = vmatprep.subr.bf16.mxu0 %v18290_v9 }
 0x689   : > { %12187 = vmatprep.mubr.f32.mxu0 %v8065_v19  ;;  %v7942_v10 = vsel %vm7919_vm2, %v7910_v34, 0  ;;  %v7940_v1 = vsel %vm7919_vm2, %v7908_v24, 0 }
 0x68a   : > { %v20064_v42 = vand.u32 4294901760, %v18392_v58  ;;  %v20062_v33 = vand.u32 4294901760, %v18395_v17  ;;  %v18408_v25 = vand.u32 4294901760, %v7942_v10  ;;  %v18410_v31 = vand.u32 4294901760, %v7940_v1  ;;  %12188 = vmatmul.mubr.f32.gmra.mrb[68].mxu0 %v8075_v53 }
 0x68b   : > { %v8085_v20 = vand.u32 4294901760, %v8084_v61  ;;  %v8095_v27 = vand.u32 4294901760, %v8094_v21 }
 0x68c   : > { %v18413_v40 = vsub.f32 %v7942_v10, %v18408_v25  ;;  %v18416_v19 = vsub.f32 %v7940_v1, %v18410_v31  ;;  %v7914_v34 = vpop.permute.xlu0 %7913  ;;  %v7912_v43 = vpop.permute.xlu1 %7911  ;;  %v8104_v24 = vsub.f32 %v18395_v17, %v20062_v33  ;;  %v8114_v14 = vsub.f32 %v18392_v58, %v20064_v42 }
 0x68d   : > { %12190 = vmatprep.mubr.f32.mxu0 %v8085_v20  ;;  %v7946_v61 = vsel %vm7919_vm2, %v7914_v34, 0  ;;  %v7944_v21 = vsel %vm7919_vm2, %v7912_v43, 0 }
 0x68e   : > { %v20070_v53 = vand.u32 4294901760, %v18413_v40  ;;  %v20068_v10 = vand.u32 4294901760, %v18416_v19  ;;  %v18428_v1 = vand.u32 4294901760, %v7946_v61  ;;  %v18430_v49 = vand.u32 4294901760, %v7944_v21  ;;  %12191 = vmatmul.mubr.f32.gmra.mrb[70].mxu0 %v8095_v27 }
 0x68f   : > { %v8105_v55 = vand.u32 4294901760, %v8104_v24  ;;  %v8115_v33 = vand.u32 4294901760, %v8114_v14 }
 0x690   : > { %v18433_v57 = vsub.f32 %v7946_v61, %v18428_v1  ;;  %v18436_v20 = vsub.f32 %v7944_v21, %v18430_v49  ;;  %v7918_v34 = vpop.permute.xlu0 %7917  ;;  %v7916_v42 = vpop.permute.xlu1 %7915  ;;  %v8124_v43 = vsub.f32 %v18416_v19, %v20068_v10  ;;  %v8134_v63 = vsub.f32 %v18413_v40, %v20070_v53 }
 0x691   : > { %12193 = vmatprep.mubr.f32.mxu0 %v8105_v55  ;;  %v7950_v27 = vsel %vm7919_vm2, %v7918_v34, 0  ;;  %v7948_v14 = vsel %vm7919_vm2, %v7916_v42, 0 }
 0x692   : > { %v20072_v24 = vand.u32 4294901760, %v18433_v57  ;;  %v20071_v61 = vand.u32 4294901760, %v18436_v20  ;;  %v18448_v21 = vand.u32 4294901760, %v7950_v27  ;;  %v18450_v23 = vand.u32 4294901760, %v7948_v14  ;;  %12194 = vmatmul.mubr.f32.gmra.mrb[72].mxu0 %v8115_v33 }
 0x693   : > { %v8125_v4 = vand.u32 4294901760, %v8124_v43  ;;  %v8135_v10 = vand.u32 4294901760, %v8134_v63 }
 0x694   : > { %v18453_v7 = vsub.f32 %v7950_v27, %v18448_v21  ;;  %v18456_v55 = vsub.f32 %v7948_v14, %v18450_v23  ;;  %v8144_v42 = vsub.f32 %v18436_v20, %v20071_v61  ;;  %v8154_v34 = vsub.f32 %v18433_v57, %v20072_v24 }
 0x695   : > { %12196 = vmatprep.mubr.f32.mxu0 %v8125_v4  ;;  %v13393_v4 = vpack.c.bf16 %v18300_v30, %v18295_v13 }
 0x696   : > { %v8173_v53 = vand.u32 4294901760, %v18453_v7  ;;  %v8163_v33 = vand.u32 4294901760, %v18456_v55  ;;  %12197 = vmatmul.mubr.f32.gmra.mrb[74].mxu0 %v8135_v10  ;;  %v8145_v63 = vand.u32 4294901760, %v8144_v42  ;;  %v8155_v43 = vand.u32 4294901760, %v8154_v34 }
 0x697   : > { %v7812_v10 = vmul.f32 %v18186_v12, %v18186_v12 }
 0x698   : > { %12199 = vmatprep.mubr.f32.mxu0 %v8145_v63  ;;  %v8164_v27 = vsub.f32 %v18456_v55, %v8163_v33  ;;  %v8174_v14 = vsub.f32 %v18453_v7, %v8173_v53  ;;  %v7815_v63 = vmul.f32 %v18192_v16, %v18192_v16  ;;  %v7817_v16 = vmul.f32 %v18214_v6, %v18214_v6 }
 0x69a   : > { %12200 = vmatmul.mubr.f32.gmra.mrb[76].mxu0 %v8155_v43  ;;  %v8165_v61 = vand.u32 4294901760, %v8164_v27  ;;  %v8175_v24 = vand.u32 4294901760, %v8174_v14 }
 0x69c   : > { %12202 = vmatprep.mubr.f32.mxu0 %v8165_v61 }
 0x69e   : > { %12203 = vmatmul.mubr.f32.gmra.mrb[78].mxu0 %v8175_v24 }
 0x69f   : > { %12213 = vmatprep.mubr.f32.mxu0 %v18308_v8 }
 0x6a2   : > { %12214 = vmatmul.mubr.f32.vlgmr.msra.gmra.mrb[64].mxu0 %v18305_v54 }
 0x6a3   : > { %13392 = vmatpush3.bf16.msra.mxu0 %v18290_v9  ;;  %12216 = vmatprep.mubr.f32.mxu0 %v18328_v11  ;;  %v7813_v9 = vmul.f32 %v18182_v50, %v18182_v50  ;;  %v7814_v50 = vmul.f32 %v18198_v48, %v18198_v48  ;;  %v7816_v48 = vmul.f32 %v18219_v36, %v18219_v36 }
 0x6a4   : > { %13394 = vmatprep.subr.bf16.mxu0 %v13393_v4  ;;  %v7819_v36 = vmul.f32 %v18233_v62, %v18233_v62  ;;  %v7821_v62 = vmul.f32 %v18245_v37, %v18245_v37  ;;  %v7823_v37 = vmul.f32 %v18256_v32, %v18256_v32  ;;  %v7825_v32 = vmul.f32 %v18266_v15, %v18266_v15 }
 0x6a6   : > { %12217 = vmatmul.mubr.f32.gmra.mrb[66].mxu0 %v18326_v41 }
 0x6a7   : > { %12219 = vmatprep.mubr.f32.mxu0 %v18348_v2  ;;  %13396 = vmatpush3.bf16.msra.mxu0 %v13393_v4 }
 0x6a8   : > { %13398 = vmatprep.subr.bf16.mxu0 %v18072_v38 }
 0x6aa   : > { %12220 = vmatmul.mubr.f32.gmra.mrb[68].mxu0 %v18346_v59 }
 0x6ab   : > { %12222 = vmatprep.mubr.f32.mxu0 %v18368_v51 }
 0x6ae   : > { %12223 = vmatmul.mubr.f32.gmra.mrb[70].mxu0 %v18366_v45 }
 0x6af   : > { %12225 = vmatprep.mubr.f32.mxu0 %v18389_v26 }
 0x6b2   : > { %12226 = vmatmul.mubr.f32.gmra.mrb[72].mxu0 %v18387_v39 }
 0x6b3   : > { %12228 = vmatprep.mubr.f32.mxu0 %v18410_v31 }
 0x6b6   : > { %12229 = vmatmul.mubr.f32.gmra.mrb[74].mxu0 %v18408_v25 }
 0x6b7   : > { %12231 = vmatprep.mubr.f32.mxu0 %v18430_v49 }
 0x6ba   : > { %12232 = vmatmul.mubr.f32.gmra.mrb[76].mxu0 %v18428_v1 }
 0x6bb   : > { %12234 = vmatprep.mubr.f32.mxu0 %v18450_v23 }
 0x6bc   : > { %v12151_v24 = vpop.f32.mrb[48].mxu1 }
 0x6bd   : > { %v7829_v61 = vsub.f32 %v7813_v9, %v12151_v24  ;;  %v7718_v42 = vpop.f32.mrb[49].mxu1 }
 0x6be   : > { %v7828_v34 = vsub.f32 %v7812_v10, %v7718_v42  ;;  %12235 = vmatmul.mubr.f32.gmra.mrb[78].mxu0 %v18448_v21  ;;  %v20880_v42 = vand.u32 4294901760, %v18207_v5  ;;  %v7818_v5 = vmul.f32 %v18237_v28, %v18237_v28  ;;  %v7820_v28 = vmul.f32 %v18249_v0, %v18249_v0 }
 0x6bf   : > { %v7845_v43 = vmul.f32 0.5, %v7829_v61  ;;  %12245 = vmatprep.mubr.f32.mxu0 %v18320_v60  ;;  %v7822_v0 = vmul.f32 %v18260_v46, %v18260_v46 }
 0x6c0   : > { %v7844_v27 = vmul.f32 0.5, %v7828_v34  ;;  %v12154_v14 = vpop.f32.mrb[50].mxu1  ;;  %v20881_v34 = vand.u32 4294901760, %v18212_v35 }
 0x6c1   : > { %v7831_v4 = vsub.f32 %v7815_v63, %v12154_v14  ;;  %9116 = vrot.lane.b32.xlu0 %v7845_v43, %s14472_s25  ;;  %v7730_v12 = vpop.f32.mrb[51].mxu1 }
 0x6c2   : > { %v7830_v9 = vsub.f32 %v7814_v50, %v7730_v12  ;;  %12246 = vmatmul.mubr.f32.vlgmr.msra.gmra.mrb[64].mxu0 %v18311_v29  ;;  %9114 = vrot.lane.b32.xlu1 %v7844_v27, %s14472_s25  ;;  %v18515_v63 = vpack.c.bf16 %v20881_v34, %v20880_v42 }
 0x6c3   : > { %v7847_v10 = vmul.f32 0.5, %v7831_v4  ;;  %13400 = vmatpush3.bf16.msra.mxu0 %v18072_v38  ;;  %12248 = vmatprep.mubr.f32.mxu0 %v18337_v56 }
 0x6c4   : > { %v7846_v24 = vmul.f32 0.5, %v7830_v9  ;;  %v12157_v61 = vpop.f32.mrb[52].mxu1  ;;  %13402 = vmatprep.subr.bf16.mxu0 %v18080_v44 }
 0x6c5   : > { %v7833_v43 = vsub.f32 %v7817_v16, %v12157_v61  ;;  %9120 = vrot.lane.b32.xlu0 %v7847_v10, %s14472_s25  ;;  %v7742_v6 = vpop.f32.mrb[53].mxu1 }
 0x6c6   : > { %v7832_v50 = vsub.f32 %v7816_v48, %v7742_v6  ;;  %12249 = vmatmul.mubr.f32.gmra.mrb[66].mxu0 %v18334_v52  ;;  %9118 = vrot.lane.b32.xlu1 %v7846_v24, %s14472_s25 }
 0x6c7   : > { %v7849_v27 = vmul.f32 0.5, %v7833_v43  ;;  %12251 = vmatprep.mubr.f32.mxu0 %v18354_v47  ;;  %13404 = vmatpush3.bf16.msra.mxu0 %v18080_v44 }
 0x6c8   : > { %v7848_v35 = vmul.f32 0.5, %v7832_v50  ;;  %v12160_v14 = vpop.f32.mrb[54].mxu1  ;;  %13406 = vmatprep.subr.bf16.mxu0 %v18515_v63 }
 0x6c9   : > { %v7835_v4 = vsub.f32 %v7819_v36, %v12160_v14  ;;  %9124 = vrot.lane.b32.xlu0 %v7849_v27, %s14472_s25  ;;  %v7754_v12 = vpop.f32.mrb[55].mxu1 }
 0x6ca   : > { %v7834_v9 = vsub.f32 %v7818_v5, %v7754_v12  ;;  %12252 = vmatmul.mubr.f32.gmra.mrb[68].mxu0 %v18351_v22  ;;  %9122 = vrot.lane.b32.xlu1 %v7848_v35, %s14472_s25  ;;  %v20882_v35 = vld [vmem:[#allocation71_spill] sm:$0xff] }
 0x6cb   : > { %v7851_v16 = vmul.f32 0.5, %v7835_v4  ;;  %12254 = vmatprep.mubr.f32.mxu0 %v18375_v18  ;;  %v7824_v46 = vmul.f32 %v20882_v35, %v20882_v35  ;;  %v20890_v35 = vand.u32 4294901760, %v18334_v52  ;;  %v20896_v52 = vand.u32 4294901760, %v18392_v58 }
 0x6cc   : > { %v7850_v10 = vmul.f32 0.5, %v7834_v9  ;;  %v12163_v48 = vpop.f32.mrb[56].mxu1 }
 0x6cd   : > { %v7837_v24 = vsub.f32 %v7821_v62, %v12163_v48  ;;  %9128 = vrot.lane.b32.xlu0 %v7851_v16, %s14472_s25  ;;  %v7766_v61 = vpop.f32.mrb[57].mxu1  ;;  %v20883_v16 = vld [vmem:[#allocation72_spill] sm:$0xff] }
 0x6ce   : > { %v7836_v42 = vsub.f32 %v7820_v28, %v7766_v61  ;;  %12255 = vmatmul.mubr.f32.gmra.mrb[70].mxu0 %v18372_v3  ;;  %9126 = vrot.lane.b32.xlu1 %v7850_v10, %s14472_s25  ;;  %v7827_v15 = vmul.f32 %v20883_v16, %v20883_v16  ;;  %v20884_v10 = vld [vmem:[#allocation73_spill] sm:$0xff] }
 0x6cf   : > { %v7853_v34 = vmul.f32 0.5, %v7837_v24  ;;  %12257 = vmatprep.mubr.f32.mxu0 %v18395_v17  ;;  %v7826_v48 = vmul.f32 %v20884_v10, %v20884_v10  ;;  %v18777_v10 = vld [vmem:[%s19553_s9 + $0x78] sm:$0xff] }
 0x6d0   : > { %v7852_v43 = vmul.f32 0.5, %v7836_v42  ;;  %v12166_v6 = vpop.f32.mrb[58].mxu1 }
 0x6d1   : > { %v7839_v50 = vsub.f32 %v7823_v37, %v12166_v6  ;;  %9132 = vrot.lane.b32.xlu0 %v7853_v34, %s14472_s25  ;;  %v7778_v36 = vpop.f32.mrb[59].mxu1  ;;  %v20885_v6 = vand.u32 4294901760, %v18320_v60  ;;  %v20891_v60 = vand.u32 4294901760, %v18354_v47  ;;  %v20897_v47 = vand.u32 4294901760, %v18416_v19 }
 0x6d2   : > { %v7838_v27 = vsub.f32 %v7822_v0, %v7778_v36  ;;  %12258 = vmatmul.mubr.f32.gmra.mrb[72].mxu0 %v18392_v58  ;;  %9130 = vrot.lane.b32.xlu1 %v7852_v43, %s14472_s25  ;;  %v20887_v36 = vand.u32 4294901760, %v18300_v30  ;;  %v20893_v30 = vand.u32 4294901760, %v18375_v18  ;;  %v20900_v18 = vand.u32 4294901760, %v18433_v57 }
 0x6d3   : > { %v7855_v5 = vmul.f32 0.5, %v7839_v50  ;;  %12260 = vmatprep.mubr.f32.mxu0 %v18416_v19  ;;  %v20886_v50 = vand.u32 4294901760, %v18295_v13  ;;  %v20892_v13 = vand.u32 4294901760, %v18351_v22  ;;  %v20899_v22 = vand.u32 4294901760, %v18436_v20 }
 0x6d4   : > { %v7854_v14 = vmul.f32 0.5, %v7838_v27  ;;  %v12169_v4 = vpop.f32.mrb[60].mxu1 }
 0x6d5   : > { %v7841_v12 = vsub.f32 %v7825_v32, %v12169_v4  ;;  %9136 = vrot.lane.b32.xlu0 %v7855_v5, %s14472_s25  ;;  %v7790_v9 = vpop.f32.mrb[61].mxu1  ;;  %v13409_v27 = vpack.c.bf16 %v20887_v36, %v20886_v50  ;;  %v20888_v32 = vand.u32 4294901760, %v18311_v29  ;;  %v20889_v5 = vand.u32 4294901760, %v18337_v56  ;;  %v18753_v4 = vld [vmem:[%s19553_s9 + $0x68] sm:$0xff] }
 0x6d6   : > { %v7840_v62 = vsub.f32 %v7824_v46, %v7790_v9  ;;  %12261 = vmatmul.mubr.f32.gmra.mrb[74].mxu0 %v18413_v40  ;;  %9134 = vrot.lane.b32.xlu1 %v7854_v14, %s14472_s25  ;;  %v20894_v29 = vand.u32 4294901760, %v18372_v3  ;;  %v20895_v56 = vand.u32 4294901760, %v18395_v17  ;;  %v18685_v3 = vld [vmem:[%s19553_s9 + $0x38] sm:$0xff]  ;;  %v18701_v17 = vld [vmem:[%s19553_s9 + $0x40] sm:$0xff]  ;;  %v9339_v9 = vand.u32 4294901760, %v18753_v4 }
 0x6d7   : > { %v7857_v28 = vmul.f32 0.5, %v7841_v12  ;;  %12263 = vmatprep.mubr.f32.mxu0 %v18436_v20  ;;  %v20086_v19 = vand.u32 4294901760, %v18701_v17  ;;  %v18732_v20 = vld [vmem:[%s19553_s9 + $0x50] sm:$0xff]  ;;  %v18748_v14 = vld [vmem:[%s19553_s9 + $0x60] sm:$0xff] }
 0x6d8   : > { %v7856_v24 = vmul.f32 0.5, %v7840_v62  ;;  %v12172_v61 = vpop.f32.mrb[62].mxu1  ;;  %v9336_v12 = vand.u32 4294901760, %v18748_v14 }
 0x6d9   : > { %v7843_v42 = vsub.f32 %v7827_v15, %v12172_v61  ;;  %9140 = vrot.lane.b32.xlu0 %v7857_v28, %s14472_s25  ;;  %v7802_v37 = vpop.f32.mrb[63].mxu1  ;;  %v18772_v28 = vld [vmem:[%s19553_s9 + $0x70] sm:$0xff]  ;;  %v9345_v61 = vand.u32 4294901760, %v18777_v10 }
 0x6da   : > { %v7842_v34 = vsub.f32 %v7826_v48, %v7802_v37  ;;  %12264 = vmatmul.mubr.f32.gmra.mrb[76].mxu0 %v18433_v57  ;;  %9138 = vrot.lane.b32.xlu1 %v7856_v24, %s14472_s25  ;;  %v18648_v57 = vld [vmem:[%s19553_s9 + $0x10] sm:$0xff]  ;;  %v18763_v62 = vpack.c.bf16 %v9339_v9, %v9336_v12  ;;  %v18782_v48 = vld [vmem:[%s19552_s8] ss:$0 sm:$0xff]  ;;  %v9342_v24 = vand.u32 4294901760, %v18772_v28 }
 0x6db   : > { %v7859_v0 = vmul.f32 0.5, %v7843_v42  ;;  %12266 = vmatprep.mubr.f32.mxu0 %v18456_v55  ;;  %v9330_v55 = vand.u32 4294901760, %v18732_v20 }
 0x6dc   : > { %v7858_v43 = vmul.f32 0.5, %v7842_v34  ;;  %20901 = vst [vmem:[#allocation74_spill] sm:$0xff] %v18763_v62 }
 0x6dd   : > { %9144 = vrot.lane.b32.xlu0 %v7859_v0, %s14472_s25  ;;  %v18794_v0 = vpack.c.bf16 %v9345_v61, %v9342_v24 }
 0x6de   : > { %12267 = vmatmul.mubr.f32.gmra.mrb[78].mxu0 %v18453_v7  ;;  %9142 = vrot.lane.b32.xlu1 %v7858_v43, %s14472_s25 }
 0x6df   : > { %12277 = vmatprep.mubr.f32.mxu0 %v20885_v6  ;;  %20904 = vst [vmem:[#allocation11_spill] sm:$0xff] %v18794_v0 }
 0x6e2   : > { %12278 = vmatmul.mubr.f32.vlgmr.msra.gmra.mrb[64].mxu0 %v20888_v32 }
 0x6e3   : > { %13408 = vmatpush3.bf16.msra.mxu0 %v18515_v63  ;;  %12280 = vmatprep.mubr.f32.mxu0 %v20889_v5  ;;  %v20898_v63 = vand.u32 4294901760, %v18413_v40 }
 0x6e4   : > { %13410 = vmatprep.subr.bf16.mxu0 %v13409_v27 }
 0x6e6   : > { %12281 = vmatmul.mubr.f32.gmra.mrb[66].mxu0 %v20890_v35 }
 0x6e7   : > { %12283 = vmatprep.mubr.f32.mxu0 %v20891_v60  ;;  %13412 = vmatpush3.bf16.msra.mxu0 %v13409_v27 }
 0x6e8   : > { %13414 = vmatprep.subr.bf16.mxu0 %v18072_v38 }
 0x6ea   : > { %12284 = vmatmul.mubr.f32.gmra.mrb[68].mxu0 %v20892_v13 }
 0x6eb   : > { %12286 = vmatprep.mubr.f32.mxu0 %v20893_v30 }
 0x6ee   : > { %12287 = vmatmul.mubr.f32.gmra.mrb[70].mxu0 %v20894_v29 }
 0x6ef   : > { %12289 = vmatprep.mubr.f32.mxu0 %v20895_v56 }
 0x6f2   : > { %12290 = vmatmul.mubr.f32.gmra.mrb[72].mxu0 %v20896_v52 }
 0x6f3   : > { %12292 = vmatprep.mubr.f32.mxu0 %v20897_v47 }
 0x6f6   : > { %12293 = vmatmul.mubr.f32.gmra.mrb[74].mxu0 %v20898_v63 }
 0x6f7   : > { %12295 = vmatprep.mubr.f32.mxu0 %v20899_v22 }
 0x6fa   : > { %12296 = vmatmul.mubr.f32.gmra.mrb[76].mxu0 %v20900_v18 }
 0x6fb   : > { %12298 = vmatprep.mubr.f32.mxu0 %v8163_v33 }
 0x6fe   : > { %12299 = vmatmul.mubr.f32.gmra.mrb[78].mxu0 %v8173_v53 }
 0x6ff   : > { %12309 = vmatprep.mubr.f32.mxu0 %v18308_v8 }
 0x702   : > { %12310 = vmatmul.mubr.f32.vlgmr.msra.gmra.mrb[64].mxu0 %v18305_v54 }
 0x703   : > { %13416 = vmatpush3.bf16.msra.mxu0 %v18072_v38  ;;  %12312 = vmatprep.mubr.f32.mxu0 %v18328_v11  ;;  %v9276_v38 = vld [vmem:[%s19553_s9] sm:$0xff] }
 0x704   : > { %13418 = vmatprep.subr.bf16.mxu0 %v18080_v44  ;;  %v9300_v7 = vand.u32 4294901760, %v9276_v38 }
 0x706   : > { %12313 = vmatmul.mubr.f32.gmra.mrb[66].mxu0 %v18326_v41  ;;  %v18765_v16 = vsub.f32 %v9276_v38, %v9300_v7 }
 0x707   : > { %12315 = vmatprep.mubr.f32.mxu0 %v18348_v2  ;;  %13420 = vmatpush3.bf16.msra.mxu0 %v18080_v44  ;;  %v9277_v44 = vld [vmem:[%s19553_s9 + $0x8] sm:$0xff] }
 0x708   : > { %20902 = vst [vmem:[#allocation4_spill] sm:$0xff] %v18765_v16  ;;  %v20080_v42 = vand.u32 4294901760, %v18765_v16 }
 0x70a   : > { %12316 = vmatmul.mubr.f32.gmra.mrb[68].mxu0 %v18346_v59  ;;  %v9544_v43 = vsub.f32 %v18765_v16, %v20080_v42 }
 0x70b   : > { %12318 = vmatprep.mubr.f32.mxu0 %v18368_v51 }
 0x70c   : > { %v9545_v32 = vand.u32 4294901760, %v9544_v43 }
 0x70e   : > { %12319 = vmatmul.mubr.f32.gmra.mrb[70].mxu0 %v18366_v45 }
 0x70f   : > { %12321 = vmatprep.mubr.f32.mxu0 %v18389_v26 }
 0x712   : > { %12322 = vmatmul.mubr.f32.gmra.mrb[72].mxu0 %v18387_v39 }
 0x713   : > { %12324 = vmatprep.mubr.f32.mxu0 %v18410_v31 }
 0x716   : > { %12325 = vmatmul.mubr.f32.gmra.mrb[74].mxu0 %v18408_v25 }
 0x717   : > { %12327 = vmatprep.mubr.f32.mxu0 %v18430_v49 }
 0x71a   : > { %12328 = vmatmul.mubr.f32.gmra.mrb[76].mxu0 %v18428_v1 }
 0x71b   : > { %12330 = vmatprep.mubr.f32.mxu0 %v18450_v23 }
 0x71e   : > { %12331 = vmatmul.mubr.f32.gmra.mrb[78].mxu0 %v18448_v21 }
 0x71f   : > { %12341 = vmatprep.mubr.f32.mxu0 %v18308_v8  ;;  %v18659_v8 = vld [vmem:[%s19553_s9 + $0x20] sm:$0xff] }
 0x722   : > { %12342 = vmatmul.mubr.f32.vlgmr.msra.gmra.mrb[64].mxu0 %v18305_v54  ;;  %v9306_v54 = vand.u32 4294901760, %v18648_v57 }
 0x723   : > { %12344 = vmatprep.mubr.f32.mxu0 %v18328_v11 }
 0x726   : > { %12345 = vmatmul.mubr.f32.gmra.mrb[66].mxu0 %v18326_v41  ;;  %v18664_v41 = vld [vmem:[%s19553_s9 + $0x28] sm:$0xff] }
 0x727   : > { %12347 = vmatprep.mubr.f32.mxu0 %v18348_v2  ;;  %v9312_v2 = vand.u32 4294901760, %v18659_v8  ;;  %v9315_v58 = vand.u32 4294901760, %v18664_v41 }
 0x729   : > { %v18694_v40 = vpack.c.bf16 %v9315_v58, %v9312_v2 }
 0x72a   : > { %12348 = vmatmul.mubr.f32.gmra.mrb[68].mxu0 %v18346_v59 }
 0x72b   : > { %12350 = vmatprep.mubr.f32.mxu0 %v18368_v51  ;;  %v18680_v51 = vld [vmem:[%s19553_s9 + $0x30] sm:$0xff] }
 0x72e   : > { %12351 = vmatmul.mubr.f32.gmra.mrb[70].mxu0 %v18366_v45 }
 0x72f   : > { %12353 = vmatprep.mubr.f32.mxu0 %v18389_v26  ;;  %v9321_v26 = vand.u32 4294901760, %v18685_v3 }
 0x732   : > { %12354 = vmatmul.mubr.f32.gmra.mrb[72].mxu0 %v18387_v39  ;;  %v9318_v39 = vand.u32 4294901760, %v18680_v51 }
 0x733   : > { %12356 = vmatprep.mubr.f32.mxu0 %v18410_v31 }
 0x734   : > { %v18714_v31 = vpack.c.bf16 %v9321_v26, %v9318_v39 }
 0x736   : > { %12357 = vmatmul.mubr.f32.gmra.mrb[74].mxu0 %v18408_v25  ;;  %v18706_v25 = vld [vmem:[%s19553_s9 + $0x48] sm:$0xff] }
 0x737   : > { %12359 = vmatprep.mubr.f32.mxu0 %v18430_v49  ;;  %v9303_v49 = vand.u32 4294901760, %v9277_v44  ;;  %v20084_v53 = vand.u32 4294901760, %v18706_v25 }
 0x739   : > { %v18667_v59 = vpack.c.bf16 %v9303_v49, %v9300_v7  ;;  %v18767_v15 = vsub.f32 %v9277_v44, %v9303_v49 }
 0x73a   : > { %12360 = vmatmul.mubr.f32.gmra.mrb[76].mxu0 %v18428_v1  ;;  %v18724_v1 = vpack.c.bf16 %v20084_v53, %v20086_v19 }
 0x73b   : > { %12362 = vmatprep.mubr.f32.mxu0 %v18450_v23  ;;  %v18653_v23 = vld [vmem:[%s19553_s9 + $0x18] sm:$0xff]  ;;  %13422 = vmatprep.subr.bf16.mxu1 %v18667_v59  ;;  %20903 = vst [vmem:[#allocation13_spill] sm:$0xff] %v18767_v15  ;;  %v20079_v37 = vand.u32 4294901760, %v18767_v15 }
 0x73c   : > { %v9309_v11 = vand.u32 4294901760, %v18653_v23  ;;  %13424 = vmatpush3.bf16.msra.mxu1 %v18667_v59 }
 0x73d   : > { %v9551_v6 = vsub.f32 %v18767_v15, %v20079_v37 }
 0x73e   : > { %12363 = vmatmul.mubr.f32.gmra.mrb[78].mxu0 %v18448_v21  ;;  %v18675_v45 = vpack.c.bf16 %v9309_v11, %v9306_v54  ;;  %v18737_v21 = vld [vmem:[%s19553_s9 + $0x58] sm:$0xff] }
 0x73f   : > { %v9333_v33 = vand.u32 4294901760, %v18737_v21  ;;  %v9552_v5 = vand.u32 4294901760, %v9551_v6 }
 0x740   : > { %13426 = vmatprep.subr.bf16.mxu1 %v18675_v45 }
 0x741   : > { %13428 = vmatpush3.bf16.msra.mxu1 %v18675_v45  ;;  %v18743_v46 = vpack.c.bf16 %v9333_v33, %v9330_v55  ;;  %v18806_v30 = vpack.c.bf16 %v9552_v5, %v9545_v32  ;;  %v18822_v5 = vsub.f32 %v18732_v20, %v9330_v55 }
 0x742   : > { %13430 = vmatprep.subr.bf16.mxu1 %v18694_v40 }
 0x743   : > { %20905 = vst [vmem:[#allocation20_spill] sm:$0xff] %v18822_v5 }
 0x745   : > { %13432 = vmatpush3.bf16.msra.mxu1 %v18694_v40 }
 0x746   : > { %13434 = vmatprep.subr.bf16.mxu1 %v18714_v31 }
 0x749   : > { %13436 = vmatpush3.bf16.msra.mxu1 %v18714_v31 }
 0x74a   : > { %13438 = vmatprep.subr.bf16.mxu1 %v18724_v1 }
 0x74d   : > { %13440 = vmatpush3.bf16.msra.mxu1 %v18724_v1 }
 0x74e   : > { %13442 = vmatprep.subr.bf16.mxu1 %v18743_v46 }
 0x751   : > { %13444 = vmatpush3.bf16.msra.mxu1 %v18743_v46 }
 0x752   : > { %13446 = vmatprep.subr.bf16.mxu1 %v18763_v62 }
 0x755   : > { %13448 = vmatpush3.bf16.msra.mxu1 %v18763_v62 }
 0x756   : > { %13450 = vmatprep.subr.bf16.mxu1 %v18794_v0 }
 0x759   : > { %13452 = vmatpush3.bf16.msra.mxu1 %v18794_v0 }
 0x75a   : > { %13454 = vmatprep.subr.bf16.mxu1 %v18806_v30 }
 0x7f5   : > { %v12343_v34 = vpop.f32.mrb[64].mxu0 }
 0x7f6   : > { %v13613_v50 = vadd.f32 %v12343_v34, %v18782_v48  ;;  %v8988_v36 = vpop.f32.mrb[65].mxu0 }
 0x7f7   : > { %v13614_v27 = vadd.f32 %v18782_v48, %v8988_v36 }
 0x7f8   : > { %v9083_v35 = vmax.f32 %v13613_v50, 0.0 }
 0x7f9   : > { %v9082_v60 = vmax.f32 %v13614_v27, 0.0  ;;  %v12346_v13 = vpop.f32.mrb[66].mxu0 }
 0x7fa   : > { %v13615_v29 = vadd.f32 %v12346_v13, %v18782_v48  ;;  %9180 = vrot.lane.b32.xlu0 %v9083_v35, %s14473_s26  ;;  %v9000_v56 = vpop.f32.mrb[67].mxu0  ;;  %v18829_v13 = vsub.f32 %v18737_v21, %v9333_v33  ;;  %v18841_v21 = vsub.f32 %v18748_v14, %v9336_v12  ;;  %v18846_v33 = vsub.f32 %v18753_v4, %v9339_v9 }
 0x7fb   : > { %v13616_v52 = vadd.f32 %v18782_v48, %v9000_v56  ;;  %9178 = vrot.lane.b32.xlu1 %v9082_v60, %s14473_s26  ;;  %v20078_v56 = vand.u32 4294901760, %v18822_v5 }
 0x7fc   : > { %v9085_v47 = vmax.f32 %v13615_v29, 0.0  ;;  %20906 = vst [vmem:[#allocation18_spill] sm:$0xff] %v18829_v13  ;;  %v20077_v20 = vand.u32 4294901760, %v18829_v13  ;;  %20907 = vst [vmem:[#allocation26_spill] sm:$0xff] %v18841_v21  ;;  %v20076_v12 = vand.u32 4294901760, %v18841_v21 }
 0x7fd   : > { %v9084_v63 = vmax.f32 %v13616_v52, 0.0  ;;  %v12349_v22 = vpop.f32.mrb[68].mxu0  ;;  %20908 = vst [vmem:[#allocation15_spill] sm:$0xff] %v18846_v33 }
 0x7fe   : > { %v13617_v18 = vadd.f32 %v12349_v22, %v18782_v48  ;;  %9184 = vrot.lane.b32.xlu0 %v9085_v47, %s14473_s26  ;;  %v9012_v38 = vpop.f32.mrb[69].mxu0 }
 0x7ff   : > { %v13618_v44 = vadd.f32 %v18782_v48, %v9012_v38  ;;  %9182 = vrot.lane.b32.xlu1 %v9084_v63, %s14473_s26  ;;  %v9614_v63 = vsub.f32 %v18822_v5, %v20078_v56  ;;  %v9621_v38 = vsub.f32 %v18829_v13, %v20077_v20  ;;  %v20913_v56 = vld [vmem:[#allocation83_spill] sm:$0xff] }
 0x800   : > { %v9087_v7 = vmax.f32 %v13617_v18, 0.0 }
 0x801   : > { %v9086_v49 = vmax.f32 %v13618_v44, 0.0  ;;  %v12352_v34 = vpop.f32.mrb[70].mxu0  ;;  %v9615_v14 = vand.u32 4294901760, %v9614_v63  ;;  %v9622_v9 = vand.u32 4294901760, %v9621_v38 }
 0x802   : > { %v13619_v43 = vadd.f32 %v12352_v34, %v18782_v48  ;;  %9188 = vrot.lane.b32.xlu0 %v9087_v7, %s14473_s26  ;;  %v9024_v6 = vpop.f32.mrb[71].mxu0  ;;  %v20075_v7 = vand.u32 4294901760, %v18846_v33 }
 0x803   : > { %v13620_v50 = vadd.f32 %v18782_v48, %v9024_v6  ;;  %9186 = vrot.lane.b32.xlu1 %v9086_v49, %s14473_s26 }
 0x804   : > { %v9089_v36 = vmax.f32 %v13619_v43, 0.0  ;;  %v9628_v43 = vsub.f32 %v18841_v21, %v20076_v12  ;;  %v9635_v6 = vsub.f32 %v18846_v33, %v20075_v7  ;;  %v20911_v7 = vld [vmem:[#allocation12_spill] sm:$0xff] }
 0x805   : > { %v9088_v27 = vmax.f32 %v13620_v50, 0.0  ;;  %v12355_v32 = vpop.f32.mrb[72].mxu0  ;;  %v18866_v50 = vsub.f32 %v18772_v28, %v9342_v24 }
 0x806   : > { %v13621_v35 = vadd.f32 %v12355_v32, %v18782_v48  ;;  %9192 = vrot.lane.b32.xlu0 %v9089_v36, %s14473_s26  ;;  %v9036_v60 = vpop.f32.mrb[73].mxu0  ;;  %v18870_v32 = vpack.c.bf16 %v9622_v9, %v9615_v14 }
 0x807   : > { %v13622_v29 = vadd.f32 %v18782_v48, %v9036_v60  ;;  %9190 = vrot.lane.b32.xlu1 %v9088_v27, %s14473_s26  ;;  %20909 = vst [vmem:[#allocation78_spill] sm:$0xff] %v18866_v50  ;;  %v20074_v28 = vand.u32 4294901760, %v18866_v50 }
 0x808   : > { %v9091_v52 = vmax.f32 %v13621_v35, 0.0  ;;  %v18875_v35 = vsub.f32 %v18777_v10, %v9345_v61 }
 0x809   : > { %v9090_v55 = vmax.f32 %v13622_v29, 0.0  ;;  %v12358_v47 = vpop.f32.mrb[74].mxu0  ;;  %v9629_v29 = vand.u32 4294901760, %v9628_v43  ;;  %v9642_v10 = vsub.f32 %v18866_v50, %v20074_v28  ;;  %v18899_v43 = vpack.c.bf16 %v18767_v15, %v18765_v16 }
 0x80a   : > { %v13623_v22 = vadd.f32 %v12358_v47, %v18782_v48  ;;  %9196 = vrot.lane.b32.xlu0 %v9091_v52, %s14473_s26  ;;  %v9048_v18 = vpop.f32.mrb[75].mxu0  ;;  %20910 = vst [vmem:[#allocation27_spill] sm:$0xff] %v18875_v35  ;;  %v9636_v52 = vand.u32 4294901760, %v9635_v6  ;;  %v18903_v6 = vpack.c.bf16 %v18829_v13, %v18822_v5 }
 0x80b   : > { %v13624_v44 = vadd.f32 %v18782_v48, %v9048_v18  ;;  %9194 = vrot.lane.b32.xlu1 %v9090_v55, %s14473_s26  ;;  %v20073_v55 = vand.u32 4294901760, %v18875_v35  ;;  %v9643_v14 = vand.u32 4294901760, %v9642_v10 }
 0x80c   : > { %v9093_v4 = vmax.f32 %v13623_v22, 0.0  ;;  %v18881_v22 = vpack.c.bf16 %v9636_v52, %v9629_v29 }
 0x80d   : > { %v9092_v49 = vmax.f32 %v13624_v44, 0.0  ;;  %v12361_v34 = vpop.f32.mrb[76].mxu0  ;;  %v9649_v38 = vsub.f32 %v18875_v35, %v20073_v55  ;;  %v18931_v55 = vsub.f32 %v18664_v41, %v9315_v58  ;;  %v18946_v41 = vsub.f32 %v18680_v51, %v9318_v39  ;;  %v20912_v58 = vld [vmem:[#allocation50_spill] sm:$0xff]  ;;  %v20914_v39 = vld [vmem:[#allocation16_spill] sm:$0xff] }
 0x80e   : > { %v13625_v36 = vadd.f32 %v12361_v34, %v18782_v48  ;;  %9200 = vrot.lane.b32.xlu0 %v9093_v4, %s14473_s26  ;;  %v9060_v27 = vpop.f32.mrb[77].mxu0 }
 0x80f   : > { %v13626_v60 = vadd.f32 %v18782_v48, %v9060_v27  ;;  %9198 = vrot.lane.b32.xlu1 %v9092_v49, %s14473_s26  ;;  %v9650_v9 = vand.u32 4294901760, %v9649_v38  ;;  %v9117_v27 = vpop.permute.xlu0 %9116 }
 0x810   : > { %v9095_v24 = vmax.f32 %v13625_v36, 0.0  ;;  %v18911_v36 = vpack.c.bf16 %v18875_v35, %v18866_v50  ;;  %v9227_v12 = vsel %vm475_vm0, %v20911_v7, %v9117_v27  ;;  %v20915_v27 = vld [vmem:[#allocation6_spill] sm:$0xff]  ;;  %v20922_v50 = vld [vmem:[#allocation48_spill] sm:$0xff] }
 0x811   : > { %v9094_v47 = vmax.f32 %v13626_v60, 0.0  ;;  %v12364_v63 = vpop.f32.mrb[78].mxu0  ;;  %v18894_v34 = vpack.c.bf16 %v9650_v9, %v9643_v14  ;;  %v9115_v60 = vpop.permute.xlu1 %9114  ;;  %v18916_v14 = vsub.f32 %v18648_v57, %v9306_v54 }
 0x812   : > { %v13627_v61 = vadd.f32 %v12364_v63, %v18782_v48  ;;  %9204 = vrot.lane.b32.xlu0 %v9095_v24, %s14473_s26  ;;  %v9072_v18 = vpop.f32.mrb[79].mxu0  ;;  %v9226_v20 = vsel %vm475_vm0, %v20912_v58, %v9115_v60 }
 0x813   : > { %v13628_v44 = vadd.f32 %v18782_v48, %v9072_v18  ;;  %9202 = vrot.lane.b32.xlu1 %v9094_v47, %s14473_s26  ;;  %v18907_v48 = vpack.c.bf16 %v18846_v33, %v18841_v21  ;;  %v9121_v29 = vpop.permute.xlu0 %9120  ;;  %v20081_v57 = vand.u32 4294901760, %v18916_v14 }
 0x814   : > { %v9097_v4 = vmax.f32 %v13627_v61, 0.0  ;;  %v9229_v37 = vsel %vm475_vm0, %v20913_v56, %v9121_v29  ;;  %v20916_v29 = vld [vmem:[#allocation85_spill] sm:$0xff] }
 0x815   : > { %v9096_v49 = vmax.f32 %v13628_v44, 0.0  ;;  %v9119_v52 = vpop.permute.xlu1 %9118  ;;  %v9558_v7 = vsub.f32 %v18916_v14, %v20081_v57  ;;  %v20917_v57 = vld [vmem:[#allocation103_spill] sm:$0xff] }
 0x816   : > { %9208 = vrot.lane.b32.xlu0 %v9097_v4, %s14473_s26  ;;  %v18921_v4 = vsub.f32 %v18653_v23, %v9309_v11  ;;  %v20085_v11 = vand.u32 4294901760, %v18931_v55 }
 0x817   : > { %9206 = vrot.lane.b32.xlu1 %v9096_v49, %s14473_s26  ;;  %v9125_v24 = vpop.permute.xlu0 %9124  ;;  %v18926_v49 = vsub.f32 %v18659_v8, %v9312_v2  ;;  %v18951_v2 = vsub.f32 %v18685_v3, %v9321_v26  ;;  %v9228_v3 = vsel %vm475_vm0, %v20914_v39, %v9119_v52  ;;  %v20918_v52 = vld [vmem:[#allocation9_spill] sm:$0xff] }
 0x818   : > { %v20082_v54 = vand.u32 4294901760, %v18921_v4  ;;  %v9579_v56 = vsub.f32 %v18931_v55, %v20085_v11  ;;  %v9231_v60 = vsel %vm475_vm0, %v20915_v27, %v9125_v24  ;;  %v20920_v27 = vld [vmem:[#allocation106_spill] sm:$0xff]  ;;  %v20923_v24 = vld [vmem:[#allocation45_spill] sm:$0xff] }
 0x819   : > { %v9123_v47 = vpop.permute.xlu1 %9122  ;;  %v20083_v23 = vand.u32 4294901760, %v18926_v49 }
 0x81a   : > { %v9565_v51 = vsub.f32 %v18921_v4, %v20082_v54  ;;  %v9230_v58 = vsel %vm475_vm0, %v20916_v29, %v9123_v47  ;;  %v9559_v29 = vand.u32 4294901760, %v9558_v7  ;;  %v20925_v7 = vld [vmem:[#allocation24_spill] sm:$0xff] }
 0x81b   : > { %v9129_v63 = vpop.permute.xlu0 %9128  ;;  %v9572_v26 = vsub.f32 %v18926_v49, %v20083_v23  ;;  %v20919_v23 = vld [vmem:[#allocation43_spill] sm:$0xff] }
 0x81c   : > { %v18979_v54 = vsel %vm475_vm0, %v20917_v57, %v9129_v63  ;;  %v9566_v35 = vand.u32 4294901760, %v9565_v51 }
 0x81d   : > { %v9127_v10 = vpop.permute.xlu1 %9126 }
 0x81e   : > { %v18983_v39 = vsel %vm475_vm0, %v20918_v52, %v9127_v10  ;;  %v9580_v52 = vand.u32 4294901760, %v9579_v56 }
 0x81f   : > { %v9133_v61 = vpop.permute.xlu0 %9132 }
 0x820   : > { %v18987_v53 = vsel %vm475_vm0, %v20919_v23, %v9133_v61  ;;  %v9573_v23 = vand.u32 4294901760, %v9572_v26 }
 0x821   : > { %v9131_v18 = vpop.permute.xlu1 %9130 }
 0x822   : > { %v18993_v47 = vsel %vm475_vm0, %v20920_v27, %v9131_v18 }
 0x823   : > { %v9137_v38 = vpop.permute.xlu0 %9136 }
 0x824   : > { %v19002_v19 = vsel %vm475_vm0, %v20922_v50, %v9137_v38  ;;  %v20926_v50 = vand.u32 4294901760, %v18946_v41 }
 0x825   : > { %v9135_v44 = vpop.permute.xlu1 %9134 }
 0x826   : > { %v19006_v18 = vsel %vm475_vm0, %v20923_v24, %v9135_v44  ;;  %v9586_v38 = vsub.f32 %v18946_v41, %v20926_v50  ;;  %v20927_v44 = vand.u32 4294901760, %v18951_v2 }
 0x827   : > { %v9141_v9 = vpop.permute.xlu0 %9140 }
 0x828   : > { %v19016_v51 = vsel %vm475_vm0, %v20925_v7, %v9141_v9  ;;  %v9593_v56 = vsub.f32 %v18951_v2, %v20927_v44 }
 0x829   : > { %v18933_v28 = vpop.permute.xlu1 %9138 }
 0x82b   : > { %v18941_v8 = vpop.permute.xlu0 %9144 }
 0x82d   : > { %v18957_v42 = vpop.permute.xlu1 %9142 }
 0x86c   : > { %v9181_v11 = vpop.permute.xlu0 %9180 }
 0x86d   : > { %v9244_v63 = vsel %vm9242_vm6, %v9227_v12, %v9181_v11  ;;  %v9179_v57 = vpop.permute.xlu1 %9178 }
 0x86e   : > { %v18997_v10 = vsel %vm9259_vm7, %v9244_v63, 0.0  ;;  %v9243_v61 = vsel %vm9242_vm6, %v9226_v20, %v9179_v57  ;;  %v19032_v63 = vpack.c.bf16 %v9566_v35, %v9559_v29  ;;  %v20928_v57 = vand.u32 4294901760, %v18701_v17 }
 0x86f   : > { %20921 = vst [vmem:[#allocation52_spill] sm:$0xff] %v18997_v10  ;;  %v19009_v12 = vand.u32 4294901760, %v18997_v10  ;;  %v19012_v11 = vsel %vm9259_vm7, %v9243_v61, 0.0 }
 0x870   : > { %20924 = vst [vmem:[#allocation76_spill] sm:$0xff] %v19012_v11  ;;  %v19019_v20 = vand.u32 4294901760, %v19012_v11  ;;  %v9185_v26 = vpop.permute.xlu0 %9184  ;;  %v19037_v61 = vsub.f32 %v18701_v17, %v20928_v57  ;;  %v20931_v17 = vand.u32 4294901760, %v18706_v25 }
 0x871   : > { %v19029_v24 = vsub.f32 %v18997_v10, %v19009_v12  ;;  %v9246_v27 = vsel %vm9242_vm6, %v9229_v37, %v9185_v26  ;;  %v9183_v9 = vpop.permute.xlu1 %9182  ;;  %v19047_v10 = vpack.c.bf16 %v9580_v52, %v9573_v23  ;;  %v9587_v23 = vand.u32 4294901760, %v9586_v38 }
 0x872   : > { %v19041_v7 = vsub.f32 %v19012_v11, %v19019_v20  ;;  %v19044_v50 = vsel %vm9259_vm7, %v9246_v27, 0.0  ;;  %v9245_v44 = vsel %vm9242_vm6, %v9228_v3, %v9183_v9  ;;  %v19059_v26 = vsub.f32 %v18706_v25, %v20931_v17 }
 0x873   : > { %20929 = vst [vmem:[#allocation82_spill] sm:$0xff] %v19044_v50  ;;  %v20092_v37 = vand.u32 4294901760, %v19029_v24  ;;  %v19051_v35 = vand.u32 4294901760, %v19044_v50  ;;  %v19054_v29 = vsel %vm9259_vm7, %v9245_v44, 0.0  ;;  %v9594_v52 = vand.u32 4294901760, %v9593_v56 }
 0x874   : > { %20930 = vst [vmem:[#allocation53_spill] sm:$0xff] %v19054_v29  ;;  %v19062_v27 = vand.u32 4294901760, %v19054_v29  ;;  %v9189_v57 = vpop.permute.xlu0 %9188  ;;  %v20096_v3 = vand.u32 4294901760, %v19041_v7 }
 0x875   : > { %v9393_v9 = vsub.f32 %v19029_v24, %v20092_v37  ;;  %v19070_v44 = vsub.f32 %v19044_v50, %v19051_v35  ;;  %v9248_v11 = vsel %vm9242_vm6, %v9231_v60, %v9189_v57  ;;  %v9187_v25 = vpop.permute.xlu1 %9186 }
 0x876   : > { %v19076_v33 = vsub.f32 %v19054_v29, %v19062_v27  ;;  %v19079_v38 = vsel %vm9259_vm7, %v9248_v11, 0.0  ;;  %v9247_v56 = vsel %vm9242_vm6, %v9230_v58, %v9187_v25  ;;  %v9383_v37 = vsub.f32 %v19041_v7, %v20096_v3 }
 0x877   : > { %20932 = vst [vmem:[#allocation54_spill] sm:$0xff] %v19079_v38  ;;  %v19086_v50 = vand.u32 4294901760, %v19079_v38  ;;  %v19089_v60 = vsel %vm9259_vm7, %v9247_v56, 0.0  ;;  %v19097_v25 = vpack.c.bf16 %v9594_v52, %v9587_v23  ;;  %v9394_v3 = vand.u32 4294901760, %v9393_v9 }
 0x878   : > { %20933 = vst [vmem:[#allocation80_spill] sm:$0xff] %v19089_v60  ;;  %v19094_v29 = vand.u32 4294901760, %v19089_v60  ;;  %v9193_v11 = vpop.permute.xlu0 %9192  ;;  %v9384_v21 = vand.u32 4294901760, %v9383_v37  ;;  %v20100_v58 = vand.u32 4294901760, %v19076_v33  ;;  %v20934_v17 = vand.u32 4294901760, %v19070_v44 }
 0x879   : > { %v19101_v13 = vsub.f32 %v19079_v38, %v19086_v50  ;;  %v9250_v56 = vsel %vm9242_vm6, %v18979_v54, %v9193_v11  ;;  %v9191_v57 = vpop.permute.xlu1 %9190 }
 0x87a   : > { %v9413_v5 = vsub.f32 %v19070_v44, %v20934_v17  ;;  %v19110_v37 = vsub.f32 %v19089_v60, %v19094_v29  ;;  %v19113_v23 = vsel %vm9259_vm7, %v9250_v56, 0.0  ;;  %v9249_v52 = vsel %vm9242_vm6, %v18983_v39, %v9191_v57  ;;  %12397 = vmatprep.mubr.f32.mxu1 %v9384_v21 }
 0x87b   : > { %20935 = vst [vmem:[#allocation86_spill] sm:$0xff] %v19113_v23  ;;  %v9403_v54 = vsub.f32 %v19076_v33, %v20100_v58  ;;  %v19121_v9 = vand.u32 4294901760, %v19113_v23  ;;  %v19124_v17 = vsel %vm9259_vm7, %v9249_v52, 0.0  ;;  %12398 = vmatmul.mubr.f32.vlgmr.msra.gmra.mrb[64].mxu1 %v9394_v3  ;;  %v20937_v56 = vand.u32 4294901760, %v19037_v61 }
 0x87c   : > { %20936 = vst [vmem:[#allocation55_spill] sm:$0xff] %v19124_v17  ;;  %v19131_v39 = vand.u32 4294901760, %v19124_v17  ;;  %13456 = vmatpush3.bf16.msra.mxu1 %v18806_v30  ;;  %v9197_v21 = vpop.permute.xlu0 %9196  ;;  %v20938_v60 = vand.u32 4294901760, %v19059_v26  ;;  %v9414_v15 = vand.u32 4294901760, %v9413_v5  ;;  %v20939_v30 = vand.u32 4294901760, %v19101_v13 }
 0x87d   : > { %v9600_v38 = vsub.f32 %v19037_v61, %v20937_v56  ;;  %v9404_v57 = vand.u32 4294901760, %v9403_v54  ;;  %v19140_v3 = vsub.f32 %v19113_v23, %v19121_v9  ;;  %v9252_v56 = vsel %vm9242_vm6, %v18987_v53, %v9197_v21  ;;  %v9195_v11 = vpop.permute.xlu1 %9194  ;;  %13458 = vmatprep.subr.bf16.mxu1 %v19032_v63 }
 0x87e   : > { %v9607_v52 = vsub.f32 %v19059_v26, %v20938_v60  ;;  %v9433_v54 = vsub.f32 %v19101_v13, %v20939_v30  ;;  %v19150_v58 = vsub.f32 %v19124_v17, %v19131_v39  ;;  %v19153_v60 = vsel %vm9259_vm7, %v9252_v56, 0.0 }
 0x87f   : > { %20940 = vst [vmem:[#allocation56_spill] sm:$0xff] %v19153_v60  ;;  %v9251_v23 = vsel %vm9242_vm6, %v18993_v47, %v9195_v11  ;;  %12400 = vmatprep.mubr.f32.mxu1 %v9404_v57  ;;  %v20941_v53 = vand.u32 4294901760, %v19110_v37  ;;  %v19161_v5 = vand.u32 4294901760, %v19153_v60  ;;  %v20109_v17 = vand.u32 4294901760, %v19140_v3 }
 0x880   : > { %v19164_v30 = vsel %vm9259_vm7, %v9251_v23, 0.0  ;;  %12401 = vmatmul.mubr.f32.gmra.mrb[66].mxu1 %v9414_v15  ;;  %v9601_v16 = vand.u32 4294901760, %v9600_v38  ;;  %v9201_v47 = vpop.permute.xlu0 %9200  ;;  %v9434_v38 = vand.u32 4294901760, %v9433_v54  ;;  %v20945_v54 = vld [vmem:[#allocation51_spill] sm:$0xff] }
 0x881   : > { %v9423_v21 = vsub.f32 %v19110_v37, %v20941_v53  ;;  %20942 = vst [vmem:[#allocation84_spill] sm:$0xff] %v19164_v30  ;;  %v19168_v56 = vand.u32 4294901760, %v19164_v30  ;;  %13460 = vmatpush3.bf16.msra.mxu1 %v19032_v63  ;;  %v9608_v53 = vand.u32 4294901760, %v9607_v52  ;;  %v19174_v0 = vsub.f32 %v19153_v60, %v19161_v5  ;;  %v9199_v23 = vpop.permute.xlu1 %9198 }
 0x882   : > { %v9254_v15 = vsel %vm9242_vm6, %v19002_v19, %v9201_v47  ;;  %13462 = vmatprep.subr.bf16.mxu1 %v19047_v10  ;;  %v9453_v63 = vsub.f32 %v19140_v3, %v20109_v17  ;;  %v9253_v57 = vsel %vm9242_vm6, %v19006_v18, %v9199_v23  ;;  %v20944_v19 = vand.u32 4294901760, %v19150_v58 }
 0x883   : > { %v9424_v11 = vand.u32 4294901760, %v9423_v21  ;;  %v19184_v21 = vsub.f32 %v19164_v30, %v19168_v56  ;;  %v19187_v52 = vsel %vm9259_vm7, %v9254_v15, 0.0  ;;  %v9238_v60 = vsel %vm475_vm0, %v20945_v54, %v18933_v28 }
 0x884   : > { %20943 = vst [vmem:[#allocation90_spill] sm:$0xff] %v19187_v52  ;;  %v9443_v47 = vsub.f32 %v19150_v58, %v20944_v19  ;;  %v19198_v17 = vand.u32 4294901760, %v19187_v52  ;;  %v19201_v30 = vsel %vm9259_vm7, %v9253_v57, 0.0  ;;  %v20113_v15 = vand.u32 4294901760, %v19174_v0 }
 0x885   : > { %12403 = vmatprep.mubr.f32.mxu1 %v9424_v11  ;;  %20946 = vst [vmem:[#allocation57_spill] sm:$0xff] %v19201_v30  ;;  %v19205_v18 = vand.u32 4294901760, %v19201_v30  ;;  %13464 = vmatpush3.bf16.msra.mxu1 %v19047_v10  ;;  %v9205_v11 = vpop.permute.xlu0 %9204  ;;  %v20115_v19 = vand.u32 4294901760, %v19184_v21  ;;  %v13469_v62 = vpack.c.bf16 %v9608_v53, %v9601_v16  ;;  %v9454_v54 = vand.u32 4294901760, %v9453_v63  ;;  %v20948_v63 = vld [vmem:[#allocation64_spill] sm:$0xff] }
 0x886   : > { %12404 = vmatmul.mubr.f32.gmra.mrb[68].mxu1 %v9434_v38  ;;  %v9444_v23 = vand.u32 4294901760, %v9443_v47  ;;  %v19211_v28 = vsub.f32 %v19187_v52, %v19198_v17  ;;  %v9256_v57 = vsel %vm9242_vm6, %v19016_v51, %v9205_v11  ;;  %v9203_v38 = vpop.permute.xlu1 %9202  ;;  %13466 = vmatprep.subr.bf16.mxu1 %v19097_v25  ;;  %v9473_v10 = vsub.f32 %v19174_v0, %v20113_v15 }
 0x887   : > { %v19221_v47 = vsub.f32 %v19201_v30, %v19205_v18  ;;  %v19224_v16 = vsel %vm9259_vm7, %v9256_v57, 0.0  ;;  %v9255_v53 = vsel %vm9242_vm6, %v9238_v60, %v9203_v38  ;;  %v9463_v51 = vsub.f32 %v19184_v21, %v20115_v19  ;;  %v20950_v60 = vld [vmem:[#allocation10_spill] sm:$0xff] }
 0x888   : > { %20947 = vst [vmem:[#allocation58_spill] sm:$0xff] %v19224_v16  ;;  %12406 = vmatprep.mubr.f32.mxu1 %v9444_v23  ;;  %v9241_v11 = vsel %vm475_vm0, %v20948_v63, %v18941_v8  ;;  %v19234_v15 = vand.u32 4294901760, %v19224_v16  ;;  %v19237_v52 = vsel %vm9259_vm7, %v9255_v53, 0.0  ;;  %v9240_v23 = vsel %vm475_vm0, %v20950_v60, %v18957_v42 }
 0x889   : > { %20949 = vst [vmem:[#allocation88_spill] sm:$0xff] %v19237_v52  ;;  %v19244_v38 = vand.u32 4294901760, %v19237_v52  ;;  %13468 = vmatpush3.bf16.msra.mxu1 %v19097_v25  ;;  %v9209_v19 = vpop.permute.xlu0 %9208  ;;  %v9464_v8 = vand.u32 4294901760, %v9463_v51  ;;  %v9474_v30 = vand.u32 4294901760, %v9473_v10  ;;  %v20951_v42 = vand.u32 4294901760, %v19211_v28 }
 0x88a   : > { %12407 = vmatmul.mubr.f32.gmra.mrb[70].mxu1 %v9454_v54  ;;  %v19250_v53 = vsub.f32 %v19224_v16, %v19234_v15  ;;  %v9258_v54 = vsel %vm9242_vm6, %v9241_v11, %v9209_v19  ;;  %v9207_v57 = vpop.permute.xlu1 %9206  ;;  %13470 = vmatprep.subr.bf16.mxu1 %v13469_v62  ;;  %v20953_v16 = vand.u32 4294901760, %v19221_v47 }
 0x88b   : > { %v9493_v60 = vsub.f32 %v19211_v28, %v20951_v42  ;;  %v19258_v25 = vsub.f32 %v19237_v52, %v19244_v38  ;;  %v19261_v51 = vsel %vm9259_vm7, %v9258_v54, 0.0  ;;  %v9257_v63 = vsel %vm9242_vm6, %v9240_v23, %v9207_v57  ;;  %12409 = vmatprep.mubr.f32.mxu1 %v9464_v8 }
 0x88c   : > { %20952 = vst [vmem:[#allocation93_spill] sm:$0xff] %v19261_v51  ;;  %v9483_v19 = vsub.f32 %v19221_v47, %v20953_v16  ;;  %v19268_v10 = vand.u32 4294901760, %v19261_v51  ;;  %v19271_v11 = vsel %vm9259_vm7, %v9257_v63, 0.0  ;;  %v20119_v42 = vand.u32 4294901760, %v19250_v53 }
 0x88d   : > { %v19275_v52 = vand.u32 4294901760, %v19271_v11  ;;  %13472 = vmatpush3.bf16.msra.mxu1 %v13469_v62  ;;  %v9502_v57 = vand.u32 4294901760, %v19258_v25  ;;  %v9494_v16 = vand.u32 4294901760, %v9493_v60 }
 0x88e   : > { %12410 = vmatmul.mubr.f32.gmra.mrb[72].mxu1 %v9474_v30  ;;  %v9484_v54 = vand.u32 4294901760, %v9483_v19  ;;  %v19280_v23 = vsub.f32 %v19261_v51, %v19268_v10  ;;  %13474 = vmatprep.subr.bf16.mxu1 %v18870_v32  ;;  %v9513_v30 = vsub.f32 %v19250_v53, %v20119_v42 }
 0x88f   : > { %v19288_v8 = vsub.f32 %v19271_v11, %v19275_v52  ;;  %v9503_v62 = vsub.f32 %v19258_v25, %v9502_v57 }
 0x890   : > { %12412 = vmatprep.mubr.f32.mxu1 %v9484_v54  ;;  %v9532_v63 = vand.u32 4294901760, %v19280_v23  ;;  %v9514_v42 = vand.u32 4294901760, %v9513_v30  ;;  %v13489_v30 = vpack.c.bf16 %v18921_v4, %v18916_v14 }
 0x891   : > { %13476 = vmatpush3.bf16.msra.mxu1 %v18870_v32  ;;  %v9504_v19 = vand.u32 4294901760, %v9503_v62  ;;  %v9522_v60 = vand.u32 4294901760, %v19288_v8 }
 0x892   : > { %12413 = vmatmul.mubr.f32.gmra.mrb[74].mxu1 %v9494_v16  ;;  %13478 = vmatprep.subr.bf16.mxu1 %v18881_v22  ;;  %v9533_v51 = vsub.f32 %v19280_v23, %v9532_v63 }
 0x893   : > { %12415 = vmatprep.mubr.f32.mxu1 %v9504_v19  ;;  %v9523_v54 = vsub.f32 %v19288_v8, %v9522_v60 }
 0x894   : > { %v9534_v32 = vand.u32 4294901760, %v9533_v51 }
 0x895   : > { %13480 = vmatpush3.bf16.msra.mxu1 %v18881_v22  ;;  %v9524_v16 = vand.u32 4294901760, %v9523_v54  ;;  %v13493_v22 = vpack.c.bf16 %v18931_v55, %v18926_v49  ;;  %v20960_v54 = vand.u32 4294901760, %v19041_v7 }
 0x896   : > { %12416 = vmatmul.mubr.f32.gmra.mrb[76].mxu1 %v9514_v42  ;;  %13482 = vmatprep.subr.bf16.mxu1 %v18894_v34  ;;  %v20958_v42 = vld [vmem:[#allocation13_spill] sm:$0xff] }
 0x897   : > { %12418 = vmatprep.mubr.f32.mxu1 %v9524_v16  ;;  %v20959_v62 = vand.u32 4294901760, %v20958_v42  ;;  %v20961_v16 = vand.u32 4294901760, %v18916_v14  ;;  %v20968_v14 = vand.u32 4294901760, %v19110_v37  ;;  %v20971_v42 = vand.u32 4294901760, %v19101_v13 }
 0x899   : > { %13484 = vmatpush3.bf16.msra.mxu1 %v18894_v34  ;;  %v13497_v34 = vpack.c.bf16 %v18951_v2, %v18946_v41 }
 0x89a   : > { %12419 = vmatmul.mubr.f32.gmra.mrb[78].mxu1 %v9534_v32  ;;  %13486 = vmatprep.subr.bf16.mxu1 %v18899_v43  ;;  %v20962_v32 = vand.u32 4294901760, %v18921_v4  ;;  %v20969_v4 = vand.u32 4294901760, %v18946_v41  ;;  %v20976_v41 = vand.u32 4294901760, %v19184_v21 }
 0x89b   : > { %12453 = vmatprep.mubr.f32.mxu1 %v19019_v20 }
 0x89e   : > { %12454 = vmatmul.mubr.f32.vlgmr.msra.gmra.mrb[64].mxu1 %v19009_v12 }
 0x89f   : > { %13488 = vmatpush3.bf16.msra.mxu1 %v18899_v43  ;;  %12456 = vmatprep.mubr.f32.mxu1 %v19062_v27  ;;  %v13501_v43 = vpack.c.bf16 %v19059_v26, %v19037_v61 }
 0x8a0   : > { %13490 = vmatprep.subr.bf16.mxu1 %v13489_v30 }
 0x8a2   : > { %12457 = vmatmul.mubr.f32.gmra.mrb[66].mxu1 %v19051_v35 }
 0x8a3   : > { %13492 = vmatpush3.bf16.msra.mxu1 %v13489_v30  ;;  %12459 = vmatprep.mubr.f32.mxu1 %v19094_v29  ;;  %v13553_v30 = vpack.c.bf16 %v20962_v32, %v20961_v16  ;;  %v20981_v16 = vand.u32 4294901760, %v19174_v0  ;;  %v20985_v32 = vld [vmem:[#allocation15_spill] sm:$0xff] }
 0x8a4   : > { %13494 = vmatprep.subr.bf16.mxu1 %v13493_v22 }
 0x8a6   : > { %12460 = vmatmul.mubr.f32.gmra.mrb[68].mxu1 %v19086_v50 }
 0x8a7   : > { %13496 = vmatpush3.bf16.msra.mxu1 %v13493_v22  ;;  %12462 = vmatprep.mubr.f32.mxu1 %v19131_v39  ;;  %v20963_v22 = vand.u32 4294901760, %v19029_v24 }
 0x8a8   : > { %13498 = vmatprep.subr.bf16.mxu1 %v13497_v34 }
 0x8aa   : > { %12463 = vmatmul.mubr.f32.gmra.mrb[70].mxu1 %v19121_v9 }
 0x8ab   : > { %13500 = vmatpush3.bf16.msra.mxu1 %v13497_v34  ;;  %12465 = vmatprep.mubr.f32.mxu1 %v19168_v56  ;;  %v20964_v34 = vand.u32 4294901760, %v19076_v33 }
 0x8ac   : > { %13502 = vmatprep.subr.bf16.mxu1 %v13501_v43 }
 0x8ae   : > { %12466 = vmatmul.mubr.f32.gmra.mrb[72].mxu1 %v19161_v5 }
 0x8af   : > { %13504 = vmatpush3.bf16.msra.mxu1 %v13501_v43  ;;  %12468 = vmatprep.mubr.f32.mxu1 %v19205_v18  ;;  %v20965_v43 = vand.u32 4294901760, %v18926_v49  ;;  %v20973_v49 = vand.u32 4294901760, %v19037_v61  ;;  %v20982_v61 = vand.u32 4294901760, %v19221_v47 }
 0x8b0   : > { %13506 = vmatprep.subr.bf16.mxu1 %v18903_v6 }
 0x8b2   : > { %12469 = vmatmul.mubr.f32.gmra.mrb[74].mxu1 %v19198_v17 }
 0x8b3   : > { %13508 = vmatpush3.bf16.msra.mxu1 %v18903_v6  ;;  %12471 = vmatprep.mubr.f32.mxu1 %v19244_v38  ;;  %v20954_v6 = vld [vmem:[#allocation74_spill] sm:$0xff] }
 0x8b4   : > { %13510 = vmatprep.subr.bf16.mxu1 %v18907_v48 }
 0x8b6   : > { %12472 = vmatmul.mubr.f32.gmra.mrb[76].mxu1 %v19234_v15 }
 0x8b7   : > { %13512 = vmatpush3.bf16.msra.mxu1 %v18907_v48  ;;  %12474 = vmatprep.mubr.f32.mxu1 %v19275_v52  ;;  %v20955_v48 = vld [vmem:[#allocation11_spill] sm:$0xff] }
 0x8b8   : > { %13514 = vmatprep.subr.bf16.mxu1 %v18911_v36 }
 0x8ba   : > { %12475 = vmatmul.mubr.f32.gmra.mrb[78].mxu1 %v19268_v10 }
 0x8bb   : > { %13516 = vmatpush3.bf16.msra.mxu1 %v18911_v36  ;;  %12509 = vmatprep.mubr.f32.mxu1 %v19041_v7  ;;  %v20956_v36 = vld [vmem:[#allocation4_spill] sm:$0xff] }
 0x8bc   : > { %13518 = vmatprep.subr.bf16.mxu1 %v18667_v59  ;;  %v20957_v51 = vand.u32 4294901760, %v20956_v36  ;;  %v20966_v36 = vand.u32 4294901760, %v18931_v55  ;;  %v20972_v55 = vand.u32 4294901760, %v19150_v58 }
 0x8be   : > { %12510 = vmatmul.mubr.f32.vlgmr.msra.gmra.mrb[64].mxu1 %v19029_v24  ;;  %v13549_v19 = vpack.c.bf16 %v20959_v62, %v20957_v51  ;;  %v13557_v7 = vpack.c.bf16 %v20966_v36, %v20965_v43  ;;  %v20967_v51 = vand.u32 4294901760, %v19070_v44  ;;  %v20970_v24 = vand.u32 4294901760, %v18951_v2  ;;  %v20990_v43 = vld [vmem:[#allocation27_spill] sm:$0xff] }
 0x8bf   : > { %13520 = vmatpush3.bf16.msra.mxu1 %v18667_v59  ;;  %12512 = vmatprep.mubr.f32.mxu1 %v19076_v33  ;;  %v20975_v62 = vand.u32 4294901760, %v19140_v3  ;;  %v20991_v36 = vand.u32 4294901760, %v20990_v43  ;;  %v20998_v43 = vld [vmem:[#allocation55_spill] sm:$0xff] }
 0x8c0   : > { %13522 = vmatprep.subr.bf16.mxu1 %v18675_v45  ;;  %v13561_v33 = vpack.c.bf16 %v20970_v24, %v20969_v4  ;;  %v19485_v4 = vld [vmem:[%s19555_s11] ss:$0 sm:$0xff] }
 0x8c2   : > { %12513 = vmatmul.mubr.f32.gmra.mrb[66].mxu1 %v19070_v44  ;;  %v20974_v44 = vand.u32 4294901760, %v19059_v26  ;;  %v20983_v26 = vld [vmem:[#allocation26_spill] sm:$0xff] }
 0x8c3   : > { %13524 = vmatpush3.bf16.msra.mxu1 %v18675_v45  ;;  %12515 = vmatprep.mubr.f32.mxu1 %v19110_v37 }
 0x8c4   : > { %13526 = vmatprep.subr.bf16.mxu1 %v18694_v40  ;;  %v13565_v37 = vpack.c.bf16 %v20974_v44, %v20973_v49  ;;  %v20993_v49 = vld [vmem:[#allocation52_spill] sm:$0xff] }
 0x8c6   : > { %12516 = vmatmul.mubr.f32.gmra.mrb[68].mxu1 %v19101_v13  ;;  %v20977_v13 = vld [vmem:[#allocation20_spill] sm:$0xff] }
 0x8c7   : > { %13528 = vmatpush3.bf16.msra.mxu1 %v18694_v40  ;;  %12518 = vmatprep.mubr.f32.mxu1 %v19150_v58  ;;  %v20978_v2 = vand.u32 4294901760, %v20977_v13 }
 0x8c8   : > { %13530 = vmatprep.subr.bf16.mxu1 %v18714_v31 }
 0x8ca   : > { %12519 = vmatmul.mubr.f32.gmra.mrb[70].mxu1 %v19140_v3  ;;  %v20984_v3 = vand.u32 4294901760, %v20983_v26  ;;  %v20996_v26 = vld [vmem:[#allocation80_spill] sm:$0xff] }
 0x8cb   : > { %13532 = vmatpush3.bf16.msra.mxu1 %v18714_v31  ;;  %12521 = vmatprep.mubr.f32.mxu1 %v19184_v21 }
 0x8cc   : > { %13534 = vmatprep.subr.bf16.mxu1 %v18724_v1 }
 0x8ce   : > { %12522 = vmatmul.mubr.f32.gmra.mrb[72].mxu1 %v19174_v0  ;;  %v20988_v0 = vld [vmem:[#allocation78_spill] sm:$0xff] }
 0x8cf   : > { %13536 = vmatpush3.bf16.msra.mxu1 %v18724_v1  ;;  %12524 = vmatprep.mubr.f32.mxu1 %v19221_v47 }
 0x8d0   : > { %13538 = vmatprep.subr.bf16.mxu1 %v18743_v46 }
 0x8d2   : > { %12525 = vmatmul.mubr.f32.gmra.mrb[74].mxu1 %v19211_v28 }
 0x8d3   : > { %13540 = vmatpush3.bf16.msra.mxu1 %v18743_v46  ;;  %12527 = vmatprep.mubr.f32.mxu1 %v19258_v25 }
 0x8d4   : > { %13542 = vmatprep.subr.bf16.mxu1 %v20954_v6 }
 0x8d6   : > { %12528 = vmatmul.mubr.f32.gmra.mrb[76].mxu1 %v19250_v53 }
 0x8d7   : > { %13544 = vmatpush3.bf16.msra.mxu1 %v20954_v6  ;;  %12530 = vmatprep.mubr.f32.mxu1 %v19288_v8 }
 0x8d8   : > { %13546 = vmatprep.subr.bf16.mxu1 %v20955_v48 }
 0x8da   : > { %12531 = vmatmul.mubr.f32.gmra.mrb[78].mxu1 %v19280_v23 }
 0x8db   : > { %13548 = vmatpush3.bf16.msra.mxu1 %v20955_v48  ;;  %12565 = vmatprep.mubr.f32.mxu1 %v20960_v54 }
 0x8dc   : > { %13550 = vmatprep.subr.bf16.mxu1 %v13549_v19 }
 0x8de   : > { %12566 = vmatmul.mubr.f32.vlgmr.msra.gmra.mrb[64].mxu1 %v20963_v22  ;;  %v20987_v22 = vand.u32 4294901760, %v19211_v28 }
 0x8df   : > { %13552 = vmatpush3.bf16.msra.mxu1 %v13549_v19  ;;  %12568 = vmatprep.mubr.f32.mxu1 %v20964_v34  ;;  %v20979_v19 = vld [vmem:[#allocation18_spill] sm:$0xff]  ;;  %v20989_v34 = vand.u32 4294901760, %v20988_v0 }
 0x8e0   : > { %13554 = vmatprep.subr.bf16.mxu1 %v13553_v30  ;;  %v20980_v54 = vand.u32 4294901760, %v20979_v19 }
 0x8e1   : > { %v13577_v47 = vpack.c.bf16 %v20991_v36, %v20989_v34 }
 0x8e2   : > { %12569 = vmatmul.mubr.f32.gmra.mrb[66].mxu1 %v20967_v51  ;;  %v13569_v58 = vpack.c.bf16 %v20980_v54, %v20978_v2  ;;  %v20995_v2 = vld [vmem:[#allocation82_spill] sm:$0xff] }
 0x8e3   : > { %13556 = vmatpush3.bf16.msra.mxu1 %v13553_v30  ;;  %12571 = vmatprep.mubr.f32.mxu1 %v20968_v14  ;;  %v20986_v30 = vand.u32 4294901760, %v20985_v32  ;;  %v20997_v32 = vld [vmem:[#allocation53_spill] sm:$0xff] }
 0x8e4   : > { %13558 = vmatprep.subr.bf16.mxu1 %v13557_v7 }
 0x8e5   : > { %v13573_v21 = vpack.c.bf16 %v20986_v30, %v20984_v3 }
 0x8e6   : > { %12572 = vmatmul.mubr.f32.gmra.mrb[68].mxu1 %v20971_v42 }
 0x8e7   : > { %13560 = vmatpush3.bf16.msra.mxu1 %v13557_v7  ;;  %12574 = vmatprep.mubr.f32.mxu1 %v20972_v55  ;;  %v20992_v7 = vand.u32 4294901760, %v19250_v53 }
 0x8e8   : > { %13562 = vmatprep.subr.bf16.mxu1 %v13561_v33 }
 0x8ea   : > { %12575 = vmatmul.mubr.f32.gmra.mrb[70].mxu1 %v20975_v62 }
 0x8eb   : > { %13564 = vmatpush3.bf16.msra.mxu1 %v13561_v33  ;;  %12577 = vmatprep.mubr.f32.mxu1 %v20976_v41 }
 0x8ec   : > { %13566 = vmatprep.subr.bf16.mxu1 %v13565_v37 }
 0x8ee   : > { %12578 = vmatmul.mubr.f32.gmra.mrb[72].mxu1 %v20981_v16 }
 0x8ef   : > { %13568 = vmatpush3.bf16.msra.mxu1 %v13565_v37  ;;  %12580 = vmatprep.mubr.f32.mxu1 %v20982_v61  ;;  %v20994_v37 = vld [vmem:[#allocation76_spill] sm:$0xff] }
 0x8f0   : > { %13570 = vmatprep.subr.bf16.mxu1 %v13569_v58 }
 0x8f2   : > { %12581 = vmatmul.mubr.f32.gmra.mrb[74].mxu1 %v20987_v22 }
 0x8f3   : > { %13572 = vmatpush3.bf16.msra.mxu1 %v13569_v58  ;;  %12583 = vmatprep.mubr.f32.mxu1 %v9502_v57 }
 0x8f4   : > { %13574 = vmatprep.subr.bf16.mxu1 %v13573_v21 }
 0x8f6   : > { %12584 = vmatmul.mubr.f32.gmra.mrb[76].mxu1 %v20992_v7 }
 0x8f7   : > { %13576 = vmatpush3.bf16.msra.mxu1 %v13573_v21  ;;  %12586 = vmatprep.mubr.f32.mxu1 %v9522_v60 }
 0x8f8   : > { %13578 = vmatprep.subr.bf16.mxu1 %v13577_v47 }
 0x8fa   : > { %12587 = vmatmul.mubr.f32.gmra.mrb[78].mxu1 %v9532_v63 }
 0x8fb   : > { %13580 = vmatpush3.bf16.msra.mxu1 %v13577_v47  ;;  %12621 = vmatprep.mubr.f32.mxu1 %v19019_v20  ;;  %v20999_v47 = vld [vmem:[#allocation54_spill] sm:$0xff] }
 0x8fc   : > { %13582 = vmatprep.subr.bf16.mxu1 %v18667_v59 }
 0x8fe   : > { %12622 = vmatmul.mubr.f32.vlgmr.msra.gmra.mrb[64].mxu1 %v19009_v12 }
 0x8ff   : > { %13584 = vmatpush3.bf16.msra.mxu1 %v18667_v59  ;;  %12624 = vmatprep.mubr.f32.mxu1 %v19062_v27  ;;  %v14474_v59 = vmov 0  }
 0x900   : > { %13586 = vmatprep.subr.bf16.mxu1 %v18675_v45  ;;  %14459 = vset.pattern.permute.xlu0 %v14474_v59 }
 0x901   : > { %14460 = vset.pattern.permute.xlu1 %v14474_v59 }
 0x902   : > { %12625 = vmatmul.mubr.f32.gmra.mrb[66].mxu1 %v19051_v35 }
 0x903   : > { %13588 = vmatpush3.bf16.msra.mxu1 %v18675_v45  ;;  %12627 = vmatprep.mubr.f32.mxu1 %v19094_v29  ;;  %v10801_v45 = vld [vmem:[#allocation2] ss:$0 sm:$0xff] }
 0x904   : > { %13590 = vmatprep.subr.bf16.mxu1 %v18694_v40 }
 0x906   : > { %12628 = vmatmul.mubr.f32.gmra.mrb[68].mxu1 %v19086_v50 }
 0x907   : > { %13592 = vmatpush3.bf16.msra.mxu1 %v18694_v40  ;;  %12630 = vmatprep.mubr.f32.mxu1 %v19131_v39 }
 0x908   : > { %13594 = vmatprep.subr.bf16.mxu1 %v18714_v31 }
 0x90a   : > { %12631 = vmatmul.mubr.f32.gmra.mrb[70].mxu1 %v19121_v9 }
 0x90b   : > { %13596 = vmatpush3.bf16.msra.mxu1 %v18714_v31  ;;  %12633 = vmatprep.mubr.f32.mxu1 %v19168_v56 }
 0x90c   : > { %13598 = vmatprep.subr.bf16.mxu1 %v18724_v1 }
 0x90e   : > { %12634 = vmatmul.mubr.f32.gmra.mrb[72].mxu1 %v19161_v5 }
 0x90f   : > { %13600 = vmatpush3.bf16.msra.mxu1 %v18724_v1  ;;  %12636 = vmatprep.mubr.f32.mxu1 %v19205_v18 }
 0x910   : > { %13602 = vmatprep.subr.bf16.mxu1 %v18743_v46 }
 0x912   : > { %12637 = vmatmul.mubr.f32.gmra.mrb[74].mxu1 %v19198_v17 }
 0x913   : > { %13604 = vmatpush3.bf16.msra.mxu1 %v18743_v46  ;;  %12639 = vmatprep.mubr.f32.mxu1 %v19244_v38 }
 0x914   : > { %13606 = vmatprep.subr.bf16.mxu1 %v20954_v6 }
 0x916   : > { %12640 = vmatmul.mubr.f32.gmra.mrb[76].mxu1 %v19234_v15 }
 0x917   : > { %13608 = vmatpush3.bf16.msra.mxu1 %v20954_v6  ;;  %12642 = vmatprep.mubr.f32.mxu1 %v19275_v52 }
 0x918   : > { %13610 = vmatprep.subr.bf16.mxu1 %v20955_v48 }
 0x91a   : > { %12643 = vmatmul.mubr.f32.gmra.mrb[78].mxu1 %v19268_v10 }
 0x91b   : > { %13612 = vmatpush3.bf16.msra.mxu1 %v20955_v48  ;;  %12677 = vmatprep.mubr.f32.mxu1 %v19019_v20 }
 0x91e   : > { %12678 = vmatmul.mubr.f32.vlgmr.msra.gmra.mrb[64].mxu1 %v19009_v12 }
 0x91f   : > { %12680 = vmatprep.mubr.f32.mxu1 %v19062_v27 }
 0x922   : > { %12681 = vmatmul.mubr.f32.gmra.mrb[66].mxu1 %v19051_v35 }
 0x923   : > { %12683 = vmatprep.mubr.f32.mxu1 %v19094_v29 }
 0x926   : > { %12684 = vmatmul.mubr.f32.gmra.mrb[68].mxu1 %v19086_v50 }
 0x927   : > { %12686 = vmatprep.mubr.f32.mxu1 %v19131_v39 }
 0x92a   : > { %12687 = vmatmul.mubr.f32.gmra.mrb[70].mxu1 %v19121_v9 }
 0x92b   : > { %12689 = vmatprep.mubr.f32.mxu1 %v19168_v56 }
 0x92e   : > { %12690 = vmatmul.mubr.f32.gmra.mrb[72].mxu1 %v19161_v5 }
 0x92f   : > { %12692 = vmatprep.mubr.f32.mxu1 %v19205_v18 }
 0x932   : > { %12693 = vmatmul.mubr.f32.gmra.mrb[74].mxu1 %v19198_v17 }
 0x933   : > { %12695 = vmatprep.mubr.f32.mxu1 %v19244_v38 }
 0x936   : > { %12696 = vmatmul.mubr.f32.gmra.mrb[76].mxu1 %v19234_v15 }
 0x937   : > { %12698 = vmatprep.mubr.f32.mxu1 %v19275_v52 }
 0x93a   : > { %12699 = vmatmul.mubr.f32.gmra.mrb[78].mxu1 %v19268_v10 }
 0x9f1   : > { %v12679_v40 = vpop.f32.mrb[64].mxu1 }
 0x9f2   : > { %v13629_v31 = vadd.f32 %v12679_v40, %v10801_v45  ;;  %v10491_v1 = vpop.f32.mrb[65].mxu1 }
 0x9f3   : > { %v13630_v46 = vadd.f32 %v10801_v45, %v10491_v1  ;;  %v21000_v1 = vld [vmem:[#allocation84_spill] sm:$0xff] }
 0x9f4   : > { %10593 = vperm.xlu0 %14459, %v13629_v31  }
 0x9f5   : > { %v12682_v12 = vpop.f32.mrb[66].mxu1  ;;  %10588 = vperm.xlu1 %14460, %v13630_v46  }
 0x9f6   : > { %v13631_v20 = vadd.f32 %v12682_v12, %v10801_v45  ;;  %v10503_v50 = vpop.f32.mrb[67].mxu1  ;;  %v21001_v12 = vld [vmem:[#allocation86_spill] sm:$0xff] }
 0x9f7   : > { %v13632_v27 = vadd.f32 %v10801_v45, %v10503_v50 }
 0x9f9   : > { %v12685_v35 = vpop.f32.mrb[68].mxu1  ;;  %10603 = vperm.xlu1 %14460, %v13631_v20  }
 0x9fa   : > { %v10515_v29 = vpop.f32.mrb[69].mxu1  ;;  %v13633_v5 = vadd.f32 %v12685_v35, %v10801_v45 }
 0x9fb   : > { %v13634_v9 = vadd.f32 %v10801_v45, %v10515_v29 }
 0x9fd   : > { %v12688_v17 = vpop.f32.mrb[70].mxu1  ;;  %10608 = vperm.xlu0 %14459, %v13634_v9   ;;  %10598 = vperm.xlu1 %14460, %v13632_v27   ;;  %v21002_v9 = vld [vmem:[#allocation57_spill] sm:$0xff] }
 0x9fe   : > { %v10527_v39 = vpop.f32.mrb[71].mxu1  ;;  %v13635_v18 = vadd.f32 %v12688_v17, %v10801_v45 }
 0x9ff   : > { %v13636_v56 = vadd.f32 %v10801_v45, %v10527_v39  ;;  %v21003_v39 = vld [vmem:[#allocation56_spill] sm:$0xff] }
 0xa01   : > { %v12691_v52 = vpop.f32.mrb[72].mxu1  ;;  %10618 = vperm.xlu0 %14459, %v13636_v56   ;;  %10613 = vperm.xlu1 %14460, %v13633_v5  }
 0xa02   : > { %v10539_v15 = vpop.f32.mrb[73].mxu1  ;;  %v13637_v25 = vadd.f32 %v12691_v52, %v10801_v45 }
 0xa03   : > { %v13638_v28 = vadd.f32 %v10801_v45, %v10539_v15 }
 0xa05   : > { %v12694_v38 = vpop.f32.mrb[74].mxu1  ;;  %10628 = vperm.xlu0 %14459, %v13638_v28   ;;  %10623 = vperm.xlu1 %14460, %v13635_v18   ;;  %v21004_v28 = vld [vmem:[#allocation88_spill] sm:$0xff] }
 0xa06   : > { %v10551_v53 = vpop.f32.mrb[75].mxu1  ;;  %v13639_v8 = vadd.f32 %v12694_v38, %v10801_v45 }
 0xa07   : > { %v13640_v10 = vadd.f32 %v10801_v45, %v10551_v53  ;;  %v21005_v53 = vld [vmem:[#allocation90_spill] sm:$0xff] }
 0xa09   : > { %v12697_v57 = vpop.f32.mrb[76].mxu1  ;;  %10638 = vperm.xlu0 %14459, %v13640_v10   ;;  %10633 = vperm.xlu1 %14460, %v13637_v25  }
 0xa0a   : > { %v10563_v23 = vpop.f32.mrb[77].mxu1  ;;  %v13641_v48 = vadd.f32 %v12697_v57, %v10801_v45 }
 0xa0b   : > { %v13642_v63 = vadd.f32 %v10801_v45, %v10563_v23 }
 0xa0d   : > { %v12700_v60 = vpop.f32.mrb[78].mxu1  ;;  %10648 = vperm.xlu0 %14459, %v13642_v63   ;;  %10643 = vperm.xlu1 %14460, %v13639_v8  }
 0xa0e   : > { %v10575_v6 = vpop.f32.mrb[79].mxu1  ;;  %v13643_v14 = vadd.f32 %v12700_v60, %v10801_v45  ;;  %v21006_v60 = vld [vmem:[#allocation58_spill] sm:$0xff] }
 0xa0f   : > { %v13644_v51 = vadd.f32 %v10801_v45, %v10575_v6 }
 0xa11   : > { %10658 = vperm.xlu0 %14459, %v13644_v51   ;;  %10653 = vperm.xlu1 %14460, %v13641_v48  }
 0xa15   : > { %10663 = vperm.xlu1 %14460, %v13643_v14   ;;  %v21007_v14 = vld [vmem:[#allocation93_spill] sm:$0xff] }
 0xa73   : > { %v10594_v24 = vpop.permute.xlu0 %10593 }
 0xa74   : > { %v10673_v33 = vmul.f32 %v19485_v4, %v10594_v24  ;;  %v10589_v42 = vpop.permute.xlu1 %10588 }
 0xa75   : > { %v10672_v55 = vmul.f32 %v19485_v4, %v10589_v42 }
 0xa76   : > { %v10689_v44 = vadd.f32 %v10673_v33, %v20993_v49 }
 0xa77   : > { %v10688_v62 = vadd.f32 %v10672_v55, %v20994_v37 }
 0xa78   : > { %10705 = vst [vmem:[%s19492_s13 + $0x8] sm:$0xff] %v10689_v44  ;;  %v10604_v41 = vpop.permute.xlu1 %10603 }
 0xa79   : > { %10704 = vst [vmem:[%s19492_s13] sm:$0xff] %v10688_v62  ;;  %v10675_v13 = vmul.f32 %v19485_v4, %v10604_v41 }
 0xa7b   : > { %v10691_v19 = vadd.f32 %v10675_v13, %v20995_v2 }
 0xa7c   : > { %v10609_v54 = vpop.permute.xlu0 %10608  ;;  %v10599_v58 = vpop.permute.xlu1 %10598 }
 0xa7d   : > { %10707 = vst [vmem:[%s19492_s13 + $0x18] sm:$0xff] %v10691_v19  ;;  %v10676_v16 = vmul.f32 %v19485_v4, %v10609_v54  ;;  %v10674_v61 = vmul.f32 %v19485_v4, %v10599_v58 }
 0xa7f   : > { %v10692_v3 = vadd.f32 %v10676_v16, %v20996_v26  ;;  %v10690_v30 = vadd.f32 %v10674_v61, %v20997_v32 }
 0xa80   : > { %v10619_v21 = vpop.permute.xlu0 %10618  ;;  %v10614_v22 = vpop.permute.xlu1 %10613 }
 0xa81   : > { %10708 = vst [vmem:[%s19492_s13 + $0x20] sm:$0xff] %v10692_v3  ;;  %10706 = vst [vmem:[%s19492_s13 + $0x10] sm:$0xff] %v10690_v30  ;;  %v10678_v0 = vmul.f32 %v19485_v4, %v10619_v21  ;;  %v10677_v34 = vmul.f32 %v19485_v4, %v10614_v22 }
 0xa83   : > { %v10694_v36 = vadd.f32 %v10678_v0, %v20998_v43  ;;  %v10693_v7 = vadd.f32 %v10677_v34, %v20999_v47 }
 0xa84   : > { %v10629_v59 = vpop.permute.xlu0 %10628  ;;  %v10624_v45 = vpop.permute.xlu1 %10623 }
 0xa85   : > { %10710 = vst [vmem:[%s19492_s13 + $0x30] sm:$0xff] %v10694_v36  ;;  %10709 = vst [vmem:[%s19492_s13 + $0x28] sm:$0xff] %v10693_v7  ;;  %v10680_v40 = vmul.f32 %v19485_v4, %v10629_v59  ;;  %v10679_v31 = vmul.f32 %v19485_v4, %v10624_v45 }
 0xa87   : > { %v10696_v46 = vadd.f32 %v10680_v40, %v21000_v1  ;;  %v10695_v20 = vadd.f32 %v10679_v31, %v21001_v12 }
 0xa88   : > { %v10639_v50 = vpop.permute.xlu0 %10638  ;;  %v10634_v35 = vpop.permute.xlu1 %10633 }
 0xa89   : > { %10712 = vst [vmem:[%s19492_s13 + $0x40] sm:$0xff] %v10696_v46  ;;  %10711 = vst [vmem:[%s19492_s13 + $0x38] sm:$0xff] %v10695_v20  ;;  %v10682_v29 = vmul.f32 %v19485_v4, %v10639_v50  ;;  %v10681_v27 = vmul.f32 %v19485_v4, %v10634_v35 }
 0xa8b   : > { %v10698_v17 = vadd.f32 %v10682_v29, %v21002_v9  ;;  %v10697_v5 = vadd.f32 %v10681_v27, %v21003_v39 }
 0xa8c   : > { %v10649_v56 = vpop.permute.xlu0 %10648  ;;  %v10644_v52 = vpop.permute.xlu1 %10643 }
 0xa8d   : > { %10714 = vst [vmem:[%s19492_s13 + $0x50] sm:$0xff] %v10698_v17  ;;  %10713 = vst [vmem:[%s19492_s13 + $0x48] sm:$0xff] %v10697_v5  ;;  %v10684_v15 = vmul.f32 %v19485_v4, %v10649_v56  ;;  %v10683_v18 = vmul.f32 %v19485_v4, %v10644_v52 }
 0xa8f   : > { %v10700_v38 = vadd.f32 %v10684_v15, %v21004_v28  ;;  %v10699_v25 = vadd.f32 %v10683_v18, %v21005_v53 }
 0xa90   : > { %v10659_v10 = vpop.permute.xlu0 %10658  ;;  %v10654_v57 = vpop.permute.xlu1 %10653 }
 0xa91   : > { %10716 = vst [vmem:[%s19492_s13 + $0x60] sm:$0xff] %v10700_v38  ;;  %10715 = vst [vmem:[%s19492_s13 + $0x58] sm:$0xff] %v10699_v25  ;;  %v10686_v23 = vmul.f32 %v19485_v4, %v10659_v10  ;;  %v10685_v8 = vmul.f32 %v19485_v4, %v10654_v57 }
 0xa93   : > { %v10702_v63 = vadd.f32 %v10686_v23, %v19271_v11  ;;  %v10701_v6 = vadd.f32 %v10685_v8, %v21006_v60 }
 0xa94   : > { %v10664_v48 = vpop.permute.xlu1 %10663 }
 0xa95   : > { %10718 = vst [vmem:[%s19492_s13 + $0x70] sm:$0xff] %v10702_v63  ;;  %10717 = vst [vmem:[%s19492_s13 + $0x68] sm:$0xff] %v10701_v6  ;;  %v10687_v51 = vmul.f32 %v19485_v4, %v10664_v48 }
 0xa97   : > { %v10703_v24 = vadd.f32 %v10687_v51, %v21007_v14 }
 0xa99   : > { %10719 = vst [vmem:[%s19492_s13 + $0x78] sm:$0xff] %v10703_v24 }
 0xa9a PF: > { %s24_s23 = sadd.s32 1, %s14467_s23  }
 0xa9b   : > { %p21_p4 = scmp.ge.s32.totalorder %s24_s23, 4  }
 0xa9d   :  { %23 = sbr.rel (!%p21_p4) target bundleno = 3 (0x3), region = 101 }

</bundles_post_ra>
